<compile_context>
chip_gen: v7x
topology: tpu7x:2x2x1
jax: 0.10.0
libtpu: 0.0.40
codegen_flags: <defaults>
</compile_context>

<pallas_src>
import jax
import jax.numpy as jnp
from jax.experimental import pallas as pl
from jax.experimental.pallas import tpu as pltpu

_EPS = 1e-5
_VMEM_LIMIT = 32 << 20   # safe on every generation (v7x physical VMEM = 64 MiB)

FC_PAD = 1024            # 1000 padded to a multiple of 128 (lane-dense stores)
HEAD_PAD = 128           # [mu | logvar | zeros] packed into one lane-dense head


# ----------------------------- Pallas kernels -----------------------------

def _matmul_bn_lrelu_kernel(p_ref, w_ref, g_ref, b_ref, o_ref):
    # Matmul on the MXU with f32 accumulation (inputs are bf16).
    z = jnp.dot(p_ref[...], w_ref[...], preferred_element_type=jnp.float32)
    # Training-mode BatchNorm: biased variance over all rows (batch*spatial).
    mean = jnp.mean(z, axis=0, keepdims=True)
    var = jnp.mean(jnp.square(z - mean), axis=0, keepdims=True)
    y = (z - mean) * jax.lax.rsqrt(var + _EPS) * g_ref[...] + b_ref[...]
    # LeakyReLU(0.2)
    o_ref[...] = jnp.where(y > 0, y, 0.2 * y).astype(o_ref.dtype)


def fused_matmul_bn_lrelu(p, w, gamma, beta, out_dtype=jnp.bfloat16):
    """y = leaky_relu(batchnorm(p @ w), 0.2) in a single pallas_call."""
    M, K = p.shape
    _, C = w.shape
    return pl.pallas_call(
        _matmul_bn_lrelu_kernel,
        out_shape=jax.ShapeDtypeStruct((M, C), out_dtype),
        grid=(1,),
        in_specs=[pl.BlockSpec((M, K), lambda i: (0, 0)),
                  pl.BlockSpec((K, C), lambda i: (0, 0)),
                  pl.BlockSpec((1, C), lambda i: (0, 0)),
                  pl.BlockSpec((1, C), lambda i: (0, 0))],
        out_specs=pl.BlockSpec((M, C), lambda i: (0, 0)),
        compiler_params=pltpu.CompilerParams(vmem_limit_bytes=_VMEM_LIMIT),
    )(p, w, gamma.reshape(1, C), beta.reshape(1, C))


def _matmul_bias_kernel(x_ref, w_ref, b_ref, o_ref):
    o_ref[...] = (jnp.dot(x_ref[...], w_ref[...],
                          preferred_element_type=jnp.float32) + b_ref[...])


def fused_head(x, w, b):
    """Single lane-dense matmul producing [mu | logvar | padding]."""
    M, K = x.shape
    _, C = w.shape
    return pl.pallas_call(
        _matmul_bias_kernel,
        out_shape=jax.ShapeDtypeStruct((M, C), jnp.float32),
        grid=(1,),
        in_specs=[pl.BlockSpec((M, K), lambda i: (0, 0)),
                  pl.BlockSpec((K, C), lambda i: (0, 0)),
                  pl.BlockSpec((1, C), lambda i: (0, 0))],
        out_specs=pl.BlockSpec((M, C), lambda i: (0, 0)),
        compiler_params=pltpu.CompilerParams(vmem_limit_bytes=_VMEM_LIMIT),
    )(x, w, b.reshape(1, C))


# ------------------------------- JAX glue ----------------------------------

def im2col_nhwc(x_nhwc, kh=4, kw=4, stride=2, pad=1):
    """Conv patches for channels-last input.

    Rows ordered (n, oh, ow); columns ordered (kh, kw, c) so the channel axis
    is last (lane-friendly) and matches the pre-transposed conv weights.
    """
    N, H, W, C = x_nhwc.shape
    xp = jnp.pad(x_nhwc, ((0, 0), (pad, pad), (pad, pad), (0, 0)))
    Ho = (H + 2 * pad - kh) // stride + 1
    Wo = (W + 2 * pad - kw) // stride + 1
    cols = [xp[:, i:i + stride * Ho:stride, j:j + stride * Wo:stride, :]
            for i in range(kh) for j in range(kw)]
    p = jnp.stack(cols, axis=3)                       # (N, Ho, Wo, kh*kw, C)
    p = p.reshape(N * Ho * Wo, kh * kw * C)
    return p, Ho, Wo


def init_params(key, channel_in=1, z_size=20):
    """Parameters in PyTorch layouts: Conv2d (Cout,Cin,4,4), Linear (out,in)."""
    ks = jax.random.split(key, 7)

    def he(k, shape, fan_in):
        return jax.random.normal(k, shape, jnp.float32) * (2.0 / fan_in) ** 0.5

    return {
        "conv1_w": he(ks[0], (32, channel_in, 4, 4), channel_in * 16),
        "bn1_g": jnp.ones((32,), jnp.float32),
        "bn1_b": jnp.zeros((32,), jnp.float32),
        "conv2_w": he(ks[1], (64, 32, 4, 4), 32 * 16),
        "bn2_g": jnp.ones((64,), jnp.float32),
        "bn2_b": jnp.zeros((64,), jnp.float32),
        "fc_w": he(ks[2], (1000, 64 * 7 * 7), 64 * 7 * 7),
        "bnfc_g": jnp.ones((1000,), jnp.float32),
        "bnfc_b": jnp.zeros((1000,), jnp.float32),
        "mu_w": he(ks[3], (z_size, 1000), 1000),
        "mu_b": jax.random.normal(ks[4], (z_size,), jnp.float32) * 0.01,
        "var_w": he(ks[5], (z_size, 1000), 1000),
        "var_b": jax.random.normal(ks[6], (z_size,), jnp.float32) * 0.01,
    }


def prepare_params(p, z_size=20):
    """One-time layout prep: (kh,kw,c)-ordered conv weights, FC column
    permutation (NCHW (c,h,w) flatten -> our NHWC (h,w,c) flatten), lane
    padding, and bf16 casts for everything feeding the MXU."""

    def conv_w(w):   # (Cout, Cin, kh, kw) -> (kh*kw*Cin, Cout), bf16
        co, ci, kh, kw = w.shape
        return w.transpose(2, 3, 1, 0).reshape(kh * kw * ci, co).astype(jnp.bfloat16)

    # FC weight: permute columns so (h,w,c) flattening matches PyTorch's (c,h,w),
    # then pad 1000 -> 1024 outputs with zero columns (BN gamma/beta padded with
    # zeros keeps padded features exactly 0, and the head rows for them are 0).
    fcw = p["fc_w"].reshape(1000, 64, 7, 7).transpose(2, 3, 1, 0).reshape(7 * 7 * 64, 1000)
    fcw = jnp.pad(fcw, ((0, 0), (0, FC_PAD - 1000))).astype(jnp.bfloat16)
    g_fc = jnp.pad(p["bnfc_g"], (0, FC_PAD - 1000))
    b_fc = jnp.pad(p["bnfc_b"], (0, FC_PAD - 1000))

    # Merged heads: one (FC_PAD, 128) weight producing [mu | logvar | zeros].
    w_head = jnp.zeros((FC_PAD, HEAD_PAD), jnp.float32)
    w_head = w_head.at[:1000, :z_size].set(p["mu_w"].T)
    w_head = w_head.at[:1000, z_size:2 * z_size].set(p["var_w"].T)
    b_head = jnp.zeros((HEAD_PAD,), jnp.float32)
    b_head = b_head.at[:z_size].set(p["mu_b"])
    b_head = b_head.at[z_size:2 * z_size].set(p["var_b"])

    return {
        "w1": conv_w(p["conv1_w"]), "g1": p["bn1_g"], "b1": p["bn1_b"],
        "w2": conv_w(p["conv2_w"]), "g2": p["bn2_g"], "b2": p["bn2_b"],
        "w_fc": fcw, "g_fc": g_fc, "b_fc": b_fc,
        "w_head": w_head.astype(jnp.bfloat16), "b_head": b_head,
    }


def encoder_forward(kp, x, z_size=20):
    """x: NCHW float32 (N, 1, 28, 28) like the PyTorch module. Returns (mu, logvar)."""
    N = x.shape[0]
    # Single layout change at the module boundary; channels-last from here on.
    xh = x.transpose(0, 2, 3, 1).astype(jnp.bfloat16)          # (N, 28, 28, 1)

    # EncoderBlock 1: conv(1->32, 28->14) fused with BN + LeakyReLU(0.2)
    p1, H1, W1 = im2col_nhwc(xh)                               # (N*196, 16)
    y1 = fused_matmul_bn_lrelu(p1, kp["w1"], kp["g1"], kp["b1"])   # (N*196, 32) bf16
    y1 = y1.reshape(N, H1, W1, 32)

    # EncoderBlock 2: conv(32->64, 14->7) fused with BN + LeakyReLU(0.2)
    p2, H2, W2 = im2col_nhwc(y1)                               # (N*49, 512)
    y2 = fused_matmul_bn_lrelu(p2, kp["w2"], kp["g2"], kp["b2"])   # (N*49, 64) bf16

    # Flatten in (h, w, c) order; the FC weight columns were permuted so this
    # matches PyTorch's z.view(len(z), -1) over the NCHW tensor.
    flat = y2.reshape(N, H2 * W2 * 64)                         # (N, 3136)
    h = fused_matmul_bn_lrelu(flat, kp["w_fc"], kp["g_fc"], kp["b_fc"])  # (N, 1024) bf16

    # Merged mu/logvar head (single lane-dense matmul + bias).
    out = fused_head(h, kp["w_head"], kp["b_head"])            # (N, 128) f32
    return out[:, :z_size], out[:, z_size:2 * z_size]


if __name__ == "__main__":
    key = jax.random.PRNGKey(0)
    k_param, k_x = jax.random.split(key)

    torch_params = init_params(k_param, channel_in=1, z_size=20)
    kernel_params = prepare_params(torch_params, z_size=20)

    x = jax.random.normal(k_x, (2, 1, 28, 28), jnp.float32)    # NCHW, MNIST-sized

    mu, logvar = jax.jit(encoder_forward)(kernel_params, x)
    jax.block_until_ready((mu, logvar))
    assert mu.shape == (2, 20) and logvar.shape == (2, 20)
    assert bool(jnp.all(jnp.isfinite(mu))) and bool(jnp.all(jnp.isfinite(logvar)))
    print("KERNEL_OK")
</pallas_src>

<mosaic_0001>
module attributes {stable_mosaic.version = 11 : i64} {
  func.func @_matmul_bn_lrelu_kernel(%arg0: i32, %arg1: memref<392x16xbf16, #tpu.memory_space<vmem>>, %arg2: memref<16x32xbf16, #tpu.memory_space<vmem>>, %arg3: memref<1x32xf32, #tpu.memory_space<vmem>>, %arg4: memref<1x32xf32, #tpu.memory_space<vmem>>, %arg5: memref<392x32xbf16, #tpu.memory_space<vmem>>) attributes {dimension_semantics = [#tpu.dimension_semantics<arbitrary>], iteration_bounds = array<i64: 1>, scalar_prefetch = 0 : i64, scratch_operands = 0 : i64, tpu.core_type = #tpu.core_type<tc>, window_params = [{pipeline_mode = #tpu.pipeline_mode<synchronous>, transform_indices = @transform_0, window_bounds = array<i64: 392, 16>}, {pipeline_mode = #tpu.pipeline_mode<synchronous>, transform_indices = @transform_1, window_bounds = array<i64: 16, 32>}, {pipeline_mode = #tpu.pipeline_mode<synchronous>, transform_indices = @transform_2, window_bounds = array<i64: 1, 32>}, {pipeline_mode = #tpu.pipeline_mode<synchronous>, transform_indices = @transform_3, window_bounds = array<i64: 1, 32>}, {pipeline_mode = #tpu.pipeline_mode<synchronous>, transform_indices = @transform_4, window_bounds = array<i64: 392, 32>}]} {
    %c0 = arith.constant 0 : index
    %c0_0 = arith.constant 0 : index
    %0 = vector.load %arg1[%c0, %c0_0] : memref<392x16xbf16, #tpu.memory_space<vmem>>, vector<392x16xbf16>
    %c0_1 = arith.constant 0 : index
    %c0_2 = arith.constant 0 : index
    %1 = vector.load %arg2[%c0_1, %c0_2] : memref<16x32xbf16, #tpu.memory_space<vmem>>, vector<16x32xbf16>
    %cst = arith.constant dense<0.000000e+00> : vector<392x32xf32>
    %2 = tpu.matmul %0, %1, %cst {dimension_numbers = #tpu.dot_dimension_numbers<[1], [0], [0], [1], [0, 0, 1, 1], [], []>} : vector<392x16xbf16>, vector<16x32xbf16>, vector<392x32xf32> -> vector<392x32xf32>
    %cst_3 = arith.constant dense<0.000000e+00> : vector<32xf32>
    %3 = vector.multi_reduction <add>, %2, %cst_3 [0] : vector<392x32xf32> to vector<32xf32>
    %4 = vector.shape_cast %3 : vector<32xf32> to vector<1x32xf32>
    %cst_4 = arith.constant 3.920000e+02 : f32
    %5 = vector.broadcast %cst_4 : f32 to vector<1x32xf32>
    %6 = arith.divf %4, %5 : vector<1x32xf32>
    %7 = vector.broadcast %6 : vector<1x32xf32> to vector<392x32xf32>
    %8 = arith.subf %2, %7 : vector<392x32xf32>
    %9 = arith.mulf %8, %8 : vector<392x32xf32>
    %cst_5 = arith.constant dense<0.000000e+00> : vector<32xf32>
    %10 = vector.multi_reduction <add>, %9, %cst_5 [0] : vector<392x32xf32> to vector<32xf32>
    %11 = vector.shape_cast %10 : vector<32xf32> to vector<1x32xf32>
    %cst_6 = arith.constant 3.920000e+02 : f32
    %12 = vector.broadcast %cst_6 : f32 to vector<1x32xf32>
    %13 = arith.divf %11, %12 : vector<1x32xf32>
    %14 = vector.broadcast %6 : vector<1x32xf32> to vector<392x32xf32>
    %15 = arith.subf %2, %14 : vector<392x32xf32>
    %cst_7 = arith.constant 9.99999974E-6 : f32
    %16 = vector.broadcast %cst_7 : f32 to vector<1x32xf32>
    %17 = arith.addf %13, %16 : vector<1x32xf32>
    %18 = math.rsqrt %17 : vector<1x32xf32>
    %19 = vector.broadcast %18 : vector<1x32xf32> to vector<392x32xf32>
    %20 = arith.mulf %15, %19 : vector<392x32xf32>
    %c0_8 = arith.constant 0 : index
    %c0_9 = arith.constant 0 : index
    %21 = vector.load %arg3[%c0_8, %c0_9] : memref<1x32xf32, #tpu.memory_space<vmem>>, vector<1x32xf32>
    %22 = vector.broadcast %21 : vector<1x32xf32> to vector<392x32xf32>
    %23 = arith.mulf %20, %22 : vector<392x32xf32>
    %c0_10 = arith.constant 0 : index
    %c0_11 = arith.constant 0 : index
    %24 = vector.load %arg4[%c0_10, %c0_11] : memref<1x32xf32, #tpu.memory_space<vmem>>, vector<1x32xf32>
    %25 = vector.broadcast %24 : vector<1x32xf32> to vector<392x32xf32>
    %26 = arith.addf %23, %25 : vector<392x32xf32>
    %cst_12 = arith.constant 0.000000e+00 : f32
    %27 = vector.broadcast %cst_12 : f32 to vector<392x32xf32>
    %28 = arith.cmpf ogt, %26, %27 : vector<392x32xf32>
    %cst_13 = arith.constant 2.000000e-01 : f32
    %29 = vector.broadcast %cst_13 : f32 to vector<392x32xf32>
    %30 = arith.mulf %29, %26 : vector<392x32xf32>
    %31 = arith.select %28, %26, %30 : vector<392x32xi1>, vector<392x32xf32>
    %32 = arith.truncf %31 : vector<392x32xf32> to vector<392x32xbf16>
    %c0_14 = arith.constant 0 : index
    %c0_15 = arith.constant 0 : index
    %33 = vector.load %arg5[%c0_14, %c0_15] : memref<392x32xbf16, #tpu.memory_space<vmem>>, vector<392x32xbf16>
    tpu.vector_store %arg5[%c0_14, %c0_15], %32 {strides = array<i32>} : memref<392x32xbf16, #tpu.memory_space<vmem>>, vector<392x32xbf16>,
    return
  }
  func.func @transform_0(%arg0: i32) -> (i32, i32) {
    %c0_i32 = arith.constant 0 : i32
    %c0_i32_0 = arith.constant 0 : i32
    %c0_i32_1 = arith.constant 0 : i32
    return %c0_i32, %c0_i32_0 : i32, i32
  }
  func.func @transform_1(%arg0: i32) -> (i32, i32) {
    %c0_i32 = arith.constant 0 : i32
    %c0_i32_0 = arith.constant 0 : i32
    %c0_i32_1 = arith.constant 0 : i32
    return %c0_i32, %c0_i32_0 : i32, i32
  }
  func.func @transform_2(%arg0: i32) -> (i32, i32) {
    %c0_i32 = arith.constant 0 : i32
    %c0_i32_0 = arith.constant 0 : i32
    %c0_i32_1 = arith.constant 0 : i32
    return %c0_i32, %c0_i32_0 : i32, i32
  }
  func.func @transform_3(%arg0: i32) -> (i32, i32) {
    %c0_i32 = arith.constant 0 : i32
    %c0_i32_0 = arith.constant 0 : i32
    %c0_i32_1 = arith.constant 0 : i32
    return %c0_i32, %c0_i32_0 : i32, i32
  }
  func.func @transform_4(%arg0: i32) -> (i32, i32) {
    %c0_i32 = arith.constant 0 : i32
    %c0_i32_0 = arith.constant 0 : i32
    %c0_i32_1 = arith.constant 0 : i32
    return %c0_i32, %c0_i32_0 : i32, i32
  }
}

module attributes {stable_mosaic.version = 11 : i64} {
  func.func @_matmul_bn_lrelu_kernel(%arg0: i32, %arg1: memref<98x512xbf16, #tpu.memory_space<vmem>>, %arg2: memref<512x64xbf16, #tpu.memory_space<vmem>>, %arg3: memref<1x64xf32, #tpu.memory_space<vmem>>, %arg4: memref<1x64xf32, #tpu.memory_space<vmem>>, %arg5: memref<98x64xbf16, #tpu.memory_space<vmem>>) attributes {dimension_semantics = [#tpu.dimension_semantics<arbitrary>], iteration_bounds = array<i64: 1>, scalar_prefetch = 0 : i64, scratch_operands = 0 : i64, tpu.core_type = #tpu.core_type<tc>, window_params = [{pipeline_mode = #tpu.pipeline_mode<synchronous>, transform_indices = @transform_0, window_bounds = array<i64: 98, 512>}, {pipeline_mode = #tpu.pipeline_mode<synchronous>, transform_indices = @transform_1, window_bounds = array<i64: 512, 64>}, {pipeline_mode = #tpu.pipeline_mode<synchronous>, transform_indices = @transform_2, window_bounds = array<i64: 1, 64>}, {pipeline_mode = #tpu.pipeline_mode<synchronous>, transform_indices = @transform_3, window_bounds = array<i64: 1, 64>}, {pipeline_mode = #tpu.pipeline_mode<synchronous>, transform_indices = @transform_4, window_bounds = array<i64: 98, 64>}]} {
    %c0 = arith.constant 0 : index
    %c0_0 = arith.constant 0 : index
    %0 = vector.load %arg1[%c0, %c0_0] : memref<98x512xbf16, #tpu.memory_space<vmem>>, vector<98x512xbf16>
    %c0_1 = arith.constant 0 : index
    %c0_2 = arith.constant 0 : index
    %1 = vector.load %arg2[%c0_1, %c0_2] : memref<512x64xbf16, #tpu.memory_space<vmem>>, vector<512x64xbf16>
    %cst = arith.constant dense<0.000000e+00> : vector<98x64xf32>
    %2 = tpu.matmul %0, %1, %cst {dimension_numbers = #tpu.dot_dimension_numbers<[1], [0], [0], [1], [0, 0, 1, 1], [], []>} : vector<98x512xbf16>, vector<512x64xbf16>, vector<98x64xf32> -> vector<98x64xf32>
    %cst_3 = arith.constant dense<0.000000e+00> : vector<64xf32>
    %3 = vector.multi_reduction <add>, %2, %cst_3 [0] : vector<98x64xf32> to vector<64xf32>
    %4 = vector.shape_cast %3 : vector<64xf32> to vector<1x64xf32>
    %cst_4 = arith.constant 9.800000e+01 : f32
    %5 = vector.broadcast %cst_4 : f32 to vector<1x64xf32>
    %6 = arith.divf %4, %5 : vector<1x64xf32>
    %7 = vector.broadcast %6 : vector<1x64xf32> to vector<98x64xf32>
    %8 = arith.subf %2, %7 : vector<98x64xf32>
    %9 = arith.mulf %8, %8 : vector<98x64xf32>
    %cst_5 = arith.constant dense<0.000000e+00> : vector<64xf32>
    %10 = vector.multi_reduction <add>, %9, %cst_5 [0] : vector<98x64xf32> to vector<64xf32>
    %11 = vector.shape_cast %10 : vector<64xf32> to vector<1x64xf32>
    %cst_6 = arith.constant 9.800000e+01 : f32
    %12 = vector.broadcast %cst_6 : f32 to vector<1x64xf32>
    %13 = arith.divf %11, %12 : vector<1x64xf32>
    %14 = vector.broadcast %6 : vector<1x64xf32> to vector<98x64xf32>
    %15 = arith.subf %2, %14 : vector<98x64xf32>
    %cst_7 = arith.constant 9.99999974E-6 : f32
    %16 = vector.broadcast %cst_7 : f32 to vector<1x64xf32>
    %17 = arith.addf %13, %16 : vector<1x64xf32>
    %18 = math.rsqrt %17 : vector<1x64xf32>
    %19 = vector.broadcast %18 : vector<1x64xf32> to vector<98x64xf32>
    %20 = arith.mulf %15, %19 : vector<98x64xf32>
    %c0_8 = arith.constant 0 : index
    %c0_9 = arith.constant 0 : index
    %21 = vector.load %arg3[%c0_8, %c0_9] : memref<1x64xf32, #tpu.memory_space<vmem>>, vector<1x64xf32>
    %22 = vector.broadcast %21 : vector<1x64xf32> to vector<98x64xf32>
    %23 = arith.mulf %20, %22 : vector<98x64xf32>
    %c0_10 = arith.constant 0 : index
    %c0_11 = arith.constant 0 : index
    %24 = vector.load %arg4[%c0_10, %c0_11] : memref<1x64xf32, #tpu.memory_space<vmem>>, vector<1x64xf32>
    %25 = vector.broadcast %24 : vector<1x64xf32> to vector<98x64xf32>
    %26 = arith.addf %23, %25 : vector<98x64xf32>
    %cst_12 = arith.constant 0.000000e+00 : f32
    %27 = vector.broadcast %cst_12 : f32 to vector<98x64xf32>
    %28 = arith.cmpf ogt, %26, %27 : vector<98x64xf32>
    %cst_13 = arith.constant 2.000000e-01 : f32
    %29 = vector.broadcast %cst_13 : f32 to vector<98x64xf32>
    %30 = arith.mulf %29, %26 : vector<98x64xf32>
    %31 = arith.select %28, %26, %30 : vector<98x64xi1>, vector<98x64xf32>
    %32 = arith.truncf %31 : vector<98x64xf32> to vector<98x64xbf16>
    %c0_14 = arith.constant 0 : index
    %c0_15 = arith.constant 0 : index
    %33 = vector.load %arg5[%c0_14, %c0_15] : memref<98x64xbf16, #tpu.memory_space<vmem>>, vector<98x64xbf16>
    tpu.vector_store %arg5[%c0_14, %c0_15], %32 {strides = array<i32>} : memref<98x64xbf16, #tpu.memory_space<vmem>>, vector<98x64xbf16>,
    return
  }
  func.func @transform_0(%arg0: i32) -> (i32, i32) {
    %c0_i32 = arith.constant 0 : i32
    %c0_i32_0 = arith.constant 0 : i32
    %c0_i32_1 = arith.constant 0 : i32
    return %c0_i32, %c0_i32_0 : i32, i32
  }
  func.func @transform_1(%arg0: i32) -> (i32, i32) {
    %c0_i32 = arith.constant 0 : i32
    %c0_i32_0 = arith.constant 0 : i32
    %c0_i32_1 = arith.constant 0 : i32
    return %c0_i32, %c0_i32_0 : i32, i32
  }
  func.func @transform_2(%arg0: i32) -> (i32, i32) {
    %c0_i32 = arith.constant 0 : i32
    %c0_i32_0 = arith.constant 0 : i32
    %c0_i32_1 = arith.constant 0 : i32
    return %c0_i32, %c0_i32_0 : i32, i32
  }
  func.func @transform_3(%arg0: i32) -> (i32, i32) {
    %c0_i32 = arith.constant 0 : i32
    %c0_i32_0 = arith.constant 0 : i32
    %c0_i32_1 = arith.constant 0 : i32
    return %c0_i32, %c0_i32_0 : i32, i32
  }
  func.func @transform_4(%arg0: i32) -> (i32, i32) {
    %c0_i32 = arith.constant 0 : i32
    %c0_i32_0 = arith.constant 0 : i32
    %c0_i32_1 = arith.constant 0 : i32
    return %c0_i32, %c0_i32_0 : i32, i32
  }
}

module attributes {stable_mosaic.version = 11 : i64} {
  func.func @_matmul_bias_kernel(%arg0: i32, %arg1: memref<2x1024xbf16, #tpu.memory_space<vmem>>, %arg2: memref<1024x128xbf16, #tpu.memory_space<vmem>>, %arg3: memref<1x128xf32, #tpu.memory_space<vmem>>, %arg4: memref<2x128xf32, #tpu.memory_space<vmem>>) attributes {dimension_semantics = [#tpu.dimension_semantics<arbitrary>], iteration_bounds = array<i64: 1>, scalar_prefetch = 0 : i64, scratch_operands = 0 : i64, tpu.core_type = #tpu.core_type<tc>, window_params = [{pipeline_mode = #tpu.pipeline_mode<synchronous>, transform_indices = @transform_0, window_bounds = array<i64: 2, 1024>}, {pipeline_mode = #tpu.pipeline_mode<synchronous>, transform_indices = @transform_1, window_bounds = array<i64: 1024, 128>}, {pipeline_mode = #tpu.pipeline_mode<synchronous>, transform_indices = @transform_2, window_bounds = array<i64: 1, 128>}, {pipeline_mode = #tpu.pipeline_mode<synchronous>, transform_indices = @transform_3, window_bounds = array<i64: 2, 128>}]} {
    %c0 = arith.constant 0 : index
    %c0_0 = arith.constant 0 : index
    %0 = vector.load %arg1[%c0, %c0_0] : memref<2x1024xbf16, #tpu.memory_space<vmem>>, vector<2x1024xbf16>
    %c0_1 = arith.constant 0 : index
    %c0_2 = arith.constant 0 : index
    %1 = vector.load %arg2[%c0_1, %c0_2] : memref<1024x128xbf16, #tpu.memory_space<vmem>>, vector<1024x128xbf16>
    %cst = arith.constant dense<0.000000e+00> : vector<2x128xf32>
    %2 = tpu.matmul %0, %1, %cst {dimension_numbers = #tpu.dot_dimension_numbers<[1], [0], [0], [1], [0, 0, 1, 1], [], []>} : vector<2x1024xbf16>, vector<1024x128xbf16>, vector<2x128xf32> -> vector<2x128xf32>
    %c0_3 = arith.constant 0 : index
    %c0_4 = arith.constant 0 : index
    %3 = vector.load %arg3[%c0_3, %c0_4] : memref<1x128xf32, #tpu.memory_space<vmem>>, vector<1x128xf32>
    %4 = vector.broadcast %3 : vector<1x128xf32> to vector<2x128xf32>
    %5 = arith.addf %2, %4 : vector<2x128xf32>
    %c0_5 = arith.constant 0 : index
    %c0_6 = arith.constant 0 : index
    %6 = vector.load %arg4[%c0_5, %c0_6] : memref<2x128xf32, #tpu.memory_space<vmem>>, vector<2x128xf32>
    tpu.vector_store %arg4[%c0_5, %c0_6], %5 {strides = array<i32>} : memref<2x128xf32, #tpu.memory_space<vmem>>, vector<2x128xf32>,
    return
  }
  func.func @transform_0(%arg0: i32) -> (i32, i32) {
    %c0_i32 = arith.constant 0 : i32
    %c0_i32_0 = arith.constant 0 : i32
    %c0_i32_1 = arith.constant 0 : i32
    return %c0_i32, %c0_i32_0 : i32, i32
  }
  func.func @transform_1(%arg0: i32) -> (i32, i32) {
    %c0_i32 = arith.constant 0 : i32
    %c0_i32_0 = arith.constant 0 : i32
    %c0_i32_1 = arith.constant 0 : i32
    return %c0_i32, %c0_i32_0 : i32, i32
  }
  func.func @transform_2(%arg0: i32) -> (i32, i32) {
    %c0_i32 = arith.constant 0 : i32
    %c0_i32_0 = arith.constant 0 : i32
    %c0_i32_1 = arith.constant 0 : i32
    return %c0_i32, %c0_i32_0 : i32, i32
  }
  func.func @transform_3(%arg0: i32) -> (i32, i32) {
    %c0_i32 = arith.constant 0 : i32
    %c0_i32_0 = arith.constant 0 : i32
    %c0_i32_1 = arith.constant 0 : i32
    return %c0_i32, %c0_i32_0 : i32, i32
  }
}

module attributes {stable_mosaic.version = 11 : i64} {
  func.func @_matmul_bn_lrelu_kernel(%arg0: i32, %arg1: memref<2x3136xbf16, #tpu.memory_space<vmem>>, %arg2: memref<3136x1024xbf16, #tpu.memory_space<vmem>>, %arg3: memref<1x1024xf32, #tpu.memory_space<vmem>>, %arg4: memref<1x1024xf32, #tpu.memory_space<vmem>>, %arg5: memref<2x1024xbf16, #tpu.memory_space<vmem>>) attributes {dimension_semantics = [#tpu.dimension_semantics<arbitrary>], iteration_bounds = array<i64: 1>, scalar_prefetch = 0 : i64, scratch_operands = 0 : i64, tpu.core_type = #tpu.core_type<tc>, window_params = [{pipeline_mode = #tpu.pipeline_mode<synchronous>, transform_indices = @transform_0, window_bounds = array<i64: 2, 3136>}, {pipeline_mode = #tpu.pipeline_mode<synchronous>, transform_indices = @transform_1, window_bounds = array<i64: 3136, 1024>}, {pipeline_mode = #tpu.pipeline_mode<synchronous>, transform_indices = @transform_2, window_bounds = array<i64: 1, 1024>}, {pipeline_mode = #tpu.pipeline_mode<synchronous>, transform_indices = @transform_3, window_bounds = array<i64: 1, 1024>}, {pipeline_mode = #tpu.pipeline_mode<synchronous>, transform_indices = @transform_4, window_bounds = array<i64: 2, 1024>}]} {
    %c0 = arith.constant 0 : index
    %c0_0 = arith.constant 0 : index
    %0 = vector.load %arg1[%c0, %c0_0] : memref<2x3136xbf16, #tpu.memory_space<vmem>>, vector<2x3136xbf16>
    %c0_1 = arith.constant 0 : index
    %c0_2 = arith.constant 0 : index
    %1 = vector.load %arg2[%c0_1, %c0_2] : memref<3136x1024xbf16, #tpu.memory_space<vmem>>, vector<3136x1024xbf16>
    %cst = arith.constant dense<0.000000e+00> : vector<2x1024xf32>
    %2 = tpu.matmul %0, %1, %cst {dimension_numbers = #tpu.dot_dimension_numbers<[1], [0], [0], [1], [0, 0, 1, 1], [], []>} : vector<2x3136xbf16>, vector<3136x1024xbf16>, vector<2x1024xf32> -> vector<2x1024xf32>
    %cst_3 = arith.constant dense<0.000000e+00> : vector<1024xf32>
    %3 = vector.multi_reduction <add>, %2, %cst_3 [0] : vector<2x1024xf32> to vector<1024xf32>
    %4 = vector.shape_cast %3 : vector<1024xf32> to vector<1x1024xf32>
    %cst_4 = arith.constant 2.000000e+00 : f32
    %5 = vector.broadcast %cst_4 : f32 to vector<1x1024xf32>
    %6 = arith.divf %4, %5 : vector<1x1024xf32>
    %7 = vector.broadcast %6 : vector<1x1024xf32> to vector<2x1024xf32>
    %8 = arith.subf %2, %7 : vector<2x1024xf32>
    %9 = arith.mulf %8, %8 : vector<2x1024xf32>
    %cst_5 = arith.constant dense<0.000000e+00> : vector<1024xf32>
    %10 = vector.multi_reduction <add>, %9, %cst_5 [0] : vector<2x1024xf32> to vector<1024xf32>
    %11 = vector.shape_cast %10 : vector<1024xf32> to vector<1x1024xf32>
    %cst_6 = arith.constant 2.000000e+00 : f32
    %12 = vector.broadcast %cst_6 : f32 to vector<1x1024xf32>
    %13 = arith.divf %11, %12 : vector<1x1024xf32>
    %14 = vector.broadcast %6 : vector<1x1024xf32> to vector<2x1024xf32>
    %15 = arith.subf %2, %14 : vector<2x1024xf32>
    %cst_7 = arith.constant 9.99999974E-6 : f32
    %16 = vector.broadcast %cst_7 : f32 to vector<1x1024xf32>
    %17 = arith.addf %13, %16 : vector<1x1024xf32>
    %18 = math.rsqrt %17 : vector<1x1024xf32>
    %19 = vector.broadcast %18 : vector<1x1024xf32> to vector<2x1024xf32>
    %20 = arith.mulf %15, %19 : vector<2x1024xf32>
    %c0_8 = arith.constant 0 : index
    %c0_9 = arith.constant 0 : index
    %21 = vector.load %arg3[%c0_8, %c0_9] : memref<1x1024xf32, #tpu.memory_space<vmem>>, vector<1x1024xf32>
    %22 = vector.broadcast %21 : vector<1x1024xf32> to vector<2x1024xf32>
    %23 = arith.mulf %20, %22 : vector<2x1024xf32>
    %c0_10 = arith.constant 0 : index
    %c0_11 = arith.constant 0 : index
    %24 = vector.load %arg4[%c0_10, %c0_11] : memref<1x1024xf32, #tpu.memory_space<vmem>>, vector<1x1024xf32>
    %25 = vector.broadcast %24 : vector<1x1024xf32> to vector<2x1024xf32>
    %26 = arith.addf %23, %25 : vector<2x1024xf32>
    %cst_12 = arith.constant 0.000000e+00 : f32
    %27 = vector.broadcast %cst_12 : f32 to vector<2x1024xf32>
    %28 = arith.cmpf ogt, %26, %27 : vector<2x1024xf32>
    %cst_13 = arith.constant 2.000000e-01 : f32
    %29 = vector.broadcast %cst_13 : f32 to vector<2x1024xf32>
    %30 = arith.mulf %29, %26 : vector<2x1024xf32>
    %31 = arith.select %28, %26, %30 : vector<2x1024xi1>, vector<2x1024xf32>
    %32 = arith.truncf %31 : vector<2x1024xf32> to vector<2x1024xbf16>
    %c0_14 = arith.constant 0 : index
    %c0_15 = arith.constant 0 : index
    %33 = vector.load %arg5[%c0_14, %c0_15] : memref<2x1024xbf16, #tpu.memory_space<vmem>>, vector<2x1024xbf16>
    tpu.vector_store %arg5[%c0_14, %c0_15], %32 {strides = array<i32>} : memref<2x1024xbf16, #tpu.memory_space<vmem>>, vector<2x1024xbf16>,
    return
  }
  func.func @transform_0(%arg0: i32) -> (i32, i32) {
    %c0_i32 = arith.constant 0 : i32
    %c0_i32_0 = arith.constant 0 : i32
    %c0_i32_1 = arith.constant 0 : i32
    return %c0_i32, %c0_i32_0 : i32, i32
  }
  func.func @transform_1(%arg0: i32) -> (i32, i32) {
    %c0_i32 = arith.constant 0 : i32
    %c0_i32_0 = arith.constant 0 : i32
    %c0_i32_1 = arith.constant 0 : i32
    return %c0_i32, %c0_i32_0 : i32, i32
  }
  func.func @transform_2(%arg0: i32) -> (i32, i32) {
    %c0_i32 = arith.constant 0 : i32
    %c0_i32_0 = arith.constant 0 : i32
    %c0_i32_1 = arith.constant 0 : i32
    return %c0_i32, %c0_i32_0 : i32, i32
  }
  func.func @transform_3(%arg0: i32) -> (i32, i32) {
    %c0_i32 = arith.constant 0 : i32
    %c0_i32_0 = arith.constant 0 : i32
    %c0_i32_1 = arith.constant 0 : i32
    return %c0_i32, %c0_i32_0 : i32, i32
  }
  func.func @transform_4(%arg0: i32) -> (i32, i32) {
    %c0_i32 = arith.constant 0 : i32
    %c0_i32_0 = arith.constant 0 : i32
    %c0_i32_1 = arith.constant 0 : i32
    return %c0_i32, %c0_i32_0 : i32, i32
  }
}

</mosaic_0001>

<bundles_post_ra>
// kernel: encoder_forward.4
= control target key start
LH: loop header
LB: loop body
LE: loop exit
PB: predicated region body
PF: predicated region fallthrough
CT: control target
= control target key end

     0   :  { %9 = vsyncpa [#allocation3], 0  ;;  %s3442_s0 = inlined_call_operand.vmem [shape: bf16[392,16], index: 0, kind: input, shape index: {}]   ;;  %s3443_s1 = inlined_call_operand.hbm [shape: bf16[16,32], index: 1, kind: input, shape index: {}]   ;;  %s3444_s2 = inlined_call_operand.hbm [shape: f32[1,32], index: 2, kind: input, shape index: {}]   ;;  %s3445_s3 = inlined_call_operand.hbm [shape: f32[1,32], index: 3, kind: input, shape index: {}]   ;;  %s3446_s4 = inlined_call_operand.vmem [shape: bf16[392,32], index: 4, kind: output, shape index: {}]  }
   0x1   :  { %10 = vsyncpa [#allocation5], 0  ;;  %s1800_s15 = smov [#allocation4]   ;;  %s1801_s17 = smov [#allocation2]  }
   0x2   :  { %s31_s16 = sshll.u32 %s1800_s15, 4  ;;  %s18_s18 = sshll.u32 %s1801_s17, 4  ;;  %s32_s16 = int_to_ptr.vmem [resolvable:$true] %s31_s16  ;;  %s1832_s18 = int_to_ptr.vmem [resolvable:$true] %s18_s18 }
   0x3   :  { %s1730_s21 = scalar_lea.hbm %s3444_s2, 16 }
   0x4   :  { %p1731_p0 = scmp.ne.s32.totalorder %s3444_s2, %s1730_s21  ;;  %p1734_p1 = scmp.lt.u32.totalorder %s1730_s21, %s3444_s2 }
   0x6   :  { %p1736_p2 = pnand %p1734_p1, %p1731_p0 }
   0x8   :  { %1739 = shalt.err (!%p1736_p2)
}
   0x9   :  { %s1740_s26 = scalar_lea.vmem %s32_s16, 16  ;;  %s1744_s27 = scalar_lea.vmem %s32_s16, 32 }
   0xa   :  { %p1741_p3 = scmp.ne.s32.totalorder %s32_s16, %s1740_s26  ;;  %p1745_p4 = scmp.lt.s32.totalorder %s32_s16, %s32_s16 }
   0xb   :  { %p1746_p5 = scmp.lt.s32.totalorder %s1744_s27, %s1740_s26 }
   0xd   :  { %p1747_p6 = por %p1746_p5, %p1745_p4 }
   0xf   :  { %p1748_p7 = pnand %p1747_p6, %p1741_p3 }
  0x11   :  { %1751 = shalt.err (!%p1748_p7)
}
  0x12   :  { %34 = dma.hbm_to_vmem [thread:$0]  %s3444_s2, 16, %s32_s16, [#allocation5]  }
  0x13   :  { %s1752_s6 = scalar_lea.hbm %s3443_s1, 128 }
  0x14   :  { %p1753_p8 = scmp.ne.s32.totalorder %s3443_s1, %s1752_s6  ;;  %p1756_p9 = scmp.lt.u32.totalorder %s1752_s6, %s3443_s1 }
  0x16   :  { %p1758_p10 = pnand %p1756_p9, %p1753_p8 }
  0x18   :  { %1761 = shalt.err (!%p1758_p10)
}
  0x19   :  { %s1762_s11 = scalar_lea.vmem %s1832_s18, 128  ;;  %p1767_p12 = scmp.lt.s32.totalorder %s1832_s18, %s1832_s18 }
  0x1a   :  { %p1763_p11 = scmp.ne.s32.totalorder %s1832_s18, %s1762_s11  ;;  %p1768_p13 = scmp.lt.s32.totalorder %s1762_s11, %s1762_s11 }
  0x1c   :  { %p1769_p0 = por %p1768_p13, %p1767_p12 }
  0x1e   :  { %p1770_p1 = pnand %p1769_p0, %p1763_p11 }
  0x20   :  { %1773 = shalt.err (!%p1770_p1)
}
  0x21   :  { %s1802_s2 = smov 64   ;;  %s1803_s12 = smov 4  }
  0x22   :  { %24 = dma.hbm_to_vmem [thread:$0]  %s3443_s1, 128, %s1832_s18, [#allocation3], %s1802_s2, %s1802_s2, %s1803_s12  }
  0x23   :  { %s1804_s15 = smov [#allocation6]   ;;  %s1774_s20 = scalar_lea.hbm %s3445_s3, 16 }
  0x24   :  { %s41_s16 = sshll.u32 %s1804_s15, 4  ;;  %p1775_p2 = scmp.ne.s32.totalorder %s3445_s3, %s1774_s20  ;;  %s42_s16 = int_to_ptr.vmem [resolvable:$true] %s41_s16 }
  0x25   :  { %p1778_p3 = scmp.lt.u32.totalorder %s1774_s20, %s3445_s3 }
  0x27   :  { %p1780_p4 = pnand %p1778_p3, %p1775_p2 }
  0x29   :  { %1783 = shalt.err (!%p1780_p4)
}
  0x2a   :  { %s1784_s25 = scalar_lea.vmem %s42_s16, 16  ;;  %s1788_s1 = scalar_lea.vmem %s42_s16, 32 }
  0x2b   :  { %p1785_p5 = scmp.ne.s32.totalorder %s42_s16, %s1784_s25  ;;  %p1789_p6 = scmp.lt.s32.totalorder %s42_s16, %s42_s16 }
  0x2c   :  { %p1790_p7 = scmp.lt.s32.totalorder %s1788_s1, %s1784_s25 }
  0x2e   :  { %p1791_p8 = por %p1790_p7, %p1789_p6 }
  0x30   :  { %p1792_p9 = pnand %p1791_p8, %p1785_p5 }
  0x32   :  { %1795 = shalt.err (!%p1792_p9)
}
  0x33   :  { %44 = dma.hbm_to_vmem [thread:$0]  %s3445_s3, 16, %s42_s16, [#allocation5]  }
  0x34   :  { %1796 = dma.done.wait [#allocation3], 128  }
  0x35   :  { %1797 = vsyncadd [#allocation3], 4294967168 }
  0x36   :  { %1798 = dma.done.wait [#allocation5], 32  }
  0x37   :  { %1799 = vsyncadd [#allocation5], 4294967264  ;;  %v1805_v0 = vmov 0.0   ;;  %vm1806_vm0 = vmmov 0   ;;  %v1702_v1 = vld [vmem:[#allocation2] sm:$0xff]   ;;  %vm235_vm1 = vcmask 130048  }
  0x38   :  { %1591 = vmatprep.subr.bf16.mxu0 %v1805_v0  ;;  %1593 = vmatprep.mubr.msk.bf16.mxu0 %vm1806_vm0, %v1805_v0  ;;  %v1703_v2 = vld [vmem:[%s3442_s0] sm:$0xff]   ;;  %v1710_v3 = vld [vmem:[%s3442_s0 + $0x68] sm:$0xff]   ;;  %v1712_v5 = vld [vmem:[%s3442_s0 + $0x70] sm:$0xff]   ;;  %vm543_vm2 = vcmask 261120  }
  0x39   :  { %1693 = vmatprep.subr.bf16.mxu1 %v1805_v0  ;;  %1645 = vmatprep.mubr.msk.bf16.mxu1 %vm1806_vm0, %v1805_v0  ;;  %v1704_v4 = vld [vmem:[%s3442_s0 + $0x8] sm:$0xff]   ;;  %v1705_v6 = vld [vmem:[%s3442_s0 + $0x10] sm:$0xff]   ;;  %v1714_v7 = vld [vmem:[%s3442_s0 + $0x78] sm:$0xff]  }
  0x3a   :  { %1592 = vmatpush3.bf16.msra.mxu0 %v1702_v1  ;;  %1694 = vmatpush3.bf16.msra.mxu1 %v1702_v1  ;;  %v1706_v8 = vld [vmem:[%s3442_s0 + $0x18] sm:$0xff]   ;;  %v1716_v9 = vld [vmem:[%s3442_s0 + $0x80] sm:$0xff]   ;;  %v1718_v11 = vld [vmem:[%s3442_s0 + $0x88] sm:$0xff]  }
  0x3b   :  { %v1707_v10 = vld [vmem:[%s3442_s0 + $0x20] sm:$0xff]   ;;  %v1708_v12 = vld [vmem:[%s3442_s0 + $0x28] sm:$0xff]   ;;  %v1720_v13 = vld [vmem:[%s3442_s0 + $0x90] sm:$0xff]  }
  0x3c   :  { %v1709_v14 = vld [vmem:[%s3442_s0 + $0x30] sm:$0xff]   ;;  %v1722_v15 = vld [vmem:[%s3442_s0 + $0x98] sm:$0xff]   ;;  %v1723_v17 = vld [vmem:[%s3442_s0 + $0xa0] sm:$0xff]  }
  0x3d   :  { %1594 = vmatmul.mubr.msk.bf16.vlgmr.msra.gmra.mrb[0].mxu0 %vm235_vm1, %v1703_v2  ;;  %1646 = vmatmul.mubr.msk.bf16.vlgmr.msra.gmra.mrb[0].mxu1 %vm235_vm1, %v1710_v3  ;;  %v1711_v16 = vld [vmem:[%s3442_s0 + $0x38] sm:$0xff]   ;;  %v1713_v18 = vld [vmem:[%s3442_s0 + $0x40] sm:$0xff]   ;;  %v1724_v19 = vld [vmem:[%s3442_s0 + $0xa8] sm:$0xff]  }
  0x3e   :  { %1597 = vmatprep.mubr.msk.bf16.mxu0 %vm1806_vm0, %v1805_v0  ;;  %1649 = vmatprep.mubr.msk.bf16.mxu1 %vm1806_vm0, %v1805_v0  ;;  %v1715_v20 = vld [vmem:[%s3442_s0 + $0x48] sm:$0xff]   ;;  %v1725_v21 = vld [vmem:[%s3442_s0 + $0xb0] sm:$0xff]   ;;  %v1726_v23 = vld [vmem:[%s3442_s0 + $0xb8] sm:$0xff]  }
  0x3f   :  { %v1717_v22 = vld [vmem:[%s3442_s0 + $0x50] sm:$0xff]   ;;  %v1719_v24 = vld [vmem:[%s3442_s0 + $0x58] sm:$0xff]   ;;  %v1727_v25 = vld [vmem:[%s3442_s0 + $0xc0] ss:$0 sps:$4 sm:$0xff]  }
  0x40   :  { %v1721_v26 = vld [vmem:[%s3442_s0 + $0x60] sm:$0xff]  }
  0x45   :  { %1598 = vmatmul.mubr.msk.bf16.gmra.mrb[4].mxu0 %vm235_vm1, %v1704_v4  ;;  %1650 = vmatmul.mubr.msk.bf16.gmra.mrb[4].mxu1 %vm235_vm1, %v1712_v5 }
  0x46   :  { %1601 = vmatprep.mubr.msk.bf16.mxu0 %vm1806_vm0, %v1805_v0  ;;  %1653 = vmatprep.mubr.msk.bf16.mxu1 %vm1806_vm0, %v1805_v0 }
  0x4d   :  { %1602 = vmatmul.mubr.msk.bf16.gmra.mrb[8].mxu0 %vm235_vm1, %v1705_v6  ;;  %1654 = vmatmul.mubr.msk.bf16.gmra.mrb[8].mxu1 %vm235_vm1, %v1714_v7 }
  0x4e   :  { %1605 = vmatprep.mubr.msk.bf16.mxu0 %vm1806_vm0, %v1805_v0  ;;  %1657 = vmatprep.mubr.msk.bf16.mxu1 %vm1806_vm0, %v1805_v0 }
  0x55   :  { %1606 = vmatmul.mubr.msk.bf16.gmra.mrb[12].mxu0 %vm235_vm1, %v1706_v8  ;;  %1658 = vmatmul.mubr.msk.bf16.gmra.mrb[12].mxu1 %vm235_vm1, %v1716_v9 }
  0x56   :  { %1609 = vmatprep.mubr.msk.bf16.mxu0 %vm1806_vm0, %v1805_v0  ;;  %1661 = vmatprep.mubr.msk.bf16.mxu1 %vm1806_vm0, %v1805_v0 }
  0x5d   :  { %1610 = vmatmul.mubr.msk.bf16.gmra.mrb[16].mxu0 %vm235_vm1, %v1707_v10  ;;  %1662 = vmatmul.mubr.msk.bf16.gmra.mrb[16].mxu1 %vm235_vm1, %v1718_v11 }
  0x5e   :  { %1613 = vmatprep.mubr.msk.bf16.mxu0 %vm1806_vm0, %v1805_v0  ;;  %1665 = vmatprep.mubr.msk.bf16.mxu1 %vm1806_vm0, %v1805_v0 }
  0x65   :  { %1614 = vmatmul.mubr.msk.bf16.gmra.mrb[20].mxu0 %vm235_vm1, %v1708_v12  ;;  %1666 = vmatmul.mubr.msk.bf16.gmra.mrb[20].mxu1 %vm235_vm1, %v1720_v13 }
  0x66   :  { %1617 = vmatprep.mubr.msk.bf16.mxu0 %vm1806_vm0, %v1805_v0  ;;  %1669 = vmatprep.mubr.msk.bf16.mxu1 %vm1806_vm0, %v1805_v0 }
  0x6d   :  { %1618 = vmatmul.mubr.msk.bf16.gmra.mrb[24].mxu0 %vm235_vm1, %v1709_v14  ;;  %1670 = vmatmul.mubr.msk.bf16.gmra.mrb[24].mxu1 %vm235_vm1, %v1722_v15 }
  0x6e   :  { %1621 = vmatprep.mubr.msk.bf16.mxu0 %vm1806_vm0, %v1805_v0  ;;  %1673 = vmatprep.mubr.msk.bf16.mxu1 %vm1806_vm0, %v1805_v0 }
  0x75   :  { %1622 = vmatmul.mubr.msk.bf16.gmra.mrb[28].mxu0 %vm235_vm1, %v1711_v16  ;;  %1674 = vmatmul.mubr.msk.bf16.gmra.mrb[28].mxu1 %vm235_vm1, %v1723_v17 }
  0x76   :  { %1625 = vmatprep.mubr.msk.bf16.mxu0 %vm1806_vm0, %v1805_v0  ;;  %1677 = vmatprep.mubr.msk.bf16.mxu1 %vm1806_vm0, %v1805_v0 }
  0x7d   :  { %1626 = vmatmul.mubr.msk.bf16.gmra.mrb[32].mxu0 %vm235_vm1, %v1713_v18  ;;  %1678 = vmatmul.mubr.msk.bf16.gmra.mrb[32].mxu1 %vm235_vm1, %v1724_v19 }
  0x7e   :  { %1629 = vmatprep.mubr.msk.bf16.mxu0 %vm1806_vm0, %v1805_v0  ;;  %1681 = vmatprep.mubr.msk.bf16.mxu1 %vm1806_vm0, %v1805_v0 }
  0x85   :  { %1630 = vmatmul.mubr.msk.bf16.gmra.mrb[36].mxu0 %vm235_vm1, %v1715_v20  ;;  %1682 = vmatmul.mubr.msk.bf16.gmra.mrb[36].mxu1 %vm235_vm1, %v1725_v21 }
  0x86   :  { %1633 = vmatprep.mubr.msk.bf16.mxu0 %vm1806_vm0, %v1805_v0  ;;  %1685 = vmatprep.mubr.msk.bf16.mxu1 %vm1806_vm0, %v1805_v0 }
  0x8d   :  { %1634 = vmatmul.mubr.msk.bf16.gmra.mrb[40].mxu0 %vm235_vm1, %v1717_v22  ;;  %1686 = vmatmul.mubr.msk.bf16.gmra.mrb[40].mxu1 %vm235_vm1, %v1726_v23 }
  0x8e   :  { %1637 = vmatprep.mubr.msk.bf16.mxu0 %vm1806_vm0, %v1805_v0  ;;  %1689 = vmatprep.mubr.msk.bf16.mxu1 %vm1806_vm0, %v1805_v0 }
  0x95   :  { %1638 = vmatmul.mubr.msk.bf16.gmra.mrb[44].mxu0 %vm235_vm1, %v1719_v24  ;;  %1690 = vmatmul.mubr.msk.bf16.gmra.mrb[44].mxu1 %vm235_vm1, %v1727_v25 }
  0x96   :  { %1641 = vmatprep.mubr.msk.bf16.mxu0 %vm1806_vm0, %v1805_v0 }
  0x9d   :  { %1642 = vmatmul.mubr.msk.bf16.gmra.mrb[48].mxu0 %vm235_vm1, %v1721_v26 }
 0x110   :  { %v2027_v27 = vpop.f32.mrb[0].mxu0  ;;  %v2035_v34 = vpop.f32.mrb[0].mxu1 }
 0x111   :  { %v1595_v28 = vpop.f32.mrb[1].mxu0  ;;  %v544_v30 = vsel %vm543_vm2, %v2027_v27, 0.0  ;;  %v1647_v35 = vpop.f32.mrb[1].mxu1 }
 0x112   :  { %v2029_v29 = vpop.f32.mrb[2].mxu0  ;;  %v2037_v36 = vpop.f32.mrb[2].mxu1 }
 0x113   :  { %v545_v31 = vsel %vm543_vm2, %v2029_v29, 0.0  ;;  %v1596_v32 = vpop.f32.mrb[3].mxu0  ;;  %v1648_v38 = vpop.f32.mrb[3].mxu1 }
 0x114   :  { %v546_v33 = vadd.f32 %v545_v31, %v544_v30 }
 0x118   :  { %v2039_v37 = vpop.f32.mrb[4].mxu0  ;;  %v2047_v46 = vpop.f32.mrb[4].mxu1 }
 0x119   :  { %v547_v39 = vsel %vm543_vm2, %v2039_v37, 0.0  ;;  %v1599_v40 = vpop.f32.mrb[5].mxu0  ;;  %v1651_v47 = vpop.f32.mrb[5].mxu1 }
 0x11a   :  { %v548_v41 = vadd.f32 %v547_v39, %v546_v33  ;;  %v2043_v42 = vpop.f32.mrb[6].mxu0  ;;  %v2049_v48 = vpop.f32.mrb[6].mxu1 }
 0x11b   :  { %v549_v43 = vsel %vm543_vm2, %v2043_v42, 0.0  ;;  %v1600_v44 = vpop.f32.mrb[7].mxu0  ;;  %v1652_v50 = vpop.f32.mrb[7].mxu1 }
 0x11c   :  { %v550_v45 = vadd.f32 %v549_v43, %v548_v41 }
 0x120   :  { %v2051_v49 = vpop.f32.mrb[8].mxu0  ;;  %v2059_v58 = vpop.f32.mrb[8].mxu1 }
 0x121   :  { %v551_v51 = vsel %vm543_vm2, %v2051_v49, 0.0  ;;  %v1603_v52 = vpop.f32.mrb[9].mxu0  ;;  %v1655_v59 = vpop.f32.mrb[9].mxu1 }
 0x122   :  { %v552_v53 = vadd.f32 %v551_v51, %v550_v45  ;;  %v2055_v54 = vpop.f32.mrb[10].mxu0  ;;  %v2061_v60 = vpop.f32.mrb[10].mxu1 }
 0x123   :  { %v553_v55 = vsel %vm543_vm2, %v2055_v54, 0.0  ;;  %v1604_v56 = vpop.f32.mrb[11].mxu0  ;;  %v1656_v62 = vpop.f32.mrb[11].mxu1 }
 0x124   :  { %v554_v57 = vadd.f32 %v553_v55, %v552_v53 }
 0x128   :  { %v2063_v61 = vpop.f32.mrb[12].mxu0  ;;  %v2071_v6 = vpop.f32.mrb[12].mxu1 }
 0x129   :  { %v555_v63 = vsel %vm543_vm2, %v2063_v61, 0.0  ;;  %v1607_v0 = vpop.f32.mrb[13].mxu0  ;;  %v1659_v7 = vpop.f32.mrb[13].mxu1 }
 0x12a   :  { %v556_v1 = vadd.f32 %v555_v63, %v554_v57  ;;  %v2067_v2 = vpop.f32.mrb[14].mxu0  ;;  %v2073_v8 = vpop.f32.mrb[14].mxu1 }
 0x12b   :  { %v557_v3 = vsel %vm543_vm2, %v2067_v2, 0.0  ;;  %v1608_v4 = vpop.f32.mrb[15].mxu0  ;;  %v1660_v10 = vpop.f32.mrb[15].mxu1 }
 0x12c   :  { %v558_v5 = vadd.f32 %v557_v3, %v556_v1 }
 0x130   :  { %v2075_v9 = vpop.f32.mrb[16].mxu0  ;;  %v2083_v18 = vpop.f32.mrb[16].mxu1 }
 0x131   :  { %v559_v11 = vsel %vm543_vm2, %v2075_v9, 0.0  ;;  %v1611_v12 = vpop.f32.mrb[17].mxu0  ;;  %v1663_v19 = vpop.f32.mrb[17].mxu1 }
 0x132   :  { %v560_v13 = vadd.f32 %v559_v11, %v558_v5  ;;  %v2079_v14 = vpop.f32.mrb[18].mxu0  ;;  %v2085_v20 = vpop.f32.mrb[18].mxu1 }
 0x133   :  { %v561_v15 = vsel %vm543_vm2, %v2079_v14, 0.0  ;;  %v1612_v16 = vpop.f32.mrb[19].mxu0  ;;  %v1664_v22 = vpop.f32.mrb[19].mxu1 }
 0x134   :  { %v562_v17 = vadd.f32 %v561_v15, %v560_v13 }
 0x138   :  { %v2087_v21 = vpop.f32.mrb[20].mxu0  ;;  %v2095_v32 = vpop.f32.mrb[20].mxu1 }
 0x139   :  { %v563_v23 = vsel %vm543_vm2, %v2087_v21, 0.0  ;;  %v1615_v24 = vpop.f32.mrb[21].mxu0  ;;  %v1667_v33 = vpop.f32.mrb[21].mxu1 }
 0x13a   :  { %v564_v25 = vadd.f32 %v563_v23, %v562_v17  ;;  %v2091_v26 = vpop.f32.mrb[22].mxu0  ;;  %v2097_v35 = vpop.f32.mrb[22].mxu1 }
 0x13b   :  { %v565_v28 = vsel %vm543_vm2, %v2091_v26, 0.0  ;;  %v1616_v30 = vpop.f32.mrb[23].mxu0  ;;  %v1668_v39 = vpop.f32.mrb[23].mxu1 }
 0x13c   :  { %v566_v31 = vadd.f32 %v565_v28, %v564_v25 }
 0x140   :  { %v2099_v38 = vpop.f32.mrb[24].mxu0  ;;  %v2107_v51 = vpop.f32.mrb[24].mxu1 }
 0x141   :  { %v567_v40 = vsel %vm543_vm2, %v2099_v38, 0.0  ;;  %v1619_v41 = vpop.f32.mrb[25].mxu0  ;;  %v1671_v52 = vpop.f32.mrb[25].mxu1 }
 0x142   :  { %v568_v43 = vadd.f32 %v567_v40, %v566_v31  ;;  %v2103_v44 = vpop.f32.mrb[26].mxu0  ;;  %v2109_v53 = vpop.f32.mrb[26].mxu1 }
 0x143   :  { %v569_v45 = vsel %vm543_vm2, %v2103_v44, 0.0  ;;  %v1620_v47 = vpop.f32.mrb[27].mxu0  ;;  %v1672_v56 = vpop.f32.mrb[27].mxu1 }
 0x144   :  { %v570_v50 = vadd.f32 %v569_v45, %v568_v43 }
 0x148   :  { %v2111_v55 = vpop.f32.mrb[28].mxu0  ;;  %v2119_v4 = vpop.f32.mrb[28].mxu1 }
 0x149   :  { %v571_v57 = vsel %vm543_vm2, %v2111_v55, 0.0  ;;  %v1623_v59 = vpop.f32.mrb[29].mxu0  ;;  %v1675_v5 = vpop.f32.mrb[29].mxu1 }
 0x14a   :  { %v572_v62 = vadd.f32 %v571_v57, %v570_v50  ;;  %v2115_v63 = vpop.f32.mrb[30].mxu0  ;;  %v2121_v7 = vpop.f32.mrb[30].mxu1 }
 0x14b   :  { %v573_v0 = vsel %vm543_vm2, %v2115_v63, 0.0  ;;  %v1624_v1 = vpop.f32.mrb[31].mxu0  ;;  %v1676_v11 = vpop.f32.mrb[31].mxu1 }
 0x14c   :  { %v574_v3 = vadd.f32 %v573_v0, %v572_v62 }
 0x150   :  { %v2123_v10 = vpop.f32.mrb[32].mxu0  ;;  %v2131_v23 = vpop.f32.mrb[32].mxu1 }
 0x151   :  { %v575_v12 = vsel %vm543_vm2, %v2123_v10, 0.0  ;;  %v1627_v13 = vpop.f32.mrb[33].mxu0  ;;  %v1679_v24 = vpop.f32.mrb[33].mxu1 }
 0x152   :  { %v576_v15 = vadd.f32 %v575_v12, %v574_v3  ;;  %v2127_v16 = vpop.f32.mrb[34].mxu0  ;;  %v2133_v25 = vpop.f32.mrb[34].mxu1 }
 0x153   :  { %v577_v17 = vsel %vm543_vm2, %v2127_v16, 0.0  ;;  %v1628_v19 = vpop.f32.mrb[35].mxu0  ;;  %v1680_v30 = vpop.f32.mrb[35].mxu1 }
 0x154   :  { %v578_v22 = vadd.f32 %v577_v17, %v576_v15 }
 0x158   :  { %v2135_v28 = vpop.f32.mrb[36].mxu0  ;;  %v2143_v47 = vpop.f32.mrb[36].mxu1 }
 0x159   :  { %v579_v31 = vsel %vm543_vm2, %v2135_v28, 0.0  ;;  %v1631_v33 = vpop.f32.mrb[37].mxu0  ;;  %v1683_v50 = vpop.f32.mrb[37].mxu1 }
 0x15a   :  { %v580_v39 = vadd.f32 %v579_v31, %v578_v22  ;;  %v2139_v40 = vpop.f32.mrb[38].mxu0  ;;  %v2145_v52 = vpop.f32.mrb[38].mxu1 }
 0x15b   :  { %v581_v41 = vsel %vm543_vm2, %v2139_v40, 0.0  ;;  %v1632_v43 = vpop.f32.mrb[39].mxu0  ;;  %3475 = vst [vmem:[#allocation9_spill] sm:$0xff] %v2145_v52  ;;  %v1684_v57 = vpop.f32.mrb[39].mxu1 }
 0x15c   :  { %v582_v45 = vadd.f32 %v581_v41, %v580_v39 }
 0x160   :  { %v2147_v56 = vpop.f32.mrb[40].mxu0  ;;  %v2155_v12 = vpop.f32.mrb[40].mxu1 }
 0x161   :  { %v583_v59 = vsel %vm543_vm2, %v2147_v56, 0.0  ;;  %v1635_v62 = vpop.f32.mrb[41].mxu0  ;;  %v1687_v13 = vpop.f32.mrb[41].mxu1 }
 0x162   :  { %v584_v0 = vadd.f32 %v583_v59, %v582_v45  ;;  %v2151_v1 = vpop.f32.mrb[42].mxu0  ;;  %v2157_v15 = vpop.f32.mrb[42].mxu1 }
 0x163   :  { %v585_v3 = vsel %vm543_vm2, %v2151_v1, 0.0  ;;  %v1636_v5 = vpop.f32.mrb[43].mxu0  ;;  %v1688_v19 = vpop.f32.mrb[43].mxu1 }
 0x164   :  { %v586_v11 = vadd.f32 %v585_v3, %v584_v0 }
 0x168   :  { %v2159_v17 = vpop.f32.mrb[44].mxu0  ;;  %v2167_v43 = vpop.f32.mrb[44].mxu1 }
 0x169   :  { %v587_v22 = vsel %vm543_vm2, %v2159_v17, 0.0  ;;  %v1639_v24 = vpop.f32.mrb[45].mxu0  ;;  %v1691_v45 = vpop.f32.mrb[45].mxu1 }
 0x16a   :  { %v588_v30 = vadd.f32 %v587_v22, %v586_v11  ;;  %v2163_v31 = vpop.f32.mrb[46].mxu0  ;;  %v540_v50 = vpop.f32.mrb[46].mxu1  ;;  %v595_v22 = vsel %vm543_vm2, %v2035_v34, 0.0 }
 0x16b   :  { %v589_v33 = vsel %vm543_vm2, %v2163_v31, 0.0  ;;  %v1640_v39 = vpop.f32.mrb[47].mxu0  ;;  %v1692_v59 = vpop.f32.mrb[47].mxu1 }
 0x16c   :  { %v590_v41 = vadd.f32 %v589_v33, %v588_v30  ;;  %v597_v30 = vsel %vm543_vm2, %v2037_v36, 0.0  ;;  %v599_v39 = vsel %vm543_vm2, %v2047_v46, 0.0  ;;  %v603_v59 = vsel %vm543_vm2, %v2059_v58, 0.0 }
 0x170   :  { %v2169_v57 = vpop.f32.mrb[48].mxu0 }
 0x171   :  { %v591_v62 = vsel %vm543_vm2, %v2169_v57, 0.0  ;;  %v1643_v0 = vpop.f32.mrb[49].mxu0 }
 0x172   :  { %v592_v3 = vadd.f32 %v591_v62, %v590_v41  ;;  %v2173_v5 = vpop.f32.mrb[50].mxu0  ;;  %v601_v41 = vsel %vm543_vm2, %v2049_v48, 0.0  ;;  %v605_v0 = vsel %vm543_vm2, %v2061_v60, 0.0 }
 0x173   :  { %v593_v11 = vsel %vm543_vm2, %v2173_v5, 0.0  ;;  %v1644_v13 = vpop.f32.mrb[51].mxu0 }
 0x174   :  { %v594_v19 = vadd.f32 %v593_v11, %v592_v3  ;;  %v607_v11 = vsel %vm543_vm2, %v2071_v6, 0.0 }
 0x176   :  { %v596_v24 = vadd.f32 %v595_v22, %v594_v19  ;;  %v609_v19 = vsel %vm543_vm2, %v2073_v8, 0.0 }
 0x178   :  { %v598_v33 = vadd.f32 %v597_v30, %v596_v24  ;;  %v611_v24 = vsel %vm543_vm2, %v2083_v18, 0.0 }
 0x17a   :  { %v600_v45 = vadd.f32 %v599_v39, %v598_v33  ;;  %v613_v33 = vsel %vm543_vm2, %v2085_v20, 0.0 }
 0x17c   :  { %v602_v50 = vadd.f32 %v601_v41, %v600_v45  ;;  %v615_v45 = vsel %vm543_vm2, %v2095_v32, 0.0 }
 0x17e   :  { %v604_v62 = vadd.f32 %v603_v59, %v602_v50  ;;  %v617_v50 = vsel %vm543_vm2, %v2097_v35, 0.0 }
 0x180   :  { %v606_v3 = vadd.f32 %v605_v0, %v604_v62  ;;  %v619_v62 = vsel %vm543_vm2, %v2107_v51, 0.0 }
 0x182   :  { %v608_v13 = vadd.f32 %v607_v11, %v606_v3  ;;  %v621_v3 = vsel %vm543_vm2, %v2109_v53, 0.0 }
 0x184   :  { %v610_v22 = vadd.f32 %v609_v19, %v608_v13  ;;  %v623_v13 = vsel %vm543_vm2, %v2119_v4, 0.0 }
 0x186   :  { %v612_v30 = vadd.f32 %v611_v24, %v610_v22  ;;  %v625_v22 = vsel %vm543_vm2, %v2121_v7, 0.0 }
 0x188   :  { %v614_v39 = vadd.f32 %v613_v33, %v612_v30  ;;  %v627_v30 = vsel %vm543_vm2, %v2131_v23, 0.0 }
 0x18a   :  { %v616_v41 = vadd.f32 %v615_v45, %v614_v39  ;;  %v629_v39 = vsel %vm543_vm2, %v2133_v25, 0.0 }
 0x18c   :  { %v618_v59 = vadd.f32 %v617_v50, %v616_v41  ;;  %v631_v41 = vsel %vm543_vm2, %v2143_v47, 0.0 }
 0x18e   :  { %v620_v0 = vadd.f32 %v619_v62, %v618_v59  ;;  %v633_v59 = vsel %vm543_vm2, %v2145_v52, 0.0 }
 0x190   :  { %v622_v11 = vadd.f32 %v621_v3, %v620_v0  ;;  %v635_v0 = vsel %vm543_vm2, %v2155_v12, 0.0 }
 0x192   :  { %v624_v19 = vadd.f32 %v623_v13, %v622_v11  ;;  %v637_v11 = vsel %vm543_vm2, %v2157_v15, 0.0  ;;  %v639_v13 = vsel %vm543_vm2, %v2167_v43, 0.0 }
 0x194   :  { %v626_v24 = vadd.f32 %v625_v22, %v624_v19 }
 0x196   :  { %v628_v33 = vadd.f32 %v627_v30, %v626_v24 }
 0x198   :  { %v630_v45 = vadd.f32 %v629_v39, %v628_v33 }
 0x19a   :  { %v632_v50 = vadd.f32 %v631_v41, %v630_v45 }
 0x19c   :  { %v634_v62 = vadd.f32 %v633_v59, %v632_v50 }
 0x19e   :  { %v636_v3 = vadd.f32 %v635_v0, %v634_v62 }
 0x1a0   :  { %v638_v19 = vadd.f32 %v637_v11, %v636_v3 }
 0x1a2   :  { %v640_v22 = vadd.f32 %v639_v13, %v638_v19 }
 0x1a4   :  { %v641_v24 = vrot.slane %v640_v22, 4 }
 0x1a6   :  { %v642_v30 = vadd.f32 %v641_v24, %v640_v22 }
 0x1a8   :  { %v643_v33 = vrot.slane %v642_v30, 2 }
 0x1aa   :  { %v644_v39 = vadd.f32 %v643_v33, %v642_v30 }
 0x1ac   :  { %v645_v45 = vrot.slane %v644_v39, 1 }
 0x1ae   :  { %v646_v41 = vadd.f32 %v645_v45, %v644_v39 }
 0x1b0   :  { %v648_v52 = vmul.f32 0.0025510204, %v646_v41 }
 0x1b2   :  { %v2224_v50 = vsub.f32 %v2027_v27, %v648_v52  ;;  %v2227_v59 = vsub.f32 %v2029_v29, %v648_v52  ;;  %v2230_v62 = vsub.f32 %v2039_v37, %v648_v52  ;;  %v2233_v0 = vsub.f32 %v2043_v42, %v648_v52 }
 0x1b3   :  { %v2236_v3 = vsub.f32 %v2051_v49, %v648_v52  ;;  %v2239_v11 = vsub.f32 %v2055_v54, %v648_v52  ;;  %v2242_v13 = vsub.f32 %v2063_v61, %v648_v52  ;;  %v2245_v27 = vsub.f32 %v2067_v2, %v648_v52 }
 0x1b4   :  { %v2248_v29 = vsub.f32 %v2075_v9, %v648_v52  ;;  %v2251_v37 = vsub.f32 %v2079_v14, %v648_v52  ;;  %v2254_v42 = vsub.f32 %v2087_v21, %v648_v52  ;;  %v2257_v49 = vsub.f32 %v2091_v26, %v648_v52 }
 0x1b5   :  { %v2260_v54 = vsub.f32 %v2099_v38, %v648_v52  ;;  %v2263_v61 = vsub.f32 %v2103_v44, %v648_v52  ;;  %v2266_v2 = vsub.f32 %v2111_v55, %v648_v52  ;;  %v2269_v9 = vsub.f32 %v2115_v63, %v648_v52 }
 0x1b6   :  { %v2272_v14 = vsub.f32 %v2123_v10, %v648_v52  ;;  %v2275_v21 = vsub.f32 %v2127_v16, %v648_v52  ;;  %v2278_v26 = vsub.f32 %v2135_v28, %v648_v52  ;;  %v2281_v38 = vsub.f32 %v2139_v40, %v648_v52 }
 0x1b7   :  { %v2284_v44 = vsub.f32 %v2147_v56, %v648_v52  ;;  %v2287_v55 = vsub.f32 %v2151_v1, %v648_v52  ;;  %v2290_v63 = vsub.f32 %v2159_v17, %v648_v52  ;;  %v2293_v10 = vsub.f32 %v2163_v31, %v648_v52 }
 0x1b8   :  { %v2296_v16 = vsub.f32 %v2169_v57, %v648_v52  ;;  %v2299_v28 = vsub.f32 %v2173_v5, %v648_v52  ;;  %v2302_v40 = vsub.f32 %v2035_v34, %v648_v52  ;;  %v2305_v56 = vsub.f32 %v2037_v36, %v648_v52 }
 0x1b9   :  { %v2308_v1 = vsub.f32 %v2047_v46, %v648_v52  ;;  %v2311_v17 = vsub.f32 %v2049_v48, %v648_v52  ;;  %v2314_v31 = vsub.f32 %v2059_v58, %v648_v52  ;;  %v2317_v57 = vsub.f32 %v2061_v60, %v648_v52 }
 0x1ba   :  { %v2320_v5 = vsub.f32 %v2071_v6, %v648_v52  ;;  %v2323_v34 = vsub.f32 %v2073_v8, %v648_v52  ;;  %v2326_v36 = vsub.f32 %v2083_v18, %v648_v52  ;;  %v2329_v46 = vsub.f32 %v2085_v20, %v648_v52 }
 0x1bb   :  { %v2332_v48 = vsub.f32 %v2095_v32, %v648_v52  ;;  %v2335_v58 = vsub.f32 %v2097_v35, %v648_v52  ;;  %v2338_v60 = vsub.f32 %v2107_v51, %v648_v52  ;;  %v2341_v6 = vsub.f32 %v2109_v53, %v648_v52  ;;  %v3481_v51 = vld [vmem:[#allocation9_spill] sm:$0xff] }
 0x1bc   :  { %3476 = vst [vmem:[#allocation10_spill] sm:$0xff] %v2320_v5  ;;  %3477 = vst [vmem:[#allocation11_spill] sm:$0xff] %v2323_v34  ;;  %v2344_v8 = vsub.f32 %v2119_v4, %v648_v52  ;;  %v2347_v18 = vsub.f32 %v2121_v7, %v648_v52  ;;  %v2350_v20 = vsub.f32 %v2131_v23, %v648_v52 }
 0x1bd   :  { %3478 = vst [vmem:[#allocation12_spill] sm:$0xff] %v2326_v36  ;;  %3479 = vst [vmem:[#allocation13_spill] sm:$0xff] %v2329_v46  ;;  %v2353_v32 = vsub.f32 %v2133_v25, %v648_v52  ;;  %v2356_v35 = vsub.f32 %v2143_v47, %v648_v52  ;;  %v2359_v19 = vsub.f32 %v3481_v51, %v648_v52 }
 0x1be   :  { %3480 = vst [vmem:[#allocation14_spill] sm:$0xff] %v2332_v48  ;;  %v2362_v53 = vsub.f32 %v2155_v12, %v648_v52  ;;  %v2365_v4 = vsub.f32 %v2157_v15, %v648_v52  ;;  %v2368_v7 = vsub.f32 %v2167_v43, %v648_v52  ;;  %v698_v23 = vmul.f32 %v2224_v50, %v2224_v50 }
 0x1bf   :  { %v699_v25 = vmul.f32 %v2227_v59, %v2227_v59  ;;  %v700_v47 = vmul.f32 %v2230_v62, %v2230_v62  ;;  %v701_v22 = vmul.f32 %v2233_v0, %v2233_v0  ;;  %v702_v52 = vmul.f32 %v2236_v3, %v2236_v3 }
 0x1c0   :  { %v747_v12 = vsel %vm543_vm2, %v698_v23, 0.0  ;;  %v703_v33 = vmul.f32 %v2239_v11, %v2239_v11  ;;  %v704_v41 = vmul.f32 %v2242_v13, %v2242_v13 }
 0x1c1   :  { %v748_v15 = vsel %vm543_vm2, %v699_v25, 0.0  ;;  %v750_v43 = vsel %vm543_vm2, %v700_v47, 0.0  ;;  %v752_v39 = vsel %vm543_vm2, %v701_v22, 0.0  ;;  %v754_v51 = vsel %vm543_vm2, %v702_v52, 0.0 }
 0x1c2   :  { %v749_v24 = vadd.f32 %v748_v15, %v747_v12  ;;  %v705_v25 = vmul.f32 %v2245_v27, %v2245_v27  ;;  %v756_v12 = vsel %vm543_vm2, %v703_v33, 0.0  ;;  %v706_v47 = vmul.f32 %v2248_v29, %v2248_v29 }
 0x1c3   :  { %v707_v22 = vmul.f32 %v2251_v37, %v2251_v37  ;;  %v708_v52 = vmul.f32 %v2254_v42, %v2254_v42  ;;  %v709_v33 = vmul.f32 %v2257_v49, %v2257_v49 }
 0x1c4   :  { %v751_v30 = vadd.f32 %v750_v43, %v749_v24  ;;  %v758_v24 = vsel %vm543_vm2, %v704_v41, 0.0  ;;  %v710_v41 = vmul.f32 %v2260_v54, %v2260_v54 }
 0x1c6   :  { %v753_v45 = vadd.f32 %v752_v39, %v751_v30  ;;  %v760_v30 = vsel %vm543_vm2, %v705_v25, 0.0  ;;  %v711_v25 = vmul.f32 %v2263_v61, %v2263_v61 }
 0x1c8   :  { %v755_v23 = vadd.f32 %v754_v51, %v753_v45  ;;  %v762_v45 = vsel %vm543_vm2, %v706_v47, 0.0  ;;  %v712_v47 = vmul.f32 %v2266_v2, %v2266_v2 }
 0x1ca   :  { %v757_v15 = vadd.f32 %v756_v12, %v755_v23  ;;  %v764_v23 = vsel %vm543_vm2, %v707_v22, 0.0  ;;  %v713_v22 = vmul.f32 %v2269_v9, %v2269_v9 }
 0x1cc   :  { %v759_v43 = vadd.f32 %v758_v24, %v757_v15  ;;  %v766_v15 = vsel %vm543_vm2, %v708_v52, 0.0  ;;  %v714_v52 = vmul.f32 %v2272_v14, %v2272_v14 }
 0x1ce   :  { %v761_v39 = vadd.f32 %v760_v30, %v759_v43  ;;  %v768_v43 = vsel %vm543_vm2, %v709_v33, 0.0  ;;  %v715_v33 = vmul.f32 %v2275_v21, %v2275_v21 }
 0x1d0   :  { %v763_v51 = vadd.f32 %v762_v45, %v761_v39  ;;  %v770_v39 = vsel %vm543_vm2, %v710_v41, 0.0  ;;  %v716_v41 = vmul.f32 %v2278_v26, %v2278_v26 }
 0x1d2   :  { %v765_v12 = vadd.f32 %v764_v23, %v763_v51  ;;  %v772_v51 = vsel %vm543_vm2, %v711_v25, 0.0  ;;  %v717_v25 = vmul.f32 %v2281_v38, %v2281_v38 }
 0x1d4   :  { %v767_v24 = vadd.f32 %v766_v15, %v765_v12  ;;  %v774_v12 = vsel %vm543_vm2, %v712_v47, 0.0  ;;  %v718_v47 = vmul.f32 %v2284_v44, %v2284_v44 }
 0x1d6   :  { %v769_v30 = vadd.f32 %v768_v43, %v767_v24  ;;  %v776_v24 = vsel %vm543_vm2, %v713_v22, 0.0  ;;  %v719_v22 = vmul.f32 %v2287_v55, %v2287_v55 }
 0x1d8   :  { %v771_v45 = vadd.f32 %v770_v39, %v769_v30  ;;  %v778_v30 = vsel %vm543_vm2, %v714_v52, 0.0  ;;  %v720_v52 = vmul.f32 %v2290_v63, %v2290_v63 }
 0x1da   :  { %v773_v23 = vadd.f32 %v772_v51, %v771_v45  ;;  %v780_v45 = vsel %vm543_vm2, %v715_v33, 0.0  ;;  %v721_v33 = vmul.f32 %v2293_v10, %v2293_v10 }
 0x1dc   :  { %v775_v15 = vadd.f32 %v774_v12, %v773_v23  ;;  %v782_v23 = vsel %vm543_vm2, %v716_v41, 0.0  ;;  %v722_v41 = vmul.f32 %v2296_v16, %v2296_v16 }
 0x1de   :  { %v777_v43 = vadd.f32 %v776_v24, %v775_v15  ;;  %v784_v15 = vsel %vm543_vm2, %v717_v25, 0.0  ;;  %v723_v25 = vmul.f32 %v2299_v28, %v2299_v28 }
 0x1e0   :  { %v779_v39 = vadd.f32 %v778_v30, %v777_v43  ;;  %v786_v43 = vsel %vm543_vm2, %v718_v47, 0.0  ;;  %v724_v47 = vmul.f32 %v2302_v40, %v2302_v40 }
 0x1e2   :  { %v781_v51 = vadd.f32 %v780_v45, %v779_v39  ;;  %v788_v39 = vsel %vm543_vm2, %v719_v22, 0.0  ;;  %v725_v22 = vmul.f32 %v2305_v56, %v2305_v56 }
 0x1e4   :  { %v783_v12 = vadd.f32 %v782_v23, %v781_v51  ;;  %v790_v51 = vsel %vm543_vm2, %v720_v52, 0.0  ;;  %v726_v52 = vmul.f32 %v2308_v1, %v2308_v1 }
 0x1e6   :  { %v785_v24 = vadd.f32 %v784_v15, %v783_v12  ;;  %v792_v12 = vsel %vm543_vm2, %v721_v33, 0.0  ;;  %v727_v33 = vmul.f32 %v2311_v17, %v2311_v17 }
 0x1e8   :  { %v787_v30 = vadd.f32 %v786_v43, %v785_v24  ;;  %v794_v24 = vsel %vm543_vm2, %v722_v41, 0.0  ;;  %v728_v41 = vmul.f32 %v2314_v31, %v2314_v31 }
 0x1ea   :  { %v789_v45 = vadd.f32 %v788_v39, %v787_v30  ;;  %v796_v30 = vsel %vm543_vm2, %v723_v25, 0.0  ;;  %v729_v25 = vmul.f32 %v2317_v57, %v2317_v57 }
 0x1ec   :  { %v791_v23 = vadd.f32 %v790_v51, %v789_v45  ;;  %v798_v45 = vsel %vm543_vm2, %v724_v47, 0.0  ;;  %v730_v47 = vmul.f32 %v2320_v5, %v2320_v5 }
 0x1ee   :  { %v793_v15 = vadd.f32 %v792_v12, %v791_v23  ;;  %v800_v23 = vsel %vm543_vm2, %v725_v22, 0.0  ;;  %v731_v22 = vmul.f32 %v2323_v34, %v2323_v34 }
 0x1f0   :  { %v795_v43 = vadd.f32 %v794_v24, %v793_v15  ;;  %v802_v15 = vsel %vm543_vm2, %v726_v52, 0.0  ;;  %v732_v52 = vmul.f32 %v2326_v36, %v2326_v36 }
 0x1f2   :  { %v797_v39 = vadd.f32 %v796_v30, %v795_v43  ;;  %v804_v43 = vsel %vm543_vm2, %v727_v33, 0.0  ;;  %v733_v33 = vmul.f32 %v2329_v46, %v2329_v46 }
 0x1f4   :  { %v799_v51 = vadd.f32 %v798_v45, %v797_v39  ;;  %v806_v39 = vsel %vm543_vm2, %v728_v41, 0.0  ;;  %v734_v41 = vmul.f32 %v2332_v48, %v2332_v48 }
 0x1f6   :  { %v801_v12 = vadd.f32 %v800_v23, %v799_v51  ;;  %v808_v51 = vsel %vm543_vm2, %v729_v25, 0.0  ;;  %v735_v25 = vmul.f32 %v2335_v58, %v2335_v58 }
 0x1f8   :  { %v803_v24 = vadd.f32 %v802_v15, %v801_v12  ;;  %v810_v12 = vsel %vm543_vm2, %v730_v47, 0.0  ;;  %v736_v47 = vmul.f32 %v2338_v60, %v2338_v60 }
 0x1fa   :  { %v805_v30 = vadd.f32 %v804_v43, %v803_v24  ;;  %v812_v24 = vsel %vm543_vm2, %v731_v22, 0.0  ;;  %v737_v22 = vmul.f32 %v2341_v6, %v2341_v6 }
 0x1fc   :  { %v807_v45 = vadd.f32 %v806_v39, %v805_v30  ;;  %v814_v30 = vsel %vm543_vm2, %v732_v52, 0.0  ;;  %v738_v52 = vmul.f32 %v2344_v8, %v2344_v8 }
 0x1fe   :  { %v809_v23 = vadd.f32 %v808_v51, %v807_v45  ;;  %v816_v45 = vsel %vm543_vm2, %v733_v33, 0.0  ;;  %v739_v33 = vmul.f32 %v2347_v18, %v2347_v18 }
 0x200   :  { %v811_v15 = vadd.f32 %v810_v12, %v809_v23  ;;  %v818_v23 = vsel %vm543_vm2, %v734_v41, 0.0  ;;  %v740_v41 = vmul.f32 %v2350_v20, %v2350_v20 }
 0x202   :  { %v813_v43 = vadd.f32 %v812_v24, %v811_v15  ;;  %v820_v15 = vsel %vm543_vm2, %v735_v25, 0.0  ;;  %v741_v25 = vmul.f32 %v2353_v32, %v2353_v32 }
 0x204   :  { %v815_v39 = vadd.f32 %v814_v30, %v813_v43  ;;  %v822_v43 = vsel %vm543_vm2, %v736_v47, 0.0  ;;  %v742_v47 = vmul.f32 %v2356_v35, %v2356_v35 }
 0x206   :  { %v817_v51 = vadd.f32 %v816_v45, %v815_v39  ;;  %v824_v39 = vsel %vm543_vm2, %v737_v22, 0.0  ;;  %v743_v22 = vmul.f32 %v2359_v19, %v2359_v19 }
 0x208   :  { %v819_v12 = vadd.f32 %v818_v23, %v817_v51  ;;  %v826_v51 = vsel %vm543_vm2, %v738_v52, 0.0  ;;  %v744_v52 = vmul.f32 %v2362_v53, %v2362_v53 }
 0x20a   :  { %v821_v24 = vadd.f32 %v820_v15, %v819_v12  ;;  %v828_v12 = vsel %vm543_vm2, %v739_v33, 0.0  ;;  %v745_v33 = vmul.f32 %v2365_v4, %v2365_v4 }
 0x20c   :  { %v823_v30 = vadd.f32 %v822_v43, %v821_v24  ;;  %v830_v24 = vsel %vm543_vm2, %v740_v41, 0.0  ;;  %v746_v41 = vmul.f32 %v2368_v7, %v2368_v7 }
 0x20e   :  { %v825_v45 = vadd.f32 %v824_v39, %v823_v30  ;;  %v832_v30 = vsel %vm543_vm2, %v741_v25, 0.0  ;;  %v840_v25 = vsel %vm543_vm2, %v745_v33, 0.0 }
 0x210   :  { %v827_v23 = vadd.f32 %v826_v51, %v825_v45  ;;  %v834_v45 = vsel %vm543_vm2, %v742_v47, 0.0 }
 0x212   :  { %v829_v15 = vadd.f32 %v828_v12, %v827_v23  ;;  %v836_v23 = vsel %vm543_vm2, %v743_v22, 0.0 }
 0x214   :  { %v831_v43 = vadd.f32 %v830_v24, %v829_v15  ;;  %v838_v15 = vsel %vm543_vm2, %v744_v52, 0.0 }
 0x216   :  { %v833_v39 = vadd.f32 %v832_v30, %v831_v43  ;;  %v842_v30 = vsel %vm543_vm2, %v746_v41, 0.0 }
 0x218   :  { %v835_v51 = vadd.f32 %v834_v45, %v833_v39 }
 0x21a   :  { %v837_v12 = vadd.f32 %v836_v23, %v835_v51 }
 0x21c   :  { %v839_v24 = vadd.f32 %v838_v15, %v837_v12 }
 0x21e   :  { %v841_v43 = vadd.f32 %v840_v25, %v839_v24  ;;  %v1465_v24 = vld [vmem:[#allocation4] ss:$0 sm:$0xff] }
 0x220   :  { %v843_v48 = vadd.f32 %v842_v30, %v841_v43 }
 0x222   :  { %v844_v47 = vrot.slane %v843_v48, 4 }
 0x224   :  { %v845_v39 = vadd.f32 %v844_v47, %v843_v48 }
 0x226   :  { %v846_v45 = vrot.slane %v845_v39, 2 }
 0x228   :  { %v847_v46 = vadd.f32 %v846_v45, %v845_v39  ;;  %v3493_v39 = vld [vmem:[#allocation14_spill] sm:$0xff] }
 0x22a   :  { %v848_v36 = vrot.slane %v847_v46, 1 }
 0x22c   :  { %v849_v34 = vadd.f32 %v848_v36, %v847_v46 }
 0x22e   :  { %v850_v22 = vmul.f32 0.0025510204, %v849_v34 }
 0x230   :  { %v851_v51 = vadd.f32 1e-05, %v850_v22 }
 0x232   :  { %1728 = vrsqrt.f32 %v851_v51 }
 0x23c   :  { %v1729_v23 = vpop.eup %1728 }
 0x23d   :  { %v2518_v5 = vmul.f32 %v1729_v23, %v2335_v58  ;;  %v2521_v52 = vmul.f32 %v1729_v23, %v2338_v60  ;;  %v2524_v33 = vmul.f32 %v1729_v23, %v2341_v6  ;;  %v2527_v12 = vmul.f32 %v1729_v23, %v2344_v8 }
 0x23e   :  { %v2530_v48 = vmul.f32 %v1729_v23, %v2347_v18  ;;  %v2533_v34 = vmul.f32 %v1729_v23, %v2350_v20  ;;  %v2536_v36 = vmul.f32 %v1729_v23, %v2353_v32  ;;  %v2539_v46 = vmul.f32 %v1729_v23, %v2356_v35 }
 0x23f   :  { %v2542_v58 = vmul.f32 %v1729_v23, %v2359_v19  ;;  %v2545_v60 = vmul.f32 %v1729_v23, %v2362_v53  ;;  %v2548_v6 = vmul.f32 %v1729_v23, %v2365_v4  ;;  %v2551_v8 = vmul.f32 %v1729_v23, %v2368_v7 }
 0x240   :  { %3482 = vst [vmem:[#allocation9_spill] sm:$0xff] %v2533_v34  ;;  %3483 = vst [vmem:[#allocation15_spill] sm:$0xff] %v2536_v36  ;;  %v853_v18 = vmul.f32 %v1729_v23, %v2224_v50  ;;  %v854_v20 = vmul.f32 %v1729_v23, %v2227_v59  ;;  %v855_v32 = vmul.f32 %v1729_v23, %v2230_v62 }
 0x241   :  { %3484 = vst [vmem:[#allocation16_spill] sm:$0xff] %v2539_v46  ;;  %3485 = vst [vmem:[#allocation17_spill] sm:$0xff] %v2542_v58  ;;  %v856_v35 = vmul.f32 %v1729_v23, %v2233_v0  ;;  %v857_v19 = vmul.f32 %v1729_v23, %v2236_v3  ;;  %v858_v41 = vmul.f32 %v1729_v23, %v2239_v11 }
 0x242   :  { %3486 = vst [vmem:[#allocation18_spill] sm:$0xff] %v2545_v60  ;;  %3487 = vst [vmem:[#allocation19_spill] sm:$0xff] %v2548_v6  ;;  %v859_v53 = vmul.f32 %v1729_v23, %v2242_v13  ;;  %v860_v4 = vmul.f32 %v1729_v23, %v2245_v27  ;;  %v861_v15 = vmul.f32 %v1729_v23, %v2248_v29 }
 0x243   :  { %3488 = vst [vmem:[#allocation20_spill] sm:$0xff] %v2551_v8  ;;  %v862_v7 = vmul.f32 %v1729_v23, %v2251_v37  ;;  %v863_v50 = vmul.f32 %v1729_v23, %v2254_v42  ;;  %v864_v59 = vmul.f32 %v1729_v23, %v2257_v49  ;;  %v865_v62 = vmul.f32 %v1729_v23, %v2260_v54 }
 0x244   :  { %v866_v0 = vmul.f32 %v1729_v23, %v2263_v61  ;;  %v867_v3 = vmul.f32 %v1729_v23, %v2266_v2  ;;  %v868_v11 = vmul.f32 %v1729_v23, %v2269_v9  ;;  %v869_v13 = vmul.f32 %v1729_v23, %v2272_v14 }
 0x245   :  { %v870_v27 = vmul.f32 %v1729_v23, %v2275_v21  ;;  %v871_v29 = vmul.f32 %v1729_v23, %v2278_v26  ;;  %v872_v37 = vmul.f32 %v1729_v23, %v2281_v38  ;;  %v873_v42 = vmul.f32 %v1729_v23, %v2284_v44 }
 0x246   :  { %v874_v49 = vmul.f32 %v1729_v23, %v2287_v55  ;;  %v875_v54 = vmul.f32 %v1729_v23, %v2290_v63  ;;  %v876_v61 = vmul.f32 %v1729_v23, %v2293_v10  ;;  %v877_v2 = vmul.f32 %v1729_v23, %v2296_v16  ;;  %v3489_v63 = vld [vmem:[#allocation10_spill] sm:$0xff]  ;;  %v3490_v10 = vld [vmem:[#allocation11_spill] sm:$0xff]  ;;  %v3491_v16 = vld [vmem:[#allocation12_spill] sm:$0xff] }
 0x247   :  { %v878_v9 = vmul.f32 %v1729_v23, %v2299_v28  ;;  %v879_v14 = vmul.f32 %v1729_v23, %v2302_v40  ;;  %v880_v21 = vmul.f32 %v1729_v23, %v2305_v56  ;;  %v881_v26 = vmul.f32 %v1729_v23, %v2308_v1  ;;  %v3492_v28 = vld [vmem:[#allocation13_spill] sm:$0xff] }
 0x248   :  { %v882_v38 = vmul.f32 %v1729_v23, %v2311_v17  ;;  %v883_v44 = vmul.f32 %v1729_v23, %v2314_v31  ;;  %v884_v55 = vmul.f32 %v1729_v23, %v2317_v57  ;;  %v885_v25 = vmul.f32 %v1729_v23, %v3489_v63 }
 0x249   :  { %v886_v43 = vmul.f32 %v1729_v23, %v3490_v10  ;;  %v887_v30 = vmul.f32 %v1729_v23, %v3491_v16  ;;  %v888_v47 = vmul.f32 %v1729_v23, %v3492_v28  ;;  %v889_v40 = vmul.f32 %v1729_v23, %v3493_v39 }
 0x24a   :  { %v909_v45 = vmul.f32 %v1465_v24, %v853_v18  ;;  %v910_v56 = vmul.f32 %v1465_v24, %v854_v20  ;;  %v911_v22 = vmul.f32 %v1465_v24, %v855_v32  ;;  %v912_v1 = vmul.f32 %v1465_v24, %v856_v35 }
 0x24b   :  { %v913_v51 = vmul.f32 %v1465_v24, %v857_v19  ;;  %v914_v17 = vmul.f32 %v1465_v24, %v858_v41  ;;  %v915_v8 = vmul.f32 %v1465_v24, %v859_v53  ;;  %v916_v31 = vmul.f32 %v1465_v24, %v860_v4 }
 0x24c   :  { %v917_v6 = vmul.f32 %v1465_v24, %v861_v15  ;;  %v918_v57 = vmul.f32 %v1465_v24, %v862_v7  ;;  %v919_v60 = vmul.f32 %v1465_v24, %v863_v50  ;;  %v920_v63 = vmul.f32 %v1465_v24, %v864_v59 }
 0x24d   :  { %v921_v58 = vmul.f32 %v1465_v24, %v865_v62  ;;  %v922_v10 = vmul.f32 %v1465_v24, %v866_v0  ;;  %v923_v46 = vmul.f32 %v1465_v24, %v867_v3  ;;  %v924_v16 = vmul.f32 %v1465_v24, %v868_v11 }
 0x24e   :  { %v925_v36 = vmul.f32 %v1465_v24, %v869_v13  ;;  %v926_v28 = vmul.f32 %v1465_v24, %v870_v27  ;;  %v927_v34 = vmul.f32 %v1465_v24, %v871_v29  ;;  %v928_v23 = vmul.f32 %v1465_v24, %v872_v37 }
 0x24f   :  { %v929_v18 = vmul.f32 %v1465_v24, %v873_v42  ;;  %v930_v20 = vmul.f32 %v1465_v24, %v874_v49  ;;  %v931_v32 = vmul.f32 %v1465_v24, %v875_v54  ;;  %v932_v35 = vmul.f32 %v1465_v24, %v876_v61  ;;  %v2594_v49 = vld [vmem:[#allocation6] ss:$0 sm:$0xff]  ;;  %v3494_v61 = vld [vmem:[#allocation9_spill] sm:$0xff] }
 0x250   :  { %v933_v19 = vmul.f32 %v1465_v24, %v877_v2  ;;  %v934_v41 = vmul.f32 %v1465_v24, %v878_v9  ;;  %v935_v53 = vmul.f32 %v1465_v24, %v879_v14  ;;  %v936_v4 = vmul.f32 %v1465_v24, %v880_v21  ;;  %v3495_v9 = vld [vmem:[#allocation15_spill] sm:$0xff]  ;;  %v3496_v21 = vld [vmem:[#allocation16_spill] sm:$0xff] }
 0x251   :  { %v937_v15 = vmul.f32 %v1465_v24, %v881_v26  ;;  %v938_v7 = vmul.f32 %v1465_v24, %v882_v38  ;;  %v939_v50 = vmul.f32 %v1465_v24, %v883_v44  ;;  %v940_v59 = vmul.f32 %v1465_v24, %v884_v55  ;;  %v3497_v38 = vld [vmem:[#allocation17_spill] sm:$0xff]  ;;  %v3498_v55 = vld [vmem:[#allocation18_spill] sm:$0xff] }
 0x252   :  { %v941_v62 = vmul.f32 %v1465_v24, %v885_v25  ;;  %v942_v0 = vmul.f32 %v1465_v24, %v886_v43  ;;  %v943_v3 = vmul.f32 %v1465_v24, %v887_v30  ;;  %v944_v11 = vmul.f32 %v1465_v24, %v888_v47  ;;  %v3499_v25 = vld [vmem:[#allocation19_spill] sm:$0xff]  ;;  %v3500_v43 = vld [vmem:[#allocation20_spill] sm:$0xff] }
 0x253   :  { %v945_v13 = vmul.f32 %v1465_v24, %v889_v40  ;;  %v946_v27 = vmul.f32 %v1465_v24, %v2518_v5  ;;  %v947_v29 = vmul.f32 %v1465_v24, %v2521_v52  ;;  %v948_v37 = vmul.f32 %v1465_v24, %v2524_v33 }
 0x254   :  { %v949_v42 = vmul.f32 %v1465_v24, %v2527_v12  ;;  %v950_v54 = vmul.f32 %v1465_v24, %v2530_v48  ;;  %v951_v2 = vmul.f32 %v1465_v24, %v3494_v61  ;;  %v952_v14 = vmul.f32 %v1465_v24, %v3495_v9 }
 0x255   :  { %v953_v26 = vmul.f32 %v1465_v24, %v3496_v21  ;;  %v954_v44 = vmul.f32 %v1465_v24, %v3497_v38  ;;  %v955_v5 = vmul.f32 %v1465_v24, %v3498_v55  ;;  %v956_v52 = vmul.f32 %v1465_v24, %v3499_v25 }
 0x256   :  { %v957_v33 = vmul.f32 %v1465_v24, %v3500_v43  ;;  %v2605_v12 = vadd.f32 %v2594_v49, %v909_v45  ;;  %v2608_v30 = vadd.f32 %v2594_v49, %v910_v56  ;;  %v2611_v48 = vadd.f32 %v2594_v49, %v911_v22 }
 0x257   :  { %v2614_v47 = vadd.f32 %v2594_v49, %v912_v1  ;;  %v2617_v39 = vadd.f32 %v2594_v49, %v913_v51  ;;  %v2620_v40 = vadd.f32 %v2594_v49, %v914_v17  ;;  %v2623_v24 = vadd.f32 %v2594_v49, %v915_v8 }
 0x258   :  { %v2626_v45 = vadd.f32 %v2594_v49, %v916_v31  ;;  %v2629_v56 = vadd.f32 %v2594_v49, %v917_v6  ;;  %v2632_v22 = vadd.f32 %v2594_v49, %v918_v57  ;;  %v2635_v1 = vadd.f32 %v2594_v49, %v919_v60 }
 0x259   :  { %v2638_v51 = vadd.f32 %v2594_v49, %v920_v63  ;;  %v2641_v17 = vadd.f32 %v2594_v49, %v921_v58  ;;  %v2644_v8 = vadd.f32 %v2594_v49, %v922_v10  ;;  %v2647_v31 = vadd.f32 %v2594_v49, %v923_v46 }
 0x25a   :  { %v2650_v6 = vadd.f32 %v2594_v49, %v924_v16  ;;  %v2653_v57 = vadd.f32 %v2594_v49, %v925_v36  ;;  %v2656_v60 = vadd.f32 %v2594_v49, %v926_v28  ;;  %v2659_v63 = vadd.f32 %v2594_v49, %v927_v34 }
 0x25b   :  { %v2662_v58 = vadd.f32 %v2594_v49, %v928_v23  ;;  %v2665_v10 = vadd.f32 %v2594_v49, %v929_v18  ;;  %v2668_v46 = vadd.f32 %v2594_v49, %v930_v20  ;;  %v2671_v16 = vadd.f32 %v2594_v49, %v931_v32 }
 0x25c   :  { %v2674_v36 = vadd.f32 %v2594_v49, %v932_v35  ;;  %v2677_v28 = vadd.f32 %v2594_v49, %v933_v19  ;;  %v2680_v34 = vadd.f32 %v2594_v49, %v934_v41  ;;  %v2683_v23 = vadd.f32 %v2594_v49, %v935_v53 }
 0x25d   :  { %3501 = vst [vmem:[#allocation10_spill] sm:$0xff] %v2665_v10  ;;  %v2686_v18 = vadd.f32 %v2594_v49, %v936_v4  ;;  %v2689_v20 = vadd.f32 %v2594_v49, %v937_v15  ;;  %v2692_v32 = vadd.f32 %v2594_v49, %v938_v7  ;;  %v2695_v35 = vadd.f32 %v2594_v49, %v939_v50 }
 0x25e   :  { %3502 = vst [vmem:[#allocation11_spill] sm:$0xff] %v2674_v36  ;;  %3503 = vst [vmem:[#allocation12_spill] sm:$0xff] %v2683_v23  ;;  %v2698_v19 = vadd.f32 %v2594_v49, %v940_v59  ;;  %v2701_v41 = vadd.f32 %v2594_v49, %v941_v62  ;;  %v2704_v53 = vadd.f32 %v2594_v49, %v942_v0  ;;  %vm1014_vm3 = vcmp.gt.f32.partialorder %v2605_v12, 0.0 }
 0x25f   :  { %3504 = vst [vmem:[#allocation13_spill] sm:$0xff] %v2692_v32  ;;  %v2707_v4 = vadd.f32 %v2594_v49, %v943_v3  ;;  %v2710_v15 = vadd.f32 %v2594_v49, %v944_v11  ;;  %v2713_v7 = vadd.f32 %v2594_v49, %v945_v13  ;;  %v2716_v50 = vadd.f32 %v2594_v49, %v946_v27 }
 0x260   :  { %v2719_v59 = vadd.f32 %v2594_v49, %v947_v29  ;;  %v2722_v62 = vadd.f32 %v2594_v49, %v948_v37  ;;  %v2725_v0 = vadd.f32 %v2594_v49, %v949_v42  ;;  %v2728_v3 = vadd.f32 %v2594_v49, %v950_v54 }
 0x261   :  { %3505 = vst [vmem:[#allocation14_spill] sm:$0xff] %v2710_v15  ;;  %3506 = vst [vmem:[#allocation9_spill] sm:$0xff] %v2713_v7  ;;  %v2731_v11 = vadd.f32 %v2594_v49, %v951_v2  ;;  %v2734_v13 = vadd.f32 %v2594_v49, %v952_v14  ;;  %v2737_v27 = vadd.f32 %v2594_v49, %v953_v26  ;;  %vm1015_vm4 = vcmp.gt.f32.partialorder %v2608_v30, 0.0 }
 0x262   :  { %3507 = vst [vmem:[#allocation15_spill] sm:$0xff] %v2716_v50  ;;  %3508 = vst [vmem:[#allocation16_spill] sm:$0xff] %v2719_v59  ;;  %v2740_v29 = vadd.f32 %v2594_v49, %v954_v44  ;;  %v2743_v37 = vadd.f32 %v2594_v49, %v955_v5  ;;  %vm1016_vm5 = vcmp.gt.f32.partialorder %v2611_v48, 0.0  ;;  %vm1017_vm6 = vcmp.gt.f32.partialorder %v2614_v47, 0.0 }
 0x263   :  { %3509 = vst [vmem:[#allocation17_spill] sm:$0xff] %v2722_v62  ;;  %3510 = vst [vmem:[#allocation18_spill] sm:$0xff] %v2725_v0  ;;  %vm1018_vm7 = vcmp.gt.f32.partialorder %v2617_v39, 0.0  ;;  %vm1019_vm8 = vcmp.gt.f32.partialorder %v2620_v40, 0.0  ;;  %vm1020_vm9 = vcmp.gt.f32.partialorder %v2623_v24, 0.0  ;;  %vm1021_vm10 = vcmp.gt.f32.partialorder %v2626_v45, 0.0 }
 0x264   :  { %3511 = vst [vmem:[#allocation19_spill] sm:$0xff] %v2728_v3  ;;  %vm1022_vm11 = vcmp.gt.f32.partialorder %v2629_v56, 0.0  ;;  %v2755_v42 = vadd.f32 %v2594_v49, %v956_v52  ;;  %vm1023_vm12 = vcmp.gt.f32.partialorder %v2632_v22, 0.0  ;;  %v1063_v54 = vmul.f32 0.2, %v2605_v12 }
 0x265   :  { %v1064_v61 = vmul.f32 0.2, %v2608_v30  ;;  %v1065_v2 = vmul.f32 0.2, %v2611_v48  ;;  %v2762_v9 = vadd.f32 %v2594_v49, %v957_v33  ;;  %vm1024_vm13 = vcmp.gt.f32.partialorder %v2635_v1, 0.0 }
 0x266   :  { %v1066_v14 = vmul.f32 0.2, %v2614_v47  ;;  %v1067_v21 = vmul.f32 0.2, %v2617_v39  ;;  %v1068_v26 = vmul.f32 0.2, %v2620_v40  ;;  %v2775_v49 = vsel %vm1014_vm3, %v2605_v12, %v1063_v54 }
 0x267   :  { %vm1025_vm14 = vcmp.gt.f32.partialorder %v2638_v51, 0.0  ;;  %v1069_v38 = vmul.f32 0.2, %v2623_v24  ;;  %v1070_v44 = vmul.f32 0.2, %v2626_v45  ;;  %3512 = vst [vmem:[#allocation20_spill] sm:$0xff] %v2775_v49  ;;  %v2790_v43 = vsel %vm1015_vm4, %v2608_v30, %v1064_v61 }
 0x268   :  { %v1071_v55 = vmul.f32 0.2, %v2629_v56  ;;  %vm1026_vm15 = vcmp.gt.f32.partialorder %v2641_v17, 0.0  ;;  %v2779_v5 = vmul.f32 0.2, %v2632_v22  ;;  %3513 = vst [vmem:[#allocation21_spill] sm:$0xff] %v2790_v43  ;;  %v2805_v49 = vsel %vm1016_vm5, %v2611_v48, %v1065_v2 }
 0x269   :  { %v2782_v25 = vmul.f32 0.2, %v2635_v1  ;;  %v2785_v52 = vmul.f32 0.2, %v2638_v51  ;;  %vm1027_vm0 = vcmp.gt.f32.partialorder %v2644_v8, 0.0  ;;  %3514 = vst [vmem:[#allocation22_spill] sm:$0xff] %v2805_v49  ;;  %v2822_v48 = vsel %vm1017_vm6, %v2614_v47, %v1066_v14 }
 0x26a   :  { %v2794_v33 = vmul.f32 0.2, %v2641_v17  ;;  %v2797_v12 = vmul.f32 0.2, %v2644_v8  ;;  %v2800_v54 = vmul.f32 0.2, %v2647_v31  ;;  %v2840_v47 = vsel %vm1018_vm7, %v2617_v39, %v1067_v21 }
 0x26b   :  { %vm1028_vm1 = vcmp.gt.f32.partialorder %v2647_v31, 0.0  ;;  %v2811_v30 = vmul.f32 0.2, %v2650_v6  ;;  %v2814_v61 = vmul.f32 0.2, %v2653_v57  ;;  %3516 = vst [vmem:[#allocation24_spill] sm:$0xff] %v2822_v48  ;;  %v2858_v39 = vsel %vm1019_vm8, %v2620_v40, %v1068_v26 }
 0x26c   :  { %v2817_v43 = vmul.f32 0.2, %v2656_v60  ;;  %vm1031_vm4 = vcmp.gt.f32.partialorder %v2656_v60, 0.0  ;;  %v2829_v2 = vmul.f32 0.2, %v2659_v63  ;;  %3517 = vst [vmem:[#allocation25_spill] sm:$0xff] %v2840_v47  ;;  %v2876_v40 = vsel %vm1020_vm9, %v2623_v24, %v1069_v38 }
 0x26d   :  { %v2832_v49 = vmul.f32 0.2, %v2662_v58  ;;  %vm1035_vm6 = vcmp.gt.f32.partialorder %v2668_v46, 0.0  ;;  %v2847_v14 = vmul.f32 0.2, %v2668_v46  ;;  %3518 = vst [vmem:[#allocation26_spill] sm:$0xff] %v2858_v39 }
 0x26e   :  { %3515 = vst [vmem:[#allocation23_spill] sm:$0xff] %v2817_v43  ;;  %v2835_v43 = vmul.f32 0.2, %v2665_v10  ;;  %v2850_v48 = vmul.f32 0.2, %v2671_v16  ;;  %vm1039_vm7 = vcmp.gt.f32.partialorder %v2680_v34, 0.0 }
 0x26f   :  { %v2853_v10 = vmul.f32 0.2, %v2674_v36  ;;  %v2865_v21 = vmul.f32 0.2, %v2677_v28  ;;  %v2868_v47 = vmul.f32 0.2, %v2680_v34 }
 0x270   :  { %v2871_v36 = vmul.f32 0.2, %v2683_v23  ;;  %3520 = vst [vmem:[#allocation28_spill] sm:$0xff] %v2876_v40  ;;  %vm1046_vm2 = vcmp.gt.f32.partialorder %v2701_v41, 0.0  ;;  %v1090_v26 = vmul.f32 0.2, %v2686_v18 }
 0x271   :  { %v1091_v39 = vmul.f32 0.2, %v2689_v20  ;;  %v1092_v23 = vmul.f32 0.2, %v2692_v32  ;;  %vm1050_vm3 = vcmp.gt.f32.partialorder %v2713_v7, 0.0  ;;  %v2900_v32 = vsel %vm1022_vm11, %v2629_v56, %v1071_v55 }
 0x272   :  { %3519 = vst [vmem:[#allocation27_spill] sm:$0xff] %v2871_v36  ;;  %v2888_v36 = vsel %vm1021_vm10, %v2626_v45, %v1070_v44  ;;  %v1093_v24 = vmul.f32 0.2, %v2695_v35  ;;  %v1094_v38 = vmul.f32 0.2, %v2698_v19  ;;  %3522 = vst [vmem:[#allocation30_spill] sm:$0xff] %v2900_v32  ;;  %v2913_v56 = vsel %vm1023_vm12, %v2632_v22, %v2779_v5 }
 0x273   :  { %3521 = vst [vmem:[#allocation29_spill] sm:$0xff] %v2888_v36  ;;  %v1095_v40 = vmul.f32 0.2, %v2701_v41  ;;  %vm1051_vm10 = vcmp.gt.f32.partialorder %v2716_v50, 0.0  ;;  %v1096_v45 = vmul.f32 0.2, %v2704_v53  ;;  %v2926_v22 = vsel %vm1024_vm13, %v2635_v1, %v2782_v25 }
 0x274   :  { %v1097_v44 = vmul.f32 0.2, %v2707_v4  ;;  %v1098_v36 = vmul.f32 0.2, %v2710_v15  ;;  %3523 = vst [vmem:[#allocation31_spill] sm:$0xff] %v2913_v56  ;;  %vm1055_vm11 = vcmp.gt.f32.partialorder %v2728_v3, 0.0  ;;  %v2939_v1 = vsel %vm1025_vm14, %v2638_v51, %v2785_v52 }
 0x275   :  { %v1099_v55 = vmul.f32 0.2, %v2713_v7  ;;  %v1100_v32 = vmul.f32 0.2, %v2716_v50  ;;  %v1101_v15 = vmul.f32 0.2, %v2719_v59  ;;  %v2957_v51 = vsel %vm1027_vm0, %v2644_v8, %v2797_v12 }
 0x276   :  { %3524 = vst [vmem:[#allocation32_spill] sm:$0xff] %v2926_v22  ;;  %vm1059_vm12 = vcmp.gt.f32.partialorder %v2740_v29, 0.0  ;;  %vm1060_vm9 = vcmp.gt.f32.partialorder %v2743_v37, 0.0  ;;  %vm1061_vm8 = vcmp.gt.f32.partialorder %v2755_v42, 0.0  ;;  %vm1062_vm5 = vcmp.gt.f32.partialorder %v2762_v9, 0.0  ;;  %3525 = vst [vmem:[#allocation33_spill] sm:$0xff] %v2957_v51 }
 0x277   :  { %v1102_v5 = vmul.f32 0.2, %v2722_v62  ;;  %v1103_v56 = vmul.f32 0.2, %v2725_v0  ;;  %v1104_v59 = vmul.f32 0.2, %v2728_v3  ;;  %v2948_v62 = vsel %vm1026_vm15, %v2641_v17, %v2794_v33 }
 0x278   :  { %v1105_v25 = vmul.f32 0.2, %v2731_v11  ;;  %v1106_v22 = vmul.f32 0.2, %v2734_v13  ;;  %v1107_v50 = vmul.f32 0.2, %v2737_v27  ;;  %v2964_v17 = vsel %vm1028_vm1, %v2647_v31, %v2800_v54 }
 0x279   :  { %v1108_v3 = vmul.f32 0.2, %v2740_v29  ;;  %v1109_v0 = vmul.f32 0.2, %v2743_v37  ;;  %v1110_v7 = vmul.f32 0.2, %v2755_v42 }
 0x27a   :  { %v1111_v52 = vmul.f32 0.2, %v2762_v9  ;;  %vm3526_vm13 = vcmp.gt.f32.partialorder %v2650_v6, 0.0  ;;  %vm3527_vm14 = vcmp.gt.f32.partialorder %v2653_v57, 0.0  ;;  %vm1358_vm15 = vcmask 257024   ;;  %v3528_v12 = vld [vmem:[#allocation23_spill] sm:$0xff] }
 0x27b   :  { %v2970_v33 = vsel %vm3526_vm13, %v2650_v6, %v2811_v30  ;;  %v2976_v8 = vsel %vm3527_vm14, %v2653_v57, %v2814_v61  ;;  %v2982_v51 = vsel %vm1031_vm4, %v2656_v60, %v3528_v12  ;;  %vm3529_vm0 = vcmp.gt.f32.partialorder %v2659_v63, 0.0  ;;  %v3531_v57 = vld [vmem:[#allocation10_spill] sm:$0xff]  ;;  %v3538_v30 = vld [vmem:[#allocation12_spill] sm:$0xff]  ;;  %v3569_v12 = vld [vmem:[#allocation29_spill] sm:$0xff] }
 0x27c   :  { %v2988_v31 = vsel %vm3529_vm0, %v2659_v63, %v2829_v2  ;;  %vm3530_vm1 = vcmp.gt.f32.partialorder %v2662_v58, 0.0  ;;  %vm3532_vm13 = vcmp.gt.f32.partialorder %v3531_v57, 0.0  ;;  %v3006_v60 = vsel %vm1035_vm6, %v2668_v46, %v2847_v14  ;;  %v3550_v14 = vld [vmem:[#allocation9_spill] sm:$0xff] }
 0x27d   :  { %v2994_v6 = vsel %vm3530_vm1, %v2662_v58, %v2832_v49  ;;  %v3000_v54 = vsel %vm3532_vm13, %v3531_v57, %v2835_v43  ;;  %vm3533_vm4 = vcmp.gt.f32.partialorder %v2671_v16, 0.0  ;;  %v3534_v58 = vld [vmem:[#allocation11_spill] sm:$0xff]  ;;  %vm3536_vm0 = vcmp.gt.f32.partialorder %v2677_v28, 0.0 }
 0x27e   :  { %v3012_v63 = vsel %vm3533_vm4, %v2671_v16, %v2850_v48  ;;  %vm3535_vm14 = vcmp.gt.f32.partialorder %v3534_v58, 0.0  ;;  %v3024_v43 = vsel %vm3536_vm0, %v2677_v28, %v2865_v21  ;;  %v3030_v46 = vsel %vm1039_vm7, %v2680_v34, %v2868_v47  ;;  %v3537_v16 = vld [vmem:[#allocation27_spill] sm:$0xff]  ;;  %v3542_v48 = vld [vmem:[#allocation13_spill] sm:$0xff]  ;;  %v3548_v47 = vld [vmem:[#allocation14_spill] sm:$0xff] }
 0x27f   :  { %v3018_v49 = vsel %vm3535_vm14, %v3534_v58, %v2853_v10  ;;  %vm3539_vm6 = vcmp.gt.f32.partialorder %v3538_v30, 0.0  ;;  %vm3540_vm1 = vcmp.gt.f32.partialorder %v2686_v18, 0.0  ;;  %vm3541_vm13 = vcmp.gt.f32.partialorder %v2689_v20, 0.0  ;;  %v3552_v21 = vld [vmem:[#allocation16_spill] sm:$0xff]  ;;  %v3570_v58 = vld [vmem:[#allocation30_spill] sm:$0xff] }
 0x280   :  { %v3036_v61 = vsel %vm3539_vm6, %v3538_v30, %v3537_v16  ;;  %v3041_v10 = vsel %vm3540_vm1, %v2686_v18, %v1090_v26  ;;  %v3046_v28 = vsel %vm3541_vm13, %v2689_v20, %v1091_v39  ;;  %vm3543_vm7 = vcmp.gt.f32.partialorder %v3542_v48, 0.0  ;;  %v3551_v39 = vld [vmem:[#allocation15_spill] sm:$0xff]  ;;  %v3556_v26 = vld [vmem:[#allocation18_spill] sm:$0xff] }
 0x281   :  { %v3051_v34 = vsel %vm3543_vm7, %v3542_v48, %v1092_v23  ;;  %vm3544_vm4 = vcmp.gt.f32.partialorder %v2695_v35, 0.0  ;;  %vm3545_vm14 = vcmp.gt.f32.partialorder %v2698_v19, 0.0  ;;  %v3066_v20 = vsel %vm1046_vm2, %v2701_v41, %v1095_v40  ;;  %v3554_v40 = vld [vmem:[#allocation17_spill] sm:$0xff]  ;;  %v3571_v30 = vld [vmem:[#allocation31_spill] sm:$0xff] }
 0x282   :  { %v3056_v2 = vsel %vm3544_vm4, %v2695_v35, %v1093_v24  ;;  %v3061_v18 = vsel %vm3545_vm14, %v2698_v19, %v1094_v38  ;;  %vm3546_vm0 = vcmp.gt.f32.partialorder %v2704_v53, 0.0  ;;  %vm3547_vm6 = vcmp.gt.f32.partialorder %v2707_v4, 0.0  ;;  %v3558_v38 = vld [vmem:[#allocation19_spill] sm:$0xff] }
 0x283   :  { %v3071_v23 = vsel %vm3546_vm0, %v2704_v53, %v1096_v45  ;;  %v3076_v35 = vsel %vm3547_vm6, %v2707_v4, %v1097_v44  ;;  %vm3549_vm1 = vcmp.gt.f32.partialorder %v3548_v47, 0.0  ;;  %v3086_v41 = vsel %vm1050_vm3, %v3550_v14, %v1099_v55  ;;  %v3564_v55 = vld [vmem:[#allocation22_spill] sm:$0xff] }
 0x284   :  { %v3081_v19 = vsel %vm3549_vm1, %v3548_v47, %v1098_v36  ;;  %v3091_v53 = vsel %vm1051_vm10, %v3551_v39, %v1100_v32  ;;  %vm3553_vm2 = vcmp.gt.f32.partialorder %v3552_v21, 0.0  ;;  %vm3555_vm13 = vcmp.gt.f32.partialorder %v3554_v40, 0.0  ;;  %v3572_v47 = vld [vmem:[#allocation32_spill] sm:$0xff] }
 0x285   :  { %v3096_v4 = vsel %vm3553_vm2, %v3552_v21, %v1101_v15  ;;  %v3101_v36 = vsel %vm3555_vm13, %v3554_v40, %v1102_v5  ;;  %vm3557_vm7 = vcmp.gt.f32.partialorder %v3556_v26, 0.0  ;;  %v3111_v32 = vsel %vm1055_vm11, %v3558_v38, %v1104_v59  ;;  %v3566_v5 = vld [vmem:[#allocation25_spill] sm:$0xff] }
 0x286   :  { %v3106_v24 = vsel %vm3557_vm7, %v3556_v26, %v1103_v56  ;;  %vm3559_vm3 = vcmp.gt.f32.partialorder %v2731_v11, 0.0  ;;  %vm3560_vm10 = vcmp.gt.f32.partialorder %v2734_v13, 0.0  ;;  %vm3561_vm4 = vcmp.gt.f32.partialorder %v2737_v27, 0.0  ;;  %v3573_v21 = vld [vmem:[#allocation33_spill] sm:$0xff] }
 0x287   :  { %v3116_v15 = vsel %vm3559_vm3, %v2731_v11, %v1105_v25  ;;  %v3121_v45 = vsel %vm3560_vm10, %v2734_v13, %v1106_v22  ;;  %v3126_v44 = vsel %vm3561_vm4, %v2737_v27, %v1107_v50  ;;  %v3131_v59 = vsel %vm1059_vm12, %v2740_v29, %v1108_v3  ;;  %v3562_v27 = vld [vmem:[#allocation20_spill] sm:$0xff]  ;;  %v3563_v3 = vld [vmem:[#allocation21_spill] sm:$0xff] }
 0x288   :  { %v3136_v11 = vsel %vm1060_vm9, %v2743_v37, %v1109_v0  ;;  %v3141_v13 = vsel %vm1061_vm8, %v2755_v42, %v1110_v7  ;;  %v3146_v50 = vsel %vm1062_vm5, %v2762_v9, %v1111_v52  ;;  %v1516_v56 = vpack.c.bf16 %v3562_v27, %v3562_v27  ;;  %v3565_v37 = vld [vmem:[#allocation24_spill] sm:$0xff]  ;;  %v3567_v42 = vld [vmem:[#allocation26_spill] sm:$0xff] }
 0x289   :  { %v1517_v29 = vpack.c.bf16 %v3563_v3, %v3563_v3  ;;  %v1518_v0 = vpack.c.bf16 %v3564_v55, %v3564_v55  ;;  %v1519_v22 = vpack.c.bf16 %v3565_v37, %v3565_v37  ;;  %v1520_v7 = vpack.c.bf16 %v3566_v5, %v3566_v5  ;;  %v3568_v9 = vld [vmem:[#allocation28_spill] sm:$0xff] }
 0x28a   :  { %v1521_v25 = vpack.c.bf16 %v3567_v42, %v3567_v42  ;;  %v1522_v52 = vpack.c.bf16 %v3568_v9, %v3568_v9  ;;  %v1523_v57 = vpack.c.bf16 %v3569_v12, %v3569_v12  ;;  %v1524_v16 = vpack.c.bf16 %v3570_v58, %v3570_v58  ;;  %1359 = vst.msk [vmem:[%s3446_s4] sm:$0xf] %vm1358_vm15, %v1516_v56 }
 0x28b   :  { %v1525_v48 = vpack.c.bf16 %v3571_v30, %v3571_v30  ;;  %v1526_v14 = vpack.c.bf16 %v3572_v47, %v3572_v47  ;;  %v1527_v39 = vpack.c.bf16 %v2939_v1, %v2939_v1  ;;  %1360 = vst.msk [vmem:[%s3446_s4 + $0x4] sm:$0xf] %vm1358_vm15, %v1517_v29  ;;  %1361 = vst.msk [vmem:[%s3446_s4 + $0x8] sm:$0xf] %vm1358_vm15, %v1518_v0 }
 0x28c   :  { %1362 = vst.msk [vmem:[%s3446_s4 + $0xc] sm:$0xf] %vm1358_vm15, %v1519_v22  ;;  %v1528_v1 = vpack.c.bf16 %v2948_v62, %v2948_v62  ;;  %v1529_v40 = vpack.c.bf16 %v3573_v21, %v3573_v21  ;;  %v1530_v26 = vpack.c.bf16 %v2964_v17, %v2964_v17  ;;  %v1531_v38 = vpack.c.bf16 %v2970_v33, %v2970_v33 }
 0x28d   :  { %1363 = vst.msk [vmem:[%s3446_s4 + $0x10] sm:$0xf] %vm1358_vm15, %v1520_v7  ;;  %1364 = vst.msk [vmem:[%s3446_s4 + $0x14] sm:$0xf] %vm1358_vm15, %v1521_v25  ;;  %v1532_v62 = vpack.c.bf16 %v2976_v8, %v2976_v8  ;;  %v1533_v17 = vpack.c.bf16 %v2982_v51, %v2982_v51  ;;  %v1534_v33 = vpack.c.bf16 %v2988_v31, %v2988_v31 }
 0x28e   :  { %1365 = vst.msk [vmem:[%s3446_s4 + $0x18] sm:$0xf] %vm1358_vm15, %v1522_v52  ;;  %1366 = vst.msk [vmem:[%s3446_s4 + $0x1c] sm:$0xf] %vm1358_vm15, %v1523_v57  ;;  %v1535_v27 = vpack.c.bf16 %v2994_v6, %v2994_v6  ;;  %v1536_v51 = vpack.c.bf16 %v3000_v54, %v3000_v54  ;;  %v1537_v8 = vpack.c.bf16 %v3006_v60, %v3006_v60 }
 0x28f   :  { %1367 = vst.msk [vmem:[%s3446_s4 + $0x20] sm:$0xf] %vm1358_vm15, %v1524_v16  ;;  %1368 = vst.msk [vmem:[%s3446_s4 + $0x24] sm:$0xf] %vm1358_vm15, %v1525_v48  ;;  %v1538_v31 = vpack.c.bf16 %v3012_v63, %v3012_v63  ;;  %v1539_v6 = vpack.c.bf16 %v3018_v49, %v3018_v49  ;;  %v1540_v54 = vpack.c.bf16 %v3024_v43, %v3024_v43 }
 0x290   :  { %1369 = vst.msk [vmem:[%s3446_s4 + $0x28] sm:$0xf] %vm1358_vm15, %v1526_v14  ;;  %1370 = vst.msk [vmem:[%s3446_s4 + $0x2c] sm:$0xf] %vm1358_vm15, %v1527_v39  ;;  %v1541_v60 = vpack.c.bf16 %v3030_v46, %v3030_v46  ;;  %v1542_v63 = vpack.c.bf16 %v3036_v61, %v3036_v61  ;;  %v1543_v49 = vpack.c.bf16 %v3041_v10, %v3041_v10 }
 0x291   :  { %1371 = vst.msk [vmem:[%s3446_s4 + $0x30] sm:$0xf] %vm1358_vm15, %v1528_v1  ;;  %1372 = vst.msk [vmem:[%s3446_s4 + $0x34] sm:$0xf] %vm1358_vm15, %v1529_v40  ;;  %v1544_v43 = vpack.c.bf16 %v3046_v28, %v3046_v28  ;;  %v1545_v46 = vpack.c.bf16 %v3051_v34, %v3051_v34  ;;  %v1546_v61 = vpack.c.bf16 %v3056_v2, %v3056_v2 }
 0x292   :  { %1373 = vst.msk [vmem:[%s3446_s4 + $0x38] sm:$0xf] %vm1358_vm15, %v1530_v26  ;;  %1374 = vst.msk [vmem:[%s3446_s4 + $0x3c] sm:$0xf] %vm1358_vm15, %v1531_v38  ;;  %v1547_v10 = vpack.c.bf16 %v3061_v18, %v3061_v18  ;;  %v1548_v28 = vpack.c.bf16 %v3066_v20, %v3066_v20  ;;  %v1549_v34 = vpack.c.bf16 %v3071_v23, %v3071_v23 }
 0x293   :  { %1375 = vst.msk [vmem:[%s3446_s4 + $0x40] sm:$0xf] %vm1358_vm15, %v1532_v62  ;;  %1376 = vst.msk [vmem:[%s3446_s4 + $0x44] sm:$0xf] %vm1358_vm15, %v1533_v17  ;;  %v1550_v2 = vpack.c.bf16 %v3076_v35, %v3076_v35  ;;  %v1551_v18 = vpack.c.bf16 %v3081_v19, %v3081_v19  ;;  %v1552_v20 = vpack.c.bf16 %v3086_v41, %v3086_v41 }
 0x294   :  { %1377 = vst.msk [vmem:[%s3446_s4 + $0x48] sm:$0xf] %vm1358_vm15, %v1534_v33  ;;  %1378 = vst.msk [vmem:[%s3446_s4 + $0x4c] sm:$0xf] %vm1358_vm15, %v1535_v27  ;;  %v1553_v23 = vpack.c.bf16 %v3091_v53, %v3091_v53  ;;  %v1554_v35 = vpack.c.bf16 %v3096_v4, %v3096_v4  ;;  %v1555_v19 = vpack.c.bf16 %v3101_v36, %v3101_v36 }
 0x295   :  { %1379 = vst.msk [vmem:[%s3446_s4 + $0x50] sm:$0xf] %vm1358_vm15, %v1536_v51  ;;  %1380 = vst.msk [vmem:[%s3446_s4 + $0x54] sm:$0xf] %vm1358_vm15, %v1537_v8  ;;  %v1556_v41 = vpack.c.bf16 %v3106_v24, %v3106_v24  ;;  %v1557_v53 = vpack.c.bf16 %v3111_v32, %v3111_v32  ;;  %v1558_v4 = vpack.c.bf16 %v3116_v15, %v3116_v15 }
 0x296   :  { %1381 = vst.msk [vmem:[%s3446_s4 + $0x58] sm:$0xf] %vm1358_vm15, %v1538_v31  ;;  %1382 = vst.msk [vmem:[%s3446_s4 + $0x5c] sm:$0xf] %vm1358_vm15, %v1539_v6  ;;  %v1559_v36 = vpack.c.bf16 %v3121_v45, %v3121_v45  ;;  %v1560_v24 = vpack.c.bf16 %v3126_v44, %v3126_v44  ;;  %v1561_v32 = vpack.c.bf16 %v3131_v59, %v3131_v59 }
 0x297   :  { %1383 = vst.msk [vmem:[%s3446_s4 + $0x60] sm:$0xf] %vm1358_vm15, %v1540_v54  ;;  %1384 = vst.msk [vmem:[%s3446_s4 + $0x64] sm:$0xf] %vm1358_vm15, %v1541_v60  ;;  %v1562_v15 = vpack.c.bf16 %v3136_v11, %v3136_v11  ;;  %v1563_v45 = vpack.c.bf16 %v3141_v13, %v3141_v13  ;;  %v1564_v44 = vpack.c.bf16 %v3146_v50, %v3146_v50 }
 0x298   :  { %1385 = vst.msk [vmem:[%s3446_s4 + $0x68] sm:$0xf] %vm1358_vm15, %v1542_v63  ;;  %1386 = vst.msk [vmem:[%s3446_s4 + $0x6c] sm:$0xf] %vm1358_vm15, %v1543_v49 }
 0x299   :  { %1387 = vst.msk [vmem:[%s3446_s4 + $0x70] sm:$0xf] %vm1358_vm15, %v1544_v43  ;;  %1388 = vst.msk [vmem:[%s3446_s4 + $0x74] sm:$0xf] %vm1358_vm15, %v1545_v46 }
 0x29a   :  { %1389 = vst.msk [vmem:[%s3446_s4 + $0x78] sm:$0xf] %vm1358_vm15, %v1546_v61  ;;  %1390 = vst.msk [vmem:[%s3446_s4 + $0x7c] sm:$0xf] %vm1358_vm15, %v1547_v10 }
 0x29b   :  { %1391 = vst.msk [vmem:[%s3446_s4 + $0x80] sm:$0xf] %vm1358_vm15, %v1548_v28  ;;  %1392 = vst.msk [vmem:[%s3446_s4 + $0x84] sm:$0xf] %vm1358_vm15, %v1549_v34 }
 0x29c   :  { %1393 = vst.msk [vmem:[%s3446_s4 + $0x88] sm:$0xf] %vm1358_vm15, %v1550_v2  ;;  %1394 = vst.msk [vmem:[%s3446_s4 + $0x8c] sm:$0xf] %vm1358_vm15, %v1551_v18 }
 0x29d   :  { %1395 = vst.msk [vmem:[%s3446_s4 + $0x90] sm:$0xf] %vm1358_vm15, %v1552_v20  ;;  %1396 = vst.msk [vmem:[%s3446_s4 + $0x94] sm:$0xf] %vm1358_vm15, %v1553_v23 }
 0x29e   :  { %1397 = vst.msk [vmem:[%s3446_s4 + $0x98] sm:$0xf] %vm1358_vm15, %v1554_v35  ;;  %1398 = vst.msk [vmem:[%s3446_s4 + $0x9c] sm:$0xf] %vm1358_vm15, %v1555_v19 }
 0x29f   :  { %1399 = vst.msk [vmem:[%s3446_s4 + $0xa0] sm:$0xf] %vm1358_vm15, %v1556_v41  ;;  %1400 = vst.msk [vmem:[%s3446_s4 + $0xa4] sm:$0xf] %vm1358_vm15, %v1557_v53 }
 0x2a0   :  { %1401 = vst.msk [vmem:[%s3446_s4 + $0xa8] sm:$0xf] %vm1358_vm15, %v1558_v4  ;;  %1402 = vst.msk [vmem:[%s3446_s4 + $0xac] sm:$0xf] %vm1358_vm15, %v1559_v36 }
 0x2a1   :  { %1403 = vst.msk [vmem:[%s3446_s4 + $0xb0] sm:$0xf] %vm1358_vm15, %v1560_v24  ;;  %1404 = vst.msk [vmem:[%s3446_s4 + $0xb4] sm:$0xf] %vm1358_vm15, %v1561_v32 }
 0x2a2   :  { %1405 = vst.msk [vmem:[%s3446_s4 + $0xb8] sm:$0xf] %vm1358_vm15, %v1562_v15  ;;  %1406 = vst.msk [vmem:[%s3446_s4 + $0xbc] sm:$0xf] %vm1358_vm15, %v1563_v45 }
 0x2a3   :  { %1407 = vst.msk [vmem:[%s3446_s4 + $0xc0] sm:$0xf] %vm1358_vm15, %v1564_v44 }
 0x2a4   :  { %1412 = vsyncpa [#allocation3], 1 }
 0x2a5   :  { %1413 = vsyncpa [#allocation5], 1 }

// kernel: encoder_forward.5
= control target key start
LH: loop header
LB: loop body
LE: loop exit
PB: predicated region body
PF: predicated region fallthrough
CT: control target
= control target key end

     0   :  { %9 = vsyncpa [#allocation3], 0  ;;  %s1571_s0 = inlined_call_operand.vmem [shape: bf16[98,512], index: 0, kind: input, shape index: {}]   ;;  %s1572_s1 = inlined_call_operand.vmem [shape: bf16[512,64], index: 1, kind: input, shape index: {}]   ;;  %s1573_s2 = inlined_call_operand.hbm [shape: f32[1,64], index: 2, kind: input, shape index: {}]   ;;  %s1574_s3 = inlined_call_operand.hbm [shape: f32[1,64], index: 3, kind: input, shape index: {}]   ;;  %s1575_s4 = inlined_call_operand.vmem [shape: bf16[98,64], index: 4, kind: output, shape index: {}]  }
   0x1   :  { %10 = vsyncpa [#allocation5], 0  ;;  %s1223_s15 = smov [#allocation2]   ;;  %s1224_s17 = smov [#allocation4]  }
   0x2   :  { %s21_s16 = sshll.u32 %s1223_s15, 4  ;;  %s31_s18 = sshll.u32 %s1224_s17, 4  ;;  %s22_s16 = int_to_ptr.vmem [resolvable:$true] %s21_s16  ;;  %s32_s18 = int_to_ptr.vmem [resolvable:$true] %s31_s18 }
   0x3   :  { %s1175_s21 = scalar_lea.hbm %s1573_s2, 16 }
   0x4   :  { %p1176_p0 = scmp.ne.s32.totalorder %s1573_s2, %s1175_s21  ;;  %p1179_p1 = scmp.lt.u32.totalorder %s1175_s21, %s1573_s2 }
   0x6   :  { %p1181_p2 = pnand %p1179_p1, %p1176_p0 }
   0x8   :  { %1184 = shalt.err (!%p1181_p2)
}
   0x9   :  { %s1185_s26 = scalar_lea.vmem %s22_s16, 16  ;;  %s1189_s27 = scalar_lea.vmem %s22_s16, 32 }
   0xa   :  { %p1186_p3 = scmp.ne.s32.totalorder %s22_s16, %s1185_s26  ;;  %p1190_p4 = scmp.lt.s32.totalorder %s22_s16, %s22_s16 }
   0xb   :  { %p1191_p5 = scmp.lt.s32.totalorder %s1189_s27, %s1185_s26 }
   0xd   :  { %p1192_p6 = por %p1191_p5, %p1190_p4 }
   0xf   :  { %p1193_p7 = pnand %p1192_p6, %p1186_p3 }
  0x11   :  { %1196 = shalt.err (!%p1193_p7)
}
  0x12   :  { %24 = dma.hbm_to_vmem [thread:$0]  %s1573_s2, 16, %s22_s16, [#allocation3]  }
  0x13   :  { %s1197_s6 = scalar_lea.hbm %s1574_s3, 16 }
  0x14   :  { %p1198_p8 = scmp.ne.s32.totalorder %s1574_s3, %s1197_s6  ;;  %p1201_p9 = scmp.lt.u32.totalorder %s1197_s6, %s1574_s3 }
  0x16   :  { %p1203_p10 = pnand %p1201_p9, %p1198_p8 }
  0x18   :  { %1206 = shalt.err (!%p1203_p10)
}
  0x19   :  { %s1207_s11 = scalar_lea.vmem %s32_s18, 16  ;;  %s1211_s12 = scalar_lea.vmem %s32_s18, 32 }
  0x1a   :  { %p1208_p11 = scmp.ne.s32.totalorder %s32_s18, %s1207_s11  ;;  %p1212_p12 = scmp.lt.s32.totalorder %s32_s18, %s32_s18 }
  0x1b   :  { %p1213_p13 = scmp.lt.s32.totalorder %s1211_s12, %s1207_s11 }
  0x1d   :  { %p1214_p0 = por %p1213_p13, %p1212_p12 }
  0x1f   :  { %p1215_p1 = pnand %p1214_p0, %p1208_p11 }
  0x21   :  { %1218 = shalt.err (!%p1215_p1)
}
  0x22   :  { %34 = dma.hbm_to_vmem [thread:$0]  %s1574_s3, 16, %s32_s18, [#allocation5]  }
  0x23   :  { %1219 = dma.done.wait [#allocation3], 16  }
  0x24   :  { %1220 = vsyncadd [#allocation3], 4294967280 }
  0x25   :  { %1221 = dma.done.wait [#allocation5], 16  }
  0x26   :  { %1222 = vsyncadd [#allocation5], 4294967280  ;;  %v1101_v0 = vld [vmem:[%s1572_s1 + $0x40] sm:$0xff]   ;;  %v1105_v4 = vld [vmem:[%s1572_s1 + $0x48] sm:$0xff]   ;;  %vm634_vm0 = vcmask 523264   ;;  %vm658_vm1 = vcmask 517120  }
  0x27   :  { %v1102_v1 = vld [vmem:[%s1572_s1 + $0xc0] sm:$0xff]   ;;  %983 = vmatprep.subr.bf16.mxu0 %v1101_v0  ;;  %v1106_v5 = vld [vmem:[%s1572_s1 + $0xc8] sm:$0xff]   ;;  %v1109_v8 = vld [vmem:[%s1572_s1 + $0x50] sm:$0xff]   ;;  %vm874_vm11 = vcmask 519168  }
  0x28   :  { %v1103_v2 = vld [vmem:[%s1572_s1] sm:$0xff]   ;;  %1041 = vmatprep.subr.bf16.mxu1 %v1102_v1  ;;  %v1107_v6 = vld [vmem:[%s1572_s1 + $0x8] sm:$0xff]   ;;  %v1110_v9 = vld [vmem:[%s1572_s1 + $0xd0] sm:$0xff]  }
  0x29   :  { %v1104_v3 = vld [vmem:[%s1572_s1 + $0x80] sm:$0xff]   ;;  %984 = vmatpush3.bf16.msra.mxu0 %v1103_v2  ;;  %v1108_v7 = vld [vmem:[%s1572_s1 + $0x88] sm:$0xff]   ;;  %v1111_v10 = vld [vmem:[%s1572_s1 + $0x10] sm:$0xff]  }
  0x2a   :  { %1042 = vmatpush3.bf16.msra.mxu1 %v1104_v3  ;;  %985 = vmatprep.subr.bf16.mxu0 %v1105_v4  ;;  %v1112_v11 = vld [vmem:[%s1572_s1 + $0x90] sm:$0xff]   ;;  %v1113_v12 = vld [vmem:[%s1572_s1 + $0x58] sm:$0xff]   ;;  %v1117_v16 = vld [vmem:[%s1572_s1 + $0x60] sm:$0xff]  }
  0x2b   :  { %1043 = vmatprep.subr.bf16.mxu1 %v1106_v5  ;;  %v1114_v13 = vld [vmem:[%s1572_s1 + $0xd8] sm:$0xff]   ;;  %v1118_v17 = vld [vmem:[%s1572_s1 + $0xe0] sm:$0xff]   ;;  %v1121_v20 = vld [vmem:[%s1572_s1 + $0x68] sm:$0xff]  }
  0x2c   :  { %v1115_v14 = vld [vmem:[%s1572_s1 + $0x18] sm:$0xff]   ;;  %v1119_v18 = vld [vmem:[%s1572_s1 + $0x20] sm:$0xff]   ;;  %v1122_v21 = vld [vmem:[%s1572_s1 + $0xe8] sm:$0xff]  }
  0x2d   :  { %986 = vmatpush3.bf16.msra.mxu0 %v1107_v6  ;;  %v1116_v15 = vld [vmem:[%s1572_s1 + $0x98] sm:$0xff]   ;;  %v1120_v19 = vld [vmem:[%s1572_s1 + $0xa0] sm:$0xff]   ;;  %v1123_v22 = vld [vmem:[%s1572_s1 + $0x28] sm:$0xff]  }
  0x2e   :  { %1044 = vmatpush3.bf16.msra.mxu1 %v1108_v7  ;;  %987 = vmatprep.subr.bf16.mxu0 %v1109_v8  ;;  %v1124_v23 = vld [vmem:[%s1572_s1 + $0xa8] sm:$0xff]   ;;  %v1125_v24 = vld [vmem:[%s1572_s1 + $0x70] sm:$0xff]   ;;  %v1129_v28 = vld [vmem:[%s1572_s1 + $0x78] sm:$0xff]  }
  0x2f   :  { %1045 = vmatprep.subr.bf16.mxu1 %v1110_v9  ;;  %v1126_v25 = vld [vmem:[%s1572_s1 + $0xf0] sm:$0xff]   ;;  %v1130_v29 = vld [vmem:[%s1572_s1 + $0xf8] sm:$0xff]   ;;  %v66_v54 = vld [vmem:[%s1571_s0 + $0xc0] sm:$0x11] }
  0x30   :  { %v1127_v26 = vld [vmem:[%s1572_s1 + $0x30] sm:$0xff]   ;;  %v1131_v30 = vld [vmem:[%s1572_s1 + $0x38] sm:$0xff]   ;;  %v67_v55 = vld [vmem:[%s1571_s0 + $0xc8] sm:$0x11]  ;;  %v920_v58 = vcombine.high %v66_v54, %v66_v54  ;;  %v919_v60 = vcombine.low %v66_v54, %v66_v54 }
  0x31   :  { %988 = vmatpush3.bf16.msra.mxu0 %v1111_v10  ;;  %v1128_v27 = vld [vmem:[%s1572_s1 + $0xb0] sm:$0xff]   ;;  %v1132_v31 = vld [vmem:[%s1572_s1 + $0xb8] sm:$0xff]   ;;  %v922_v59 = vcombine.high %v67_v55, %v67_v55  ;;  %v921_v61 = vcombine.low %v67_v55, %v67_v55 }
  0x32   :  { %1046 = vmatpush3.bf16.msra.mxu1 %v1112_v11  ;;  %989 = vmatprep.subr.bf16.mxu0 %v1113_v12  ;;  %v1133_v32 = vld [vmem:[%s1571_s0] ss:$16 sps:$4 sm:$0xff]   ;;  %v1135_v33 = vld [vmem:[%s1571_s0 + $0x4] ss:$16 sps:$4 sm:$0xff]   ;;  %v1136_v34 = vld [vmem:[%s1571_s0 + $0x8] ss:$16 sps:$4 sm:$0xff]  }
  0x33   :  { %1047 = vmatprep.subr.bf16.mxu1 %v1114_v13  ;;  %v1138_v35 = vld [vmem:[%s1571_s0 + $0xc] ss:$16 sps:$4 sm:$0xff]   ;;  %490 = vmatprep.mubr.bf16.mxu0 %v1135_v33  ;;  %v1139_v36 = vld [vmem:[%s1571_s0 + $0x24] ss:$16 sps:$4 sm:$0xff]   ;;  %v1143_v38 = vld [vmem:[%s1571_s0 + $0x20] ss:$16 sps:$4 sm:$0xff]  }
  0x34   :  { %578 = vmatprep.mubr.bf16.mxu1 %v1138_v35  ;;  %v1141_v37 = vld [vmem:[%s1571_s0 + $0x2c] ss:$16 sps:$4 sm:$0xff]   ;;  %v1144_v39 = vld [vmem:[%s1571_s0 + $0x28] ss:$16 sps:$4 sm:$0xff]   ;;  %v1145_v40 = vld [vmem:[%s1571_s0 + $0x44] ss:$16 sps:$4 sm:$0xff]  }
  0x35   :  { %990 = vmatpush3.bf16.msra.mxu0 %v1115_v14  ;;  %v1147_v41 = vld [vmem:[%s1571_s0 + $0x4c] ss:$16 sps:$4 sm:$0xff]   ;;  %v1149_v42 = vld [vmem:[%s1571_s0 + $0x40] ss:$16 sps:$4 sm:$0xff]   ;;  %v1150_v43 = vld [vmem:[%s1571_s0 + $0x48] ss:$16 sps:$4 sm:$0xff]  }
  0x36   :  { %1048 = vmatpush3.bf16.msra.mxu1 %v1116_v15  ;;  %991 = vmatprep.subr.bf16.mxu0 %v1117_v16  ;;  %v1151_v44 = vld [vmem:[%s1571_s0 + $0x64] ss:$16 sps:$4 sm:$0xff]   ;;  %v1153_v45 = vld [vmem:[%s1571_s0 + $0x6c] ss:$16 sps:$4 sm:$0xff]   ;;  %v1155_v46 = vld [vmem:[%s1571_s0 + $0x60] ss:$16 sps:$4 sm:$0xff]  }
  0x37   :  { %1049 = vmatprep.subr.bf16.mxu1 %v1118_v17  ;;  %v1156_v47 = vld [vmem:[%s1571_s0 + $0x68] ss:$16 sps:$4 sm:$0xff]   ;;  %v1157_v48 = vld [vmem:[%s1571_s0 + $0x84] ss:$16 sps:$4 sm:$0xff]   ;;  %v1159_v49 = vld [vmem:[%s1571_s0 + $0x8c] ss:$16 sps:$4 sm:$0xff]  }
  0x38   :  { %v1161_v50 = vld [vmem:[%s1571_s0 + $0x80] ss:$16 sps:$4 sm:$0xff]   ;;  %v1162_v51 = vld [vmem:[%s1571_s0 + $0x88] ss:$16 sps:$4 sm:$0xff]   ;;  %v1163_v52 = vld [vmem:[%s1571_s0 + $0xa4] ss:$16 sps:$4 sm:$0xff]  }
  0x39   :  { %992 = vmatpush3.bf16.msra.mxu0 %v1119_v18  ;;  %v1165_v53 = vld [vmem:[%s1571_s0 + $0xac] ss:$16 sps:$4 sm:$0xff]   ;;  %v1167_v56 = vld [vmem:[%s1571_s0 + $0xa0] ss:$16 sps:$4 sm:$0xff]   ;;  %v1168_v57 = vld [vmem:[%s1571_s0 + $0xa8] ss:$16 sps:$4 sm:$0xff]  }
  0x3a   :  { %1050 = vmatpush3.bf16.msra.mxu1 %v1120_v19  ;;  %993 = vmatprep.subr.bf16.mxu0 %v1121_v20 }
  0x3b   :  { %1051 = vmatprep.subr.bf16.mxu1 %v1122_v21 }
  0x3d   :  { %994 = vmatpush3.bf16.msra.mxu0 %v1123_v22 }
  0x3e   :  { %1052 = vmatpush3.bf16.msra.mxu1 %v1124_v23  ;;  %995 = vmatprep.subr.bf16.mxu0 %v1125_v24 }
  0x3f   :  { %1053 = vmatprep.subr.bf16.mxu1 %v1126_v25 }
  0x41   :  { %996 = vmatpush3.bf16.msra.mxu0 %v1127_v26 }
  0x42   :  { %1054 = vmatpush3.bf16.msra.mxu1 %v1128_v27  ;;  %997 = vmatprep.subr.bf16.mxu0 %v1129_v28 }
  0x43   :  { %1055 = vmatprep.subr.bf16.mxu1 %v1130_v29 }
  0x45   :  { %998 = vmatpush3.bf16.msra.mxu0 %v1131_v30 }
  0x46   :  { %1056 = vmatpush3.bf16.msra.mxu1 %v1132_v31 }
  0x48   :  { %491 = vmatmul.mubr.bf16.vlgmr.msra.gmra.mrb[0].mxu0 %v1133_v32 }
  0x49   :  { %579 = vmatmul.mubr.bf16.vlgmr.msra.gmra.mrb[0].mxu1 %v1136_v34  ;;  %498 = vmatprep.mubr.bf16.mxu0 %v1139_v36 }
  0x4a   :  { %586 = vmatprep.mubr.bf16.mxu1 %v1141_v37 }
  0x50   :  { %499 = vmatmul.mubr.bf16.gmra.mrb[4].mxu0 %v1143_v38 }
  0x51   :  { %587 = vmatmul.mubr.bf16.gmra.mrb[4].mxu1 %v1144_v39  ;;  %506 = vmatprep.mubr.bf16.mxu0 %v1145_v40 }
  0x52   :  { %594 = vmatprep.mubr.bf16.mxu1 %v1147_v41 }
  0x58   :  { %507 = vmatmul.mubr.bf16.gmra.mrb[8].mxu0 %v1149_v42 }
  0x59   :  { %595 = vmatmul.mubr.bf16.gmra.mrb[8].mxu1 %v1150_v43  ;;  %514 = vmatprep.mubr.bf16.mxu0 %v1151_v44 }
  0x5a   :  { %602 = vmatprep.mubr.bf16.mxu1 %v1153_v45 }
  0x60   :  { %515 = vmatmul.mubr.bf16.gmra.mrb[12].mxu0 %v1155_v46 }
  0x61   :  { %603 = vmatmul.mubr.bf16.gmra.mrb[12].mxu1 %v1156_v47  ;;  %522 = vmatprep.mubr.bf16.mxu0 %v1157_v48 }
  0x62   :  { %610 = vmatprep.mubr.bf16.mxu1 %v1159_v49 }
  0x68   :  { %523 = vmatmul.mubr.bf16.gmra.mrb[16].mxu0 %v1161_v50 }
  0x69   :  { %611 = vmatmul.mubr.bf16.gmra.mrb[16].mxu1 %v1162_v51  ;;  %530 = vmatprep.mubr.bf16.mxu0 %v1163_v52 }
  0x6a   :  { %618 = vmatprep.mubr.bf16.mxu1 %v1165_v53 }
  0x70   :  { %531 = vmatmul.mubr.bf16.gmra.mrb[20].mxu0 %v1167_v56 }
  0x71   :  { %619 = vmatmul.mubr.bf16.gmra.mrb[20].mxu1 %v1168_v57  ;;  %538 = vmatprep.mubr.bf16.mxu0 %v920_v58 }
  0x72   :  { %626 = vmatprep.mubr.bf16.mxu1 %v922_v59 }
  0x78   :  { %539 = vmatmul.mubr.bf16.gmra.mrb[24].mxu0 %v919_v60 }
  0x79   :  { %627 = vmatmul.mubr.bf16.gmra.mrb[24].mxu1 %v921_v61 }
 0x11b   :  { %v999_v62 = vpop.f32.mrb[0].mxu0 }
 0x11c   :  { %v1057_v63 = vpop.f32.mrb[0].mxu1  ;;  %v1000_v0 = vpop.f32.mrb[1].mxu0 }
 0x11d   :  { %v1001_v1 = vadd.f32 %v1000_v0, %v999_v62  ;;  %v1058_v2 = vpop.f32.mrb[1].mxu1  ;;  %v1002_v3 = vpop.f32.mrb[2].mxu0 }
 0x11e   :  { %v1059_v4 = vadd.f32 %v1058_v2, %v1057_v63  ;;  %v1060_v5 = vpop.f32.mrb[2].mxu1  ;;  %v1003_v6 = vpop.f32.mrb[3].mxu0 }
 0x11f   :  { %v1004_v7 = vadd.f32 %v1003_v6, %v1002_v3  ;;  %v1061_v8 = vpop.f32.mrb[3].mxu1 }
 0x120   :  { %v1448_v9 = vadd.f32 %v1059_v4, %v1001_v1  ;;  %v1062_v10 = vadd.f32 %v1061_v8, %v1060_v5 }
 0x122   :  { %v1450_v11 = vadd.f32 %v1062_v10, %v1004_v7  ;;  %v635_v13 = vsel %vm634_vm0, %v1448_v9, 0.0 }
 0x123   :  { %v1005_v12 = vpop.f32.mrb[4].mxu0 }
 0x124   :  { %v636_v14 = vsel %vm634_vm0, %v1450_v11, 0.0  ;;  %v1063_v15 = vpop.f32.mrb[4].mxu1  ;;  %v1006_v16 = vpop.f32.mrb[5].mxu0 }
 0x125   :  { %v637_v17 = vadd.f32 %v636_v14, %v635_v13  ;;  %v1007_v18 = vadd.f32 %v1006_v16, %v1005_v12  ;;  %v1064_v19 = vpop.f32.mrb[5].mxu1  ;;  %v1008_v20 = vpop.f32.mrb[6].mxu0 }
 0x126   :  { %v1065_v21 = vadd.f32 %v1064_v19, %v1063_v15  ;;  %v1066_v22 = vpop.f32.mrb[6].mxu1  ;;  %v1009_v23 = vpop.f32.mrb[7].mxu0 }
 0x127   :  { %v1010_v24 = vadd.f32 %v1009_v23, %v1008_v20  ;;  %v1067_v25 = vpop.f32.mrb[7].mxu1 }
 0x128   :  { %v1456_v26 = vadd.f32 %v1065_v21, %v1007_v18  ;;  %v1068_v27 = vadd.f32 %v1067_v25, %v1066_v22 }
 0x12a   :  { %v638_v28 = vsel %vm634_vm0, %v1456_v26, 0.0  ;;  %v1460_v29 = vadd.f32 %v1068_v27, %v1010_v24 }
 0x12b   :  { %v639_v30 = vadd.f32 %v638_v28, %v637_v17  ;;  %v1011_v31 = vpop.f32.mrb[8].mxu0 }
 0x12c   :  { %v640_v32 = vsel %vm634_vm0, %v1460_v29, 0.0  ;;  %v1069_v33 = vpop.f32.mrb[8].mxu1  ;;  %v1012_v34 = vpop.f32.mrb[9].mxu0 }
 0x12d   :  { %v641_v35 = vadd.f32 %v640_v32, %v639_v30  ;;  %v1013_v36 = vadd.f32 %v1012_v34, %v1011_v31  ;;  %v1070_v37 = vpop.f32.mrb[9].mxu1  ;;  %v1014_v38 = vpop.f32.mrb[10].mxu0 }
 0x12e   :  { %v1071_v39 = vadd.f32 %v1070_v37, %v1069_v33  ;;  %v1072_v40 = vpop.f32.mrb[10].mxu1  ;;  %v1015_v41 = vpop.f32.mrb[11].mxu0 }
 0x12f   :  { %v1016_v42 = vadd.f32 %v1015_v41, %v1014_v38  ;;  %v1073_v43 = vpop.f32.mrb[11].mxu1 }
 0x130   :  { %v1464_v44 = vadd.f32 %v1071_v39, %v1013_v36  ;;  %v1074_v45 = vadd.f32 %v1073_v43, %v1072_v40 }
 0x132   :  { %v642_v46 = vsel %vm634_vm0, %v1464_v44, 0.0  ;;  %v1468_v47 = vadd.f32 %v1074_v45, %v1016_v42 }
 0x133   :  { %v643_v48 = vadd.f32 %v642_v46, %v641_v35  ;;  %v1017_v49 = vpop.f32.mrb[12].mxu0 }
 0x134   :  { %v644_v50 = vsel %vm634_vm0, %v1468_v47, 0.0  ;;  %v1075_v51 = vpop.f32.mrb[12].mxu1  ;;  %v1018_v52 = vpop.f32.mrb[13].mxu0 }
 0x135   :  { %v645_v53 = vadd.f32 %v644_v50, %v643_v48  ;;  %v1019_v54 = vadd.f32 %v1018_v52, %v1017_v49  ;;  %v1076_v55 = vpop.f32.mrb[13].mxu1  ;;  %v1020_v56 = vpop.f32.mrb[14].mxu0 }
 0x136   :  { %v1077_v57 = vadd.f32 %v1076_v55, %v1075_v51  ;;  %v1078_v58 = vpop.f32.mrb[14].mxu1  ;;  %v1021_v59 = vpop.f32.mrb[15].mxu0 }
 0x137   :  { %v1022_v60 = vadd.f32 %v1021_v59, %v1020_v56  ;;  %v1079_v61 = vpop.f32.mrb[15].mxu1 }
 0x138   :  { %v1472_v62 = vadd.f32 %v1077_v57, %v1019_v54  ;;  %v1080_v63 = vadd.f32 %v1079_v61, %v1078_v58 }
 0x13a   :  { %v646_v0 = vsel %vm634_vm0, %v1472_v62, 0.0  ;;  %v1476_v1 = vadd.f32 %v1080_v63, %v1022_v60 }
 0x13b   :  { %v647_v2 = vadd.f32 %v646_v0, %v645_v53  ;;  %v1023_v3 = vpop.f32.mrb[16].mxu0 }
 0x13c   :  { %v648_v4 = vsel %vm634_vm0, %v1476_v1, 0.0  ;;  %v1081_v5 = vpop.f32.mrb[16].mxu1  ;;  %v1024_v6 = vpop.f32.mrb[17].mxu0 }
 0x13d   :  { %v649_v7 = vadd.f32 %v648_v4, %v647_v2  ;;  %v1025_v8 = vadd.f32 %v1024_v6, %v1023_v3  ;;  %v1082_v10 = vpop.f32.mrb[17].mxu1  ;;  %v1026_v12 = vpop.f32.mrb[18].mxu0 }
 0x13e   :  { %v1083_v13 = vadd.f32 %v1082_v10, %v1081_v5  ;;  %v1084_v14 = vpop.f32.mrb[18].mxu1  ;;  %v1027_v15 = vpop.f32.mrb[19].mxu0 }
 0x13f   :  { %v1028_v16 = vadd.f32 %v1027_v15, %v1026_v12  ;;  %v1085_v17 = vpop.f32.mrb[19].mxu1 }
 0x140   :  { %v613_v18 = vadd.f32 %v1083_v13, %v1025_v8  ;;  %v1086_v19 = vadd.f32 %v1085_v17, %v1084_v14 }
 0x142   :  { %v650_v20 = vsel %vm634_vm0, %v613_v18, 0.0  ;;  %v616_v21 = vadd.f32 %v1086_v19, %v1028_v16 }
 0x143   :  { %v651_v22 = vadd.f32 %v650_v20, %v649_v7  ;;  %v1029_v23 = vpop.f32.mrb[20].mxu0 }
 0x144   :  { %v652_v24 = vsel %vm634_vm0, %v616_v21, 0.0  ;;  %v1087_v25 = vpop.f32.mrb[20].mxu1  ;;  %v1030_v27 = vpop.f32.mrb[21].mxu0 }
 0x145   :  { %v653_v28 = vadd.f32 %v652_v24, %v651_v22  ;;  %v1031_v30 = vadd.f32 %v1030_v27, %v1029_v23  ;;  %v1088_v31 = vpop.f32.mrb[21].mxu1  ;;  %v1032_v32 = vpop.f32.mrb[22].mxu0 }
 0x146   :  { %v1089_v33 = vadd.f32 %v1088_v31, %v1087_v25  ;;  %v1090_v34 = vpop.f32.mrb[22].mxu1  ;;  %v1033_v35 = vpop.f32.mrb[23].mxu0 }
 0x147   :  { %v1034_v36 = vadd.f32 %v1033_v35, %v1032_v32  ;;  %v1091_v37 = vpop.f32.mrb[23].mxu1 }
 0x148   :  { %v621_v38 = vadd.f32 %v1089_v33, %v1031_v30  ;;  %v1092_v39 = vadd.f32 %v1091_v37, %v1090_v34 }
 0x14a   :  { %v654_v40 = vsel %vm634_vm0, %v621_v38, 0.0  ;;  %v624_v41 = vadd.f32 %v1092_v39, %v1034_v36 }
 0x14b   :  { %v655_v42 = vadd.f32 %v654_v40, %v653_v28  ;;  %v1035_v43 = vpop.f32.mrb[24].mxu0 }
 0x14c   :  { %v656_v45 = vsel %vm634_vm0, %v624_v41, 0.0  ;;  %v1093_v46 = vpop.f32.mrb[24].mxu1  ;;  %v1036_v48 = vpop.f32.mrb[25].mxu0 }
 0x14d   :  { %v657_v49 = vadd.f32 %v656_v45, %v655_v42  ;;  %v1037_v50 = vadd.f32 %v1036_v48, %v1035_v43  ;;  %v1094_v51 = vpop.f32.mrb[25].mxu1  ;;  %v1038_v52 = vpop.f32.mrb[26].mxu0 }
 0x14e   :  { %v1095_v53 = vadd.f32 %v1094_v51, %v1093_v46  ;;  %v1096_v54 = vpop.f32.mrb[26].mxu1  ;;  %v1039_v55 = vpop.f32.mrb[27].mxu0 }
 0x14f   :  { %v1097_v56 = vpop.f32.mrb[27].mxu1 }
 0x150   :  { %v629_v57 = vadd.f32 %v1095_v53, %v1037_v50 }
 0x152   :  { %v659_v58 = vsel %vm658_vm1, %v629_v57, 0.0 }
 0x153   :  { %v660_v59 = vadd.f32 %v659_v58, %v657_v49 }
 0x155   :  { %v661_v60 = vrot.slane %v660_v59, 4 }
 0x157   :  { %v662_v61 = vadd.f32 %v661_v60, %v660_v59 }
 0x159   :  { %v663_v63 = vrot.slane %v662_v61, 2 }
 0x15b   :  { %v664_v0 = vadd.f32 %v663_v63, %v662_v61 }
 0x15d   :  { %v665_v2 = vrot.slane %v664_v0, 1 }
 0x15f   :  { %v666_v3 = vadd.f32 %v665_v2, %v664_v0 }
 0x161   :  { %v668_v4 = vmul.f32 0.010204081, %v666_v3 }
 0x163   :  { %v669_v5 = vsub.f32 %v1448_v9, %v668_v4  ;;  %v670_v6 = vsub.f32 %v1450_v11, %v668_v4  ;;  %v671_v7 = vsub.f32 %v1456_v26, %v668_v4  ;;  %v672_v8 = vsub.f32 %v1460_v29, %v668_v4 }
 0x164   :  { %v673_v10 = vsub.f32 %v1464_v44, %v668_v4  ;;  %v674_v12 = vsub.f32 %v1468_v47, %v668_v4  ;;  %v675_v13 = vsub.f32 %v1472_v62, %v668_v4  ;;  %v676_v14 = vsub.f32 %v1476_v1, %v668_v4 }
 0x165   :  { %v677_v15 = vsub.f32 %v613_v18, %v668_v4  ;;  %v678_v16 = vsub.f32 %v616_v21, %v668_v4  ;;  %v679_v17 = vsub.f32 %v621_v38, %v668_v4  ;;  %v680_v19 = vsub.f32 %v624_v41, %v668_v4 }
 0x166   :  { %v681_v20 = vsub.f32 %v629_v57, %v668_v4  ;;  %v682_v9 = vmul.f32 %v669_v5, %v669_v5  ;;  %v683_v22 = vmul.f32 %v670_v6, %v670_v6  ;;  %v684_v11 = vmul.f32 %v671_v7, %v671_v7 }
 0x167   :  { %v685_v23 = vmul.f32 %v672_v8, %v672_v8  ;;  %v686_v24 = vmul.f32 %v673_v10, %v673_v10  ;;  %v687_v25 = vmul.f32 %v674_v12, %v674_v12  ;;  %v688_v21 = vmul.f32 %v675_v13, %v675_v13 }
 0x168   :  { %v695_v26 = vsel %vm634_vm0, %v682_v9, 0.0  ;;  %v696_v29 = vsel %vm634_vm0, %v683_v22, 0.0  ;;  %v698_v47 = vsel %vm634_vm0, %v684_v11, 0.0  ;;  %v689_v30 = vmul.f32 %v676_v14, %v676_v14  ;;  %v955_v9 = vld [vmem:[#allocation2] ss:$0 sm:$0xff] }
 0x169   :  { %v697_v44 = vadd.f32 %v696_v29, %v695_v26  ;;  %v700_v1 = vsel %vm634_vm0, %v685_v23, 0.0  ;;  %v702_v27 = vsel %vm634_vm0, %v686_v24, 0.0  ;;  %v704_v31 = vsel %vm634_vm0, %v687_v25, 0.0 }
 0x16a   :  { %v690_v33 = vmul.f32 %v677_v15, %v677_v15  ;;  %v706_v34 = vsel %vm634_vm0, %v688_v21, 0.0  ;;  %v691_v36 = vmul.f32 %v678_v16, %v678_v16  ;;  %v708_v37 = vsel %vm634_vm0, %v689_v30, 0.0  ;;  %v956_v21 = vld [vmem:[#allocation4] ss:$0 sm:$0xff] }
 0x16b   :  { %v699_v62 = vadd.f32 %v698_v47, %v697_v44  ;;  %v692_v39 = vmul.f32 %v679_v17, %v679_v17  ;;  %v693_v42 = vmul.f32 %v680_v19, %v680_v19  ;;  %v694_v46 = vmul.f32 %v681_v20, %v681_v20 }
 0x16c   :  { %v710_v40 = vsel %vm634_vm0, %v690_v33, 0.0  ;;  %v712_v43 = vsel %vm634_vm0, %v691_v36, 0.0 }
 0x16d   :  { %v701_v18 = vadd.f32 %v700_v1, %v699_v62  ;;  %v714_v48 = vsel %vm634_vm0, %v692_v39, 0.0  ;;  %v716_v50 = vsel %vm634_vm0, %v693_v42, 0.0  ;;  %v718_v52 = vsel %vm658_vm1, %v694_v46, 0.0 }
 0x16e   :  { %vm887_vm0 = vcmask 516096  }
 0x16f   :  { %v703_v28 = vadd.f32 %v702_v27, %v701_v18 }
 0x171   :  { %v705_v32 = vadd.f32 %v704_v31, %v703_v28 }
 0x173   :  { %v707_v35 = vadd.f32 %v706_v34, %v705_v32 }
 0x175   :  { %v709_v38 = vadd.f32 %v708_v37, %v707_v35 }
 0x177   :  { %v711_v41 = vadd.f32 %v710_v40, %v709_v38 }
 0x179   :  { %v713_v45 = vadd.f32 %v712_v43, %v711_v41 }
 0x17b   :  { %v715_v49 = vadd.f32 %v714_v48, %v713_v45 }
 0x17d   :  { %v717_v51 = vadd.f32 %v716_v50, %v715_v49 }
 0x17f   :  { %v719_v53 = vadd.f32 %v718_v52, %v717_v51 }
 0x181   :  { %v720_v54 = vrot.slane %v719_v53, 4 }
 0x183   :  { %v721_v55 = vadd.f32 %v720_v54, %v719_v53 }
 0x185   :  { %v722_v56 = vrot.slane %v721_v55, 2 }
 0x187   :  { %v723_v57 = vadd.f32 %v722_v56, %v721_v55 }
 0x189   :  { %v724_v58 = vrot.slane %v723_v57, 1 }
 0x18b   :  { %v725_v59 = vadd.f32 %v724_v58, %v723_v57 }
 0x18d   :  { %v726_v60 = vmul.f32 0.010204081, %v725_v59 }
 0x18f   :  { %v727_v61 = vadd.f32 1e-05, %v726_v60 }
 0x191   :  { %1173 = vrsqrt.f32 %v727_v61 }
 0x19b   :  { %v1174_v63 = vpop.eup %1173 }
 0x19c   :  { %v729_v0 = vmul.f32 %v1174_v63, %v669_v5  ;;  %v730_v2 = vmul.f32 %v1174_v63, %v670_v6  ;;  %v731_v3 = vmul.f32 %v1174_v63, %v671_v7  ;;  %v732_v4 = vmul.f32 %v1174_v63, %v672_v8 }
 0x19d   :  { %v733_v22 = vmul.f32 %v1174_v63, %v673_v10  ;;  %v734_v11 = vmul.f32 %v1174_v63, %v674_v12  ;;  %v735_v23 = vmul.f32 %v1174_v63, %v675_v13  ;;  %v736_v26 = vmul.f32 %v1174_v63, %v676_v14 }
 0x19e   :  { %v737_v29 = vmul.f32 %v1174_v63, %v677_v15  ;;  %v738_v44 = vmul.f32 %v1174_v63, %v678_v16  ;;  %v739_v24 = vmul.f32 %v1174_v63, %v679_v17  ;;  %v740_v47 = vmul.f32 %v1174_v63, %v680_v19 }
 0x19f   :  { %v741_v62 = vmul.f32 %v1174_v63, %v681_v20  ;;  %v749_v25 = vmul.f32 %v955_v9, %v729_v0  ;;  %v750_v1 = vmul.f32 %v955_v9, %v730_v2  ;;  %v751_v18 = vmul.f32 %v955_v9, %v731_v3 }
 0x1a0   :  { %v752_v27 = vmul.f32 %v955_v9, %v732_v4  ;;  %v753_v28 = vmul.f32 %v955_v9, %v733_v22  ;;  %v754_v5 = vmul.f32 %v955_v9, %v734_v11  ;;  %v755_v6 = vmul.f32 %v955_v9, %v735_v23 }
 0x1a1   :  { %v756_v7 = vmul.f32 %v955_v9, %v736_v26  ;;  %v757_v8 = vmul.f32 %v955_v9, %v737_v29  ;;  %v758_v30 = vmul.f32 %v955_v9, %v738_v44  ;;  %v759_v10 = vmul.f32 %v955_v9, %v739_v24 }
 0x1a2   :  { %v760_v12 = vmul.f32 %v955_v9, %v740_v47  ;;  %v761_v13 = vmul.f32 %v955_v9, %v741_v62  ;;  %v769_v14 = vadd.f32 %v956_v21, %v749_v25  ;;  %v770_v15 = vadd.f32 %v956_v21, %v750_v1 }
 0x1a3   :  { %v771_v16 = vadd.f32 %v956_v21, %v751_v18  ;;  %v772_v17 = vadd.f32 %v956_v21, %v752_v27  ;;  %v773_v19 = vadd.f32 %v956_v21, %v753_v28  ;;  %v774_v20 = vadd.f32 %v956_v21, %v754_v5 }
 0x1a4   :  { %v775_v31 = vadd.f32 %v956_v21, %v755_v6  ;;  %v776_v32 = vadd.f32 %v956_v21, %v756_v7  ;;  %v777_v33 = vadd.f32 %v956_v21, %v757_v8  ;;  %v778_v34 = vadd.f32 %v956_v21, %v758_v30 }
 0x1a5   :  { %v779_v35 = vadd.f32 %v956_v21, %v759_v10  ;;  %v780_v36 = vadd.f32 %v956_v21, %v760_v12  ;;  %v781_v37 = vadd.f32 %v956_v21, %v761_v13  ;;  %vm782_vm2 = vcmp.gt.f32.partialorder %v769_v14, 0.0 }
 0x1a6   :  { %vm783_vm3 = vcmp.gt.f32.partialorder %v770_v15, 0.0  ;;  %vm784_vm4 = vcmp.gt.f32.partialorder %v771_v16, 0.0  ;;  %vm785_vm5 = vcmp.gt.f32.partialorder %v772_v17, 0.0  ;;  %vm786_vm6 = vcmp.gt.f32.partialorder %v773_v19, 0.0 }
 0x1a7   :  { %vm787_vm7 = vcmp.gt.f32.partialorder %v774_v20, 0.0  ;;  %vm788_vm8 = vcmp.gt.f32.partialorder %v775_v31, 0.0  ;;  %vm789_vm9 = vcmp.gt.f32.partialorder %v776_v32, 0.0  ;;  %vm790_vm10 = vcmp.gt.f32.partialorder %v777_v33, 0.0 }
 0x1a8   :  { %vm791_vm12 = vcmp.gt.f32.partialorder %v778_v34, 0.0  ;;  %vm792_vm13 = vcmp.gt.f32.partialorder %v779_v35, 0.0  ;;  %vm793_vm14 = vcmp.gt.f32.partialorder %v780_v36, 0.0  ;;  %vm794_vm15 = vcmp.gt.f32.partialorder %v781_v37, 0.0 }
 0x1a9   :  { %v795_v38 = vmul.f32 0.2, %v769_v14  ;;  %v796_v39 = vmul.f32 0.2, %v770_v15  ;;  %v797_v40 = vmul.f32 0.2, %v771_v16 }
 0x1aa   :  { %v798_v41 = vmul.f32 0.2, %v772_v17  ;;  %v799_v42 = vmul.f32 0.2, %v773_v19  ;;  %v800_v43 = vmul.f32 0.2, %v774_v20 }
 0x1ab   :  { %v801_v45 = vmul.f32 0.2, %v775_v31  ;;  %v802_v46 = vmul.f32 0.2, %v776_v32  ;;  %v803_v48 = vmul.f32 0.2, %v777_v33  ;;  %v808_v49 = vsel %vm782_vm2, %v769_v14, %v795_v38 }
 0x1ac   :  { %v804_v50 = vmul.f32 0.2, %v778_v34  ;;  %v805_v51 = vmul.f32 0.2, %v779_v35  ;;  %v806_v52 = vmul.f32 0.2, %v780_v36  ;;  %v809_v53 = vsel %vm783_vm3, %v770_v15, %v796_v39 }
 0x1ad   :  { %v807_v54 = vmul.f32 0.2, %v781_v37  ;;  %v810_v55 = vsel %vm784_vm4, %v771_v16, %v797_v40  ;;  %v811_v56 = vsel %vm785_vm5, %v772_v17, %v798_v41  ;;  %v812_v57 = vsel %vm786_vm6, %v773_v19, %v799_v42 }
 0x1ae   :  { %v813_v58 = vsel %vm787_vm7, %v774_v20, %v800_v43  ;;  %v814_v59 = vsel %vm788_vm8, %v775_v31, %v801_v45  ;;  %v815_v60 = vsel %vm789_vm9, %v776_v32, %v802_v46  ;;  %v816_v61 = vsel %vm790_vm10, %v777_v33, %v803_v48 }
 0x1af   :  { %v817_v63 = vsel %vm791_vm12, %v778_v34, %v804_v50  ;;  %v818_v0 = vsel %vm792_vm13, %v779_v35, %v805_v51  ;;  %v819_v2 = vsel %vm793_vm14, %v780_v36, %v806_v52  ;;  %v820_v3 = vsel %vm794_vm15, %v781_v37, %v807_v54 }
 0x1b0   :  { %v970_v4 = vpack.c.bf16 %v808_v49, %v808_v49  ;;  %v971_v9 = vpack.c.bf16 %v809_v53, %v809_v53  ;;  %v972_v22 = vpack.c.bf16 %v810_v55, %v810_v55  ;;  %v973_v11 = vpack.c.bf16 %v811_v56, %v811_v56 }
 0x1b1   :  { %v974_v23 = vpack.c.bf16 %v812_v57, %v812_v57  ;;  %v975_v26 = vpack.c.bf16 %v813_v58, %v813_v58  ;;  %v976_v29 = vpack.c.bf16 %v814_v59, %v814_v59  ;;  %v977_v44 = vpack.c.bf16 %v815_v60, %v815_v60 }
 0x1b2   :  { %v978_v24 = vpack.c.bf16 %v816_v61, %v816_v61  ;;  %v979_v47 = vpack.c.bf16 %v817_v63, %v817_v63  ;;  %v980_v62 = vpack.c.bf16 %v818_v0, %v818_v0  ;;  %v981_v25 = vpack.c.bf16 %v819_v2, %v819_v2  ;;  %875 = vst.msk [vmem:[%s1575_s4] sm:$0xf] %vm874_vm11, %v970_v4 }
 0x1b3   :  { %876 = vst.msk [vmem:[%s1575_s4 + $0x4] sm:$0xf] %vm874_vm11, %v971_v9  ;;  %877 = vst.msk [vmem:[%s1575_s4 + $0x8] sm:$0xf] %vm874_vm11, %v972_v22  ;;  %v982_v1 = vpack.c.bf16 %v820_v3, %v820_v3 }
 0x1b4   :  { %878 = vst.msk [vmem:[%s1575_s4 + $0xc] sm:$0xf] %vm874_vm11, %v973_v11  ;;  %879 = vst.msk [vmem:[%s1575_s4 + $0x10] sm:$0xf] %vm874_vm11, %v974_v23 }
 0x1b5   :  { %880 = vst.msk [vmem:[%s1575_s4 + $0x14] sm:$0xf] %vm874_vm11, %v975_v26  ;;  %881 = vst.msk [vmem:[%s1575_s4 + $0x18] sm:$0xf] %vm874_vm11, %v976_v29 }
 0x1b6   :  { %882 = vst.msk [vmem:[%s1575_s4 + $0x1c] sm:$0xf] %vm874_vm11, %v977_v44  ;;  %883 = vst.msk [vmem:[%s1575_s4 + $0x20] sm:$0xf] %vm874_vm11, %v978_v24 }
 0x1b7   :  { %884 = vst.msk [vmem:[%s1575_s4 + $0x24] sm:$0xf] %vm874_vm11, %v979_v47  ;;  %885 = vst.msk [vmem:[%s1575_s4 + $0x28] sm:$0xf] %vm874_vm11, %v980_v62 }
 0x1b8   :  { %886 = vst.msk [vmem:[%s1575_s4 + $0x2c] sm:$0xf] %vm874_vm11, %v981_v25 }
 0x1b9   :  { %888 = vst.msk [vmem:[%s1575_s4 + $0x30] sm:$0x1] %vm887_vm0, %v982_v1 }
 0x1ba   :  { %893 = vsyncpa [#allocation3], 1 }
 0x1bb   :  { %894 = vsyncpa [#allocation5], 1 }

// kernel: encoder_forward.7
= control target key start
LH: loop header
LB: loop body
LE: loop exit
PB: predicated region body
PF: predicated region fallthrough
CT: control target
= control target key end

     0   :  { %v977_v22 = vmov 1966171168   ;;  %v156_v24 = vlaneseq  ;;  %s1212_s1 = inlined_call_operand.vmem [shape: bf16[1024,128], index: 1, kind: input, shape index: {}]   ;;  %s1213_s0 = inlined_call_operand.vmem [shape: bf16[2,1024], index: 0, kind: input, shape index: {}]   ;;  %s1214_s2 = inlined_call_operand.vmem [shape: f32[1,128], index: 2, kind: input, shape index: {}]   ;;  %s1215_s3 = inlined_call_operand.vmem [shape: f32[2,128], index: 3, kind: output, shape index: {}]  }
   0x1   :  { %v912_v0 = vld [vmem:[%s1212_s1 + $0x40] sm:$0xff]   ;;  %v916_v4 = vld [vmem:[%s1212_s1 + $0x48] sm:$0xff]   ;;  %v920_v8 = vld [vmem:[%s1212_s1 + $0x50] sm:$0xff]   ;;  %v154_v23 = vunpack.c.l.s4 %v977_v22 }
   0x2   :  { %v913_v1 = vld [vmem:[%s1212_s1 + $0xc0] sm:$0xff]   ;;  %823 = vmatprep.subr.bf16.mxu0 %v912_v0  ;;  %v917_v5 = vld [vmem:[%s1212_s1 + $0xc8] sm:$0xff]   ;;  %v921_v9 = vld [vmem:[%s1212_s1 + $0xd0] sm:$0xff]   ;;  %v157_v30 = vshrl.u32 %v156_v24, 7 }
   0x3   :  { %v914_v2 = vld [vmem:[%s1212_s1] sm:$0xff]   ;;  %845 = vmatprep.subr.bf16.mxu1 %v913_v1  ;;  %v918_v6 = vld [vmem:[%s1212_s1 + $0x8] sm:$0xff]   ;;  %v922_v10 = vld [vmem:[%s1212_s1 + $0x10] sm:$0xff]   ;;  %v155_v29 = vunpack.c.0.s8 %v154_v23 }
   0x4   :  { %v915_v3 = vld [vmem:[%s1212_s1 + $0x80] sm:$0xff]   ;;  %824 = vmatpush3.bf16.msra.mxu0 %v914_v2  ;;  %v919_v7 = vld [vmem:[%s1212_s1 + $0x88] sm:$0xff]   ;;  %v923_v11 = vld [vmem:[%s1212_s1 + $0x90] sm:$0xff]  }
   0x5   :  { %846 = vmatpush3.bf16.msra.mxu1 %v915_v3  ;;  %825 = vmatprep.subr.bf16.mxu0 %v916_v4  ;;  %v924_v12 = vld [vmem:[%s1212_s1 + $0x58] sm:$0xff]   ;;  %v928_v16 = vld [vmem:[%s1212_s1 + $0x60] sm:$0xff]   ;;  %v932_v20 = vld [vmem:[%s1212_s1 + $0x68] sm:$0xff]   ;;  %v1088_v35 = vsub.s32 %v155_v29, %v157_v30 }
   0x6   :  { %847 = vmatprep.subr.bf16.mxu1 %v917_v5  ;;  %v925_v13 = vld [vmem:[%s1212_s1 + $0xd8] sm:$0xff]   ;;  %v929_v17 = vld [vmem:[%s1212_s1 + $0xe0] sm:$0xff]   ;;  %v933_v21 = vld [vmem:[%s1212_s1 + $0xe8] sm:$0xff]  }
   0x7   :  { %v926_v14 = vld [vmem:[%s1212_s1 + $0x18] sm:$0xff]   ;;  %v930_v18 = vld [vmem:[%s1212_s1 + $0x20] sm:$0xff]   ;;  %v934_v25 = vld [vmem:[%s1212_s1 + $0x28] sm:$0xff]  }
   0x8   :  { %826 = vmatpush3.bf16.msra.mxu0 %v918_v6  ;;  %v927_v15 = vld [vmem:[%s1212_s1 + $0x98] sm:$0xff]   ;;  %v931_v19 = vld [vmem:[%s1212_s1 + $0xa0] sm:$0xff]   ;;  %v935_v26 = vld [vmem:[%s1212_s1 + $0xa8] sm:$0xff]  }
   0x9   :  { %848 = vmatpush3.bf16.msra.mxu1 %v919_v7  ;;  %827 = vmatprep.subr.bf16.mxu0 %v920_v8  ;;  %v936_v27 = vld [vmem:[%s1212_s1 + $0x70] sm:$0xff]   ;;  %v940_v33 = vld [vmem:[%s1212_s1 + $0x78] sm:$0xff]   ;;  %v15_v38 = vld [vmem:[%s1213_s0] sm:$0xff] }
   0xa   :  { %849 = vmatprep.subr.bf16.mxu1 %v921_v9  ;;  %v937_v28 = vld [vmem:[%s1212_s1 + $0xf0] sm:$0xff]   ;;  %v941_v34 = vld [vmem:[%s1212_s1 + $0xf8] sm:$0xff]   ;;  %v152_v39 = vcombine.high %v15_v38, %v15_v38  ;;  %v159_v40 = vrot.slane %v15_v38, %v1088_v35  ;;  %v945_v41 = vld [vmem:[%s1212_s1 + $0x140] sm:$0xff]  }
   0xb   :  { %v938_v31 = vld [vmem:[%s1212_s1 + $0x30] sm:$0xff]   ;;  %v942_v36 = vld [vmem:[%s1212_s1 + $0x38] sm:$0xff]   ;;  %v946_v42 = vld [vmem:[%s1212_s1 + $0x1c0] sm:$0xff]  }
   0xc   :  { %828 = vmatpush3.bf16.msra.mxu0 %v922_v10  ;;  %v939_v32 = vld [vmem:[%s1212_s1 + $0xb0] sm:$0xff]   ;;  %v943_v37 = vld [vmem:[%s1212_s1 + $0xb8] sm:$0xff]   ;;  %v167_v43 = vcombine.high %v159_v40, %v159_v40  ;;  %v175_v44 = vrot.slane %v159_v40, %v1088_v35  ;;  %v1108_v45 = vrot.slane %v152_v39, %v1088_v35  ;;  %v947_v47 = vld [vmem:[%s1212_s1 + $0x100] sm:$0xff]  }
   0xd   :  { %850 = vmatpush3.bf16.msra.mxu1 %v923_v11  ;;  %829 = vmatprep.subr.bf16.mxu0 %v924_v12  ;;  %v949_v50 = vld [vmem:[%s1212_s1 + $0x148] sm:$0xff]   ;;  %v948_v52 = vld [vmem:[%s1212_s1 + $0x180] sm:$0xff]   ;;  %v953_v57 = vld [vmem:[%s1212_s1 + $0x150] sm:$0xff]  }
   0xe   :  { %851 = vmatprep.subr.bf16.mxu1 %v925_v13  ;;  %v189_v46 = vrot.slane %v167_v43, %v1088_v35  ;;  %v168_v48 = vcombine.high %v1108_v45, %v1108_v45  ;;  %v197_v49 = vcombine.high %v175_v44, %v175_v44  ;;  %v950_v54 = vld [vmem:[%s1212_s1 + $0x1c8] sm:$0xff]   ;;  %v954_v59 = vld [vmem:[%s1212_s1 + $0x1d0] sm:$0xff]   ;;  %v957_v61 = vld [vmem:[%s1212_s1 + $0x158] sm:$0xff]  }
   0xf   :  { %v951_v55 = vld [vmem:[%s1212_s1 + $0x108] sm:$0xff]   ;;  %v955_v60 = vld [vmem:[%s1212_s1 + $0x110] sm:$0xff]   ;;  %v958_v63 = vld [vmem:[%s1212_s1 + $0x1d8] sm:$0xff]  }
  0x10   :  { %830 = vmatpush3.bf16.msra.mxu0 %v926_v14  ;;  %625 = vmatprep.mubr.bf16.mxu0 %v189_v46  ;;  %v199_v51 = vcombine.high %v189_v46, %v189_v46  ;;  %v196_v53 = vrot.slane %v168_v48, %v1088_v35  ;;  %v952_v58 = vld [vmem:[%s1212_s1 + $0x188] sm:$0xff]   ;;  %v956_v62 = vld [vmem:[%s1212_s1 + $0x190] sm:$0xff]   ;;  %v959_v0 = vld [vmem:[%s1212_s1 + $0x118] sm:$0xff]  }
  0x11   :  { %852 = vmatpush3.bf16.msra.mxu1 %v927_v15  ;;  %831 = vmatprep.subr.bf16.mxu0 %v928_v16  ;;  %v961_v1 = vld [vmem:[%s1212_s1 + $0x160] sm:$0xff]   ;;  %v960_v2 = vld [vmem:[%s1212_s1 + $0x198] sm:$0xff]   ;;  %v965_v5 = vld [vmem:[%s1212_s1 + $0x168] sm:$0xff]  }
  0x12   :  { %853 = vmatprep.subr.bf16.mxu1 %v929_v17  ;;  %665 = vmatprep.mubr.bf16.mxu1 %v199_v51  ;;  %v200_v56 = vcombine.high %v196_v53, %v196_v53  ;;  %v962_v3 = vld [vmem:[%s1212_s1 + $0x1e0] sm:$0xff]   ;;  %v966_v7 = vld [vmem:[%s1212_s1 + $0x1e8] sm:$0xff]   ;;  %v969_v9 = vld [vmem:[%s1212_s1 + $0x170] sm:$0xff]   ;;  %v182_v17 = vrot.slane %v1108_v45, %v1088_v35 }
  0x13   :  { %v963_v4 = vld [vmem:[%s1212_s1 + $0x120] sm:$0xff]   ;;  %v967_v8 = vld [vmem:[%s1212_s1 + $0x128] sm:$0xff]   ;;  %v970_v11 = vld [vmem:[%s1212_s1 + $0x1f0] sm:$0xff]  }
  0x14   :  { %832 = vmatpush3.bf16.msra.mxu0 %v930_v18  ;;  %v964_v6 = vld [vmem:[%s1212_s1 + $0x1a0] sm:$0xff]   ;;  %v968_v10 = vld [vmem:[%s1212_s1 + $0x1a8] sm:$0xff]   ;;  %v971_v12 = vld [vmem:[%s1212_s1 + $0x130] sm:$0xff]  }
  0x15   :  { %854 = vmatpush3.bf16.msra.mxu1 %v931_v19  ;;  %833 = vmatprep.subr.bf16.mxu0 %v932_v20  ;;  %v973_v13 = vld [vmem:[%s1212_s1 + $0x178] sm:$0xff]   ;;  %v972_v14 = vld [vmem:[%s1212_s1 + $0x1b0] sm:$0xff]   ;;  %v198_v19 = vcombine.high %v182_v17, %v182_v17 }
  0x16   :  { %855 = vmatprep.subr.bf16.mxu1 %v933_v21  ;;  %v974_v15 = vld [vmem:[%s1212_s1 + $0x1f8] sm:$0xff]   ;;  %v758_v21 = vld [vmem:[%s1214_s2] ss:$0 sm:$0xff] }
  0x17   :  { %v975_v16 = vld [vmem:[%s1212_s1 + $0x138] sm:$0xff]  }
  0x18   :  { %834 = vmatpush3.bf16.msra.mxu0 %v934_v25  ;;  %v976_v18 = vld [vmem:[%s1212_s1 + $0x1b8] sm:$0xff]  }
  0x19   :  { %856 = vmatpush3.bf16.msra.mxu1 %v935_v26  ;;  %835 = vmatprep.subr.bf16.mxu0 %v936_v27 }
  0x1a   :  { %857 = vmatprep.subr.bf16.mxu1 %v937_v28 }
  0x1c   :  { %836 = vmatpush3.bf16.msra.mxu0 %v938_v31 }
  0x1d   :  { %858 = vmatpush3.bf16.msra.mxu1 %v939_v32  ;;  %837 = vmatprep.subr.bf16.mxu0 %v940_v33 }
  0x1e   :  { %859 = vmatprep.subr.bf16.mxu1 %v941_v34 }
  0x20   :  { %838 = vmatpush3.bf16.msra.mxu0 %v942_v36 }
  0x21   :  { %860 = vmatpush3.bf16.msra.mxu1 %v943_v37  ;;  %867 = vmatprep.subr.bf16.mxu0 %v945_v41 }
  0x22   :  { %889 = vmatprep.subr.bf16.mxu1 %v946_v42 }
  0x23   :  { %626 = vmatmul.mubr.bf16.vlgmr.msra.gmra.mrb[0].mxu0 %v175_v44 }
  0x24   :  { %868 = vmatpush3.bf16.msra.mxu0 %v947_v47  ;;  %666 = vmatmul.mubr.bf16.vlgmr.msra.gmra.mrb[0].mxu1 %v197_v49 }
  0x25   :  { %869 = vmatprep.subr.bf16.mxu0 %v949_v50  ;;  %890 = vmatpush3.bf16.msra.mxu1 %v948_v52 }
  0x26   :  { %705 = vmatprep.mubr.bf16.mxu0 %v196_v53  ;;  %891 = vmatprep.subr.bf16.mxu1 %v950_v54 }
  0x27   :  { %745 = vmatprep.mubr.bf16.mxu1 %v200_v56 }
  0x28   :  { %870 = vmatpush3.bf16.msra.mxu0 %v951_v55 }
  0x29   :  { %871 = vmatprep.subr.bf16.mxu0 %v953_v57  ;;  %892 = vmatpush3.bf16.msra.mxu1 %v952_v58 }
  0x2a   :  { %893 = vmatprep.subr.bf16.mxu1 %v954_v59 }
  0x2c   :  { %872 = vmatpush3.bf16.msra.mxu0 %v955_v60 }
  0x2d   :  { %873 = vmatprep.subr.bf16.mxu0 %v957_v61  ;;  %894 = vmatpush3.bf16.msra.mxu1 %v956_v62 }
  0x2e   :  { %895 = vmatprep.subr.bf16.mxu1 %v958_v63 }
  0x30   :  { %874 = vmatpush3.bf16.msra.mxu0 %v959_v0 }
  0x31   :  { %875 = vmatprep.subr.bf16.mxu0 %v961_v1  ;;  %896 = vmatpush3.bf16.msra.mxu1 %v960_v2 }
  0x32   :  { %897 = vmatprep.subr.bf16.mxu1 %v962_v3 }
  0x34   :  { %876 = vmatpush3.bf16.msra.mxu0 %v963_v4 }
  0x35   :  { %877 = vmatprep.subr.bf16.mxu0 %v965_v5  ;;  %898 = vmatpush3.bf16.msra.mxu1 %v964_v6 }
  0x36   :  { %899 = vmatprep.subr.bf16.mxu1 %v966_v7 }
  0x38   :  { %878 = vmatpush3.bf16.msra.mxu0 %v967_v8 }
  0x39   :  { %879 = vmatprep.subr.bf16.mxu0 %v969_v9  ;;  %900 = vmatpush3.bf16.msra.mxu1 %v968_v10 }
  0x3a   :  { %901 = vmatprep.subr.bf16.mxu1 %v970_v11 }
  0x3c   :  { %880 = vmatpush3.bf16.msra.mxu0 %v971_v12 }
  0x3d   :  { %881 = vmatprep.subr.bf16.mxu0 %v973_v13  ;;  %902 = vmatpush3.bf16.msra.mxu1 %v972_v14 }
  0x3e   :  { %903 = vmatprep.subr.bf16.mxu1 %v974_v15 }
  0x40   :  { %882 = vmatpush3.bf16.msra.mxu0 %v975_v16 }
  0x41   :  { %904 = vmatpush3.bf16.msra.mxu1 %v976_v18 }
  0x43   :  { %706 = vmatmul.mubr.bf16.vlgmr.msra.gmra.mrb[4].mxu0 %v182_v17 }
  0x44   :  { %746 = vmatmul.mubr.bf16.vlgmr.msra.gmra.mrb[4].mxu1 %v198_v19 }
  0xf6   :  { %v839_v20 = vpop.f32.mrb[0].mxu0 }
  0xf7   :  { %v840_v22 = vpop.f32.mrb[1].mxu0  ;;  %v861_v23 = vpop.f32.mrb[0].mxu1 }
  0xf8   :  { %v841_v24 = vadd.f32 %v840_v22, %v839_v20  ;;  %v842_v25 = vpop.f32.mrb[2].mxu0  ;;  %v862_v26 = vpop.f32.mrb[1].mxu1 }
  0xf9   :  { %v843_v27 = vpop.f32.mrb[3].mxu0  ;;  %v863_v29 = vadd.f32 %v862_v26, %v861_v23  ;;  %v864_v30 = vpop.f32.mrb[2].mxu1 }
  0xfa   :  { %v628_v28 = vadd.f32 %v841_v24, %v758_v21  ;;  %v865_v31 = vpop.f32.mrb[3].mxu1 }
  0xfc   :  { %v668_v32 = vadd.f32 %v863_v29, %v628_v28 }
 0x116   :  { %v883_v33 = vpop.f32.mrb[4].mxu0 }
 0x117   :  { %v884_v34 = vpop.f32.mrb[5].mxu0  ;;  %v905_v35 = vpop.f32.mrb[4].mxu1 }
 0x118   :  { %v885_v36 = vadd.f32 %v884_v34, %v883_v33  ;;  %v886_v37 = vpop.f32.mrb[6].mxu0  ;;  %v906_v38 = vpop.f32.mrb[5].mxu1 }
 0x119   :  { %v887_v39 = vpop.f32.mrb[7].mxu0  ;;  %v907_v41 = vadd.f32 %v906_v38, %v905_v35  ;;  %v908_v42 = vpop.f32.mrb[6].mxu1 }
 0x11a   :  { %v708_v40 = vadd.f32 %v885_v36, %v668_v32  ;;  %v909_v43 = vpop.f32.mrb[7].mxu1 }
 0x11c   :  { %v748_v44 = vadd.f32 %v907_v41, %v708_v40 }
 0x11e   :  { %753 = vst [vmem:[%s1215_s3] sm:$0x3] %v748_v44 }

// kernel: encoder_forward.6
= control target key start
LH: loop header
LB: loop body
LE: loop exit
PB: predicated region body
PF: predicated region fallthrough
CT: control target
= control target key end

     0   :  { %9 = vsyncpa [#allocation3], 0  ;;  %s14452_s0 = inlined_call_operand.vmem [shape: bf16[2,3136], index: 0, kind: input, shape index: {}]   ;;  %s14453_s1 = inlined_call_operand.hbm [shape: bf16[3136,1024], index: 1, kind: input, shape index: {}]   ;;  %s14454_s2 = inlined_call_operand.hbm [shape: f32[1,1024], index: 2, kind: input, shape index: {}]   ;;  %s14455_s3 = inlined_call_operand.hbm [shape: f32[1,1024], index: 3, kind: input, shape index: {}]   ;;  %s14456_s4 = inlined_call_operand.vmem [shape: bf16[2,1024], index: 4, kind: output, shape index: {}]  }
   0x1   :  { %10 = vsyncpa [#allocation5], 0  ;;  %s14026_s15 = smov [#allocation4]   ;;  %s14027_s17 = smov [#allocation2]  }
   0x2   :  { %s31_s16 = sshll.u32 %s14026_s15, 4  ;;  %s18_s18 = sshll.u32 %s14027_s17, 4  ;;  %s32_s16 = int_to_ptr.vmem [resolvable:$true] %s31_s16  ;;  %s14058_s18 = int_to_ptr.vmem [resolvable:$true] %s18_s18 }
   0x3   :  { %s13956_s21 = scalar_lea.hbm %s14454_s2, 128 }
   0x4   :  { %p13957_p0 = scmp.ne.s32.totalorder %s14454_s2, %s13956_s21  ;;  %p13960_p1 = scmp.lt.u32.totalorder %s13956_s21, %s14454_s2 }
   0x6   :  { %p13962_p2 = pnand %p13960_p1, %p13957_p0 }
   0x8   :  { %13965 = shalt.err (!%p13962_p2)
}
   0x9   :  { %s13966_s26 = scalar_lea.vmem %s32_s16, 128  ;;  %p13971_p4 = scmp.lt.s32.totalorder %s32_s16, %s32_s16 }
   0xa   :  { %p13967_p3 = scmp.ne.s32.totalorder %s32_s16, %s13966_s26  ;;  %p13972_p5 = scmp.lt.s32.totalorder %s13966_s26, %s13966_s26 }
   0xc   :  { %p13973_p6 = por %p13972_p5, %p13971_p4 }
   0xe   :  { %p13974_p7 = pnand %p13973_p6, %p13967_p3 }
  0x10   :  { %13977 = shalt.err (!%p13974_p7)
}
  0x11   :  { %34 = dma.hbm_to_vmem [thread:$0]  %s14454_s2, 128, %s32_s16, [#allocation5]  }
  0x12   :  { %s13978_s5 = scalar_lea.hbm %s14453_s1, 200704 }
  0x13   :  { %p13979_p8 = scmp.ne.s32.totalorder %s14453_s1, %s13978_s5  ;;  %p13982_p9 = scmp.lt.u32.totalorder %s13978_s5, %s14453_s1 }
  0x15   :  { %p13984_p10 = pnand %p13982_p9, %p13979_p8 }
  0x17   :  { %13987 = shalt.err (!%p13984_p10)
}
  0x18   :  { %s13988_s10 = scalar_lea.vmem %s14058_s18, 200704  ;;  %p13993_p12 = scmp.lt.s32.totalorder %s14058_s18, %s14058_s18 }
  0x19   :  { %p13989_p11 = scmp.ne.s32.totalorder %s14058_s18, %s13988_s10  ;;  %p13994_p13 = scmp.lt.s32.totalorder %s13988_s10, %s13988_s10 }
  0x1b   :  { %p13995_p0 = por %p13994_p13, %p13993_p12 }
  0x1d   :  { %p13996_p1 = pnand %p13995_p0, %p13989_p11 }
  0x1f   :  { %13999 = shalt.err (!%p13996_p1)
}
  0x20   :  { %s14028_s2 = smov 512   ;;  %s14029_s11 = smov 32  }
  0x21   :  { %24 = dma.hbm_to_vmem [thread:$0]  %s14453_s1, 200704, %s14058_s18, [#allocation3], %s14028_s2, %s14028_s2, %s14029_s11  }
  0x22   :  { %s14030_s14 = smov [#allocation6]   ;;  %s14000_s19 = scalar_lea.hbm %s14455_s3, 128 }
  0x23   :  { %s41_s15 = sshll.u32 %s14030_s14, 4  ;;  %p14001_p2 = scmp.ne.s32.totalorder %s14455_s3, %s14000_s19  ;;  %s42_s15 = int_to_ptr.vmem [resolvable:$true] %s41_s15 }
  0x24   :  { %p14004_p3 = scmp.lt.u32.totalorder %s14000_s19, %s14455_s3 }
  0x26   :  { %p14006_p4 = pnand %p14004_p3, %p14001_p2 }
  0x28   :  { %14009 = shalt.err (!%p14006_p4)
}
  0x29   :  { %s14010_s24 = scalar_lea.vmem %s42_s15, 128  ;;  %p14015_p6 = scmp.lt.s32.totalorder %s42_s15, %s42_s15 }
  0x2a   :  { %p14011_p5 = scmp.ne.s32.totalorder %s42_s15, %s14010_s24  ;;  %p14016_p7 = scmp.lt.s32.totalorder %s14010_s24, %s14010_s24 }
  0x2c   :  { %p14017_p8 = por %p14016_p7, %p14015_p6 }
  0x2e   :  { %p14018_p9 = pnand %p14017_p8, %p14011_p5 }
  0x30   :  { %14021 = shalt.err (!%p14018_p9)
}
  0x31   :  { %44 = dma.hbm_to_vmem [thread:$0]  %s14455_s3, 128, %s42_s15, [#allocation5]  }
  0x32   :  { %14022 = dma.done.wait [#allocation3], 200704  }
  0x33   :  { %14023 = vsyncadd [#allocation3], 4294766592 }
  0x34   :  { %14024 = dma.done.wait [#allocation5], 256  }
  0x35   :  { %14025 = vsyncadd [#allocation5], 4294967040  ;;  %v59_v0 = vld [vmem:[#allocation2] sm:$0xff]  ;;  %v60_v2 = vld [vmem:[#allocation2 + $0x8] sm:$0xff]  ;;  %v14031_v32 = vmov 1966171168   ;;  %v1635_v34 = vlaneseq }
  0x36   :  { %v63_v1 = vld [vmem:[#allocation2 + $0x20] sm:$0xff]  ;;  %v64_v4 = vld [vmem:[#allocation2 + $0x28] sm:$0xff]  ;;  %v1633_v33 = vunpack.c.l.s4 %v14031_v32  ;;  %vm9656_vm0 = vcmask 523264   ;;  %vm11792_vm1 = vcmask 1041408  }
  0x37   :  { %v12161_v3 = vcombine.high %v59_v0, %v63_v1  ;;  %v12160_v5 = vcombine.low %v59_v0, %v63_v1  ;;  %v67_v6 = vld [vmem:[#allocation2 + $0x40] sm:$0xff]  ;;  %v12163_v8 = vcombine.high %v60_v2, %v64_v4  ;;  %v12162_v9 = vcombine.low %v60_v2, %v64_v4  ;;  %v68_v11 = vld [vmem:[#allocation2 + $0x48] sm:$0xff] }
  0x38   :  { %v71_v7 = vld [vmem:[#allocation2 + $0x60] sm:$0xff]  ;;  %v72_v12 = vld [vmem:[#allocation2 + $0x68] sm:$0xff]  ;;  %v1634_v43 = vunpack.c.0.s8 %v1633_v33  ;;  %v14101_v44 = vshrl.u32 %v1635_v34, 7 }
  0x39   :  { %v12169_v10 = vcombine.high %v67_v6, %v71_v7  ;;  %v75_v13 = vld [vmem:[#allocation2 + $0x80] sm:$0xff]  ;;  %9660 = vmatprep.subr.bf16.mxu0 %v12161_v3  ;;  %v12171_v14 = vcombine.high %v68_v11, %v72_v12  ;;  %v76_v16 = vld [vmem:[#allocation2 + $0x88] sm:$0xff]  ;;  %10193 = vmatprep.subr.bf16.mxu1 %v12163_v8  ;;  %v12168_v18 = vcombine.low %v67_v6, %v71_v7 }
  0x3a   :  { %v79_v15 = vld [vmem:[#allocation2 + $0xa0] sm:$0xff]  ;;  %v80_v17 = vld [vmem:[#allocation2 + $0xa8] sm:$0xff]  ;;  %9661 = vmatpush1.bf16.msra.mxu0 %v12160_v5  ;;  %10194 = vmatpush1.bf16.msra.mxu1 %v12162_v9  ;;  %v12170_v19 = vcombine.low %v68_v11, %v72_v12  ;;  %v14104_v53 = vsub.s32 %v1634_v43, %v14101_v44 }
  0x3b   :  { %9662 = vmatprep.subr.bf16.mxu0 %v12169_v10  ;;  %v12177_v20 = vcombine.high %v75_v13, %v79_v15  ;;  %10195 = vmatprep.subr.bf16.mxu1 %v12171_v14  ;;  %v12179_v21 = vcombine.high %v76_v16, %v80_v17  ;;  %v83_v22 = vld [vmem:[#allocation2 + $0xc0] sm:$0xff]  ;;  %v84_v24 = vld [vmem:[#allocation2 + $0xc8] sm:$0xff]  ;;  %v12176_v26 = vcombine.low %v75_v13, %v79_v15 }
  0x3c   :  { %v87_v23 = vld [vmem:[#allocation2 + $0xe0] sm:$0xff]  ;;  %v88_v25 = vld [vmem:[#allocation2 + $0xe8] sm:$0xff]  ;;  %v12178_v27 = vcombine.low %v76_v16, %v80_v17 }
  0x3d   :  { %v12185_v28 = vcombine.high %v83_v22, %v87_v23  ;;  %v12187_v29 = vcombine.high %v84_v24, %v88_v25  ;;  %v91_v30 = vld [vmem:[#allocation2 + $0x100] sm:$0xff]  ;;  %v92_v35 = vld [vmem:[#allocation2 + $0x108] sm:$0xff]  ;;  %v12184_v37 = vcombine.low %v83_v22, %v87_v23  ;;  %v12186_v38 = vcombine.low %v84_v24, %v88_v25 }
  0x3e   :  { %9663 = vmatpush1.bf16.msra.mxu0 %v12168_v18  ;;  %10196 = vmatpush1.bf16.msra.mxu1 %v12170_v19  ;;  %v95_v31 = vld [vmem:[#allocation2 + $0x120] sm:$0xff]  ;;  %v96_v36 = vld [vmem:[#allocation2 + $0x128] sm:$0xff] }
  0x3f   :  { %9664 = vmatprep.subr.bf16.mxu0 %v12177_v20  ;;  %10197 = vmatprep.subr.bf16.mxu1 %v12179_v21  ;;  %v12193_v39 = vcombine.high %v91_v30, %v95_v31  ;;  %v12195_v40 = vcombine.high %v92_v35, %v96_v36  ;;  %v99_v41 = vld [vmem:[#allocation2 + $0x140] sm:$0xff]  ;;  %v100_v45 = vld [vmem:[#allocation2 + $0x148] sm:$0xff]  ;;  %v12192_v47 = vcombine.low %v91_v30, %v95_v31 }
  0x40   :  { %v103_v42 = vld [vmem:[#allocation2 + $0x160] sm:$0xff]  ;;  %v104_v46 = vld [vmem:[#allocation2 + $0x168] sm:$0xff]  ;;  %v12194_v48 = vcombine.low %v92_v35, %v96_v36 }
  0x41   :  { %v12201_v49 = vcombine.high %v99_v41, %v103_v42  ;;  %v12203_v50 = vcombine.high %v100_v45, %v104_v46  ;;  %v107_v51 = vld [vmem:[#allocation2 + $0x180] sm:$0xff]  ;;  %v108_v54 = vld [vmem:[#allocation2 + $0x188] sm:$0xff]  ;;  %v12200_v56 = vcombine.low %v99_v41, %v103_v42  ;;  %v12202_v57 = vcombine.low %v100_v45, %v104_v46 }
  0x42   :  { %9665 = vmatpush1.bf16.msra.mxu0 %v12176_v26  ;;  %10198 = vmatpush1.bf16.msra.mxu1 %v12178_v27  ;;  %v111_v52 = vld [vmem:[#allocation2 + $0x1a0] sm:$0xff]  ;;  %v112_v55 = vld [vmem:[#allocation2 + $0x1a8] sm:$0xff] }
  0x43   :  { %9666 = vmatprep.subr.bf16.mxu0 %v12185_v28  ;;  %10199 = vmatprep.subr.bf16.mxu1 %v12187_v29  ;;  %v12209_v58 = vcombine.high %v107_v51, %v111_v52  ;;  %v14109_v59 = vld [vmem:[%s14452_s0] sm:$0xff]  ;;  %v12211_v60 = vcombine.high %v108_v54, %v112_v55  ;;  %v116_v0 = vld [vmem:[#allocation2 + $0x1c8] sm:$0xff]  ;;  %v12208_v2 = vcombine.low %v107_v51, %v111_v52 }
  0x44   :  { %v115_v61 = vld [vmem:[#allocation2 + $0x1c0] sm:$0xff]  ;;  %v14113_v63 = vrot.slane %v14109_v59, %v14104_v53  ;;  %v120_v1 = vld [vmem:[#allocation2 + $0x1e8] sm:$0xff]  ;;  %v12210_v4 = vcombine.low %v108_v54, %v112_v55 }
  0x45   :  { %v119_v62 = vld [vmem:[#allocation2 + $0x1e0] sm:$0xff]  ;;  %v12219_v6 = vcombine.high %v116_v0, %v120_v1  ;;  %v124_v10 = vld [vmem:[#allocation2 + $0x208] sm:$0xff]  ;;  %v12218_v13 = vcombine.low %v116_v0, %v120_v1 }
  0x46   :  { %9667 = vmatpush1.bf16.msra.mxu0 %v12184_v37  ;;  %10200 = vmatpush1.bf16.msra.mxu1 %v12186_v38  ;;  %v1646_v3 = vcombine.high %v14113_v63, %v14113_v63  ;;  %v12217_v5 = vcombine.high %v115_v61, %v119_v62  ;;  %v123_v7 = vld [vmem:[#allocation2 + $0x200] sm:$0xff]  ;;  %v128_v11 = vld [vmem:[#allocation2 + $0x228] sm:$0xff]  ;;  %v12216_v12 = vcombine.low %v115_v61, %v119_v62 }
  0x47   :  { %9668 = vmatprep.subr.bf16.mxu0 %v12193_v39  ;;  %10201 = vmatprep.subr.bf16.mxu1 %v12195_v40  ;;  %v127_v8 = vld [vmem:[#allocation2 + $0x220] sm:$0xff]  ;;  %v12227_v15 = vcombine.high %v124_v10, %v128_v11  ;;  %v132_v18 = vld [vmem:[#allocation2 + $0x248] sm:$0xff]  ;;  %v12226_v21 = vcombine.low %v124_v10, %v128_v11 }
  0x48   :  { %v14118_v9 = vrot.slane %v1646_v3, %v14104_v53  ;;  %v12225_v14 = vcombine.high %v123_v7, %v127_v8  ;;  %v131_v16 = vld [vmem:[#allocation2 + $0x240] sm:$0xff]  ;;  %v136_v19 = vld [vmem:[#allocation2 + $0x268] sm:$0xff]  ;;  %v12224_v20 = vcombine.low %v123_v7, %v127_v8 }
  0x49   :  { %v135_v17 = vld [vmem:[#allocation2 + $0x260] sm:$0xff]  ;;  %v12235_v23 = vcombine.high %v132_v18, %v136_v19  ;;  %v140_v26 = vld [vmem:[#allocation2 + $0x288] sm:$0xff]  ;;  %v12234_v29 = vcombine.low %v132_v18, %v136_v19 }
  0x4a   :  { %9669 = vmatpush1.bf16.msra.mxu0 %v12192_v47  ;;  %10202 = vmatpush1.bf16.msra.mxu1 %v12194_v48  ;;  %v12233_v22 = vcombine.high %v131_v16, %v135_v17  ;;  %v139_v24 = vld [vmem:[#allocation2 + $0x280] sm:$0xff]  ;;  %v144_v27 = vld [vmem:[#allocation2 + $0x2a8] sm:$0xff]  ;;  %v12232_v28 = vcombine.low %v131_v16, %v135_v17 }
  0x4b   :  { %9670 = vmatprep.subr.bf16.mxu0 %v12201_v49  ;;  %10203 = vmatprep.subr.bf16.mxu1 %v12203_v50  ;;  %v143_v25 = vld [vmem:[#allocation2 + $0x2a0] sm:$0xff]  ;;  %v12243_v31 = vcombine.high %v140_v26, %v144_v27  ;;  %v148_v34 = vld [vmem:[#allocation2 + $0x2c8] sm:$0xff]  ;;  %v12242_v37 = vcombine.low %v140_v26, %v144_v27 }
  0x4c   :  { %9692 = vmatprep.mubr.bf16.mxu0 %v14118_v9  ;;  %10225 = vmatprep.mubr.bf16.mxu1 %v14118_v9  ;;  %v12241_v30 = vcombine.high %v139_v24, %v143_v25  ;;  %v147_v32 = vld [vmem:[#allocation2 + $0x2c0] sm:$0xff]  ;;  %v152_v35 = vld [vmem:[#allocation2 + $0x2e8] sm:$0xff]  ;;  %v12240_v36 = vcombine.low %v139_v24, %v143_v25 }
  0x4d   :  { %v151_v33 = vld [vmem:[#allocation2 + $0x2e0] sm:$0xff]  ;;  %v12251_v39 = vcombine.high %v148_v34, %v152_v35  ;;  %v156_v42 = vld [vmem:[#allocation2 + $0x308] sm:$0xff]  ;;  %v12250_v46 = vcombine.low %v148_v34, %v152_v35 }
  0x4e   :  { %9671 = vmatpush1.bf16.msra.mxu0 %v12200_v56  ;;  %10204 = vmatpush1.bf16.msra.mxu1 %v12202_v57  ;;  %v12249_v38 = vcombine.high %v147_v32, %v151_v33  ;;  %v155_v40 = vld [vmem:[#allocation2 + $0x300] sm:$0xff]  ;;  %v160_v43 = vld [vmem:[#allocation2 + $0x328] sm:$0xff]  ;;  %v12248_v45 = vcombine.low %v147_v32, %v151_v33  ;;  %v14128_v32 = vcombine.high %v14118_v9, %v14118_v9 }
  0x4f   :  { %9672 = vmatprep.subr.bf16.mxu0 %v12209_v58  ;;  %10205 = vmatprep.subr.bf16.mxu1 %v12211_v60  ;;  %v159_v41 = vld [vmem:[#allocation2 + $0x320] sm:$0xff]  ;;  %v12259_v48 = vcombine.high %v156_v42, %v160_v43  ;;  %v164_v51 = vld [vmem:[#allocation2 + $0x348] sm:$0xff]  ;;  %v12258_v55 = vcombine.low %v156_v42, %v160_v43 }
  0x50   :  { %v12257_v47 = vcombine.high %v155_v40, %v159_v41  ;;  %v163_v49 = vld [vmem:[#allocation2 + $0x340] sm:$0xff]  ;;  %v168_v52 = vld [vmem:[#allocation2 + $0x368] sm:$0xff]  ;;  %v12256_v54 = vcombine.low %v155_v40, %v159_v41 }
  0x51   :  { %v167_v50 = vld [vmem:[#allocation2 + $0x360] sm:$0xff]  ;;  %v12267_v57 = vcombine.high %v164_v51, %v168_v52  ;;  %v172_v61 = vld [vmem:[#allocation2 + $0x388] sm:$0xff]  ;;  %v12266_v1 = vcombine.low %v164_v51, %v168_v52 }
  0x52   :  { %9673 = vmatpush1.bf16.msra.mxu0 %v12208_v2  ;;  %10206 = vmatpush1.bf16.msra.mxu1 %v12210_v4  ;;  %v12265_v56 = vcombine.high %v163_v49, %v167_v50  ;;  %v171_v58 = vld [vmem:[#allocation2 + $0x380] sm:$0xff]  ;;  %v176_v62 = vld [vmem:[#allocation2 + $0x3a8] sm:$0xff]  ;;  %v12264_v0 = vcombine.low %v163_v49, %v167_v50 }
  0x53   :  { %9674 = vmatprep.subr.bf16.mxu0 %v12217_v5  ;;  %10207 = vmatprep.subr.bf16.mxu1 %v12219_v6  ;;  %v175_v60 = vld [vmem:[#allocation2 + $0x3a0] sm:$0xff]  ;;  %v12275_v3 = vcombine.high %v172_v61, %v176_v62  ;;  %v180_v6 = vld [vmem:[#allocation2 + $0x3c8] sm:$0xff]  ;;  %v12274_v10 = vcombine.low %v172_v61, %v176_v62 }
  0x54   :  { %v12273_v2 = vcombine.high %v171_v58, %v175_v60  ;;  %v179_v4 = vld [vmem:[#allocation2 + $0x3c0] sm:$0xff]  ;;  %v184_v7 = vld [vmem:[#allocation2 + $0x3e8] sm:$0xff]  ;;  %v12272_v8 = vcombine.low %v171_v58, %v175_v60 }
  0x55   :  { %v183_v5 = vld [vmem:[#allocation2 + $0x3e0] sm:$0xff]  ;;  %v192_v16 = vld [vmem:[#allocation2 + $0x428] sm:$0xff]  ;;  %v12282_v18 = vcombine.low %v180_v6, %v184_v7 }
  0x56   :  { %9675 = vmatpush1.bf16.msra.mxu0 %v12216_v12  ;;  %10208 = vmatpush1.bf16.msra.mxu1 %v12218_v13  ;;  %v12281_v11 = vcombine.high %v179_v4, %v183_v5  ;;  %v12283_v12 = vcombine.high %v180_v6, %v184_v7  ;;  %v187_v13 = vld [vmem:[#allocation2 + $0x400] sm:$0xff]  ;;  %v12280_v17 = vcombine.low %v179_v4, %v183_v5  ;;  %v196_v24 = vld [vmem:[#allocation2 + $0x448] sm:$0xff] }
  0x57   :  { %9676 = vmatprep.subr.bf16.mxu0 %v12225_v14  ;;  %10209 = vmatprep.subr.bf16.mxu1 %v12227_v15  ;;  %v191_v14 = vld [vmem:[#allocation2 + $0x420] sm:$0xff]  ;;  %v188_v15 = vld [vmem:[#allocation2 + $0x408] sm:$0xff] }
  0x58   :  { %v12289_v19 = vcombine.high %v187_v13, %v191_v14  ;;  %v200_v25 = vld [vmem:[#allocation2 + $0x468] sm:$0xff]  ;;  %v12288_v26 = vcombine.low %v187_v13, %v191_v14  ;;  %v12290_v27 = vcombine.low %v188_v15, %v192_v16 }
  0x59   :  { %v208_v33 = vld [vmem:[#allocation2 + $0x4a8] sm:$0xff]  ;;  %v12298_v35 = vcombine.low %v196_v24, %v200_v25 }
  0x5a   :  { %9677 = vmatpush1.bf16.msra.mxu0 %v12224_v20  ;;  %10210 = vmatpush1.bf16.msra.mxu1 %v12226_v21  ;;  %v12291_v20 = vcombine.high %v188_v15, %v192_v16  ;;  %v195_v21 = vld [vmem:[#allocation2 + $0x440] sm:$0xff]  ;;  %v212_v40 = vld [vmem:[#allocation2 + $0x4c8] sm:$0xff] }
  0x5b   :  { %9678 = vmatprep.subr.bf16.mxu0 %v12233_v22  ;;  %10211 = vmatprep.subr.bf16.mxu1 %v12235_v23  ;;  %v199_v22 = vld [vmem:[#allocation2 + $0x460] sm:$0xff]  ;;  %v14124_v23 = vrot.slane %v14113_v63, %v14104_v53  ;;  %v204_v63 = vld [vmem:[#allocation2 + $0x488] sm:$0xff] }
  0x5c   :  { %v12296_v34 = vcombine.low %v195_v21, %v199_v22  ;;  %v216_v41 = vld [vmem:[#allocation2 + $0x4e8] sm:$0xff]  ;;  %v12306_v43 = vcombine.low %v204_v63, %v208_v33 }
  0x5d   :  { %v220_v49 = vld [vmem:[#allocation2 + $0x508] sm:$0xff]  ;;  %v12314_v52 = vcombine.low %v212_v40, %v216_v41 }
  0x5e   :  { %9679 = vmatpush1.bf16.msra.mxu0 %v12232_v28  ;;  %10212 = vmatpush1.bf16.msra.mxu1 %v12234_v29  ;;  %v12297_v28 = vcombine.high %v195_v21, %v199_v22  ;;  %v12299_v29 = vcombine.high %v196_v24, %v200_v25  ;;  %v224_v50 = vld [vmem:[#allocation2 + $0x528] sm:$0xff] }
  0x5f   :  { %9680 = vmatprep.subr.bf16.mxu0 %v12241_v30  ;;  %10213 = vmatprep.subr.bf16.mxu1 %v12243_v31  ;;  %v203_v30 = vld [vmem:[#allocation2 + $0x480] sm:$0xff]  ;;  %v228_v58 = vld [vmem:[#allocation2 + $0x548] sm:$0xff]  ;;  %v12322_v62 = vcombine.low %v220_v49, %v224_v50 }
  0x60   :  { %v207_v31 = vld [vmem:[#allocation2 + $0x4a0] sm:$0xff]  ;;  %v232_v60 = vld [vmem:[#allocation2 + $0x568] sm:$0xff] }
  0x61   :  { %v12304_v42 = vcombine.low %v203_v30, %v207_v31  ;;  %v236_v4 = vld [vmem:[#allocation2 + $0x588] sm:$0xff]  ;;  %v12330_v7 = vcombine.low %v228_v58, %v232_v60 }
  0x62   :  { %9681 = vmatpush1.bf16.msra.mxu0 %v12240_v36  ;;  %10214 = vmatpush1.bf16.msra.mxu1 %v12242_v37  ;;  %v12305_v36 = vcombine.high %v203_v30, %v207_v31  ;;  %v12307_v37 = vcombine.high %v204_v63, %v208_v33  ;;  %v240_v5 = vld [vmem:[#allocation2 + $0x5a8] sm:$0xff] }
  0x63   :  { %9682 = vmatprep.subr.bf16.mxu0 %v12249_v38  ;;  %10215 = vmatprep.subr.bf16.mxu1 %v12251_v39  ;;  %v211_v38 = vld [vmem:[#allocation2 + $0x4c0] sm:$0xff]  ;;  %v244_v13 = vld [vmem:[#allocation2 + $0x5c8] sm:$0xff]  ;;  %v12338_v16 = vcombine.low %v236_v4, %v240_v5 }
  0x64   :  { %v215_v39 = vld [vmem:[#allocation2 + $0x4e0] sm:$0xff]  ;;  %v248_v14 = vld [vmem:[#allocation2 + $0x5e8] sm:$0xff] }
  0x65   :  { %v12312_v51 = vcombine.low %v211_v38, %v215_v39  ;;  %v252_v21 = vld [vmem:[#allocation2 + $0x608] sm:$0xff]  ;;  %v12346_v25 = vcombine.low %v244_v13, %v248_v14 }
  0x66   :  { %9683 = vmatpush1.bf16.msra.mxu0 %v12248_v45  ;;  %10216 = vmatpush1.bf16.msra.mxu1 %v12250_v46  ;;  %v12313_v45 = vcombine.high %v211_v38, %v215_v39  ;;  %v12315_v46 = vcombine.high %v212_v40, %v216_v41  ;;  %v256_v22 = vld [vmem:[#allocation2 + $0x628] sm:$0xff] }
  0x67   :  { %9684 = vmatprep.subr.bf16.mxu0 %v12257_v47  ;;  %10217 = vmatprep.subr.bf16.mxu1 %v12259_v48  ;;  %v219_v47 = vld [vmem:[#allocation2 + $0x500] sm:$0xff]  ;;  %v260_v30 = vld [vmem:[#allocation2 + $0x648] sm:$0xff]  ;;  %v12354_v33 = vcombine.low %v252_v21, %v256_v22 }
  0x68   :  { %v223_v48 = vld [vmem:[#allocation2 + $0x520] sm:$0xff]  ;;  %v264_v31 = vld [vmem:[#allocation2 + $0x668] sm:$0xff] }
  0x69   :  { %v12320_v61 = vcombine.low %v219_v47, %v223_v48  ;;  %v268_v38 = vld [vmem:[#allocation2 + $0x688] sm:$0xff]  ;;  %v12362_v41 = vcombine.low %v260_v30, %v264_v31 }
  0x6a   :  { %9685 = vmatpush1.bf16.msra.mxu0 %v12256_v54  ;;  %10218 = vmatpush1.bf16.msra.mxu1 %v12258_v55  ;;  %v12321_v54 = vcombine.high %v219_v47, %v223_v48  ;;  %v12323_v55 = vcombine.high %v220_v49, %v224_v50  ;;  %v272_v39 = vld [vmem:[#allocation2 + $0x6a8] sm:$0xff] }
  0x6b   :  { %9686 = vmatprep.subr.bf16.mxu0 %v12265_v56  ;;  %10219 = vmatprep.subr.bf16.mxu1 %v12267_v57  ;;  %v227_v56 = vld [vmem:[#allocation2 + $0x540] sm:$0xff]  ;;  %v276_v47 = vld [vmem:[#allocation2 + $0x6c8] sm:$0xff]  ;;  %v12370_v50 = vcombine.low %v268_v38, %v272_v39 }
  0x6c   :  { %v231_v57 = vld [vmem:[#allocation2 + $0x560] sm:$0xff]  ;;  %v280_v48 = vld [vmem:[#allocation2 + $0x6e8] sm:$0xff] }
  0x6d   :  { %v12328_v6 = vcombine.low %v227_v56, %v231_v57 }
  0x6e   :  { %9687 = vmatpush1.bf16.msra.mxu0 %v12264_v0  ;;  %10220 = vmatpush1.bf16.msra.mxu1 %v12266_v1  ;;  %v12329_v0 = vcombine.high %v227_v56, %v231_v57  ;;  %v12331_v1 = vcombine.high %v228_v58, %v232_v60  ;;  %v284_v56 = vld [vmem:[#allocation2 + $0x708] sm:$0xff]  ;;  %v12378_v60 = vcombine.low %v276_v47, %v280_v48 }
  0x6f   :  { %9688 = vmatprep.subr.bf16.mxu0 %v12273_v2  ;;  %10221 = vmatprep.subr.bf16.mxu1 %v12275_v3  ;;  %v235_v2 = vld [vmem:[#allocation2 + $0x580] sm:$0xff]  ;;  %v288_v57 = vld [vmem:[#allocation2 + $0x728] sm:$0xff] }
  0x70   :  { %v239_v3 = vld [vmem:[#allocation2 + $0x5a0] sm:$0xff] }
  0x71   :  { %v12336_v15 = vcombine.low %v235_v2, %v239_v3 }
  0x72   :  { %9689 = vmatpush1.bf16.msra.mxu0 %v12272_v8  ;;  %10222 = vmatpush1.bf16.msra.mxu1 %v12274_v10  ;;  %v12337_v8 = vcombine.high %v235_v2, %v239_v3  ;;  %v12339_v10 = vcombine.high %v236_v4, %v240_v5  ;;  %v292_v2 = vld [vmem:[#allocation2 + $0x748] sm:$0xff]  ;;  %v12386_v5 = vcombine.low %v284_v56, %v288_v57 }
  0x73   :  { %9690 = vmatprep.subr.bf16.mxu0 %v12281_v11  ;;  %10223 = vmatprep.subr.bf16.mxu1 %v12283_v12  ;;  %v243_v11 = vld [vmem:[#allocation2 + $0x5c0] sm:$0xff]  ;;  %v296_v3 = vld [vmem:[#allocation2 + $0x768] sm:$0xff] }
  0x74   :  { %v247_v12 = vld [vmem:[#allocation2 + $0x5e0] sm:$0xff] }
  0x75   :  { %v12344_v24 = vcombine.low %v243_v11, %v247_v12 }
  0x76   :  { %9691 = vmatpush1.bf16.msra.mxu0 %v12280_v17  ;;  %10224 = vmatpush1.bf16.msra.mxu1 %v12282_v18  ;;  %v12345_v17 = vcombine.high %v243_v11, %v247_v12  ;;  %v12347_v18 = vcombine.high %v244_v13, %v248_v14  ;;  %v300_v11 = vld [vmem:[#allocation2 + $0x788] sm:$0xff]  ;;  %v12394_v14 = vcombine.low %v292_v2, %v296_v3 }
  0x77   :  { %9701 = vmatprep.subr.bf16.mxu0 %v12289_v19  ;;  %10234 = vmatprep.subr.bf16.mxu1 %v12291_v20  ;;  %v251_v19 = vld [vmem:[#allocation2 + $0x600] sm:$0xff]  ;;  %v304_v12 = vld [vmem:[#allocation2 + $0x7a8] sm:$0xff] }
  0x78   :  { %v255_v20 = vld [vmem:[#allocation2 + $0x620] sm:$0xff] }
  0x79   :  { %9693 = vmatmul.mubr.bf16.vlgmr.msra.gmra.mrb[0].mxu0 %v14124_v23  ;;  %10226 = vmatmul.mubr.bf16.vlgmr.msra.gmra.mrb[0].mxu1 %v14124_v23  ;;  %v12352_v63 = vcombine.low %v251_v19, %v255_v20 }
  0x7a   :  { %9702 = vmatpush1.bf16.msra.mxu0 %v12288_v26  ;;  %10235 = vmatpush1.bf16.msra.mxu1 %v12290_v27  ;;  %v12353_v26 = vcombine.high %v251_v19, %v255_v20  ;;  %v12355_v27 = vcombine.high %v252_v21, %v256_v22  ;;  %v1631_v19 = vcombine.high %v14109_v59, %v14109_v59  ;;  %v308_v20 = vld [vmem:[#allocation2 + $0x7c8] sm:$0xff] }
  0x7b   :  { %9703 = vmatprep.subr.bf16.mxu0 %v12297_v28  ;;  %10236 = vmatprep.subr.bf16.mxu1 %v12299_v29  ;;  %v259_v28 = vld [vmem:[#allocation2 + $0x640] sm:$0xff]  ;;  %v312_v21 = vld [vmem:[#allocation2 + $0x7e8] sm:$0xff] }
  0x7c   :  { %9733 = vmatprep.mubr.bf16.mxu0 %v14128_v32  ;;  %10266 = vmatprep.mubr.bf16.mxu1 %v14128_v32  ;;  %v263_v29 = vld [vmem:[#allocation2 + $0x660] sm:$0xff]  ;;  %v12410_v59 = vcombine.low %v308_v20, %v312_v21 }
  0x7d   :  { %v12360_v40 = vcombine.low %v259_v28, %v263_v29 }
  0x7e   :  { %9704 = vmatpush1.bf16.msra.mxu0 %v12296_v34  ;;  %10237 = vmatpush1.bf16.msra.mxu1 %v12298_v35  ;;  %v12361_v34 = vcombine.high %v259_v28, %v263_v29  ;;  %v12363_v35 = vcombine.high %v260_v30, %v264_v31  ;;  %v319_v28 = vld [vmem:[#allocation2 + $0x820] sm:$0xff]  ;;  %v14137_v29 = vrot.slane %v1631_v19, %v14104_v53  ;;  %v316_v30 = vld [vmem:[#allocation2 + $0x808] sm:$0xff] }
  0x7f   :  { %9705 = vmatprep.subr.bf16.mxu0 %v12305_v36  ;;  %10238 = vmatprep.subr.bf16.mxu1 %v12307_v37  ;;  %v267_v36 = vld [vmem:[#allocation2 + $0x680] sm:$0xff]  ;;  %v320_v31 = vld [vmem:[#allocation2 + $0x828] sm:$0xff] }
  0x80   :  { %v271_v37 = vld [vmem:[#allocation2 + $0x6a0] sm:$0xff] }
  0x81   :  { %v12368_v49 = vcombine.low %v267_v36, %v271_v37  ;;  %v363_v19 = vld [vmem:[#allocation2 + $0x980] sm:$0xff] }
  0x82   :  { %9706 = vmatpush1.bf16.msra.mxu0 %v12304_v42  ;;  %10239 = vmatpush1.bf16.msra.mxu1 %v12306_v43  ;;  %v12369_v42 = vcombine.high %v267_v36, %v271_v37  ;;  %v12371_v43 = vcombine.high %v268_v38, %v272_v39  ;;  %v327_v36 = vld [vmem:[#allocation2 + $0x860] sm:$0xff]  ;;  %v1647_v37 = vcombine.high %v14137_v29, %v14137_v29  ;;  %v324_v39 = vld [vmem:[#allocation2 + $0x848] sm:$0xff] }
  0x83   :  { %9707 = vmatprep.subr.bf16.mxu0 %v12313_v45  ;;  %10240 = vmatprep.subr.bf16.mxu1 %v12315_v46  ;;  %v275_v45 = vld [vmem:[#allocation2 + $0x6c0] sm:$0xff]  ;;  %v14143_v38 = vcombine.high %v14124_v23, %v14124_v23 }
  0x84   :  { %v279_v46 = vld [vmem:[#allocation2 + $0x6e0] sm:$0xff] }
  0x85   :  { %v12376_v58 = vcombine.low %v275_v45, %v279_v46 }
  0x86   :  { %9708 = vmatpush1.bf16.msra.mxu0 %v12312_v51  ;;  %10241 = vmatpush1.bf16.msra.mxu1 %v12314_v52  ;;  %v12377_v51 = vcombine.high %v275_v45, %v279_v46  ;;  %v12379_v52 = vcombine.high %v276_v47, %v280_v48  ;;  %v331_v46 = vld [vmem:[#allocation2 + $0x880] sm:$0xff]  ;;  %v14146_v48 = vrot.slane %v1647_v37, %v14104_v53 }
  0x87   :  { %9709 = vmatprep.subr.bf16.mxu0 %v12321_v54  ;;  %10242 = vmatprep.subr.bf16.mxu1 %v12323_v55  ;;  %v283_v54 = vld [vmem:[#allocation2 + $0x700] sm:$0xff] }
  0x88   :  { %v287_v55 = vld [vmem:[#allocation2 + $0x720] sm:$0xff] }
  0x89   :  { %v12384_v4 = vcombine.low %v283_v54, %v287_v55  ;;  %v335_v47 = vld [vmem:[#allocation2 + $0x8a0] sm:$0xff] }
  0x8a   :  { %9710 = vmatpush1.bf16.msra.mxu0 %v12320_v61  ;;  %10243 = vmatpush1.bf16.msra.mxu1 %v12322_v62  ;;  %v12385_v61 = vcombine.high %v283_v54, %v287_v55  ;;  %v12387_v62 = vcombine.high %v284_v56, %v288_v57  ;;  %v12433_v54 = vcombine.high %v331_v46, %v335_v47  ;;  %v339_v56 = vld [vmem:[#allocation2 + $0x8c0] sm:$0xff] }
  0x8b   :  { %9711 = vmatprep.subr.bf16.mxu0 %v12329_v0  ;;  %10244 = vmatprep.subr.bf16.mxu1 %v12331_v1  ;;  %v291_v0 = vld [vmem:[#allocation2 + $0x740] sm:$0xff] }
  0x8c   :  { %v295_v1 = vld [vmem:[#allocation2 + $0x760] sm:$0xff] }
  0x8d   :  { %v12392_v13 = vcombine.low %v291_v0, %v295_v1  ;;  %v343_v57 = vld [vmem:[#allocation2 + $0x8e0] sm:$0xff] }
  0x8e   :  { %9712 = vmatpush1.bf16.msra.mxu0 %v12328_v6  ;;  %10245 = vmatpush1.bf16.msra.mxu1 %v12330_v7  ;;  %v12393_v6 = vcombine.high %v291_v0, %v295_v1  ;;  %v12395_v7 = vcombine.high %v292_v2, %v296_v3  ;;  %v12441_v0 = vcombine.high %v339_v56, %v343_v57  ;;  %v347_v2 = vld [vmem:[#allocation2 + $0x900] sm:$0xff] }
  0x8f   :  { %9713 = vmatprep.subr.bf16.mxu0 %v12337_v8  ;;  %10246 = vmatprep.subr.bf16.mxu1 %v12339_v10  ;;  %v299_v8 = vld [vmem:[#allocation2 + $0x780] sm:$0xff] }
  0x90   :  { %v303_v10 = vld [vmem:[#allocation2 + $0x7a0] sm:$0xff] }
  0x91   :  { %v12400_v22 = vcombine.low %v299_v8, %v303_v10  ;;  %v351_v3 = vld [vmem:[#allocation2 + $0x920] sm:$0xff] }
  0x92   :  { %9714 = vmatpush1.bf16.msra.mxu0 %v12336_v15  ;;  %10247 = vmatpush1.bf16.msra.mxu1 %v12338_v16  ;;  %v12401_v15 = vcombine.high %v299_v8, %v303_v10  ;;  %v12403_v16 = vcombine.high %v300_v11, %v304_v12  ;;  %v12449_v8 = vcombine.high %v347_v2, %v351_v3  ;;  %v383_v37 = vld [vmem:[#allocation2 + $0xa20] sm:$0xff] }
  0x93   :  { %9715 = vmatprep.subr.bf16.mxu0 %v12345_v17  ;;  %10248 = vmatprep.subr.bf16.mxu1 %v12347_v18  ;;  %v307_v17 = vld [vmem:[#allocation2 + $0x7c0] sm:$0xff] }
  0x94   :  { %v311_v18 = vld [vmem:[#allocation2 + $0x7e0] sm:$0xff] }
  0x96   :  { %9716 = vmatpush1.bf16.msra.mxu0 %v12344_v24  ;;  %10249 = vmatpush1.bf16.msra.mxu1 %v12346_v25  ;;  %v12402_v24 = vcombine.low %v300_v11, %v304_v12  ;;  %v12409_v25 = vcombine.high %v307_v17, %v311_v18  ;;  %v355_v11 = vld [vmem:[#allocation2 + $0x940] sm:$0xff] }
  0x97   :  { %9717 = vmatprep.subr.bf16.mxu0 %v12353_v26  ;;  %10250 = vmatprep.subr.bf16.mxu1 %v12355_v27  ;;  %v12411_v26 = vcombine.high %v308_v20, %v312_v21  ;;  %v315_v27 = vld [vmem:[#allocation2 + $0x800] sm:$0xff]  ;;  %v364_v21 = vld [vmem:[#allocation2 + $0x988] sm:$0xff] }
  0x98   :  { %v359_v12 = vld [vmem:[#allocation2 + $0x960] sm:$0xff] }
  0x99   :  { %v367_v20 = vld [vmem:[#allocation2 + $0x9a0] sm:$0xff] }
  0x9a   :  { %9718 = vmatpush1.bf16.msra.mxu0 %v12352_v63  ;;  %10251 = vmatpush1.bf16.msra.mxu1 %v12354_v33  ;;  %v12408_v63 = vcombine.low %v307_v17, %v311_v18  ;;  %v12417_v33 = vcombine.high %v315_v27, %v319_v28  ;;  %v12457_v17 = vcombine.high %v355_v11, %v359_v12 }
  0x9b   :  { %9719 = vmatprep.subr.bf16.mxu0 %v12361_v34  ;;  %10252 = vmatprep.subr.bf16.mxu1 %v12363_v35  ;;  %v12419_v34 = vcombine.high %v316_v30, %v320_v31  ;;  %v323_v35 = vld [vmem:[#allocation2 + $0x840] sm:$0xff] }
  0x9e   :  { %9720 = vmatpush1.bf16.msra.mxu0 %v12360_v40  ;;  %10253 = vmatpush1.bf16.msra.mxu1 %v12362_v41  ;;  %v328_v40 = vld [vmem:[#allocation2 + $0x868] sm:$0xff]  ;;  %v12416_v41 = vcombine.low %v315_v27, %v319_v28  ;;  %v371_v28 = vld [vmem:[#allocation2 + $0x9c0] sm:$0xff] }
  0x9f   :  { %9721 = vmatprep.subr.bf16.mxu0 %v12369_v42  ;;  %10254 = vmatprep.subr.bf16.mxu1 %v12371_v43  ;;  %v12418_v42 = vcombine.low %v316_v30, %v320_v31  ;;  %v12425_v43 = vcombine.high %v323_v35, %v327_v36  ;;  %v12427_v45 = vcombine.high %v324_v39, %v328_v40  ;;  %v375_v30 = vld [vmem:[#allocation2 + $0x9e0] sm:$0xff]  ;;  %v372_v31 = vld [vmem:[#allocation2 + $0x9c8] sm:$0xff] }
  0xa2   :  { %9722 = vmatpush1.bf16.msra.mxu0 %v12368_v49  ;;  %10255 = vmatpush1.bf16.msra.mxu1 %v12370_v50  ;;  %v332_v49 = vld [vmem:[#allocation2 + $0x888] sm:$0xff] }
  0xa3   :  { %9723 = vmatprep.subr.bf16.mxu0 %v12377_v51  ;;  %10256 = vmatprep.subr.bf16.mxu1 %v12379_v52  ;;  %v336_v50 = vld [vmem:[#allocation2 + $0x8a8] sm:$0xff]  ;;  %v12424_v51 = vcombine.low %v323_v35, %v327_v36  ;;  %v12426_v52 = vcombine.low %v324_v39, %v328_v40  ;;  %v379_v36 = vld [vmem:[#allocation2 + $0xa00] sm:$0xff] }
  0xa4   :  { %v12435_v55 = vcombine.high %v332_v49, %v336_v50  ;;  %v380_v39 = vld [vmem:[#allocation2 + $0xa08] sm:$0xff] }
  0xa5   :  { %v384_v40 = vld [vmem:[#allocation2 + $0xa28] sm:$0xff] }
  0xa6   :  { %9724 = vmatpush1.bf16.msra.mxu0 %v12376_v58  ;;  %10257 = vmatpush1.bf16.msra.mxu1 %v12378_v60  ;;  %v340_v58 = vld [vmem:[#allocation2 + $0x8c8] sm:$0xff] }
  0xa7   :  { %9725 = vmatprep.subr.bf16.mxu0 %v12385_v61  ;;  %10258 = vmatprep.subr.bf16.mxu1 %v12387_v62  ;;  %v344_v60 = vld [vmem:[#allocation2 + $0x8e8] sm:$0xff]  ;;  %v12432_v61 = vcombine.low %v331_v46, %v335_v47  ;;  %v12434_v62 = vcombine.low %v332_v49, %v336_v50  ;;  %v387_v46 = vld [vmem:[#allocation2 + $0xa40] sm:$0xff] }
  0xa8   :  { %v12443_v1 = vcombine.high %v340_v58, %v344_v60  ;;  %v391_v47 = vld [vmem:[#allocation2 + $0xa60] sm:$0xff]  ;;  %v388_v49 = vld [vmem:[#allocation2 + $0xa48] sm:$0xff] }
  0xa9   :  { %v392_v50 = vld [vmem:[#allocation2 + $0xa68] sm:$0xff] }
  0xaa   :  { %9726 = vmatpush1.bf16.msra.mxu0 %v12384_v4  ;;  %10259 = vmatpush1.bf16.msra.mxu1 %v12386_v5  ;;  %v348_v4 = vld [vmem:[#allocation2 + $0x908] sm:$0xff] }
  0xab   :  { %9727 = vmatprep.subr.bf16.mxu0 %v12393_v6  ;;  %10260 = vmatprep.subr.bf16.mxu1 %v12395_v7  ;;  %v352_v5 = vld [vmem:[#allocation2 + $0x928] sm:$0xff]  ;;  %v12440_v6 = vcombine.low %v339_v56, %v343_v57  ;;  %v12442_v7 = vcombine.low %v340_v58, %v344_v60  ;;  %v395_v56 = vld [vmem:[#allocation2 + $0xa80] sm:$0xff] }
  0xac   :  { %v12451_v10 = vcombine.high %v348_v4, %v352_v5  ;;  %v399_v57 = vld [vmem:[#allocation2 + $0xaa0] sm:$0xff]  ;;  %v396_v58 = vld [vmem:[#allocation2 + $0xa88] sm:$0xff] }
  0xad   :  { %v400_v60 = vld [vmem:[#allocation2 + $0xaa8] sm:$0xff] }
  0xae   :  { %9728 = vmatpush1.bf16.msra.mxu0 %v12392_v13  ;;  %10261 = vmatpush1.bf16.msra.mxu1 %v12394_v14  ;;  %v356_v13 = vld [vmem:[#allocation2 + $0x948] sm:$0xff] }
  0xaf   :  { %9729 = vmatprep.subr.bf16.mxu0 %v12401_v15  ;;  %10262 = vmatprep.subr.bf16.mxu1 %v12403_v16  ;;  %v360_v14 = vld [vmem:[#allocation2 + $0x968] sm:$0xff]  ;;  %v12448_v15 = vcombine.low %v347_v2, %v351_v3  ;;  %v12450_v16 = vcombine.low %v348_v4, %v352_v5  ;;  %v403_v2 = vld [vmem:[#allocation2 + $0xac0] sm:$0xff] }
  0xb0   :  { %v12459_v18 = vcombine.high %v356_v13, %v360_v14  ;;  %v407_v3 = vld [vmem:[#allocation2 + $0xae0] sm:$0xff]  ;;  %v404_v4 = vld [vmem:[#allocation2 + $0xac8] sm:$0xff] }
  0xb1   :  { %v408_v5 = vld [vmem:[#allocation2 + $0xae8] sm:$0xff] }
  0xb2   :  { %9730 = vmatpush1.bf16.msra.mxu0 %v12400_v22  ;;  %10263 = vmatpush1.bf16.msra.mxu1 %v12402_v24  ;;  %v368_v22 = vld [vmem:[#allocation2 + $0x9a8] sm:$0xff]  ;;  %v12456_v24 = vcombine.low %v355_v11, %v359_v12  ;;  %v411_v11 = vld [vmem:[#allocation2 + $0xb00] sm:$0xff] }
  0xb3   :  { %9731 = vmatprep.subr.bf16.mxu0 %v12409_v25  ;;  %10264 = vmatprep.subr.bf16.mxu1 %v12411_v26  ;;  %v12458_v25 = vcombine.low %v356_v13, %v360_v14  ;;  %v12465_v26 = vcombine.high %v363_v19, %v367_v20  ;;  %v12467_v27 = vcombine.high %v364_v21, %v368_v22  ;;  %v415_v12 = vld [vmem:[#allocation2 + $0xb20] sm:$0xff]  ;;  %v412_v13 = vld [vmem:[#allocation2 + $0xb08] sm:$0xff] }
  0xb4   :  { %v416_v14 = vld [vmem:[#allocation2 + $0xb28] sm:$0xff] }
  0xb6   :  { %9732 = vmatpush1.bf16.msra.mxu0 %v12408_v63  ;;  %10265 = vmatpush1.bf16.msra.mxu1 %v12410_v59  ;;  %v376_v63 = vld [vmem:[#allocation2 + $0x9e8] sm:$0xff]  ;;  %v12464_v59 = vcombine.low %v363_v19, %v367_v20  ;;  %v419_v19 = vld [vmem:[#allocation2 + $0xb40] sm:$0xff] }
  0xb7   :  { %9742 = vmatprep.subr.bf16.mxu0 %v12417_v33  ;;  %10275 = vmatprep.subr.bf16.mxu1 %v12419_v34  ;;  %v12466_v33 = vcombine.low %v364_v21, %v368_v22  ;;  %v12473_v34 = vcombine.high %v371_v28, %v375_v30  ;;  %v12475_v35 = vcombine.high %v372_v31, %v376_v63  ;;  %v423_v20 = vld [vmem:[#allocation2 + $0xb60] sm:$0xff]  ;;  %v420_v21 = vld [vmem:[#allocation2 + $0xb48] sm:$0xff] }
  0xb8   :  { %v424_v22 = vld [vmem:[#allocation2 + $0xb68] sm:$0xff] }
  0xb9   :  { %9734 = vmatmul.mubr.bf16.vlgmr.msra.gmra.mrb[0].mxu0 %v14143_v38  ;;  %10267 = vmatmul.mubr.bf16.vlgmr.msra.gmra.mrb[0].mxu1 %v14143_v38 }
  0xba   :  { %9743 = vmatpush1.bf16.msra.mxu0 %v12416_v41  ;;  %10276 = vmatpush1.bf16.msra.mxu1 %v12418_v42  ;;  %v12472_v41 = vcombine.low %v371_v28, %v375_v30  ;;  %v12474_v42 = vcombine.low %v372_v31, %v376_v63  ;;  %v427_v28 = vld [vmem:[#allocation2 + $0xb80] sm:$0xff]  ;;  %v428_v31 = vld [vmem:[#allocation2 + $0xb88] sm:$0xff] }
  0xbb   :  { %9744 = vmatprep.subr.bf16.mxu0 %v12425_v43  ;;  %10277 = vmatprep.subr.bf16.mxu1 %v12427_v45  ;;  %v12481_v43 = vcombine.high %v379_v36, %v383_v37  ;;  %v12483_v45 = vcombine.high %v380_v39, %v384_v40  ;;  %v431_v30 = vld [vmem:[#allocation2 + $0xba0] sm:$0xff]  ;;  %v432_v63 = vld [vmem:[#allocation2 + $0xba8] sm:$0xff] }
  0xbc   :  { %9774 = vmatprep.mubr.bf16.mxu0 %v14146_v48  ;;  %10307 = vmatprep.mubr.bf16.mxu1 %v14146_v48 }
  0xbe   :  { %9745 = vmatpush1.bf16.msra.mxu0 %v12424_v51  ;;  %10278 = vmatpush1.bf16.msra.mxu1 %v12426_v52  ;;  %v12480_v51 = vcombine.low %v379_v36, %v383_v37  ;;  %v12482_v52 = vcombine.low %v380_v39, %v384_v40  ;;  %v435_v36 = vld [vmem:[#allocation2 + $0xbc0] sm:$0xff]  ;;  %v436_v39 = vld [vmem:[#allocation2 + $0xbc8] sm:$0xff] }
  0xbf   :  { %9746 = vmatprep.subr.bf16.mxu0 %v12433_v54  ;;  %10279 = vmatprep.subr.bf16.mxu1 %v12435_v55  ;;  %v12489_v54 = vcombine.high %v387_v46, %v391_v47  ;;  %v12491_v55 = vcombine.high %v388_v49, %v392_v50  ;;  %v439_v37 = vld [vmem:[#allocation2 + $0xbe0] sm:$0xff]  ;;  %v440_v40 = vld [vmem:[#allocation2 + $0xbe8] sm:$0xff] }
  0xc2   :  { %9747 = vmatpush1.bf16.msra.mxu0 %v12432_v61  ;;  %10280 = vmatpush1.bf16.msra.mxu1 %v12434_v62  ;;  %v12488_v61 = vcombine.low %v387_v46, %v391_v47  ;;  %v12490_v62 = vcombine.low %v388_v49, %v392_v50  ;;  %v443_v46 = vld [vmem:[#allocation2 + $0xc00] sm:$0xff]  ;;  %v444_v49 = vld [vmem:[#allocation2 + $0xc08] sm:$0xff] }
  0xc3   :  { %9748 = vmatprep.subr.bf16.mxu0 %v12441_v0  ;;  %10281 = vmatprep.subr.bf16.mxu1 %v12443_v1  ;;  %v12497_v0 = vcombine.high %v395_v56, %v399_v57  ;;  %v12499_v1 = vcombine.high %v396_v58, %v400_v60  ;;  %v447_v47 = vld [vmem:[#allocation2 + $0xc20] sm:$0xff]  ;;  %v448_v50 = vld [vmem:[#allocation2 + $0xc28] sm:$0xff] }
  0xc6   :  { %9749 = vmatpush1.bf16.msra.mxu0 %v12440_v6  ;;  %10282 = vmatpush1.bf16.msra.mxu1 %v12442_v7  ;;  %v12496_v6 = vcombine.low %v395_v56, %v399_v57  ;;  %v12498_v7 = vcombine.low %v396_v58, %v400_v60  ;;  %v451_v56 = vld [vmem:[#allocation2 + $0xc40] sm:$0xff]  ;;  %v14154_v58 = vrot.slane %v14137_v29, %v14104_v53  ;;  %v452_v60 = vld [vmem:[#allocation2 + $0xc48] sm:$0xff] }
  0xc7   :  { %9750 = vmatprep.subr.bf16.mxu0 %v12449_v8  ;;  %10283 = vmatprep.subr.bf16.mxu1 %v12451_v10  ;;  %v12505_v8 = vcombine.high %v403_v2, %v407_v3  ;;  %v12507_v10 = vcombine.high %v404_v4, %v408_v5  ;;  %v455_v57 = vld [vmem:[#allocation2 + $0xc60] sm:$0xff]  ;;  %v460_v29 = vld [vmem:[#allocation2 + $0xc88] sm:$0xff] }
  0xca   :  { %9751 = vmatpush1.bf16.msra.mxu0 %v12448_v15  ;;  %10284 = vmatpush1.bf16.msra.mxu1 %v12450_v16  ;;  %v12504_v15 = vcombine.low %v403_v2, %v407_v3  ;;  %v12506_v16 = vcombine.low %v404_v4, %v408_v5  ;;  %v459_v3 = vld [vmem:[#allocation2 + $0xc80] sm:$0xff]  ;;  %v14158_v5 = vcombine.high %v14146_v48, %v14146_v48 }
  0xcb   :  { %9752 = vmatprep.subr.bf16.mxu0 %v12457_v17  ;;  %10285 = vmatprep.subr.bf16.mxu1 %v12459_v18  ;;  %v12513_v17 = vcombine.high %v411_v11, %v415_v12  ;;  %v12515_v18 = vcombine.high %v412_v13, %v416_v14  ;;  %v463_v4 = vld [vmem:[#allocation2 + $0xca0] sm:$0xff] }
  0xce   :  { %9753 = vmatpush1.bf16.msra.mxu0 %v12456_v24  ;;  %10286 = vmatpush1.bf16.msra.mxu1 %v12458_v25  ;;  %v12512_v24 = vcombine.low %v411_v11, %v415_v12  ;;  %v12514_v25 = vcombine.low %v412_v13, %v416_v14  ;;  %v467_v12 = vld [vmem:[#allocation2 + $0xcc0] sm:$0xff]  ;;  %v468_v14 = vld [vmem:[#allocation2 + $0xcc8] sm:$0xff] }
  0xcf   :  { %9754 = vmatprep.subr.bf16.mxu0 %v12465_v26  ;;  %10287 = vmatprep.subr.bf16.mxu1 %v12467_v27  ;;  %v12521_v26 = vcombine.high %v419_v19, %v423_v20  ;;  %v12523_v27 = vcombine.high %v420_v21, %v424_v22  ;;  %v471_v13 = vld [vmem:[#allocation2 + $0xce0] sm:$0xff] }
  0xd2   :  { %9755 = vmatpush1.bf16.msra.mxu0 %v12464_v59  ;;  %10288 = vmatpush1.bf16.msra.mxu1 %v12466_v33  ;;  %v12520_v59 = vcombine.low %v419_v19, %v423_v20  ;;  %v12522_v33 = vcombine.low %v420_v21, %v424_v22  ;;  %v475_v20 = vld [vmem:[#allocation2 + $0xd00] sm:$0xff]  ;;  %v476_v22 = vld [vmem:[#allocation2 + $0xd08] sm:$0xff] }
  0xd3   :  { %9756 = vmatprep.subr.bf16.mxu0 %v12473_v34  ;;  %10289 = vmatprep.subr.bf16.mxu1 %v12475_v35  ;;  %v12529_v34 = vcombine.high %v427_v28, %v431_v30  ;;  %v12531_v35 = vcombine.high %v428_v31, %v432_v63  ;;  %v479_v21 = vld [vmem:[#allocation2 + $0xd20] sm:$0xff] }
  0xd6   :  { %9757 = vmatpush1.bf16.msra.mxu0 %v12472_v41  ;;  %10290 = vmatpush1.bf16.msra.mxu1 %v12474_v42  ;;  %v12528_v41 = vcombine.low %v427_v28, %v431_v30  ;;  %v12530_v42 = vcombine.low %v428_v31, %v432_v63  ;;  %v483_v30 = vld [vmem:[#allocation2 + $0xd40] sm:$0xff]  ;;  %v484_v63 = vld [vmem:[#allocation2 + $0xd48] sm:$0xff] }
  0xd7   :  { %9758 = vmatprep.subr.bf16.mxu0 %v12481_v43  ;;  %10291 = vmatprep.subr.bf16.mxu1 %v12483_v45  ;;  %v12537_v43 = vcombine.high %v435_v36, %v439_v37  ;;  %v12539_v45 = vcombine.high %v436_v39, %v440_v40  ;;  %v487_v31 = vld [vmem:[#allocation2 + $0xd60] sm:$0xff] }
  0xda   :  { %9759 = vmatpush1.bf16.msra.mxu0 %v12480_v51  ;;  %10292 = vmatpush1.bf16.msra.mxu1 %v12482_v52  ;;  %v12536_v51 = vcombine.low %v435_v36, %v439_v37  ;;  %v12538_v52 = vcombine.low %v436_v39, %v440_v40  ;;  %v491_v37 = vld [vmem:[#allocation2 + $0xd80] sm:$0xff]  ;;  %v492_v40 = vld [vmem:[#allocation2 + $0xd88] sm:$0xff] }
  0xdb   :  { %9760 = vmatprep.subr.bf16.mxu0 %v12489_v54  ;;  %10293 = vmatprep.subr.bf16.mxu1 %v12491_v55  ;;  %v12545_v54 = vcombine.high %v443_v46, %v447_v47  ;;  %v12547_v55 = vcombine.high %v444_v49, %v448_v50  ;;  %v495_v39 = vld [vmem:[#allocation2 + $0xda0] sm:$0xff] }
  0xde   :  { %9761 = vmatpush1.bf16.msra.mxu0 %v12488_v61  ;;  %10294 = vmatpush1.bf16.msra.mxu1 %v12490_v62  ;;  %v456_v61 = vld [vmem:[#allocation2 + $0xc68] sm:$0xff]  ;;  %v12544_v62 = vcombine.low %v443_v46, %v447_v47  ;;  %v499_v47 = vld [vmem:[#allocation2 + $0xdc0] sm:$0xff] }
  0xdf   :  { %9762 = vmatprep.subr.bf16.mxu0 %v12497_v0  ;;  %10295 = vmatprep.subr.bf16.mxu1 %v12499_v1  ;;  %v12546_v0 = vcombine.low %v444_v49, %v448_v50  ;;  %v12553_v1 = vcombine.high %v451_v56, %v455_v57  ;;  %v12555_v2 = vcombine.high %v452_v60, %v456_v61  ;;  %v503_v49 = vld [vmem:[#allocation2 + $0xde0] sm:$0xff]  ;;  %v500_v50 = vld [vmem:[#allocation2 + $0xdc8] sm:$0xff] }
  0xe2   :  { %9763 = vmatpush1.bf16.msra.mxu0 %v12496_v6  ;;  %10296 = vmatpush1.bf16.msra.mxu1 %v12498_v7  ;;  %v464_v6 = vld [vmem:[#allocation2 + $0xca8] sm:$0xff]  ;;  %v12552_v7 = vcombine.low %v451_v56, %v455_v57  ;;  %v507_v57 = vld [vmem:[#allocation2 + $0xe00] sm:$0xff] }
  0xe3   :  { %9764 = vmatprep.subr.bf16.mxu0 %v12505_v8  ;;  %10297 = vmatprep.subr.bf16.mxu1 %v12507_v10  ;;  %v12554_v8 = vcombine.low %v452_v60, %v456_v61  ;;  %v12561_v10 = vcombine.high %v459_v3, %v463_v4  ;;  %v12563_v11 = vcombine.high %v460_v29, %v464_v6  ;;  %v511_v60 = vld [vmem:[#allocation2 + $0xe20] sm:$0xff]  ;;  %v508_v61 = vld [vmem:[#allocation2 + $0xe08] sm:$0xff] }
  0xe6   :  { %9765 = vmatpush1.bf16.msra.mxu0 %v12504_v15  ;;  %10298 = vmatpush1.bf16.msra.mxu1 %v12506_v16  ;;  %v472_v15 = vld [vmem:[#allocation2 + $0xce8] sm:$0xff]  ;;  %v12560_v16 = vcombine.low %v459_v3, %v463_v4  ;;  %v515_v4 = vld [vmem:[#allocation2 + $0xe40] sm:$0xff] }
  0xe7   :  { %9766 = vmatprep.subr.bf16.mxu0 %v12513_v17  ;;  %10299 = vmatprep.subr.bf16.mxu1 %v12515_v18  ;;  %v12562_v17 = vcombine.low %v460_v29, %v464_v6  ;;  %v12569_v18 = vcombine.high %v467_v12, %v471_v13  ;;  %v12571_v19 = vcombine.high %v468_v14, %v472_v15  ;;  %v519_v29 = vld [vmem:[#allocation2 + $0xe60] sm:$0xff]  ;;  %v516_v6 = vld [vmem:[#allocation2 + $0xe48] sm:$0xff] }
  0xea   :  { %9767 = vmatpush1.bf16.msra.mxu0 %v12512_v24  ;;  %10300 = vmatpush1.bf16.msra.mxu1 %v12514_v25  ;;  %v480_v24 = vld [vmem:[#allocation2 + $0xd28] sm:$0xff]  ;;  %v12568_v25 = vcombine.low %v467_v12, %v471_v13  ;;  %v523_v13 = vld [vmem:[#allocation2 + $0xe80] sm:$0xff] }
  0xeb   :  { %9768 = vmatprep.subr.bf16.mxu0 %v12521_v26  ;;  %10301 = vmatprep.subr.bf16.mxu1 %v12523_v27  ;;  %v12570_v26 = vcombine.low %v468_v14, %v472_v15  ;;  %v12577_v27 = vcombine.high %v475_v20, %v479_v21  ;;  %v12579_v28 = vcombine.high %v476_v22, %v480_v24  ;;  %v527_v14 = vld [vmem:[#allocation2 + $0xea0] sm:$0xff]  ;;  %v524_v15 = vld [vmem:[#allocation2 + $0xe88] sm:$0xff] }
  0xee   :  { %9769 = vmatpush1.bf16.msra.mxu0 %v12520_v59  ;;  %10302 = vmatpush1.bf16.msra.mxu1 %v12522_v33  ;;  %v488_v59 = vld [vmem:[#allocation2 + $0xd68] sm:$0xff]  ;;  %v12576_v33 = vcombine.low %v475_v20, %v479_v21  ;;  %v531_v21 = vld [vmem:[#allocation2 + $0xec0] sm:$0xff] }
  0xef   :  { %9770 = vmatprep.subr.bf16.mxu0 %v12529_v34  ;;  %10303 = vmatprep.subr.bf16.mxu1 %v12531_v35  ;;  %v12578_v34 = vcombine.low %v476_v22, %v480_v24  ;;  %v12585_v35 = vcombine.high %v483_v30, %v487_v31  ;;  %v12587_v36 = vcombine.high %v484_v63, %v488_v59  ;;  %v535_v22 = vld [vmem:[#allocation2 + $0xee0] sm:$0xff]  ;;  %v532_v24 = vld [vmem:[#allocation2 + $0xec8] sm:$0xff] }
  0xf2   :  { %9771 = vmatpush1.bf16.msra.mxu0 %v12528_v41  ;;  %10304 = vmatpush1.bf16.msra.mxu1 %v12530_v42  ;;  %v496_v41 = vld [vmem:[#allocation2 + $0xda8] sm:$0xff]  ;;  %v12584_v42 = vcombine.low %v483_v30, %v487_v31  ;;  %v539_v31 = vld [vmem:[#allocation2 + $0xf00] sm:$0xff] }
  0xf3   :  { %9772 = vmatprep.subr.bf16.mxu0 %v12537_v43  ;;  %10305 = vmatprep.subr.bf16.mxu1 %v12539_v45  ;;  %v12586_v43 = vcombine.low %v484_v63, %v488_v59  ;;  %v12593_v45 = vcombine.high %v491_v37, %v495_v39  ;;  %v12595_v46 = vcombine.high %v492_v40, %v496_v41  ;;  %v543_v63 = vld [vmem:[#allocation2 + $0xf20] sm:$0xff]  ;;  %v540_v59 = vld [vmem:[#allocation2 + $0xf08] sm:$0xff] }
  0xf6   :  { %9773 = vmatpush1.bf16.msra.mxu0 %v12536_v51  ;;  %10306 = vmatpush1.bf16.msra.mxu1 %v12538_v52  ;;  %v504_v51 = vld [vmem:[#allocation2 + $0xde8] sm:$0xff]  ;;  %v12592_v52 = vcombine.low %v491_v37, %v495_v39  ;;  %v547_v39 = vld [vmem:[#allocation2 + $0xf40] sm:$0xff] }
  0xf7   :  { %9783 = vmatprep.subr.bf16.mxu0 %v12545_v54  ;;  %10316 = vmatprep.subr.bf16.mxu1 %v12547_v55  ;;  %v12594_v54 = vcombine.low %v492_v40, %v496_v41  ;;  %v12601_v55 = vcombine.high %v499_v47, %v503_v49  ;;  %v12603_v56 = vcombine.high %v500_v50, %v504_v51  ;;  %v551_v40 = vld [vmem:[#allocation2 + $0xf60] sm:$0xff]  ;;  %v548_v41 = vld [vmem:[#allocation2 + $0xf48] sm:$0xff] }
  0xf9   :  { %9775 = vmatmul.mubr.bf16.vlgmr.msra.gmra.mrb[0].mxu0 %v14154_v58  ;;  %10308 = vmatmul.mubr.bf16.vlgmr.msra.gmra.mrb[0].mxu1 %v14154_v58 }
  0xfa   :  { %9784 = vmatpush1.bf16.msra.mxu0 %v12544_v62  ;;  %10317 = vmatpush1.bf16.msra.mxu1 %v12546_v0  ;;  %v512_v62 = vld [vmem:[#allocation2 + $0xe28] sm:$0xff]  ;;  %v12600_v0 = vcombine.low %v499_v47, %v503_v49  ;;  %v555_v49 = vld [vmem:[#allocation2 + $0xf80] sm:$0xff] }
  0xfb   :  { %9785 = vmatprep.subr.bf16.mxu0 %v12553_v1  ;;  %10318 = vmatprep.subr.bf16.mxu1 %v12555_v2  ;;  %v12602_v1 = vcombine.low %v500_v50, %v504_v51  ;;  %v12609_v2 = vcombine.high %v507_v57, %v511_v60  ;;  %v12611_v3 = vcombine.high %v508_v61, %v512_v62  ;;  %v559_v50 = vld [vmem:[#allocation2 + $0xfa0] sm:$0xff]  ;;  %v556_v51 = vld [vmem:[#allocation2 + $0xf88] sm:$0xff] }
  0xfc   :  { %9815 = vmatprep.mubr.bf16.mxu0 %v14158_v5  ;;  %10348 = vmatprep.mubr.bf16.mxu1 %v14158_v5 }
  0xfe   :  { %9786 = vmatpush1.bf16.msra.mxu0 %v12552_v7  ;;  %10319 = vmatpush1.bf16.msra.mxu1 %v12554_v8  ;;  %v520_v7 = vld [vmem:[#allocation2 + $0xe68] sm:$0xff]  ;;  %v12608_v8 = vcombine.low %v507_v57, %v511_v60  ;;  %v563_v60 = vld [vmem:[#allocation2 + $0xfc0] sm:$0xff] }
  0xff   :  { %9787 = vmatprep.subr.bf16.mxu0 %v12561_v10  ;;  %10320 = vmatprep.subr.bf16.mxu1 %v12563_v11  ;;  %v12610_v10 = vcombine.low %v508_v61, %v512_v62  ;;  %v12617_v11 = vcombine.high %v515_v4, %v519_v29  ;;  %v12619_v12 = vcombine.high %v516_v6, %v520_v7  ;;  %v567_v61 = vld [vmem:[#allocation2 + $0xfe0] sm:$0xff]  ;;  %v564_v62 = vld [vmem:[#allocation2 + $0xfc8] sm:$0xff] }
 0x102   :  { %9788 = vmatpush1.bf16.msra.mxu0 %v12560_v16  ;;  %10321 = vmatpush1.bf16.msra.mxu1 %v12562_v17  ;;  %v528_v16 = vld [vmem:[#allocation2 + $0xea8] sm:$0xff]  ;;  %v12616_v17 = vcombine.low %v515_v4, %v519_v29  ;;  %v12665_v4 = vcombine.high %v563_v60, %v567_v61 }
 0x103   :  { %9789 = vmatprep.subr.bf16.mxu0 %v12569_v18  ;;  %10322 = vmatprep.subr.bf16.mxu1 %v12571_v19  ;;  %v12618_v18 = vcombine.low %v516_v6, %v520_v7  ;;  %v12625_v19 = vcombine.high %v523_v13, %v527_v14  ;;  %v12627_v20 = vcombine.high %v524_v15, %v528_v16  ;;  %v571_v6 = vld [vmem:[#allocation2 + $0x1000] sm:$0xff] }
 0x104   :  { %v575_v7 = vld [vmem:[#allocation2 + $0x1020] sm:$0xff] }
 0x106   :  { %9790 = vmatpush1.bf16.msra.mxu0 %v12568_v25  ;;  %10323 = vmatpush1.bf16.msra.mxu1 %v12570_v26  ;;  %v536_v25 = vld [vmem:[#allocation2 + $0xee8] sm:$0xff]  ;;  %v12624_v26 = vcombine.low %v523_v13, %v527_v14  ;;  %v12673_v14 = vcombine.high %v571_v6, %v575_v7 }
 0x107   :  { %9791 = vmatprep.subr.bf16.mxu0 %v12577_v27  ;;  %10324 = vmatprep.subr.bf16.mxu1 %v12579_v28  ;;  %v12626_v27 = vcombine.low %v524_v15, %v528_v16  ;;  %v12633_v28 = vcombine.high %v531_v21, %v535_v22  ;;  %v12635_v30 = vcombine.high %v532_v24, %v536_v25  ;;  %v579_v16 = vld [vmem:[#allocation2 + $0x1040] sm:$0xff] }
 0x10a   :  { %9792 = vmatpush1.bf16.msra.mxu0 %v12576_v33  ;;  %10325 = vmatpush1.bf16.msra.mxu1 %v12578_v34  ;;  %v544_v33 = vld [vmem:[#allocation2 + $0xf28] sm:$0xff]  ;;  %v12632_v34 = vcombine.low %v531_v21, %v535_v22  ;;  %v12672_v22 = vcombine.low %v571_v6, %v575_v7 }
 0x10b   :  { %9793 = vmatprep.subr.bf16.mxu0 %v12585_v35  ;;  %10326 = vmatprep.subr.bf16.mxu1 %v12587_v36  ;;  %v12634_v35 = vcombine.low %v532_v24, %v536_v25  ;;  %v12641_v36 = vcombine.high %v539_v31, %v543_v63  ;;  %v12643_v37 = vcombine.high %v540_v59, %v544_v33  ;;  %v584_v21 = vld [vmem:[#allocation2 + $0x1068] sm:$0xff] }
 0x10c   :  { %v620_v6 = vld [vmem:[#allocation2 + $0x1188] sm:$0xff] }
 0x10d   :  { %v624_v7 = vld [vmem:[#allocation2 + $0x11a8] sm:$0xff] }
 0x10e   :  { %9794 = vmatpush1.bf16.msra.mxu0 %v12584_v42  ;;  %10327 = vmatpush1.bf16.msra.mxu1 %v12586_v43  ;;  %v552_v42 = vld [vmem:[#allocation2 + $0xf68] sm:$0xff]  ;;  %v12640_v43 = vcombine.low %v539_v31, %v543_v63 }
 0x10f   :  { %9795 = vmatprep.subr.bf16.mxu0 %v12593_v45  ;;  %10328 = vmatprep.subr.bf16.mxu1 %v12595_v46  ;;  %v12642_v45 = vcombine.low %v540_v59, %v544_v33  ;;  %v12649_v46 = vcombine.high %v547_v39, %v551_v40  ;;  %v12651_v47 = vcombine.high %v548_v41, %v552_v42  ;;  %v588_v31 = vld [vmem:[#allocation2 + $0x1088] sm:$0xff] }
 0x110   :  { %v592_v63 = vld [vmem:[#allocation2 + $0x10a8] sm:$0xff] }
 0x112   :  { %9796 = vmatpush1.bf16.msra.mxu0 %v12592_v52  ;;  %10329 = vmatpush1.bf16.msra.mxu1 %v12594_v54  ;;  %v560_v52 = vld [vmem:[#allocation2 + $0xfa8] sm:$0xff]  ;;  %v12648_v54 = vcombine.low %v547_v39, %v551_v40 }
 0x113   :  { %9797 = vmatprep.subr.bf16.mxu0 %v12601_v55  ;;  %10330 = vmatprep.subr.bf16.mxu1 %v12603_v56  ;;  %v12650_v55 = vcombine.low %v548_v41, %v552_v42  ;;  %v12657_v56 = vcombine.high %v555_v49, %v559_v50  ;;  %v12659_v57 = vcombine.high %v556_v51, %v560_v52  ;;  %v596_v39 = vld [vmem:[#allocation2 + $0x10c8] sm:$0xff] }
 0x114   :  { %v600_v40 = vld [vmem:[#allocation2 + $0x10e8] sm:$0xff]  ;;  %v12690_v42 = vcombine.low %v588_v31, %v592_v63 }
 0x116   :  { %9798 = vmatpush1.bf16.msra.mxu0 %v12600_v0  ;;  %10331 = vmatpush1.bf16.msra.mxu1 %v12602_v1  ;;  %v568_v0 = vld [vmem:[#allocation2 + $0xfe8] sm:$0xff] }
 0x117   :  { %9799 = vmatprep.subr.bf16.mxu0 %v12609_v2  ;;  %10332 = vmatprep.subr.bf16.mxu1 %v12611_v3  ;;  %v14167_v1 = vld [vmem:[%s14452_s0 + $0x8] sm:$0xff]  ;;  %v12656_v2 = vcombine.low %v555_v49, %v559_v50  ;;  %v12658_v3 = vcombine.low %v556_v51, %v560_v52  ;;  %v12667_v29 = vcombine.high %v564_v62, %v568_v0 }
 0x118   :  { %v12666_v13 = vcombine.low %v564_v62, %v568_v0  ;;  %v604_v49 = vld [vmem:[#allocation2 + $0x1108] sm:$0xff]  ;;  %v12698_v52 = vcombine.low %v596_v39, %v600_v40 }
 0x119   :  { %v608_v50 = vld [vmem:[#allocation2 + $0x1128] sm:$0xff] }
 0x11a   :  { %9800 = vmatpush1.bf16.msra.mxu0 %v12608_v8  ;;  %10333 = vmatpush1.bf16.msra.mxu1 %v12610_v10  ;;  %v14171_v8 = vrot.slane %v14167_v1, %v14104_v53  ;;  %v572_v10 = vld [vmem:[#allocation2 + $0x1008] sm:$0xff]  ;;  %v12706_v0 = vcombine.low %v604_v49, %v608_v50 }
 0x11b   :  { %9801 = vmatprep.subr.bf16.mxu0 %v12617_v11  ;;  %10334 = vmatprep.subr.bf16.mxu1 %v12619_v12  ;;  %v576_v11 = vld [vmem:[#allocation2 + $0x1028] sm:$0xff]  ;;  %v12664_v12 = vcombine.low %v563_v60, %v567_v61 }
 0x11c   :  { %v12675_v15 = vcombine.high %v572_v10, %v576_v11  ;;  %v12674_v24 = vcombine.low %v572_v10, %v576_v11  ;;  %v612_v60 = vld [vmem:[#allocation2 + $0x1148] sm:$0xff] }
 0x11d   :  { %v616_v61 = vld [vmem:[#allocation2 + $0x1168] sm:$0xff] }
 0x11e   :  { %9802 = vmatpush1.bf16.msra.mxu0 %v12616_v17  ;;  %10335 = vmatpush1.bf16.msra.mxu1 %v12618_v18  ;;  %v583_v17 = vld [vmem:[#allocation2 + $0x1060] sm:$0xff]  ;;  %v1695_v18 = vcombine.high %v14171_v8, %v14171_v8  ;;  %v12714_v11 = vcombine.low %v612_v60, %v616_v61 }
 0x11f   :  { %9803 = vmatprep.subr.bf16.mxu0 %v12625_v19  ;;  %10336 = vmatprep.subr.bf16.mxu1 %v12627_v20  ;;  %v14177_v19 = vcombine.high %v14154_v58, %v14154_v58  ;;  %v580_v20 = vld [vmem:[#allocation2 + $0x1048] sm:$0xff]  ;;  %v12681_v25 = vcombine.high %v579_v16, %v583_v17  ;;  %v12680_v59 = vcombine.low %v579_v16, %v583_v17 }
 0x120   :  { %v12682_v33 = vcombine.low %v580_v20, %v584_v21  ;;  %v628_v16 = vld [vmem:[#allocation2 + $0x11c8] sm:$0xff] }
 0x121   :  { %v632_v17 = vld [vmem:[#allocation2 + $0x11e8] sm:$0xff] }
 0x122   :  { %9804 = vmatpush1.bf16.msra.mxu0 %v12624_v26  ;;  %10337 = vmatpush1.bf16.msra.mxu1 %v12626_v27  ;;  %v12683_v26 = vcombine.high %v580_v20, %v584_v21  ;;  %v587_v27 = vld [vmem:[#allocation2 + $0x1080] sm:$0xff]  ;;  %v12722_v20 = vcombine.low %v620_v6, %v624_v7 }
 0x123   :  { %9805 = vmatprep.subr.bf16.mxu0 %v12633_v28  ;;  %10338 = vmatprep.subr.bf16.mxu1 %v12635_v30  ;;  %v591_v28 = vld [vmem:[#allocation2 + $0x10a0] sm:$0xff]  ;;  %v14180_v30 = vrot.slane %v1695_v18, %v14104_v53 }
 0x124   :  { %v12688_v41 = vcombine.low %v587_v27, %v591_v28 }
 0x126   :  { %9806 = vmatpush1.bf16.msra.mxu0 %v12632_v34  ;;  %10339 = vmatpush1.bf16.msra.mxu1 %v12634_v35  ;;  %v12689_v34 = vcombine.high %v587_v27, %v591_v28  ;;  %v12691_v35 = vcombine.high %v588_v31, %v592_v63  ;;  %v640_v27 = vld [vmem:[#allocation2 + $0x1228] sm:$0xff]  ;;  %v12730_v31 = vcombine.low %v628_v16, %v632_v17 }
 0x127   :  { %9807 = vmatprep.subr.bf16.mxu0 %v12641_v36  ;;  %10340 = vmatprep.subr.bf16.mxu1 %v12643_v37  ;;  %v595_v36 = vld [vmem:[#allocation2 + $0x10c0] sm:$0xff] }
 0x128   :  { %v599_v37 = vld [vmem:[#allocation2 + $0x10e0] sm:$0xff] }
 0x129   :  { %v12696_v51 = vcombine.low %v595_v36, %v599_v37 }
 0x12a   :  { %9808 = vmatpush1.bf16.msra.mxu0 %v12640_v43  ;;  %10341 = vmatpush1.bf16.msra.mxu1 %v12642_v45  ;;  %v12697_v43 = vcombine.high %v595_v36, %v599_v37  ;;  %v12699_v45 = vcombine.high %v596_v39, %v600_v40  ;;  %v648_v36 = vld [vmem:[#allocation2 + $0x1268] sm:$0xff] }
 0x12b   :  { %9809 = vmatprep.subr.bf16.mxu0 %v12649_v46  ;;  %10342 = vmatprep.subr.bf16.mxu1 %v12651_v47  ;;  %v603_v46 = vld [vmem:[#allocation2 + $0x1100] sm:$0xff] }
 0x12c   :  { %v607_v47 = vld [vmem:[#allocation2 + $0x1120] sm:$0xff] }
 0x12d   :  { %v12704_v62 = vcombine.low %v603_v46, %v607_v47 }
 0x12e   :  { %9810 = vmatpush1.bf16.msra.mxu0 %v12648_v54  ;;  %10343 = vmatpush1.bf16.msra.mxu1 %v12650_v55  ;;  %v12705_v54 = vcombine.high %v603_v46, %v607_v47  ;;  %v12707_v55 = vcombine.high %v604_v49, %v608_v50  ;;  %v656_v46 = vld [vmem:[#allocation2 + $0x12a8] sm:$0xff] }
 0x12f   :  { %9811 = vmatprep.subr.bf16.mxu0 %v12657_v56  ;;  %10344 = vmatprep.subr.bf16.mxu1 %v12659_v57  ;;  %v611_v56 = vld [vmem:[#allocation2 + $0x1140] sm:$0xff] }
 0x130   :  { %v615_v57 = vld [vmem:[#allocation2 + $0x1160] sm:$0xff] }
 0x131   :  { %v12712_v10 = vcombine.low %v611_v56, %v615_v57 }
 0x132   :  { %9812 = vmatpush1.bf16.msra.mxu0 %v12656_v2  ;;  %10345 = vmatpush1.bf16.msra.mxu1 %v12658_v3  ;;  %v12713_v2 = vcombine.high %v611_v56, %v615_v57  ;;  %v12715_v3 = vcombine.high %v612_v60, %v616_v61  ;;  %v664_v56 = vld [vmem:[#allocation2 + $0x12e8] sm:$0xff] }
 0x133   :  { %9813 = vmatprep.subr.bf16.mxu0 %v12665_v4  ;;  %10346 = vmatprep.subr.bf16.mxu1 %v12667_v29  ;;  %v619_v4 = vld [vmem:[#allocation2 + $0x1180] sm:$0xff] }
 0x134   :  { %v623_v29 = vld [vmem:[#allocation2 + $0x11a0] sm:$0xff] }
 0x135   :  { %v12720_v18 = vcombine.low %v619_v4, %v623_v29 }
 0x136   :  { %9814 = vmatpush1.bf16.msra.mxu0 %v12664_v12  ;;  %10347 = vmatpush1.bf16.msra.mxu1 %v12666_v13  ;;  %v12721_v12 = vcombine.high %v619_v4, %v623_v29  ;;  %v12723_v13 = vcombine.high %v620_v6, %v624_v7  ;;  %v672_v4 = vld [vmem:[#allocation2 + $0x1328] sm:$0xff] }
 0x137   :  { %9824 = vmatprep.subr.bf16.mxu0 %v12673_v14  ;;  %10357 = vmatprep.subr.bf16.mxu1 %v12675_v15  ;;  %v627_v14 = vld [vmem:[#allocation2 + $0x11c0] sm:$0xff] }
 0x138   :  { %v631_v15 = vld [vmem:[#allocation2 + $0x11e0] sm:$0xff] }
 0x139   :  { %9816 = vmatmul.mubr.bf16.vlgmr.msra.gmra.mrb[0].mxu0 %v14177_v19  ;;  %10349 = vmatmul.mubr.bf16.vlgmr.msra.gmra.mrb[0].mxu1 %v14177_v19  ;;  %v12729_v21 = vcombine.high %v627_v14, %v631_v15  ;;  %v12728_v28 = vcombine.low %v627_v14, %v631_v15  ;;  %v680_v14 = vld [vmem:[#allocation2 + $0x1368] sm:$0xff] }
 0x13a   :  { %9825 = vmatpush1.bf16.msra.mxu0 %v12672_v22  ;;  %10358 = vmatpush1.bf16.msra.mxu1 %v12674_v24  ;;  %v12731_v22 = vcombine.high %v628_v16, %v632_v17  ;;  %v635_v24 = vld [vmem:[#allocation2 + $0x1200] sm:$0xff] }
 0x13b   :  { %9826 = vmatprep.subr.bf16.mxu0 %v12681_v25  ;;  %10359 = vmatprep.subr.bf16.mxu1 %v12683_v26  ;;  %v639_v25 = vld [vmem:[#allocation2 + $0x1220] sm:$0xff]  ;;  %v636_v26 = vld [vmem:[#allocation2 + $0x1208] sm:$0xff] }
 0x13c   :  { %9856 = vmatprep.mubr.bf16.mxu0 %v14180_v30  ;;  %10389 = vmatprep.mubr.bf16.mxu1 %v14180_v30  ;;  %v12737_v63 = vcombine.high %v635_v24, %v639_v25  ;;  %v12736_v37 = vcombine.low %v635_v24, %v639_v25  ;;  %v12738_v39 = vcombine.low %v636_v26, %v640_v27  ;;  %v688_v24 = vld [vmem:[#allocation2 + $0x13a8] sm:$0xff] }
 0x13e   :  { %9827 = vmatpush1.bf16.msra.mxu0 %v12680_v59  ;;  %10360 = vmatpush1.bf16.msra.mxu1 %v12682_v33  ;;  %v12739_v59 = vcombine.high %v636_v26, %v640_v27  ;;  %v643_v33 = vld [vmem:[#allocation2 + $0x1240] sm:$0xff] }
 0x13f   :  { %9828 = vmatprep.subr.bf16.mxu0 %v12689_v34  ;;  %10361 = vmatprep.subr.bf16.mxu1 %v12691_v35  ;;  %v647_v34 = vld [vmem:[#allocation2 + $0x1260] sm:$0xff]  ;;  %v644_v35 = vld [vmem:[#allocation2 + $0x1248] sm:$0xff] }
 0x140   :  { %v12745_v40 = vcombine.high %v643_v33, %v647_v34  ;;  %v12744_v47 = vcombine.low %v643_v33, %v647_v34  ;;  %v12746_v49 = vcombine.low %v644_v35, %v648_v36  ;;  %v696_v33 = vld [vmem:[#allocation2 + $0x13e8] sm:$0xff] }
 0x142   :  { %9829 = vmatpush1.bf16.msra.mxu0 %v12688_v41  ;;  %10362 = vmatpush1.bf16.msra.mxu1 %v12690_v42  ;;  %v12747_v41 = vcombine.high %v644_v35, %v648_v36  ;;  %v651_v42 = vld [vmem:[#allocation2 + $0x1280] sm:$0xff] }
 0x143   :  { %9830 = vmatprep.subr.bf16.mxu0 %v12697_v43  ;;  %10363 = vmatprep.subr.bf16.mxu1 %v12699_v45  ;;  %v655_v43 = vld [vmem:[#allocation2 + $0x12a0] sm:$0xff]  ;;  %v652_v45 = vld [vmem:[#allocation2 + $0x1288] sm:$0xff] }
 0x144   :  { %v12753_v50 = vcombine.high %v651_v42, %v655_v43  ;;  %v12752_v57 = vcombine.low %v651_v42, %v655_v43  ;;  %v12754_v60 = vcombine.low %v652_v45, %v656_v46  ;;  %v704_v42 = vld [vmem:[#allocation2 + $0x1428] sm:$0xff] }
 0x146   :  { %9831 = vmatpush1.bf16.msra.mxu0 %v12696_v51  ;;  %10364 = vmatpush1.bf16.msra.mxu1 %v12698_v52  ;;  %v12755_v51 = vcombine.high %v652_v45, %v656_v46  ;;  %v659_v52 = vld [vmem:[#allocation2 + $0x12c0] sm:$0xff] }
 0x147   :  { %9832 = vmatprep.subr.bf16.mxu0 %v12705_v54  ;;  %10365 = vmatprep.subr.bf16.mxu1 %v12707_v55  ;;  %v663_v54 = vld [vmem:[#allocation2 + $0x12e0] sm:$0xff]  ;;  %v660_v55 = vld [vmem:[#allocation2 + $0x12c8] sm:$0xff] }
 0x148   :  { %v12761_v61 = vcombine.high %v659_v52, %v663_v54  ;;  %v12760_v29 = vcombine.low %v659_v52, %v663_v54  ;;  %v12762_v6 = vcombine.low %v660_v55, %v664_v56  ;;  %v708_v52 = vld [vmem:[#allocation2 + $0x1448] sm:$0xff] }
 0x149   :  { %v712_v54 = vld [vmem:[#allocation2 + $0x1468] sm:$0xff] }
 0x14a   :  { %9833 = vmatpush1.bf16.msra.mxu0 %v12704_v62  ;;  %10366 = vmatpush1.bf16.msra.mxu1 %v12706_v0  ;;  %v12763_v62 = vcombine.high %v660_v55, %v664_v56  ;;  %v667_v0 = vld [vmem:[#allocation2 + $0x1300] sm:$0xff] }
 0x14b   :  { %9834 = vmatprep.subr.bf16.mxu0 %v12713_v2  ;;  %10367 = vmatprep.subr.bf16.mxu1 %v12715_v3  ;;  %v671_v2 = vld [vmem:[#allocation2 + $0x1320] sm:$0xff]  ;;  %v668_v3 = vld [vmem:[#allocation2 + $0x1308] sm:$0xff] }
 0x14c   :  { %v12769_v7 = vcombine.high %v667_v0, %v671_v2  ;;  %v12768_v15 = vcombine.low %v667_v0, %v671_v2  ;;  %v12770_v16 = vcombine.low %v668_v3, %v672_v4  ;;  %v14192_v0 = vcombine.high %v14180_v30, %v14180_v30  ;;  %v720_v2 = vld [vmem:[#allocation2 + $0x14a8] sm:$0xff] }
 0x14e   :  { %9835 = vmatpush1.bf16.msra.mxu0 %v12712_v10  ;;  %10368 = vmatpush1.bf16.msra.mxu1 %v12714_v11  ;;  %v12771_v10 = vcombine.high %v668_v3, %v672_v4  ;;  %v675_v11 = vld [vmem:[#allocation2 + $0x1340] sm:$0xff]  ;;  %v12810_v4 = vcombine.low %v708_v52, %v712_v54 }
 0x14f   :  { %9836 = vmatprep.subr.bf16.mxu0 %v12721_v12  ;;  %10369 = vmatprep.subr.bf16.mxu1 %v12723_v13  ;;  %v679_v12 = vld [vmem:[#allocation2 + $0x1360] sm:$0xff]  ;;  %v676_v13 = vld [vmem:[#allocation2 + $0x1348] sm:$0xff] }
 0x150   :  { %v12777_v17 = vcombine.high %v675_v11, %v679_v12  ;;  %v12776_v25 = vcombine.low %v675_v11, %v679_v12  ;;  %v12778_v26 = vcombine.low %v676_v13, %v680_v14  ;;  %v724_v11 = vld [vmem:[#allocation2 + $0x14c8] sm:$0xff] }
 0x151   :  { %v728_v12 = vld [vmem:[#allocation2 + $0x14e8] sm:$0xff] }
 0x152   :  { %9837 = vmatpush1.bf16.msra.mxu0 %v12720_v18  ;;  %10370 = vmatpush1.bf16.msra.mxu1 %v12722_v20  ;;  %v12779_v18 = vcombine.high %v676_v13, %v680_v14  ;;  %v683_v20 = vld [vmem:[#allocation2 + $0x1380] sm:$0xff] }
 0x153   :  { %9838 = vmatprep.subr.bf16.mxu0 %v12729_v21  ;;  %10371 = vmatprep.subr.bf16.mxu1 %v12731_v22  ;;  %v687_v21 = vld [vmem:[#allocation2 + $0x13a0] sm:$0xff]  ;;  %v684_v22 = vld [vmem:[#allocation2 + $0x1388] sm:$0xff] }
 0x154   :  { %v12785_v27 = vcombine.high %v683_v20, %v687_v21  ;;  %v12784_v34 = vcombine.low %v683_v20, %v687_v21  ;;  %v12786_v35 = vcombine.low %v684_v22, %v688_v24  ;;  %v732_v20 = vld [vmem:[#allocation2 + $0x1508] sm:$0xff] }
 0x155   :  { %v736_v21 = vld [vmem:[#allocation2 + $0x1528] sm:$0xff] }
 0x156   :  { %9839 = vmatpush1.bf16.msra.mxu0 %v12728_v28  ;;  %10372 = vmatpush1.bf16.msra.mxu1 %v12730_v31  ;;  %v12787_v28 = vcombine.high %v684_v22, %v688_v24  ;;  %v691_v31 = vld [vmem:[#allocation2 + $0x13c0] sm:$0xff]  ;;  %v12826_v24 = vcombine.low %v724_v11, %v728_v12 }
 0x157   :  { %9840 = vmatprep.subr.bf16.mxu0 %v12737_v63  ;;  %10373 = vmatprep.subr.bf16.mxu1 %v12739_v59  ;;  %v695_v63 = vld [vmem:[#allocation2 + $0x13e0] sm:$0xff]  ;;  %v692_v59 = vld [vmem:[#allocation2 + $0x13c8] sm:$0xff] }
 0x158   :  { %v12793_v36 = vcombine.high %v691_v31, %v695_v63  ;;  %v12792_v43 = vcombine.low %v691_v31, %v695_v63  ;;  %v12794_v45 = vcombine.low %v692_v59, %v696_v33  ;;  %v740_v31 = vld [vmem:[#allocation2 + $0x1548] sm:$0xff] }
 0x159   :  { %v744_v63 = vld [vmem:[#allocation2 + $0x1568] sm:$0xff] }
 0x15a   :  { %9841 = vmatpush1.bf16.msra.mxu0 %v12736_v37  ;;  %10374 = vmatpush1.bf16.msra.mxu1 %v12738_v39  ;;  %v12795_v37 = vcombine.high %v692_v59, %v696_v33  ;;  %v699_v39 = vld [vmem:[#allocation2 + $0x1400] sm:$0xff]  ;;  %v12834_v33 = vcombine.low %v732_v20, %v736_v21 }
 0x15b   :  { %9842 = vmatprep.subr.bf16.mxu0 %v12745_v40  ;;  %10375 = vmatprep.subr.bf16.mxu1 %v12747_v41  ;;  %v703_v40 = vld [vmem:[#allocation2 + $0x1420] sm:$0xff]  ;;  %v700_v41 = vld [vmem:[#allocation2 + $0x1408] sm:$0xff] }
 0x15c   :  { %v12801_v46 = vcombine.high %v699_v39, %v703_v40  ;;  %v12800_v55 = vcombine.low %v699_v39, %v703_v40  ;;  %v12802_v56 = vcombine.low %v700_v41, %v704_v42  ;;  %v748_v39 = vld [vmem:[#allocation2 + $0x1588] sm:$0xff] }
 0x15d   :  { %v752_v40 = vld [vmem:[#allocation2 + $0x15a8] sm:$0xff] }
 0x15e   :  { %9843 = vmatpush1.bf16.msra.mxu0 %v12744_v47  ;;  %10376 = vmatpush1.bf16.msra.mxu1 %v12746_v49  ;;  %v12803_v47 = vcombine.high %v700_v41, %v704_v42  ;;  %v707_v49 = vld [vmem:[#allocation2 + $0x1440] sm:$0xff]  ;;  %v12842_v42 = vcombine.low %v740_v31, %v744_v63 }
 0x15f   :  { %9844 = vmatprep.subr.bf16.mxu0 %v12753_v50  ;;  %10377 = vmatprep.subr.bf16.mxu1 %v12755_v51  ;;  %v711_v50 = vld [vmem:[#allocation2 + $0x1460] sm:$0xff]  ;;  %v14188_v51 = vrot.slane %v14171_v8, %v14104_v53  ;;  %v716_v8 = vld [vmem:[#allocation2 + $0x1488] sm:$0xff] }
 0x160   :  { %v12808_v3 = vcombine.low %v707_v49, %v711_v50  ;;  %v12818_v14 = vcombine.low %v716_v8, %v720_v2 }
 0x162   :  { %9845 = vmatpush1.bf16.msra.mxu0 %v12752_v57  ;;  %10378 = vmatpush1.bf16.msra.mxu1 %v12754_v60  ;;  %v12809_v57 = vcombine.high %v707_v49, %v711_v50  ;;  %v12811_v60 = vcombine.high %v708_v52, %v712_v54  ;;  %v756_v49 = vld [vmem:[#allocation2 + $0x15c8] sm:$0xff]  ;;  %v12850_v54 = vcombine.low %v748_v39, %v752_v40 }
 0x163   :  { %9846 = vmatprep.subr.bf16.mxu0 %v12761_v61  ;;  %10379 = vmatprep.subr.bf16.mxu1 %v12763_v62  ;;  %v715_v61 = vld [vmem:[#allocation2 + $0x1480] sm:$0xff]  ;;  %v760_v50 = vld [vmem:[#allocation2 + $0x15e8] sm:$0xff] }
 0x164   :  { %v719_v62 = vld [vmem:[#allocation2 + $0x14a0] sm:$0xff] }
 0x165   :  { %v12816_v13 = vcombine.low %v715_v61, %v719_v62 }
 0x166   :  { %9847 = vmatpush1.bf16.msra.mxu0 %v12760_v29  ;;  %10380 = vmatpush1.bf16.msra.mxu1 %v12762_v6  ;;  %v12817_v29 = vcombine.high %v715_v61, %v719_v62  ;;  %v12819_v6 = vcombine.high %v716_v8, %v720_v2  ;;  %v764_v61 = vld [vmem:[#allocation2 + $0x1608] sm:$0xff]  ;;  %v12858_v2 = vcombine.low %v756_v49, %v760_v50 }
 0x167   :  { %9848 = vmatprep.subr.bf16.mxu0 %v12769_v7  ;;  %10381 = vmatprep.subr.bf16.mxu1 %v12771_v10  ;;  %v723_v7 = vld [vmem:[#allocation2 + $0x14c0] sm:$0xff]  ;;  %v768_v62 = vld [vmem:[#allocation2 + $0x1628] sm:$0xff] }
 0x168   :  { %v727_v10 = vld [vmem:[#allocation2 + $0x14e0] sm:$0xff] }
 0x169   :  { %v12824_v22 = vcombine.low %v723_v7, %v727_v10 }
 0x16a   :  { %9849 = vmatpush1.bf16.msra.mxu0 %v12768_v15  ;;  %10382 = vmatpush1.bf16.msra.mxu1 %v12770_v16  ;;  %v12825_v15 = vcombine.high %v723_v7, %v727_v10  ;;  %v12827_v16 = vcombine.high %v724_v11, %v728_v12  ;;  %v772_v7 = vld [vmem:[#allocation2 + $0x1648] sm:$0xff]  ;;  %v12866_v12 = vcombine.low %v764_v61, %v768_v62 }
 0x16b   :  { %9850 = vmatprep.subr.bf16.mxu0 %v12777_v17  ;;  %10383 = vmatprep.subr.bf16.mxu1 %v12779_v18  ;;  %v731_v17 = vld [vmem:[#allocation2 + $0x1500] sm:$0xff]  ;;  %v776_v10 = vld [vmem:[#allocation2 + $0x1668] sm:$0xff] }
 0x16c   :  { %v735_v18 = vld [vmem:[#allocation2 + $0x1520] sm:$0xff] }
 0x16d   :  { %v12832_v59 = vcombine.low %v731_v17, %v735_v18 }
 0x16e   :  { %9851 = vmatpush1.bf16.msra.mxu0 %v12776_v25  ;;  %10384 = vmatpush1.bf16.msra.mxu1 %v12778_v26  ;;  %v12833_v25 = vcombine.high %v731_v17, %v735_v18  ;;  %v12835_v26 = vcombine.high %v732_v20, %v736_v21  ;;  %v780_v17 = vld [vmem:[#allocation2 + $0x1688] sm:$0xff]  ;;  %v12874_v21 = vcombine.low %v772_v7, %v776_v10 }
 0x16f   :  { %9852 = vmatprep.subr.bf16.mxu0 %v12785_v27  ;;  %10385 = vmatprep.subr.bf16.mxu1 %v12787_v28  ;;  %v739_v27 = vld [vmem:[#allocation2 + $0x1540] sm:$0xff]  ;;  %v784_v18 = vld [vmem:[#allocation2 + $0x16a8] sm:$0xff] }
 0x170   :  { %v743_v28 = vld [vmem:[#allocation2 + $0x1560] sm:$0xff] }
 0x171   :  { %v12840_v41 = vcombine.low %v739_v27, %v743_v28 }
 0x172   :  { %9853 = vmatpush1.bf16.msra.mxu0 %v12784_v34  ;;  %10386 = vmatpush1.bf16.msra.mxu1 %v12786_v35  ;;  %v12841_v34 = vcombine.high %v739_v27, %v743_v28  ;;  %v12843_v35 = vcombine.high %v740_v31, %v744_v63  ;;  %v788_v27 = vld [vmem:[#allocation2 + $0x16c8] sm:$0xff]  ;;  %v12882_v63 = vcombine.low %v780_v17, %v784_v18 }
 0x173   :  { %9854 = vmatprep.subr.bf16.mxu0 %v12793_v36  ;;  %10387 = vmatprep.subr.bf16.mxu1 %v12795_v37  ;;  %v747_v36 = vld [vmem:[#allocation2 + $0x1580] sm:$0xff]  ;;  %v792_v28 = vld [vmem:[#allocation2 + $0x16e8] sm:$0xff] }
 0x174   :  { %v751_v37 = vld [vmem:[#allocation2 + $0x15a0] sm:$0xff] }
 0x175   :  { %v12848_v52 = vcombine.low %v747_v36, %v751_v37 }
 0x176   :  { %9855 = vmatpush1.bf16.msra.mxu0 %v12792_v43  ;;  %10388 = vmatpush1.bf16.msra.mxu1 %v12794_v45  ;;  %v12849_v43 = vcombine.high %v747_v36, %v751_v37  ;;  %v12851_v45 = vcombine.high %v748_v39, %v752_v40  ;;  %v796_v36 = vld [vmem:[#allocation2 + $0x1708] sm:$0xff]  ;;  %v12890_v40 = vcombine.low %v788_v27, %v792_v28 }
 0x177   :  { %9865 = vmatprep.subr.bf16.mxu0 %v12801_v46  ;;  %10398 = vmatprep.subr.bf16.mxu1 %v12803_v47  ;;  %v755_v46 = vld [vmem:[#allocation2 + $0x15c0] sm:$0xff]  ;;  %v800_v37 = vld [vmem:[#allocation2 + $0x1728] sm:$0xff] }
 0x178   :  { %v759_v47 = vld [vmem:[#allocation2 + $0x15e0] sm:$0xff] }
 0x179   :  { %9857 = vmatmul.mubr.bf16.vlgmr.msra.gmra.mrb[0].mxu0 %v14188_v51  ;;  %10390 = vmatmul.mubr.bf16.vlgmr.msra.gmra.mrb[0].mxu1 %v14188_v51  ;;  %v12856_v8 = vcombine.low %v755_v46, %v759_v47 }
 0x17a   :  { %9866 = vmatpush1.bf16.msra.mxu0 %v12800_v55  ;;  %10399 = vmatpush1.bf16.msra.mxu1 %v12802_v56  ;;  %v12857_v55 = vcombine.high %v755_v46, %v759_v47  ;;  %v12859_v56 = vcombine.high %v756_v49, %v760_v50  ;;  %v804_v46 = vld [vmem:[#allocation2 + $0x1748] sm:$0xff]  ;;  %v12898_v50 = vcombine.low %v796_v36, %v800_v37 }
 0x17b   :  { %9867 = vmatprep.subr.bf16.mxu0 %v12809_v57  ;;  %10400 = vmatprep.subr.bf16.mxu1 %v12811_v60  ;;  %v763_v57 = vld [vmem:[#allocation2 + $0x1600] sm:$0xff]  ;;  %v808_v47 = vld [vmem:[#allocation2 + $0x1768] sm:$0xff] }
 0x17c   :  { %9897 = vmatprep.mubr.bf16.mxu0 %v14192_v0  ;;  %10430 = vmatprep.mubr.bf16.mxu1 %v14192_v0  ;;  %v767_v60 = vld [vmem:[#allocation2 + $0x1620] sm:$0xff] }
 0x17d   :  { %v12864_v11 = vcombine.low %v763_v57, %v767_v60 }
 0x17e   :  { %9868 = vmatpush1.bf16.msra.mxu0 %v12808_v3  ;;  %10401 = vmatpush1.bf16.msra.mxu1 %v12810_v4  ;;  %v12865_v3 = vcombine.high %v763_v57, %v767_v60  ;;  %v12867_v4 = vcombine.high %v764_v61, %v768_v62  ;;  %v812_v57 = vld [vmem:[#allocation2 + $0x1788] sm:$0xff]  ;;  %v12906_v62 = vcombine.low %v804_v46, %v808_v47 }
 0x17f   :  { %9869 = vmatprep.subr.bf16.mxu0 %v12817_v29  ;;  %10402 = vmatprep.subr.bf16.mxu1 %v12819_v6  ;;  %v771_v29 = vld [vmem:[#allocation2 + $0x1640] sm:$0xff]  ;;  %v816_v60 = vld [vmem:[#allocation2 + $0x17a8] sm:$0xff] }
 0x180   :  { %v775_v6 = vld [vmem:[#allocation2 + $0x1660] sm:$0xff] }
 0x181   :  { %v12872_v20 = vcombine.low %v771_v29, %v775_v6 }
 0x182   :  { %9870 = vmatpush1.bf16.msra.mxu0 %v12816_v13  ;;  %10403 = vmatpush1.bf16.msra.mxu1 %v12818_v14  ;;  %v12873_v13 = vcombine.high %v771_v29, %v775_v6  ;;  %v12875_v14 = vcombine.high %v772_v7, %v776_v10  ;;  %v1680_v29 = vcombine.high %v14167_v1, %v14167_v1  ;;  %v820_v6 = vld [vmem:[#allocation2 + $0x17c8] sm:$0xff] }
 0x183   :  { %9871 = vmatprep.subr.bf16.mxu0 %v12825_v15  ;;  %10404 = vmatprep.subr.bf16.mxu1 %v12827_v16  ;;  %v779_v15 = vld [vmem:[#allocation2 + $0x1680] sm:$0xff]  ;;  %v824_v7 = vld [vmem:[#allocation2 + $0x17e8] sm:$0xff] }
 0x184   :  { %v783_v16 = vld [vmem:[#allocation2 + $0x16a0] sm:$0xff]  ;;  %v12922_v1 = vcombine.low %v820_v6, %v824_v7 }
 0x185   :  { %v12880_v31 = vcombine.low %v779_v15, %v783_v16 }
 0x186   :  { %9872 = vmatpush1.bf16.msra.mxu0 %v12824_v22  ;;  %10405 = vmatpush1.bf16.msra.mxu1 %v12826_v24  ;;  %v12881_v22 = vcombine.high %v779_v15, %v783_v16  ;;  %v12883_v24 = vcombine.high %v780_v17, %v784_v18  ;;  %v831_v15 = vld [vmem:[#allocation2 + $0x1820] sm:$0xff]  ;;  %v14201_v16 = vrot.slane %v1680_v29, %v14104_v53  ;;  %v828_v17 = vld [vmem:[#allocation2 + $0x1808] sm:$0xff] }
 0x187   :  { %9873 = vmatprep.subr.bf16.mxu0 %v12833_v25  ;;  %10406 = vmatprep.subr.bf16.mxu1 %v12835_v26  ;;  %v787_v25 = vld [vmem:[#allocation2 + $0x16c0] sm:$0xff]  ;;  %v832_v18 = vld [vmem:[#allocation2 + $0x1828] sm:$0xff] }
 0x188   :  { %v791_v26 = vld [vmem:[#allocation2 + $0x16e0] sm:$0xff] }
 0x189   :  { %v12888_v39 = vcombine.low %v787_v25, %v791_v26  ;;  %v867_v29 = vld [vmem:[#allocation2 + $0x1940] sm:$0xff] }
 0x18a   :  { %9874 = vmatpush1.bf16.msra.mxu0 %v12832_v59  ;;  %10407 = vmatpush1.bf16.msra.mxu1 %v12834_v33  ;;  %v12889_v59 = vcombine.high %v787_v25, %v791_v26  ;;  %v12891_v33 = vcombine.high %v788_v27, %v792_v28  ;;  %v839_v25 = vld [vmem:[#allocation2 + $0x1860] sm:$0xff]  ;;  %v1696_v26 = vcombine.high %v14201_v16, %v14201_v16  ;;  %v836_v28 = vld [vmem:[#allocation2 + $0x1848] sm:$0xff] }
 0x18b   :  { %9875 = vmatprep.subr.bf16.mxu0 %v12841_v34  ;;  %10408 = vmatprep.subr.bf16.mxu1 %v12843_v35  ;;  %v795_v34 = vld [vmem:[#allocation2 + $0x1700] sm:$0xff]  ;;  %v14207_v27 = vcombine.high %v14188_v51, %v14188_v51 }
 0x18c   :  { %v799_v35 = vld [vmem:[#allocation2 + $0x1720] sm:$0xff] }
 0x18d   :  { %v12896_v49 = vcombine.low %v795_v34, %v799_v35 }
 0x18e   :  { %9876 = vmatpush1.bf16.msra.mxu0 %v12840_v41  ;;  %10409 = vmatpush1.bf16.msra.mxu1 %v12842_v42  ;;  %v12897_v41 = vcombine.high %v795_v34, %v799_v35  ;;  %v12899_v42 = vcombine.high %v796_v36, %v800_v37  ;;  %v843_v35 = vld [vmem:[#allocation2 + $0x1880] sm:$0xff]  ;;  %v14210_v37 = vrot.slane %v1696_v26, %v14104_v53 }
 0x18f   :  { %9877 = vmatprep.subr.bf16.mxu0 %v12849_v43  ;;  %10410 = vmatprep.subr.bf16.mxu1 %v12851_v45  ;;  %v803_v43 = vld [vmem:[#allocation2 + $0x1740] sm:$0xff] }
 0x190   :  { %v807_v45 = vld [vmem:[#allocation2 + $0x1760] sm:$0xff] }
 0x191   :  { %v12904_v61 = vcombine.low %v803_v43, %v807_v45  ;;  %v847_v36 = vld [vmem:[#allocation2 + $0x18a0] sm:$0xff] }
 0x192   :  { %9878 = vmatpush1.bf16.msra.mxu0 %v12848_v52  ;;  %10411 = vmatpush1.bf16.msra.mxu1 %v12850_v54  ;;  %v12905_v52 = vcombine.high %v803_v43, %v807_v45  ;;  %v12907_v54 = vcombine.high %v804_v46, %v808_v47  ;;  %v12945_v43 = vcombine.high %v843_v35, %v847_v36  ;;  %v851_v46 = vld [vmem:[#allocation2 + $0x18c0] sm:$0xff] }
 0x193   :  { %9879 = vmatprep.subr.bf16.mxu0 %v12857_v55  ;;  %10412 = vmatprep.subr.bf16.mxu1 %v12859_v56  ;;  %v811_v55 = vld [vmem:[#allocation2 + $0x1780] sm:$0xff] }
 0x194   :  { %v815_v56 = vld [vmem:[#allocation2 + $0x17a0] sm:$0xff] }
 0x195   :  { %v12912_v10 = vcombine.low %v811_v55, %v815_v56  ;;  %v855_v47 = vld [vmem:[#allocation2 + $0x18e0] sm:$0xff] }
 0x196   :  { %9880 = vmatpush1.bf16.msra.mxu0 %v12856_v8  ;;  %10413 = vmatpush1.bf16.msra.mxu1 %v12858_v2  ;;  %v12913_v8 = vcombine.high %v811_v55, %v815_v56  ;;  %v12915_v2 = vcombine.high %v812_v57, %v816_v60  ;;  %v12953_v55 = vcombine.high %v851_v46, %v855_v47  ;;  %v887_v26 = vld [vmem:[#allocation2 + $0x19e0] sm:$0xff] }
 0x197   :  { %9881 = vmatprep.subr.bf16.mxu0 %v12865_v3  ;;  %10414 = vmatprep.subr.bf16.mxu1 %v12867_v4  ;;  %v819_v3 = vld [vmem:[#allocation2 + $0x17c0] sm:$0xff] }
 0x198   :  { %v823_v4 = vld [vmem:[#allocation2 + $0x17e0] sm:$0xff] }
 0x19a   :  { %9882 = vmatpush1.bf16.msra.mxu0 %v12864_v11  ;;  %10415 = vmatpush1.bf16.msra.mxu1 %v12866_v12  ;;  %v12914_v11 = vcombine.low %v812_v57, %v816_v60  ;;  %v12921_v12 = vcombine.high %v819_v3, %v823_v4  ;;  %v859_v57 = vld [vmem:[#allocation2 + $0x1900] sm:$0xff] }
 0x19b   :  { %9883 = vmatprep.subr.bf16.mxu0 %v12873_v13  ;;  %10416 = vmatprep.subr.bf16.mxu1 %v12875_v14  ;;  %v12923_v13 = vcombine.high %v820_v6, %v824_v7  ;;  %v827_v14 = vld [vmem:[#allocation2 + $0x1800] sm:$0xff]  ;;  %v868_v7 = vld [vmem:[#allocation2 + $0x1948] sm:$0xff] }
 0x19c   :  { %v863_v60 = vld [vmem:[#allocation2 + $0x1920] sm:$0xff] }
 0x19d   :  { %v871_v6 = vld [vmem:[#allocation2 + $0x1960] sm:$0xff] }
 0x19e   :  { %9884 = vmatpush1.bf16.msra.mxu0 %v12872_v20  ;;  %10417 = vmatpush1.bf16.msra.mxu1 %v12874_v21  ;;  %v12920_v20 = vcombine.low %v819_v3, %v823_v4  ;;  %v12929_v21 = vcombine.high %v827_v14, %v831_v15  ;;  %v12961_v3 = vcombine.high %v859_v57, %v863_v60 }
 0x19f   :  { %9885 = vmatprep.subr.bf16.mxu0 %v12881_v22  ;;  %10418 = vmatprep.subr.bf16.mxu1 %v12883_v24  ;;  %v12931_v22 = vcombine.high %v828_v17, %v832_v18  ;;  %v835_v24 = vld [vmem:[#allocation2 + $0x1840] sm:$0xff] }
 0x1a2   :  { %9886 = vmatpush1.bf16.msra.mxu0 %v12880_v31  ;;  %10419 = vmatpush1.bf16.msra.mxu1 %v12882_v63  ;;  %v840_v31 = vld [vmem:[#allocation2 + $0x1868] sm:$0xff]  ;;  %v12928_v63 = vcombine.low %v827_v14, %v831_v15  ;;  %v875_v15 = vld [vmem:[#allocation2 + $0x1980] sm:$0xff] }
 0x1a3   :  { %9887 = vmatprep.subr.bf16.mxu0 %v12889_v59  ;;  %10420 = vmatprep.subr.bf16.mxu1 %v12891_v33  ;;  %v12930_v59 = vcombine.low %v828_v17, %v832_v18  ;;  %v12937_v33 = vcombine.high %v835_v24, %v839_v25  ;;  %v12939_v34 = vcombine.high %v836_v28, %v840_v31  ;;  %v879_v17 = vld [vmem:[#allocation2 + $0x19a0] sm:$0xff]  ;;  %v876_v18 = vld [vmem:[#allocation2 + $0x1988] sm:$0xff] }
 0x1a6   :  { %9888 = vmatpush1.bf16.msra.mxu0 %v12888_v39  ;;  %10421 = vmatpush1.bf16.msra.mxu1 %v12890_v40  ;;  %v844_v39 = vld [vmem:[#allocation2 + $0x1888] sm:$0xff] }
 0x1a7   :  { %9889 = vmatprep.subr.bf16.mxu0 %v12897_v41  ;;  %10422 = vmatprep.subr.bf16.mxu1 %v12899_v42  ;;  %v848_v40 = vld [vmem:[#allocation2 + $0x18a8] sm:$0xff]  ;;  %v12936_v41 = vcombine.low %v835_v24, %v839_v25  ;;  %v12938_v42 = vcombine.low %v836_v28, %v840_v31  ;;  %v883_v25 = vld [vmem:[#allocation2 + $0x19c0] sm:$0xff] }
 0x1a8   :  { %v12947_v45 = vcombine.high %v844_v39, %v848_v40  ;;  %v884_v28 = vld [vmem:[#allocation2 + $0x19c8] sm:$0xff] }
 0x1a9   :  { %v888_v31 = vld [vmem:[#allocation2 + $0x19e8] sm:$0xff] }
 0x1aa   :  { %9890 = vmatpush1.bf16.msra.mxu0 %v12896_v49  ;;  %10423 = vmatpush1.bf16.msra.mxu1 %v12898_v50  ;;  %v852_v49 = vld [vmem:[#allocation2 + $0x18c8] sm:$0xff] }
 0x1ab   :  { %9891 = vmatprep.subr.bf16.mxu0 %v12905_v52  ;;  %10424 = vmatprep.subr.bf16.mxu1 %v12907_v54  ;;  %v856_v50 = vld [vmem:[#allocation2 + $0x18e8] sm:$0xff]  ;;  %v12944_v52 = vcombine.low %v843_v35, %v847_v36  ;;  %v12946_v54 = vcombine.low %v844_v39, %v848_v40  ;;  %v891_v35 = vld [vmem:[#allocation2 + $0x1a00] sm:$0xff] }
 0x1ac   :  { %v12955_v56 = vcombine.high %v852_v49, %v856_v50  ;;  %v895_v36 = vld [vmem:[#allocation2 + $0x1a20] sm:$0xff]  ;;  %v892_v39 = vld [vmem:[#allocation2 + $0x1a08] sm:$0xff] }
 0x1ad   :  { %v896_v40 = vld [vmem:[#allocation2 + $0x1a28] sm:$0xff] }
 0x1ae   :  { %9892 = vmatpush1.bf16.msra.mxu0 %v12904_v61  ;;  %10425 = vmatpush1.bf16.msra.mxu1 %v12906_v62  ;;  %v860_v61 = vld [vmem:[#allocation2 + $0x1908] sm:$0xff] }
 0x1af   :  { %9893 = vmatprep.subr.bf16.mxu0 %v12913_v8  ;;  %10426 = vmatprep.subr.bf16.mxu1 %v12915_v2  ;;  %v864_v62 = vld [vmem:[#allocation2 + $0x1928] sm:$0xff]  ;;  %v12952_v8 = vcombine.low %v851_v46, %v855_v47  ;;  %v12954_v2 = vcombine.low %v852_v49, %v856_v50  ;;  %v899_v46 = vld [vmem:[#allocation2 + $0x1a40] sm:$0xff] }
 0x1b0   :  { %v12963_v4 = vcombine.high %v860_v61, %v864_v62  ;;  %v903_v47 = vld [vmem:[#allocation2 + $0x1a60] sm:$0xff]  ;;  %v900_v49 = vld [vmem:[#allocation2 + $0x1a48] sm:$0xff] }
 0x1b1   :  { %v904_v50 = vld [vmem:[#allocation2 + $0x1a68] sm:$0xff] }
 0x1b2   :  { %9894 = vmatpush1.bf16.msra.mxu0 %v12912_v10  ;;  %10427 = vmatpush1.bf16.msra.mxu1 %v12914_v11  ;;  %v872_v10 = vld [vmem:[#allocation2 + $0x1968] sm:$0xff]  ;;  %v12960_v11 = vcombine.low %v859_v57, %v863_v60  ;;  %v907_v57 = vld [vmem:[#allocation2 + $0x1a80] sm:$0xff] }
 0x1b3   :  { %9895 = vmatprep.subr.bf16.mxu0 %v12921_v12  ;;  %10428 = vmatprep.subr.bf16.mxu1 %v12923_v13  ;;  %v12962_v12 = vcombine.low %v860_v61, %v864_v62  ;;  %v12969_v13 = vcombine.high %v867_v29, %v871_v6  ;;  %v12971_v14 = vcombine.high %v868_v7, %v872_v10  ;;  %v911_v60 = vld [vmem:[#allocation2 + $0x1aa0] sm:$0xff]  ;;  %v908_v61 = vld [vmem:[#allocation2 + $0x1a88] sm:$0xff] }
 0x1b4   :  { %v912_v62 = vld [vmem:[#allocation2 + $0x1aa8] sm:$0xff] }
 0x1b6   :  { %9896 = vmatpush1.bf16.msra.mxu0 %v12920_v20  ;;  %10429 = vmatpush1.bf16.msra.mxu1 %v12922_v1  ;;  %v880_v20 = vld [vmem:[#allocation2 + $0x19a8] sm:$0xff]  ;;  %v12968_v1 = vcombine.low %v867_v29, %v871_v6  ;;  %v915_v29 = vld [vmem:[#allocation2 + $0x1ac0] sm:$0xff] }
 0x1b7   :  { %9906 = vmatprep.subr.bf16.mxu0 %v12929_v21  ;;  %10439 = vmatprep.subr.bf16.mxu1 %v12931_v22  ;;  %v12970_v21 = vcombine.low %v868_v7, %v872_v10  ;;  %v12977_v22 = vcombine.high %v875_v15, %v879_v17  ;;  %v12979_v24 = vcombine.high %v876_v18, %v880_v20  ;;  %v919_v6 = vld [vmem:[#allocation2 + $0x1ae0] sm:$0xff]  ;;  %v916_v7 = vld [vmem:[#allocation2 + $0x1ac8] sm:$0xff] }
 0x1b8   :  { %v920_v10 = vld [vmem:[#allocation2 + $0x1ae8] sm:$0xff] }
 0x1b9   :  { %9898 = vmatmul.mubr.bf16.vlgmr.msra.gmra.mrb[0].mxu0 %v14207_v27  ;;  %10431 = vmatmul.mubr.bf16.vlgmr.msra.gmra.mrb[0].mxu1 %v14207_v27 }
 0x1ba   :  { %9907 = vmatpush1.bf16.msra.mxu0 %v12928_v63  ;;  %10440 = vmatpush1.bf16.msra.mxu1 %v12930_v59  ;;  %v12976_v63 = vcombine.low %v875_v15, %v879_v17  ;;  %v12978_v59 = vcombine.low %v876_v18, %v880_v20  ;;  %v923_v15 = vld [vmem:[#allocation2 + $0x1b00] sm:$0xff]  ;;  %v924_v18 = vld [vmem:[#allocation2 + $0x1b08] sm:$0xff] }
 0x1bb   :  { %9908 = vmatprep.subr.bf16.mxu0 %v12937_v33  ;;  %10441 = vmatprep.subr.bf16.mxu1 %v12939_v34  ;;  %v12985_v33 = vcombine.high %v883_v25, %v887_v26  ;;  %v12987_v34 = vcombine.high %v884_v28, %v888_v31  ;;  %v927_v17 = vld [vmem:[#allocation2 + $0x1b20] sm:$0xff]  ;;  %v928_v20 = vld [vmem:[#allocation2 + $0x1b28] sm:$0xff] }
 0x1bc   :  { %9938 = vmatprep.mubr.bf16.mxu0 %v14210_v37  ;;  %10471 = vmatprep.mubr.bf16.mxu1 %v14210_v37 }
 0x1be   :  { %9909 = vmatpush1.bf16.msra.mxu0 %v12936_v41  ;;  %10442 = vmatpush1.bf16.msra.mxu1 %v12938_v42  ;;  %v12984_v41 = vcombine.low %v883_v25, %v887_v26  ;;  %v12986_v42 = vcombine.low %v884_v28, %v888_v31  ;;  %v931_v25 = vld [vmem:[#allocation2 + $0x1b40] sm:$0xff]  ;;  %v932_v28 = vld [vmem:[#allocation2 + $0x1b48] sm:$0xff] }
 0x1bf   :  { %9910 = vmatprep.subr.bf16.mxu0 %v12945_v43  ;;  %10443 = vmatprep.subr.bf16.mxu1 %v12947_v45  ;;  %v12993_v43 = vcombine.high %v891_v35, %v895_v36  ;;  %v12995_v45 = vcombine.high %v892_v39, %v896_v40  ;;  %v935_v26 = vld [vmem:[#allocation2 + $0x1b60] sm:$0xff]  ;;  %v936_v31 = vld [vmem:[#allocation2 + $0x1b68] sm:$0xff] }
 0x1c2   :  { %9911 = vmatpush1.bf16.msra.mxu0 %v12944_v52  ;;  %10444 = vmatpush1.bf16.msra.mxu1 %v12946_v54  ;;  %v12992_v52 = vcombine.low %v891_v35, %v895_v36  ;;  %v12994_v54 = vcombine.low %v892_v39, %v896_v40  ;;  %v939_v35 = vld [vmem:[#allocation2 + $0x1b80] sm:$0xff]  ;;  %v940_v39 = vld [vmem:[#allocation2 + $0x1b88] sm:$0xff] }
 0x1c3   :  { %9912 = vmatprep.subr.bf16.mxu0 %v12953_v55  ;;  %10445 = vmatprep.subr.bf16.mxu1 %v12955_v56  ;;  %v13001_v55 = vcombine.high %v899_v46, %v903_v47  ;;  %v13003_v56 = vcombine.high %v900_v49, %v904_v50  ;;  %v943_v36 = vld [vmem:[#allocation2 + $0x1ba0] sm:$0xff]  ;;  %v944_v40 = vld [vmem:[#allocation2 + $0x1ba8] sm:$0xff] }
 0x1c6   :  { %9913 = vmatpush1.bf16.msra.mxu0 %v12952_v8  ;;  %10446 = vmatpush1.bf16.msra.mxu1 %v12954_v2  ;;  %v13000_v8 = vcombine.low %v899_v46, %v903_v47  ;;  %v13002_v2 = vcombine.low %v900_v49, %v904_v50  ;;  %v947_v46 = vld [vmem:[#allocation2 + $0x1bc0] sm:$0xff]  ;;  %v948_v49 = vld [vmem:[#allocation2 + $0x1bc8] sm:$0xff] }
 0x1c7   :  { %9914 = vmatprep.subr.bf16.mxu0 %v12961_v3  ;;  %10447 = vmatprep.subr.bf16.mxu1 %v12963_v4  ;;  %v13009_v3 = vcombine.high %v907_v57, %v911_v60  ;;  %v13011_v4 = vcombine.high %v908_v61, %v912_v62  ;;  %v951_v47 = vld [vmem:[#allocation2 + $0x1be0] sm:$0xff]  ;;  %v952_v50 = vld [vmem:[#allocation2 + $0x1be8] sm:$0xff] }
 0x1ca   :  { %9915 = vmatpush1.bf16.msra.mxu0 %v12960_v11  ;;  %10448 = vmatpush1.bf16.msra.mxu1 %v12962_v12  ;;  %v13008_v11 = vcombine.low %v907_v57, %v911_v60  ;;  %v13010_v12 = vcombine.low %v908_v61, %v912_v62  ;;  %v955_v57 = vld [vmem:[#allocation2 + $0x1c00] sm:$0xff]  ;;  %v956_v61 = vld [vmem:[#allocation2 + $0x1c08] sm:$0xff] }
 0x1cb   :  { %9916 = vmatprep.subr.bf16.mxu0 %v12969_v13  ;;  %10449 = vmatprep.subr.bf16.mxu1 %v12971_v14  ;;  %v13017_v13 = vcombine.high %v915_v29, %v919_v6  ;;  %v13019_v14 = vcombine.high %v916_v7, %v920_v10  ;;  %v959_v60 = vld [vmem:[#allocation2 + $0x1c20] sm:$0xff]  ;;  %v960_v62 = vld [vmem:[#allocation2 + $0x1c28] sm:$0xff] }
 0x1ce   :  { %9917 = vmatpush1.bf16.msra.mxu0 %v12968_v1  ;;  %10450 = vmatpush1.bf16.msra.mxu1 %v12970_v21  ;;  %v13016_v1 = vcombine.low %v915_v29, %v919_v6  ;;  %v13018_v21 = vcombine.low %v916_v7, %v920_v10  ;;  %v963_v29 = vld [vmem:[#allocation2 + $0x1c40] sm:$0xff]  ;;  %v14218_v7 = vrot.slane %v14201_v16, %v14104_v53  ;;  %v964_v10 = vld [vmem:[#allocation2 + $0x1c48] sm:$0xff] }
 0x1cf   :  { %9918 = vmatprep.subr.bf16.mxu0 %v12977_v22  ;;  %10451 = vmatprep.subr.bf16.mxu1 %v12979_v24  ;;  %v13025_v22 = vcombine.high %v923_v15, %v927_v17  ;;  %v13027_v24 = vcombine.high %v924_v18, %v928_v20  ;;  %v967_v6 = vld [vmem:[#allocation2 + $0x1c60] sm:$0xff]  ;;  %v972_v16 = vld [vmem:[#allocation2 + $0x1c88] sm:$0xff] }
 0x1d2   :  { %9919 = vmatpush1.bf16.msra.mxu0 %v12976_v63  ;;  %10452 = vmatpush1.bf16.msra.mxu1 %v12978_v59  ;;  %v13024_v63 = vcombine.low %v923_v15, %v927_v17  ;;  %v13026_v59 = vcombine.low %v924_v18, %v928_v20  ;;  %v971_v17 = vld [vmem:[#allocation2 + $0x1c80] sm:$0xff]  ;;  %v14222_v20 = vcombine.high %v14210_v37, %v14210_v37 }
 0x1d3   :  { %9920 = vmatprep.subr.bf16.mxu0 %v12985_v33  ;;  %10453 = vmatprep.subr.bf16.mxu1 %v12987_v34  ;;  %v13033_v33 = vcombine.high %v931_v25, %v935_v26  ;;  %v13035_v34 = vcombine.high %v932_v28, %v936_v31  ;;  %v975_v18 = vld [vmem:[#allocation2 + $0x1ca0] sm:$0xff] }
 0x1d6   :  { %9921 = vmatpush1.bf16.msra.mxu0 %v12984_v41  ;;  %10454 = vmatpush1.bf16.msra.mxu1 %v12986_v42  ;;  %v13032_v41 = vcombine.low %v931_v25, %v935_v26  ;;  %v13034_v42 = vcombine.low %v932_v28, %v936_v31  ;;  %v979_v26 = vld [vmem:[#allocation2 + $0x1cc0] sm:$0xff]  ;;  %v980_v31 = vld [vmem:[#allocation2 + $0x1cc8] sm:$0xff] }
 0x1d7   :  { %9922 = vmatprep.subr.bf16.mxu0 %v12993_v43  ;;  %10455 = vmatprep.subr.bf16.mxu1 %v12995_v45  ;;  %v13041_v43 = vcombine.high %v939_v35, %v943_v36  ;;  %v13043_v45 = vcombine.high %v940_v39, %v944_v40  ;;  %v983_v28 = vld [vmem:[#allocation2 + $0x1ce0] sm:$0xff] }
 0x1da   :  { %9923 = vmatpush1.bf16.msra.mxu0 %v12992_v52  ;;  %10456 = vmatpush1.bf16.msra.mxu1 %v12994_v54  ;;  %v13040_v52 = vcombine.low %v939_v35, %v943_v36  ;;  %v13042_v54 = vcombine.low %v940_v39, %v944_v40  ;;  %v987_v36 = vld [vmem:[#allocation2 + $0x1d00] sm:$0xff]  ;;  %v988_v40 = vld [vmem:[#allocation2 + $0x1d08] sm:$0xff] }
 0x1db   :  { %9924 = vmatprep.subr.bf16.mxu0 %v13001_v55  ;;  %10457 = vmatprep.subr.bf16.mxu1 %v13003_v56  ;;  %v13049_v55 = vcombine.high %v947_v46, %v951_v47  ;;  %v13051_v56 = vcombine.high %v948_v49, %v952_v50  ;;  %v991_v39 = vld [vmem:[#allocation2 + $0x1d20] sm:$0xff] }
 0x1de   :  { %9925 = vmatpush1.bf16.msra.mxu0 %v13000_v8  ;;  %10458 = vmatpush1.bf16.msra.mxu1 %v13002_v2  ;;  %v13048_v8 = vcombine.low %v947_v46, %v951_v47  ;;  %v13050_v2 = vcombine.low %v948_v49, %v952_v50  ;;  %v995_v47 = vld [vmem:[#allocation2 + $0x1d40] sm:$0xff]  ;;  %v996_v50 = vld [vmem:[#allocation2 + $0x1d48] sm:$0xff] }
 0x1df   :  { %9926 = vmatprep.subr.bf16.mxu0 %v13009_v3  ;;  %10459 = vmatprep.subr.bf16.mxu1 %v13011_v4  ;;  %v13057_v3 = vcombine.high %v955_v57, %v959_v60  ;;  %v13059_v4 = vcombine.high %v956_v61, %v960_v62  ;;  %v999_v49 = vld [vmem:[#allocation2 + $0x1d60] sm:$0xff] }
 0x1e2   :  { %9927 = vmatpush1.bf16.msra.mxu0 %v13008_v11  ;;  %10460 = vmatpush1.bf16.msra.mxu1 %v13010_v12  ;;  %v968_v11 = vld [vmem:[#allocation2 + $0x1c68] sm:$0xff]  ;;  %v13056_v12 = vcombine.low %v955_v57, %v959_v60  ;;  %v1003_v60 = vld [vmem:[#allocation2 + $0x1d80] sm:$0xff] }
 0x1e3   :  { %9928 = vmatprep.subr.bf16.mxu0 %v13017_v13  ;;  %10461 = vmatprep.subr.bf16.mxu1 %v13019_v14  ;;  %v13058_v13 = vcombine.low %v956_v61, %v960_v62  ;;  %v13065_v14 = vcombine.high %v963_v29, %v967_v6  ;;  %v13067_v15 = vcombine.high %v964_v10, %v968_v11  ;;  %v1007_v61 = vld [vmem:[#allocation2 + $0x1da0] sm:$0xff]  ;;  %v1004_v62 = vld [vmem:[#allocation2 + $0x1d88] sm:$0xff] }
 0x1e6   :  { %9929 = vmatpush1.bf16.msra.mxu0 %v13016_v1  ;;  %10462 = vmatpush1.bf16.msra.mxu1 %v13018_v21  ;;  %v976_v1 = vld [vmem:[#allocation2 + $0x1ca8] sm:$0xff]  ;;  %v13064_v21 = vcombine.low %v963_v29, %v967_v6  ;;  %v1011_v6 = vld [vmem:[#allocation2 + $0x1dc0] sm:$0xff] }
 0x1e7   :  { %9930 = vmatprep.subr.bf16.mxu0 %v13025_v22  ;;  %10463 = vmatprep.subr.bf16.mxu1 %v13027_v24  ;;  %v13066_v22 = vcombine.low %v964_v10, %v968_v11  ;;  %v13073_v24 = vcombine.high %v971_v17, %v975_v18  ;;  %v13075_v25 = vcombine.high %v972_v16, %v976_v1  ;;  %v1015_v10 = vld [vmem:[#allocation2 + $0x1de0] sm:$0xff]  ;;  %v1012_v11 = vld [vmem:[#allocation2 + $0x1dc8] sm:$0xff] }
 0x1ea   :  { %9931 = vmatpush1.bf16.msra.mxu0 %v13024_v63  ;;  %10464 = vmatpush1.bf16.msra.mxu1 %v13026_v59  ;;  %v984_v63 = vld [vmem:[#allocation2 + $0x1ce8] sm:$0xff]  ;;  %v13072_v59 = vcombine.low %v971_v17, %v975_v18  ;;  %v1019_v18 = vld [vmem:[#allocation2 + $0x1e00] sm:$0xff] }
 0x1eb   :  { %9932 = vmatprep.subr.bf16.mxu0 %v13033_v33  ;;  %10465 = vmatprep.subr.bf16.mxu1 %v13035_v34  ;;  %v13074_v33 = vcombine.low %v972_v16, %v976_v1  ;;  %v13081_v34 = vcombine.high %v979_v26, %v983_v28  ;;  %v13083_v35 = vcombine.high %v980_v31, %v984_v63  ;;  %v1023_v16 = vld [vmem:[#allocation2 + $0x1e20] sm:$0xff]  ;;  %v1020_v1 = vld [vmem:[#allocation2 + $0x1e08] sm:$0xff] }
 0x1ee   :  { %9933 = vmatpush1.bf16.msra.mxu0 %v13032_v41  ;;  %10466 = vmatpush1.bf16.msra.mxu1 %v13034_v42  ;;  %v992_v41 = vld [vmem:[#allocation2 + $0x1d28] sm:$0xff]  ;;  %v13080_v42 = vcombine.low %v979_v26, %v983_v28  ;;  %v1027_v28 = vld [vmem:[#allocation2 + $0x1e40] sm:$0xff] }
 0x1ef   :  { %9934 = vmatprep.subr.bf16.mxu0 %v13041_v43  ;;  %10467 = vmatprep.subr.bf16.mxu1 %v13043_v45  ;;  %v13082_v43 = vcombine.low %v980_v31, %v984_v63  ;;  %v13089_v45 = vcombine.high %v987_v36, %v991_v39  ;;  %v13091_v46 = vcombine.high %v988_v40, %v992_v41  ;;  %v1031_v31 = vld [vmem:[#allocation2 + $0x1e60] sm:$0xff]  ;;  %v1028_v63 = vld [vmem:[#allocation2 + $0x1e48] sm:$0xff] }
 0x1f2   :  { %9935 = vmatpush1.bf16.msra.mxu0 %v13040_v52  ;;  %10468 = vmatpush1.bf16.msra.mxu1 %v13042_v54  ;;  %v1000_v52 = vld [vmem:[#allocation2 + $0x1d68] sm:$0xff]  ;;  %v13088_v54 = vcombine.low %v987_v36, %v991_v39  ;;  %v1035_v39 = vld [vmem:[#allocation2 + $0x1e80] sm:$0xff] }
 0x1f3   :  { %9936 = vmatprep.subr.bf16.mxu0 %v13049_v55  ;;  %10469 = vmatprep.subr.bf16.mxu1 %v13051_v56  ;;  %v13090_v55 = vcombine.low %v988_v40, %v992_v41  ;;  %v13097_v56 = vcombine.high %v995_v47, %v999_v49  ;;  %v13099_v57 = vcombine.high %v996_v50, %v1000_v52  ;;  %v1039_v40 = vld [vmem:[#allocation2 + $0x1ea0] sm:$0xff]  ;;  %v1036_v41 = vld [vmem:[#allocation2 + $0x1e88] sm:$0xff] }
 0x1f6   :  { %9937 = vmatpush1.bf16.msra.mxu0 %v13048_v8  ;;  %10470 = vmatpush1.bf16.msra.mxu1 %v13050_v2  ;;  %v1008_v8 = vld [vmem:[#allocation2 + $0x1da8] sm:$0xff]  ;;  %v13096_v2 = vcombine.low %v995_v47, %v999_v49  ;;  %v1043_v49 = vld [vmem:[#allocation2 + $0x1ec0] sm:$0xff] }
 0x1f7   :  { %9947 = vmatprep.subr.bf16.mxu0 %v13057_v3  ;;  %10480 = vmatprep.subr.bf16.mxu1 %v13059_v4  ;;  %v13098_v3 = vcombine.low %v996_v50, %v1000_v52  ;;  %v13105_v4 = vcombine.high %v1003_v60, %v1007_v61  ;;  %v13107_v29 = vcombine.high %v1004_v62, %v1008_v8  ;;  %v1047_v50 = vld [vmem:[#allocation2 + $0x1ee0] sm:$0xff]  ;;  %v1044_v52 = vld [vmem:[#allocation2 + $0x1ec8] sm:$0xff] }
 0x1f9   :  { %9939 = vmatmul.mubr.bf16.vlgmr.msra.gmra.mrb[0].mxu0 %v14218_v7  ;;  %10472 = vmatmul.mubr.bf16.vlgmr.msra.gmra.mrb[0].mxu1 %v14218_v7 }
 0x1fa   :  { %9948 = vmatpush1.bf16.msra.mxu0 %v13056_v12  ;;  %10481 = vmatpush1.bf16.msra.mxu1 %v13058_v13  ;;  %v1016_v12 = vld [vmem:[#allocation2 + $0x1de8] sm:$0xff]  ;;  %v13104_v13 = vcombine.low %v1003_v60, %v1007_v61  ;;  %v1051_v61 = vld [vmem:[#allocation2 + $0x1f00] sm:$0xff] }
 0x1fb   :  { %9949 = vmatprep.subr.bf16.mxu0 %v13065_v14  ;;  %10482 = vmatprep.subr.bf16.mxu1 %v13067_v15  ;;  %v13106_v14 = vcombine.low %v1004_v62, %v1008_v8  ;;  %v13113_v15 = vcombine.high %v1011_v6, %v1015_v10  ;;  %v13115_v17 = vcombine.high %v1012_v11, %v1016_v12  ;;  %v1055_v62 = vld [vmem:[#allocation2 + $0x1f20] sm:$0xff]  ;;  %v1052_v8 = vld [vmem:[#allocation2 + $0x1f08] sm:$0xff] }
 0x1fc   :  { %9979 = vmatprep.mubr.bf16.mxu0 %v14222_v20  ;;  %10512 = vmatprep.mubr.bf16.mxu1 %v14222_v20 }
 0x1fe   :  { %9950 = vmatpush1.bf16.msra.mxu0 %v13064_v21  ;;  %10483 = vmatpush1.bf16.msra.mxu1 %v13066_v22  ;;  %v1024_v21 = vld [vmem:[#allocation2 + $0x1e28] sm:$0xff]  ;;  %v13112_v22 = vcombine.low %v1011_v6, %v1015_v10  ;;  %v1059_v10 = vld [vmem:[#allocation2 + $0x1f40] sm:$0xff] }
 0x1ff   :  { %9951 = vmatprep.subr.bf16.mxu0 %v13073_v24  ;;  %10484 = vmatprep.subr.bf16.mxu1 %v13075_v25  ;;  %v13114_v24 = vcombine.low %v1012_v11, %v1016_v12  ;;  %v13121_v25 = vcombine.high %v1019_v18, %v1023_v16  ;;  %v13123_v26 = vcombine.high %v1020_v1, %v1024_v21  ;;  %v1063_v11 = vld [vmem:[#allocation2 + $0x1f60] sm:$0xff]  ;;  %v1060_v12 = vld [vmem:[#allocation2 + $0x1f48] sm:$0xff] }
 0x202   :  { %9952 = vmatpush1.bf16.msra.mxu0 %v13072_v59  ;;  %10485 = vmatpush1.bf16.msra.mxu1 %v13074_v33  ;;  %v1032_v59 = vld [vmem:[#allocation2 + $0x1e68] sm:$0xff]  ;;  %v13120_v33 = vcombine.low %v1019_v18, %v1023_v16  ;;  %v1067_v16 = vld [vmem:[#allocation2 + $0x1f80] sm:$0xff] }
 0x203   :  { %9953 = vmatprep.subr.bf16.mxu0 %v13081_v34  ;;  %10486 = vmatprep.subr.bf16.mxu1 %v13083_v35  ;;  %v13122_v34 = vcombine.low %v1020_v1, %v1024_v21  ;;  %v13129_v35 = vcombine.high %v1027_v28, %v1031_v31  ;;  %v13131_v36 = vcombine.high %v1028_v63, %v1032_v59  ;;  %v1071_v1 = vld [vmem:[#allocation2 + $0x1fa0] sm:$0xff]  ;;  %v1068_v21 = vld [vmem:[#allocation2 + $0x1f88] sm:$0xff] }
 0x206   :  { %9954 = vmatpush1.bf16.msra.mxu0 %v13080_v42  ;;  %10487 = vmatpush1.bf16.msra.mxu1 %v13082_v43  ;;  %v1040_v42 = vld [vmem:[#allocation2 + $0x1ea8] sm:$0xff]  ;;  %v13128_v43 = vcombine.low %v1027_v28, %v1031_v31  ;;  %v1075_v31 = vld [vmem:[#allocation2 + $0x1fc0] sm:$0xff] }
 0x207   :  { %9955 = vmatprep.subr.bf16.mxu0 %v13089_v45  ;;  %10488 = vmatprep.subr.bf16.mxu1 %v13091_v46  ;;  %v13130_v45 = vcombine.low %v1028_v63, %v1032_v59  ;;  %v13137_v46 = vcombine.high %v1035_v39, %v1039_v40  ;;  %v13139_v47 = vcombine.high %v1036_v41, %v1040_v42  ;;  %v1079_v63 = vld [vmem:[#allocation2 + $0x1fe0] sm:$0xff]  ;;  %v1076_v59 = vld [vmem:[#allocation2 + $0x1fc8] sm:$0xff] }
 0x20a   :  { %9956 = vmatpush1.bf16.msra.mxu0 %v13088_v54  ;;  %10489 = vmatpush1.bf16.msra.mxu1 %v13090_v55  ;;  %v1048_v54 = vld [vmem:[#allocation2 + $0x1ee8] sm:$0xff]  ;;  %v13136_v55 = vcombine.low %v1035_v39, %v1039_v40  ;;  %v13177_v39 = vcombine.high %v1075_v31, %v1079_v63 }
 0x20b   :  { %9957 = vmatprep.subr.bf16.mxu0 %v13097_v56  ;;  %10490 = vmatprep.subr.bf16.mxu1 %v13099_v57  ;;  %v13138_v56 = vcombine.low %v1036_v41, %v1040_v42  ;;  %v13145_v57 = vcombine.high %v1043_v49, %v1047_v50  ;;  %v13147_v60 = vcombine.high %v1044_v52, %v1048_v54  ;;  %v1083_v41 = vld [vmem:[#allocation2 + $0x2000] sm:$0xff] }
 0x20c   :  { %v1087_v42 = vld [vmem:[#allocation2 + $0x2020] sm:$0xff] }
 0x20e   :  { %9958 = vmatpush1.bf16.msra.mxu0 %v13096_v2  ;;  %10491 = vmatpush1.bf16.msra.mxu1 %v13098_v3  ;;  %v1056_v2 = vld [vmem:[#allocation2 + $0x1f28] sm:$0xff]  ;;  %v13144_v3 = vcombine.low %v1043_v49, %v1047_v50  ;;  %v13185_v50 = vcombine.high %v1083_v41, %v1087_v42 }
 0x20f   :  { %9959 = vmatprep.subr.bf16.mxu0 %v13105_v4  ;;  %10492 = vmatprep.subr.bf16.mxu1 %v13107_v29  ;;  %v13146_v4 = vcombine.low %v1044_v52, %v1048_v54  ;;  %v13153_v29 = vcombine.high %v1051_v61, %v1055_v62  ;;  %v13155_v6 = vcombine.high %v1052_v8, %v1056_v2  ;;  %v1091_v54 = vld [vmem:[#allocation2 + $0x2040] sm:$0xff] }
 0x212   :  { %9960 = vmatpush1.bf16.msra.mxu0 %v13104_v13  ;;  %10493 = vmatpush1.bf16.msra.mxu1 %v13106_v14  ;;  %v1064_v13 = vld [vmem:[#allocation2 + $0x1f68] sm:$0xff]  ;;  %v13152_v14 = vcombine.low %v1051_v61, %v1055_v62  ;;  %v13184_v62 = vcombine.low %v1083_v41, %v1087_v42 }
 0x213   :  { %9961 = vmatprep.subr.bf16.mxu0 %v13113_v15  ;;  %10494 = vmatprep.subr.bf16.mxu1 %v13115_v17  ;;  %v13154_v15 = vcombine.low %v1052_v8, %v1056_v2  ;;  %v13161_v17 = vcombine.high %v1059_v10, %v1063_v11  ;;  %v13163_v18 = vcombine.high %v1060_v12, %v1064_v13  ;;  %v1096_v61 = vld [vmem:[#allocation2 + $0x2068] sm:$0xff] }
 0x214   :  { %v1124_v41 = vld [vmem:[#allocation2 + $0x2148] sm:$0xff] }
 0x215   :  { %v1128_v42 = vld [vmem:[#allocation2 + $0x2168] sm:$0xff] }
 0x216   :  { %9962 = vmatpush1.bf16.msra.mxu0 %v13112_v22  ;;  %10495 = vmatpush1.bf16.msra.mxu1 %v13114_v24  ;;  %v1072_v22 = vld [vmem:[#allocation2 + $0x1fa8] sm:$0xff]  ;;  %v13160_v24 = vcombine.low %v1059_v10, %v1063_v11 }
 0x217   :  { %9963 = vmatprep.subr.bf16.mxu0 %v13121_v25  ;;  %10496 = vmatprep.subr.bf16.mxu1 %v13123_v26  ;;  %v13162_v25 = vcombine.low %v1060_v12, %v1064_v13  ;;  %v13169_v26 = vcombine.high %v1067_v16, %v1071_v1  ;;  %v13171_v28 = vcombine.high %v1068_v21, %v1072_v22  ;;  %v1100_v10 = vld [vmem:[#allocation2 + $0x2088] sm:$0xff] }
 0x218   :  { %v1104_v11 = vld [vmem:[#allocation2 + $0x20a8] sm:$0xff] }
 0x21a   :  { %9964 = vmatpush1.bf16.msra.mxu0 %v13120_v33  ;;  %10497 = vmatpush1.bf16.msra.mxu1 %v13122_v34  ;;  %v1080_v33 = vld [vmem:[#allocation2 + $0x1fe8] sm:$0xff]  ;;  %v14231_v34 = vld [vmem:[%s14452_s0 + $0x10] sm:$0xff] }
 0x21b   :  { %9965 = vmatprep.subr.bf16.mxu0 %v13129_v35  ;;  %10498 = vmatprep.subr.bf16.mxu1 %v13131_v36  ;;  %v13168_v35 = vcombine.low %v1067_v16, %v1071_v1  ;;  %v13170_v36 = vcombine.low %v1068_v21, %v1072_v22  ;;  %v13179_v40 = vcombine.high %v1076_v59, %v1080_v33  ;;  %v1108_v16 = vld [vmem:[#allocation2 + $0x20c8] sm:$0xff] }
 0x21c   :  { %v13178_v49 = vcombine.low %v1076_v59, %v1080_v33  ;;  %v1112_v1 = vld [vmem:[#allocation2 + $0x20e8] sm:$0xff]  ;;  %v13202_v22 = vcombine.low %v1100_v10, %v1104_v11 }
 0x21d   :  { %v13210_v33 = vcombine.low %v1108_v16, %v1112_v1 }
 0x21e   :  { %9966 = vmatpush1.bf16.msra.mxu0 %v13128_v43  ;;  %10499 = vmatpush1.bf16.msra.mxu1 %v13130_v45  ;;  %v14235_v43 = vrot.slane %v14231_v34, %v14104_v53  ;;  %v1084_v45 = vld [vmem:[#allocation2 + $0x2008] sm:$0xff] }
 0x21f   :  { %9967 = vmatprep.subr.bf16.mxu0 %v13137_v46  ;;  %10500 = vmatprep.subr.bf16.mxu1 %v13139_v47  ;;  %v1088_v46 = vld [vmem:[#allocation2 + $0x2028] sm:$0xff]  ;;  %v13176_v47 = vcombine.low %v1075_v31, %v1079_v63 }
 0x220   :  { %v13187_v52 = vcombine.high %v1084_v45, %v1088_v46  ;;  %v13186_v8 = vcombine.low %v1084_v45, %v1088_v46  ;;  %v1116_v31 = vld [vmem:[#allocation2 + $0x2108] sm:$0xff] }
 0x221   :  { %v1120_v63 = vld [vmem:[#allocation2 + $0x2128] sm:$0xff] }
 0x222   :  { %9968 = vmatpush1.bf16.msra.mxu0 %v13136_v55  ;;  %10501 = vmatpush1.bf16.msra.mxu1 %v13138_v56  ;;  %v1095_v55 = vld [vmem:[#allocation2 + $0x2060] sm:$0xff]  ;;  %v1744_v56 = vcombine.high %v14235_v43, %v14235_v43  ;;  %v13218_v46 = vcombine.low %v1116_v31, %v1120_v63 }
 0x223   :  { %9969 = vmatprep.subr.bf16.mxu0 %v13145_v57  ;;  %10502 = vmatprep.subr.bf16.mxu1 %v13147_v60  ;;  %v14241_v57 = vcombine.high %v14218_v7, %v14218_v7  ;;  %v1092_v60 = vld [vmem:[#allocation2 + $0x2048] sm:$0xff]  ;;  %v13193_v2 = vcombine.high %v1091_v54, %v1095_v55  ;;  %v13192_v12 = vcombine.low %v1091_v54, %v1095_v55 }
 0x224   :  { %v13194_v13 = vcombine.low %v1092_v60, %v1096_v61  ;;  %v1132_v54 = vld [vmem:[#allocation2 + $0x2188] sm:$0xff] }
 0x225   :  { %v1136_v55 = vld [vmem:[#allocation2 + $0x21a8] sm:$0xff] }
 0x226   :  { %9970 = vmatpush1.bf16.msra.mxu0 %v13144_v3  ;;  %10503 = vmatpush1.bf16.msra.mxu1 %v13146_v4  ;;  %v13195_v3 = vcombine.high %v1092_v60, %v1096_v61  ;;  %v1099_v4 = vld [vmem:[#allocation2 + $0x2080] sm:$0xff]  ;;  %v13226_v60 = vcombine.low %v1124_v41, %v1128_v42 }
 0x227   :  { %9971 = vmatprep.subr.bf16.mxu0 %v13153_v29  ;;  %10504 = vmatprep.subr.bf16.mxu1 %v13155_v6  ;;  %v1103_v29 = vld [vmem:[#allocation2 + $0x20a0] sm:$0xff]  ;;  %v14244_v6 = vrot.slane %v1744_v56, %v14104_v53 }
 0x228   :  { %v13200_v21 = vcombine.low %v1099_v4, %v1103_v29 }
 0x22a   :  { %9972 = vmatpush1.bf16.msra.mxu0 %v13152_v14  ;;  %10505 = vmatpush1.bf16.msra.mxu1 %v13154_v15  ;;  %v13201_v14 = vcombine.high %v1099_v4, %v1103_v29  ;;  %v13203_v15 = vcombine.high %v1100_v10, %v1104_v11  ;;  %v1144_v4 = vld [vmem:[#allocation2 + $0x21e8] sm:$0xff]  ;;  %v13234_v10 = vcombine.low %v1132_v54, %v1136_v55 }
 0x22b   :  { %9973 = vmatprep.subr.bf16.mxu0 %v13161_v17  ;;  %10506 = vmatprep.subr.bf16.mxu1 %v13163_v18  ;;  %v1107_v17 = vld [vmem:[#allocation2 + $0x20c0] sm:$0xff] }
 0x22c   :  { %v1111_v18 = vld [vmem:[#allocation2 + $0x20e0] sm:$0xff] }
 0x22d   :  { %v13208_v59 = vcombine.low %v1107_v17, %v1111_v18 }
 0x22e   :  { %9974 = vmatpush1.bf16.msra.mxu0 %v13160_v24  ;;  %10507 = vmatpush1.bf16.msra.mxu1 %v13162_v25  ;;  %v13209_v24 = vcombine.high %v1107_v17, %v1111_v18  ;;  %v13211_v25 = vcombine.high %v1108_v16, %v1112_v1  ;;  %v1152_v17 = vld [vmem:[#allocation2 + $0x2228] sm:$0xff] }
 0x22f   :  { %9975 = vmatprep.subr.bf16.mxu0 %v13169_v26  ;;  %10508 = vmatprep.subr.bf16.mxu1 %v13171_v28  ;;  %v1115_v26 = vld [vmem:[#allocation2 + $0x2100] sm:$0xff] }
 0x230   :  { %v1119_v28 = vld [vmem:[#allocation2 + $0x2120] sm:$0xff] }
 0x231   :  { %v13216_v45 = vcombine.low %v1115_v26, %v1119_v28 }
 0x232   :  { %9976 = vmatpush1.bf16.msra.mxu0 %v13168_v35  ;;  %10509 = vmatpush1.bf16.msra.mxu1 %v13170_v36  ;;  %v13217_v35 = vcombine.high %v1115_v26, %v1119_v28  ;;  %v13219_v36 = vcombine.high %v1116_v31, %v1120_v63  ;;  %v1160_v26 = vld [vmem:[#allocation2 + $0x2268] sm:$0xff] }
 0x233   :  { %9977 = vmatprep.subr.bf16.mxu0 %v13177_v39  ;;  %10510 = vmatprep.subr.bf16.mxu1 %v13179_v40  ;;  %v1123_v39 = vld [vmem:[#allocation2 + $0x2140] sm:$0xff] }
 0x234   :  { %v1127_v40 = vld [vmem:[#allocation2 + $0x2160] sm:$0xff] }
 0x235   :  { %v13224_v56 = vcombine.low %v1123_v39, %v1127_v40 }
 0x236   :  { %9978 = vmatpush1.bf16.msra.mxu0 %v13176_v47  ;;  %10511 = vmatpush1.bf16.msra.mxu1 %v13178_v49  ;;  %v13225_v47 = vcombine.high %v1123_v39, %v1127_v40  ;;  %v13227_v49 = vcombine.high %v1124_v41, %v1128_v42  ;;  %v1168_v39 = vld [vmem:[#allocation2 + $0x22a8] sm:$0xff] }
 0x237   :  { %9988 = vmatprep.subr.bf16.mxu0 %v13185_v50  ;;  %10521 = vmatprep.subr.bf16.mxu1 %v13187_v52  ;;  %v1131_v50 = vld [vmem:[#allocation2 + $0x2180] sm:$0xff] }
 0x238   :  { %v1135_v52 = vld [vmem:[#allocation2 + $0x21a0] sm:$0xff] }
 0x239   :  { %9980 = vmatmul.mubr.bf16.vlgmr.msra.gmra.mrb[0].mxu0 %v14241_v57  ;;  %10513 = vmatmul.mubr.bf16.vlgmr.msra.gmra.mrb[0].mxu1 %v14241_v57  ;;  %v13233_v61 = vcombine.high %v1131_v50, %v1135_v52  ;;  %v13232_v29 = vcombine.low %v1131_v50, %v1135_v52  ;;  %v1176_v50 = vld [vmem:[#allocation2 + $0x22e8] sm:$0xff] }
 0x23a   :  { %9989 = vmatpush1.bf16.msra.mxu0 %v13184_v62  ;;  %10522 = vmatpush1.bf16.msra.mxu1 %v13186_v8  ;;  %v13235_v62 = vcombine.high %v1132_v54, %v1136_v55  ;;  %v1139_v8 = vld [vmem:[#allocation2 + $0x21c0] sm:$0xff] }
 0x23b   :  { %9990 = vmatprep.subr.bf16.mxu0 %v13193_v2  ;;  %10523 = vmatprep.subr.bf16.mxu1 %v13195_v3  ;;  %v1143_v2 = vld [vmem:[#allocation2 + $0x21e0] sm:$0xff]  ;;  %v1140_v3 = vld [vmem:[#allocation2 + $0x21c8] sm:$0xff] }
 0x23c   :  { %10020 = vmatprep.mubr.bf16.mxu0 %v14244_v6  ;;  %10553 = vmatprep.mubr.bf16.mxu1 %v14244_v6  ;;  %v13241_v11 = vcombine.high %v1139_v8, %v1143_v2  ;;  %v13240_v18 = vcombine.low %v1139_v8, %v1143_v2  ;;  %v13242_v16 = vcombine.low %v1140_v3, %v1144_v4  ;;  %v1184_v8 = vld [vmem:[#allocation2 + $0x2328] sm:$0xff] }
 0x23e   :  { %9991 = vmatpush1.bf16.msra.mxu0 %v13192_v12  ;;  %10524 = vmatpush1.bf16.msra.mxu1 %v13194_v13  ;;  %v13243_v12 = vcombine.high %v1140_v3, %v1144_v4  ;;  %v1147_v13 = vld [vmem:[#allocation2 + $0x2200] sm:$0xff] }
 0x23f   :  { %9992 = vmatprep.subr.bf16.mxu0 %v13201_v14  ;;  %10525 = vmatprep.subr.bf16.mxu1 %v13203_v15  ;;  %v1151_v14 = vld [vmem:[#allocation2 + $0x2220] sm:$0xff]  ;;  %v1148_v15 = vld [vmem:[#allocation2 + $0x2208] sm:$0xff] }
 0x240   :  { %v13249_v1 = vcombine.high %v1147_v13, %v1151_v14  ;;  %v13248_v28 = vcombine.low %v1147_v13, %v1151_v14  ;;  %v13250_v31 = vcombine.low %v1148_v15, %v1152_v17  ;;  %v1192_v13 = vld [vmem:[#allocation2 + $0x2368] sm:$0xff] }
 0x242   :  { %9993 = vmatpush1.bf16.msra.mxu0 %v13200_v21  ;;  %10526 = vmatpush1.bf16.msra.mxu1 %v13202_v22  ;;  %v13251_v21 = vcombine.high %v1148_v15, %v1152_v17  ;;  %v1155_v22 = vld [vmem:[#allocation2 + $0x2240] sm:$0xff] }
 0x243   :  { %9994 = vmatprep.subr.bf16.mxu0 %v13209_v24  ;;  %10527 = vmatprep.subr.bf16.mxu1 %v13211_v25  ;;  %v1159_v24 = vld [vmem:[#allocation2 + $0x2260] sm:$0xff]  ;;  %v1156_v25 = vld [vmem:[#allocation2 + $0x2248] sm:$0xff] }
 0x244   :  { %v13257_v63 = vcombine.high %v1155_v22, %v1159_v24  ;;  %v13256_v40 = vcombine.low %v1155_v22, %v1159_v24  ;;  %v13258_v41 = vcombine.low %v1156_v25, %v1160_v26  ;;  %v1200_v22 = vld [vmem:[#allocation2 + $0x23a8] sm:$0xff] }
 0x246   :  { %9995 = vmatpush1.bf16.msra.mxu0 %v13208_v59  ;;  %10528 = vmatpush1.bf16.msra.mxu1 %v13210_v33  ;;  %v13259_v59 = vcombine.high %v1156_v25, %v1160_v26  ;;  %v1163_v33 = vld [vmem:[#allocation2 + $0x2280] sm:$0xff] }
 0x247   :  { %9996 = vmatprep.subr.bf16.mxu0 %v13217_v35  ;;  %10529 = vmatprep.subr.bf16.mxu1 %v13219_v36  ;;  %v1167_v35 = vld [vmem:[#allocation2 + $0x22a0] sm:$0xff]  ;;  %v1164_v36 = vld [vmem:[#allocation2 + $0x2288] sm:$0xff] }
 0x248   :  { %v13265_v42 = vcombine.high %v1163_v33, %v1167_v35  ;;  %v13264_v52 = vcombine.low %v1163_v33, %v1167_v35  ;;  %v13266_v54 = vcombine.low %v1164_v36, %v1168_v39  ;;  %v1208_v33 = vld [vmem:[#allocation2 + $0x23e8] sm:$0xff] }
 0x24a   :  { %9997 = vmatpush1.bf16.msra.mxu0 %v13216_v45  ;;  %10530 = vmatpush1.bf16.msra.mxu1 %v13218_v46  ;;  %v13267_v45 = vcombine.high %v1164_v36, %v1168_v39  ;;  %v1171_v46 = vld [vmem:[#allocation2 + $0x22c0] sm:$0xff] }
 0x24b   :  { %9998 = vmatprep.subr.bf16.mxu0 %v13225_v47  ;;  %10531 = vmatprep.subr.bf16.mxu1 %v13227_v49  ;;  %v1175_v47 = vld [vmem:[#allocation2 + $0x22e0] sm:$0xff]  ;;  %v1172_v49 = vld [vmem:[#allocation2 + $0x22c8] sm:$0xff] }
 0x24c   :  { %v13273_v55 = vcombine.high %v1171_v46, %v1175_v47  ;;  %v13272_v2 = vcombine.low %v1171_v46, %v1175_v47  ;;  %v13274_v3 = vcombine.low %v1172_v49, %v1176_v50  ;;  %v1216_v46 = vld [vmem:[#allocation2 + $0x2428] sm:$0xff] }
 0x24e   :  { %9999 = vmatpush1.bf16.msra.mxu0 %v13224_v56  ;;  %10532 = vmatpush1.bf16.msra.mxu1 %v13226_v60  ;;  %v13275_v56 = vcombine.high %v1172_v49, %v1176_v50  ;;  %v1179_v60 = vld [vmem:[#allocation2 + $0x2300] sm:$0xff] }
 0x24f   :  { %10000 = vmatprep.subr.bf16.mxu0 %v13233_v61  ;;  %10533 = vmatprep.subr.bf16.mxu1 %v13235_v62  ;;  %v1183_v61 = vld [vmem:[#allocation2 + $0x2320] sm:$0xff]  ;;  %v1180_v62 = vld [vmem:[#allocation2 + $0x2308] sm:$0xff] }
 0x250   :  { %v13281_v4 = vcombine.high %v1179_v60, %v1183_v61  ;;  %v13280_v14 = vcombine.low %v1179_v60, %v1183_v61  ;;  %v13282_v15 = vcombine.low %v1180_v62, %v1184_v8  ;;  %v1220_v60 = vld [vmem:[#allocation2 + $0x2448] sm:$0xff] }
 0x251   :  { %v1224_v61 = vld [vmem:[#allocation2 + $0x2468] sm:$0xff] }
 0x252   :  { %10001 = vmatpush1.bf16.msra.mxu0 %v13232_v29  ;;  %10534 = vmatpush1.bf16.msra.mxu1 %v13234_v10  ;;  %v13283_v29 = vcombine.high %v1180_v62, %v1184_v8  ;;  %v1187_v10 = vld [vmem:[#allocation2 + $0x2340] sm:$0xff] }
 0x253   :  { %10002 = vmatprep.subr.bf16.mxu0 %v13241_v11  ;;  %10535 = vmatprep.subr.bf16.mxu1 %v13243_v12  ;;  %v1191_v11 = vld [vmem:[#allocation2 + $0x2360] sm:$0xff]  ;;  %v1188_v12 = vld [vmem:[#allocation2 + $0x2348] sm:$0xff] }
 0x254   :  { %v13289_v17 = vcombine.high %v1187_v10, %v1191_v11  ;;  %v13288_v24 = vcombine.low %v1187_v10, %v1191_v11  ;;  %v13290_v25 = vcombine.low %v1188_v12, %v1192_v13  ;;  %v14256_v10 = vcombine.high %v14244_v6, %v14244_v6  ;;  %v1232_v11 = vld [vmem:[#allocation2 + $0x24a8] sm:$0xff] }
 0x256   :  { %10003 = vmatpush1.bf16.msra.mxu0 %v13240_v18  ;;  %10536 = vmatpush1.bf16.msra.mxu1 %v13242_v16  ;;  %v13291_v18 = vcombine.high %v1188_v12, %v1192_v13  ;;  %v1195_v16 = vld [vmem:[#allocation2 + $0x2380] sm:$0xff]  ;;  %v13322_v13 = vcombine.low %v1220_v60, %v1224_v61 }
 0x257   :  { %10004 = vmatprep.subr.bf16.mxu0 %v13249_v1  ;;  %10537 = vmatprep.subr.bf16.mxu1 %v13251_v21  ;;  %v1199_v1 = vld [vmem:[#allocation2 + $0x23a0] sm:$0xff]  ;;  %v1196_v21 = vld [vmem:[#allocation2 + $0x2388] sm:$0xff] }
 0x258   :  { %v13297_v26 = vcombine.high %v1195_v16, %v1199_v1  ;;  %v13296_v35 = vcombine.low %v1195_v16, %v1199_v1  ;;  %v13298_v36 = vcombine.low %v1196_v21, %v1200_v22  ;;  %v1236_v16 = vld [vmem:[#allocation2 + $0x24c8] sm:$0xff] }
 0x259   :  { %v1240_v1 = vld [vmem:[#allocation2 + $0x24e8] sm:$0xff] }
 0x25a   :  { %10005 = vmatpush1.bf16.msra.mxu0 %v13248_v28  ;;  %10538 = vmatpush1.bf16.msra.mxu1 %v13250_v31  ;;  %v13299_v28 = vcombine.high %v1196_v21, %v1200_v22  ;;  %v1203_v31 = vld [vmem:[#allocation2 + $0x23c0] sm:$0xff] }
 0x25b   :  { %10006 = vmatprep.subr.bf16.mxu0 %v13257_v63  ;;  %10539 = vmatprep.subr.bf16.mxu1 %v13259_v59  ;;  %v1207_v63 = vld [vmem:[#allocation2 + $0x23e0] sm:$0xff]  ;;  %v1204_v59 = vld [vmem:[#allocation2 + $0x23c8] sm:$0xff] }
 0x25c   :  { %v13305_v39 = vcombine.high %v1203_v31, %v1207_v63  ;;  %v13304_v47 = vcombine.low %v1203_v31, %v1207_v63  ;;  %v13306_v49 = vcombine.low %v1204_v59, %v1208_v33  ;;  %v1244_v31 = vld [vmem:[#allocation2 + $0x2508] sm:$0xff] }
 0x25d   :  { %v1248_v63 = vld [vmem:[#allocation2 + $0x2528] sm:$0xff] }
 0x25e   :  { %10007 = vmatpush1.bf16.msra.mxu0 %v13256_v40  ;;  %10540 = vmatpush1.bf16.msra.mxu1 %v13258_v41  ;;  %v13307_v40 = vcombine.high %v1204_v59, %v1208_v33  ;;  %v1211_v41 = vld [vmem:[#allocation2 + $0x2400] sm:$0xff]  ;;  %v13338_v33 = vcombine.low %v1236_v16, %v1240_v1 }
 0x25f   :  { %10008 = vmatprep.subr.bf16.mxu0 %v13265_v42  ;;  %10541 = vmatprep.subr.bf16.mxu1 %v13267_v45  ;;  %v1215_v42 = vld [vmem:[#allocation2 + $0x2420] sm:$0xff]  ;;  %v1212_v45 = vld [vmem:[#allocation2 + $0x2408] sm:$0xff] }
 0x260   :  { %v13313_v50 = vcombine.high %v1211_v41, %v1215_v42  ;;  %v13312_v62 = vcombine.low %v1211_v41, %v1215_v42  ;;  %v13314_v8 = vcombine.low %v1212_v45, %v1216_v46  ;;  %v1252_v41 = vld [vmem:[#allocation2 + $0x2548] sm:$0xff] }
 0x261   :  { %v1256_v42 = vld [vmem:[#allocation2 + $0x2568] sm:$0xff] }
 0x262   :  { %10009 = vmatpush1.bf16.msra.mxu0 %v13264_v52  ;;  %10542 = vmatpush1.bf16.msra.mxu1 %v13266_v54  ;;  %v13315_v52 = vcombine.high %v1212_v45, %v1216_v46  ;;  %v1219_v54 = vld [vmem:[#allocation2 + $0x2440] sm:$0xff]  ;;  %v13346_v46 = vcombine.low %v1244_v31, %v1248_v63 }
 0x263   :  { %10010 = vmatprep.subr.bf16.mxu0 %v13273_v55  ;;  %10543 = vmatprep.subr.bf16.mxu1 %v13275_v56  ;;  %v1223_v55 = vld [vmem:[#allocation2 + $0x2460] sm:$0xff]  ;;  %v14252_v56 = vrot.slane %v14235_v43, %v14104_v53  ;;  %v1228_v43 = vld [vmem:[#allocation2 + $0x2488] sm:$0xff] }
 0x264   :  { %v13320_v12 = vcombine.low %v1219_v54, %v1223_v55  ;;  %v13330_v22 = vcombine.low %v1228_v43, %v1232_v11 }
 0x266   :  { %10011 = vmatpush1.bf16.msra.mxu0 %v13272_v2  ;;  %10544 = vmatpush1.bf16.msra.mxu1 %v13274_v3  ;;  %v13321_v2 = vcombine.high %v1219_v54, %v1223_v55  ;;  %v13323_v3 = vcombine.high %v1220_v60, %v1224_v61  ;;  %v1260_v54 = vld [vmem:[#allocation2 + $0x2588] sm:$0xff]  ;;  %v13354_v61 = vcombine.low %v1252_v41, %v1256_v42 }
 0x267   :  { %10012 = vmatprep.subr.bf16.mxu0 %v13281_v4  ;;  %10545 = vmatprep.subr.bf16.mxu1 %v13283_v29  ;;  %v1227_v4 = vld [vmem:[#allocation2 + $0x2480] sm:$0xff]  ;;  %v1264_v55 = vld [vmem:[#allocation2 + $0x25a8] sm:$0xff] }
 0x268   :  { %v1231_v29 = vld [vmem:[#allocation2 + $0x24a0] sm:$0xff] }
 0x269   :  { %v13328_v21 = vcombine.low %v1227_v4, %v1231_v29 }
 0x26a   :  { %10013 = vmatpush1.bf16.msra.mxu0 %v13280_v14  ;;  %10546 = vmatpush1.bf16.msra.mxu1 %v13282_v15  ;;  %v13329_v14 = vcombine.high %v1227_v4, %v1231_v29  ;;  %v13331_v15 = vcombine.high %v1228_v43, %v1232_v11  ;;  %v1268_v4 = vld [vmem:[#allocation2 + $0x25c8] sm:$0xff]  ;;  %v13362_v11 = vcombine.low %v1260_v54, %v1264_v55 }
 0x26b   :  { %10014 = vmatprep.subr.bf16.mxu0 %v13289_v17  ;;  %10547 = vmatprep.subr.bf16.mxu1 %v13291_v18  ;;  %v1235_v17 = vld [vmem:[#allocation2 + $0x24c0] sm:$0xff]  ;;  %v1272_v29 = vld [vmem:[#allocation2 + $0x25e8] sm:$0xff] }
 0x26c   :  { %v1239_v18 = vld [vmem:[#allocation2 + $0x24e0] sm:$0xff] }
 0x26d   :  { %v13336_v59 = vcombine.low %v1235_v17, %v1239_v18 }
 0x26e   :  { %10015 = vmatpush1.bf16.msra.mxu0 %v13288_v24  ;;  %10548 = vmatpush1.bf16.msra.mxu1 %v13290_v25  ;;  %v13337_v24 = vcombine.high %v1235_v17, %v1239_v18  ;;  %v13339_v25 = vcombine.high %v1236_v16, %v1240_v1  ;;  %v1276_v17 = vld [vmem:[#allocation2 + $0x2608] sm:$0xff]  ;;  %v13370_v1 = vcombine.low %v1268_v4, %v1272_v29 }
 0x26f   :  { %10016 = vmatprep.subr.bf16.mxu0 %v13297_v26  ;;  %10549 = vmatprep.subr.bf16.mxu1 %v13299_v28  ;;  %v1243_v26 = vld [vmem:[#allocation2 + $0x2500] sm:$0xff]  ;;  %v1280_v18 = vld [vmem:[#allocation2 + $0x2628] sm:$0xff] }
 0x270   :  { %v1247_v28 = vld [vmem:[#allocation2 + $0x2520] sm:$0xff] }
 0x271   :  { %v13344_v45 = vcombine.low %v1243_v26, %v1247_v28 }
 0x272   :  { %10017 = vmatpush1.bf16.msra.mxu0 %v13296_v35  ;;  %10550 = vmatpush1.bf16.msra.mxu1 %v13298_v36  ;;  %v13345_v35 = vcombine.high %v1243_v26, %v1247_v28  ;;  %v13347_v36 = vcombine.high %v1244_v31, %v1248_v63  ;;  %v1284_v26 = vld [vmem:[#allocation2 + $0x2648] sm:$0xff]  ;;  %v13378_v63 = vcombine.low %v1276_v17, %v1280_v18 }
 0x273   :  { %10018 = vmatprep.subr.bf16.mxu0 %v13305_v39  ;;  %10551 = vmatprep.subr.bf16.mxu1 %v13307_v40  ;;  %v1251_v39 = vld [vmem:[#allocation2 + $0x2540] sm:$0xff]  ;;  %v1288_v28 = vld [vmem:[#allocation2 + $0x2668] sm:$0xff] }
 0x274   :  { %v1255_v40 = vld [vmem:[#allocation2 + $0x2560] sm:$0xff] }
 0x275   :  { %v13352_v60 = vcombine.low %v1251_v39, %v1255_v40 }
 0x276   :  { %10019 = vmatpush1.bf16.msra.mxu0 %v13304_v47  ;;  %10552 = vmatpush1.bf16.msra.mxu1 %v13306_v49  ;;  %v13353_v47 = vcombine.high %v1251_v39, %v1255_v40  ;;  %v13355_v49 = vcombine.high %v1252_v41, %v1256_v42  ;;  %v1292_v39 = vld [vmem:[#allocation2 + $0x2688] sm:$0xff]  ;;  %v13386_v42 = vcombine.low %v1284_v26, %v1288_v28 }
 0x277   :  { %10029 = vmatprep.subr.bf16.mxu0 %v13313_v50  ;;  %10562 = vmatprep.subr.bf16.mxu1 %v13315_v52  ;;  %v1259_v50 = vld [vmem:[#allocation2 + $0x2580] sm:$0xff]  ;;  %v1296_v40 = vld [vmem:[#allocation2 + $0x26a8] sm:$0xff] }
 0x278   :  { %v1263_v52 = vld [vmem:[#allocation2 + $0x25a0] sm:$0xff] }
 0x279   :  { %10021 = vmatmul.mubr.bf16.vlgmr.msra.gmra.mrb[0].mxu0 %v14252_v56  ;;  %10554 = vmatmul.mubr.bf16.vlgmr.msra.gmra.mrb[0].mxu1 %v14252_v56  ;;  %v13360_v43 = vcombine.low %v1259_v50, %v1263_v52 }
 0x27a   :  { %10030 = vmatpush1.bf16.msra.mxu0 %v13312_v62  ;;  %10563 = vmatpush1.bf16.msra.mxu1 %v13314_v8  ;;  %v13361_v62 = vcombine.high %v1259_v50, %v1263_v52  ;;  %v13363_v8 = vcombine.high %v1260_v54, %v1264_v55  ;;  %v1300_v50 = vld [vmem:[#allocation2 + $0x26c8] sm:$0xff]  ;;  %v13394_v55 = vcombine.low %v1292_v39, %v1296_v40 }
 0x27b   :  { %10031 = vmatprep.subr.bf16.mxu0 %v13321_v2  ;;  %10564 = vmatprep.subr.bf16.mxu1 %v13323_v3  ;;  %v1267_v2 = vld [vmem:[#allocation2 + $0x25c0] sm:$0xff]  ;;  %v1304_v52 = vld [vmem:[#allocation2 + $0x26e8] sm:$0xff] }
 0x27c   :  { %10061 = vmatprep.mubr.bf16.mxu0 %v14256_v10  ;;  %10594 = vmatprep.mubr.bf16.mxu1 %v14256_v10  ;;  %v1271_v3 = vld [vmem:[#allocation2 + $0x25e0] sm:$0xff] }
 0x27d   :  { %v13368_v16 = vcombine.low %v1267_v2, %v1271_v3 }
 0x27e   :  { %10032 = vmatpush1.bf16.msra.mxu0 %v13320_v12  ;;  %10565 = vmatpush1.bf16.msra.mxu1 %v13322_v13  ;;  %v13369_v12 = vcombine.high %v1267_v2, %v1271_v3  ;;  %v13371_v13 = vcombine.high %v1268_v4, %v1272_v29  ;;  %v1308_v2 = vld [vmem:[#allocation2 + $0x2708] sm:$0xff]  ;;  %v13402_v29 = vcombine.low %v1300_v50, %v1304_v52 }
 0x27f   :  { %10033 = vmatprep.subr.bf16.mxu0 %v13329_v14  ;;  %10566 = vmatprep.subr.bf16.mxu1 %v13331_v15  ;;  %v1275_v14 = vld [vmem:[#allocation2 + $0x2600] sm:$0xff]  ;;  %v1312_v3 = vld [vmem:[#allocation2 + $0x2728] sm:$0xff] }
 0x280   :  { %v1279_v15 = vld [vmem:[#allocation2 + $0x2620] sm:$0xff] }
 0x281   :  { %v13376_v31 = vcombine.low %v1275_v14, %v1279_v15 }
 0x282   :  { %10034 = vmatpush1.bf16.msra.mxu0 %v13328_v21  ;;  %10567 = vmatpush1.bf16.msra.mxu1 %v13330_v22  ;;  %v13377_v21 = vcombine.high %v1275_v14, %v1279_v15  ;;  %v13379_v22 = vcombine.high %v1276_v17, %v1280_v18  ;;  %v1316_v14 = vld [vmem:[#allocation2 + $0x2748] sm:$0xff]  ;;  %v13410_v18 = vcombine.low %v1308_v2, %v1312_v3 }
 0x283   :  { %10035 = vmatprep.subr.bf16.mxu0 %v13337_v24  ;;  %10568 = vmatprep.subr.bf16.mxu1 %v13339_v25  ;;  %v1283_v24 = vld [vmem:[#allocation2 + $0x2640] sm:$0xff]  ;;  %v1320_v15 = vld [vmem:[#allocation2 + $0x2768] sm:$0xff] }
 0x284   :  { %v1287_v25 = vld [vmem:[#allocation2 + $0x2660] sm:$0xff] }
 0x285   :  { %v13384_v41 = vcombine.low %v1283_v24, %v1287_v25 }
 0x286   :  { %10036 = vmatpush1.bf16.msra.mxu0 %v13336_v59  ;;  %10569 = vmatpush1.bf16.msra.mxu1 %v13338_v33  ;;  %v13385_v59 = vcombine.high %v1283_v24, %v1287_v25  ;;  %v13387_v33 = vcombine.high %v1284_v26, %v1288_v28  ;;  %v1324_v24 = vld [vmem:[#allocation2 + $0x2788] sm:$0xff]  ;;  %v13418_v28 = vcombine.low %v1316_v14, %v1320_v15 }
 0x287   :  { %10037 = vmatprep.subr.bf16.mxu0 %v13345_v35  ;;  %10570 = vmatprep.subr.bf16.mxu1 %v13347_v36  ;;  %v1291_v35 = vld [vmem:[#allocation2 + $0x2680] sm:$0xff]  ;;  %v1328_v25 = vld [vmem:[#allocation2 + $0x27a8] sm:$0xff] }
 0x288   :  { %v1295_v36 = vld [vmem:[#allocation2 + $0x26a0] sm:$0xff] }
 0x289   :  { %v13392_v54 = vcombine.low %v1291_v35, %v1295_v36 }
 0x28a   :  { %10038 = vmatpush1.bf16.msra.mxu0 %v13344_v45  ;;  %10571 = vmatpush1.bf16.msra.mxu1 %v13346_v46  ;;  %v13393_v45 = vcombine.high %v1291_v35, %v1295_v36  ;;  %v13395_v46 = vcombine.high %v1292_v39, %v1296_v40  ;;  %v1729_v35 = vcombine.high %v14231_v34, %v14231_v34  ;;  %v1332_v36 = vld [vmem:[#allocation2 + $0x27c8] sm:$0xff] }
 0x28b   :  { %10039 = vmatprep.subr.bf16.mxu0 %v13353_v47  ;;  %10572 = vmatprep.subr.bf16.mxu1 %v13355_v49  ;;  %v1299_v47 = vld [vmem:[#allocation2 + $0x26c0] sm:$0xff]  ;;  %v1336_v39 = vld [vmem:[#allocation2 + $0x27e8] sm:$0xff] }
 0x28c   :  { %v1303_v49 = vld [vmem:[#allocation2 + $0x26e0] sm:$0xff]  ;;  %v13434_v34 = vcombine.low %v1332_v36, %v1336_v39 }
 0x28d   :  { %v13400_v4 = vcombine.low %v1299_v47, %v1303_v49 }
 0x28e   :  { %10040 = vmatpush1.bf16.msra.mxu0 %v13352_v60  ;;  %10573 = vmatpush1.bf16.msra.mxu1 %v13354_v61  ;;  %v13401_v60 = vcombine.high %v1299_v47, %v1303_v49  ;;  %v13403_v61 = vcombine.high %v1300_v50, %v1304_v52  ;;  %v1343_v47 = vld [vmem:[#allocation2 + $0x2820] sm:$0xff]  ;;  %v14265_v49 = vrot.slane %v1729_v35, %v14104_v53  ;;  %v1340_v50 = vld [vmem:[#allocation2 + $0x2808] sm:$0xff] }
 0x28f   :  { %10041 = vmatprep.subr.bf16.mxu0 %v13361_v62  ;;  %10574 = vmatprep.subr.bf16.mxu1 %v13363_v8  ;;  %v1307_v62 = vld [vmem:[#allocation2 + $0x2700] sm:$0xff]  ;;  %v1344_v52 = vld [vmem:[#allocation2 + $0x2828] sm:$0xff] }
 0x290   :  { %v1311_v8 = vld [vmem:[#allocation2 + $0x2720] sm:$0xff] }
 0x291   :  { %v13408_v17 = vcombine.low %v1307_v62, %v1311_v8  ;;  %v1371_v35 = vld [vmem:[#allocation2 + $0x2900] sm:$0xff] }
 0x292   :  { %10042 = vmatpush1.bf16.msra.mxu0 %v13360_v43  ;;  %10575 = vmatpush1.bf16.msra.mxu1 %v13362_v11  ;;  %v13409_v43 = vcombine.high %v1307_v62, %v1311_v8  ;;  %v13411_v11 = vcombine.high %v1308_v2, %v1312_v3  ;;  %v1351_v62 = vld [vmem:[#allocation2 + $0x2860] sm:$0xff]  ;;  %v1745_v8 = vcombine.high %v14265_v49, %v14265_v49  ;;  %v1348_v3 = vld [vmem:[#allocation2 + $0x2848] sm:$0xff] }
 0x293   :  { %10043 = vmatprep.subr.bf16.mxu0 %v13369_v12  ;;  %10576 = vmatprep.subr.bf16.mxu1 %v13371_v13  ;;  %v1315_v12 = vld [vmem:[#allocation2 + $0x2740] sm:$0xff]  ;;  %v14271_v2 = vcombine.high %v14252_v56, %v14252_v56 }
 0x294   :  { %v1319_v13 = vld [vmem:[#allocation2 + $0x2760] sm:$0xff] }
 0x295   :  { %v13416_v26 = vcombine.low %v1315_v12, %v1319_v13 }
 0x296   :  { %10044 = vmatpush1.bf16.msra.mxu0 %v13368_v16  ;;  %10577 = vmatpush1.bf16.msra.mxu1 %v13370_v1  ;;  %v13417_v16 = vcombine.high %v1315_v12, %v1319_v13  ;;  %v13419_v1 = vcombine.high %v1316_v14, %v1320_v15  ;;  %v1355_v13 = vld [vmem:[#allocation2 + $0x2880] sm:$0xff]  ;;  %v14274_v15 = vrot.slane %v1745_v8, %v14104_v53 }
 0x297   :  { %10045 = vmatprep.subr.bf16.mxu0 %v13377_v21  ;;  %10578 = vmatprep.subr.bf16.mxu1 %v13379_v22  ;;  %v1323_v21 = vld [vmem:[#allocation2 + $0x2780] sm:$0xff] }
 0x298   :  { %v1327_v22 = vld [vmem:[#allocation2 + $0x27a0] sm:$0xff] }
 0x299   :  { %v13424_v40 = vcombine.low %v1323_v21, %v1327_v22  ;;  %v1359_v14 = vld [vmem:[#allocation2 + $0x28a0] sm:$0xff] }
 0x29a   :  { %10046 = vmatpush1.bf16.msra.mxu0 %v13376_v31  ;;  %10579 = vmatpush1.bf16.msra.mxu1 %v13378_v63  ;;  %v13425_v31 = vcombine.high %v1323_v21, %v1327_v22  ;;  %v13427_v63 = vcombine.high %v1324_v24, %v1328_v25  ;;  %v13457_v21 = vcombine.high %v1355_v13, %v1359_v14  ;;  %v1391_v8 = vld [vmem:[#allocation2 + $0x29a0] sm:$0xff] }
 0x29b   :  { %10047 = vmatprep.subr.bf16.mxu0 %v13385_v59  ;;  %10580 = vmatprep.subr.bf16.mxu1 %v13387_v33  ;;  %v1331_v59 = vld [vmem:[#allocation2 + $0x27c0] sm:$0xff] }
 0x29c   :  { %v1335_v33 = vld [vmem:[#allocation2 + $0x27e0] sm:$0xff] }
 0x29e   :  { %10048 = vmatpush1.bf16.msra.mxu0 %v13384_v41  ;;  %10581 = vmatpush1.bf16.msra.mxu1 %v13386_v42  ;;  %v13426_v41 = vcombine.low %v1324_v24, %v1328_v25  ;;  %v13433_v42 = vcombine.high %v1331_v59, %v1335_v33  ;;  %v1363_v24 = vld [vmem:[#allocation2 + $0x28c0] sm:$0xff] }
 0x29f   :  { %10049 = vmatprep.subr.bf16.mxu0 %v13393_v45  ;;  %10582 = vmatprep.subr.bf16.mxu1 %v13395_v46  ;;  %v13435_v45 = vcombine.high %v1332_v36, %v1336_v39  ;;  %v1339_v46 = vld [vmem:[#allocation2 + $0x2800] sm:$0xff]  ;;  %v1372_v39 = vld [vmem:[#allocation2 + $0x2908] sm:$0xff] }
 0x2a0   :  { %v1367_v25 = vld [vmem:[#allocation2 + $0x28e0] sm:$0xff] }
 0x2a1   :  { %v1375_v36 = vld [vmem:[#allocation2 + $0x2920] sm:$0xff] }
 0x2a2   :  { %10050 = vmatpush1.bf16.msra.mxu0 %v13392_v54  ;;  %10583 = vmatpush1.bf16.msra.mxu1 %v13394_v55  ;;  %v13432_v54 = vcombine.low %v1331_v59, %v1335_v33  ;;  %v13441_v55 = vcombine.high %v1339_v46, %v1343_v47  ;;  %v13465_v59 = vcombine.high %v1363_v24, %v1367_v25 }
 0x2a3   :  { %10051 = vmatprep.subr.bf16.mxu0 %v13401_v60  ;;  %10584 = vmatprep.subr.bf16.mxu1 %v13403_v61  ;;  %v13443_v60 = vcombine.high %v1340_v50, %v1344_v52  ;;  %v1347_v61 = vld [vmem:[#allocation2 + $0x2840] sm:$0xff] }
 0x2a6   :  { %10052 = vmatpush1.bf16.msra.mxu0 %v13400_v4  ;;  %10585 = vmatpush1.bf16.msra.mxu1 %v13402_v29  ;;  %v1352_v4 = vld [vmem:[#allocation2 + $0x2868] sm:$0xff]  ;;  %v13440_v29 = vcombine.low %v1339_v46, %v1343_v47  ;;  %v1379_v47 = vld [vmem:[#allocation2 + $0x2940] sm:$0xff] }
 0x2a7   :  { %10053 = vmatprep.subr.bf16.mxu0 %v13409_v43  ;;  %10586 = vmatprep.subr.bf16.mxu1 %v13411_v11  ;;  %v13442_v43 = vcombine.low %v1340_v50, %v1344_v52  ;;  %v13449_v11 = vcombine.high %v1347_v61, %v1351_v62  ;;  %v13451_v12 = vcombine.high %v1348_v3, %v1352_v4  ;;  %v1383_v50 = vld [vmem:[#allocation2 + $0x2960] sm:$0xff]  ;;  %v1380_v52 = vld [vmem:[#allocation2 + $0x2948] sm:$0xff] }
 0x2aa   :  { %10054 = vmatpush1.bf16.msra.mxu0 %v13408_v17  ;;  %10587 = vmatpush1.bf16.msra.mxu1 %v13410_v18  ;;  %v1356_v17 = vld [vmem:[#allocation2 + $0x2888] sm:$0xff] }
 0x2ab   :  { %10055 = vmatprep.subr.bf16.mxu0 %v13417_v16  ;;  %10588 = vmatprep.subr.bf16.mxu1 %v13419_v1  ;;  %v1360_v18 = vld [vmem:[#allocation2 + $0x28a8] sm:$0xff]  ;;  %v13448_v16 = vcombine.low %v1347_v61, %v1351_v62  ;;  %v13450_v1 = vcombine.low %v1348_v3, %v1352_v4  ;;  %v1387_v62 = vld [vmem:[#allocation2 + $0x2980] sm:$0xff] }
 0x2ac   :  { %v13459_v22 = vcombine.high %v1356_v17, %v1360_v18  ;;  %v1388_v3 = vld [vmem:[#allocation2 + $0x2988] sm:$0xff] }
 0x2ad   :  { %v1392_v4 = vld [vmem:[#allocation2 + $0x29a8] sm:$0xff] }
 0x2ae   :  { %10056 = vmatpush1.bf16.msra.mxu0 %v13416_v26  ;;  %10589 = vmatpush1.bf16.msra.mxu1 %v13418_v28  ;;  %v1364_v26 = vld [vmem:[#allocation2 + $0x28c8] sm:$0xff] }
 0x2af   :  { %10057 = vmatprep.subr.bf16.mxu0 %v13425_v31  ;;  %10590 = vmatprep.subr.bf16.mxu1 %v13427_v63  ;;  %v1368_v28 = vld [vmem:[#allocation2 + $0x28e8] sm:$0xff]  ;;  %v13456_v31 = vcombine.low %v1355_v13, %v1359_v14  ;;  %v13458_v63 = vcombine.low %v1356_v17, %v1360_v18  ;;  %v1395_v13 = vld [vmem:[#allocation2 + $0x29c0] sm:$0xff] }
 0x2b0   :  { %v13467_v33 = vcombine.high %v1364_v26, %v1368_v28  ;;  %v1399_v14 = vld [vmem:[#allocation2 + $0x29e0] sm:$0xff]  ;;  %v1396_v17 = vld [vmem:[#allocation2 + $0x29c8] sm:$0xff] }
 0x2b1   :  { %v1400_v18 = vld [vmem:[#allocation2 + $0x29e8] sm:$0xff] }
 0x2b2   :  { %10058 = vmatpush1.bf16.msra.mxu0 %v13424_v40  ;;  %10591 = vmatpush1.bf16.msra.mxu1 %v13426_v41  ;;  %v1376_v40 = vld [vmem:[#allocation2 + $0x2928] sm:$0xff]  ;;  %v13464_v41 = vcombine.low %v1363_v24, %v1367_v25  ;;  %v1403_v24 = vld [vmem:[#allocation2 + $0x2a00] sm:$0xff] }
 0x2b3   :  { %10059 = vmatprep.subr.bf16.mxu0 %v13433_v42  ;;  %10592 = vmatprep.subr.bf16.mxu1 %v13435_v45  ;;  %v13466_v42 = vcombine.low %v1364_v26, %v1368_v28  ;;  %v13473_v45 = vcombine.high %v1371_v35, %v1375_v36  ;;  %v13475_v46 = vcombine.high %v1372_v39, %v1376_v40  ;;  %v1407_v25 = vld [vmem:[#allocation2 + $0x2a20] sm:$0xff]  ;;  %v1404_v26 = vld [vmem:[#allocation2 + $0x2a08] sm:$0xff] }
 0x2b4   :  { %v1408_v28 = vld [vmem:[#allocation2 + $0x2a28] sm:$0xff] }
 0x2b6   :  { %10060 = vmatpush1.bf16.msra.mxu0 %v13432_v54  ;;  %10593 = vmatpush1.bf16.msra.mxu1 %v13434_v34  ;;  %v1384_v54 = vld [vmem:[#allocation2 + $0x2968] sm:$0xff]  ;;  %v13472_v34 = vcombine.low %v1371_v35, %v1375_v36  ;;  %v1411_v35 = vld [vmem:[#allocation2 + $0x2a40] sm:$0xff] }
 0x2b7   :  { %10070 = vmatprep.subr.bf16.mxu0 %v13441_v55  ;;  %10603 = vmatprep.subr.bf16.mxu1 %v13443_v60  ;;  %v13474_v55 = vcombine.low %v1372_v39, %v1376_v40  ;;  %v13481_v60 = vcombine.high %v1379_v47, %v1383_v50  ;;  %v13483_v61 = vcombine.high %v1380_v52, %v1384_v54  ;;  %v1415_v36 = vld [vmem:[#allocation2 + $0x2a60] sm:$0xff]  ;;  %v1412_v39 = vld [vmem:[#allocation2 + $0x2a48] sm:$0xff] }
 0x2b8   :  { %v1416_v40 = vld [vmem:[#allocation2 + $0x2a68] sm:$0xff] }
 0x2b9   :  { %10062 = vmatmul.mubr.bf16.vlgmr.msra.gmra.mrb[0].mxu0 %v14271_v2  ;;  %10595 = vmatmul.mubr.bf16.vlgmr.msra.gmra.mrb[0].mxu1 %v14271_v2 }
 0x2ba   :  { %10071 = vmatpush1.bf16.msra.mxu0 %v13440_v29  ;;  %10604 = vmatpush1.bf16.msra.mxu1 %v13442_v43  ;;  %v13480_v29 = vcombine.low %v1379_v47, %v1383_v50  ;;  %v13482_v43 = vcombine.low %v1380_v52, %v1384_v54  ;;  %v1419_v47 = vld [vmem:[#allocation2 + $0x2a80] sm:$0xff]  ;;  %v1420_v52 = vld [vmem:[#allocation2 + $0x2a88] sm:$0xff] }
 0x2bb   :  { %10072 = vmatprep.subr.bf16.mxu0 %v13449_v11  ;;  %10605 = vmatprep.subr.bf16.mxu1 %v13451_v12  ;;  %v13489_v11 = vcombine.high %v1387_v62, %v1391_v8  ;;  %v13491_v12 = vcombine.high %v1388_v3, %v1392_v4  ;;  %v1423_v50 = vld [vmem:[#allocation2 + $0x2aa0] sm:$0xff]  ;;  %v1424_v54 = vld [vmem:[#allocation2 + $0x2aa8] sm:$0xff] }
 0x2bc   :  { %10102 = vmatprep.mubr.bf16.mxu0 %v14274_v15  ;;  %10635 = vmatprep.mubr.bf16.mxu1 %v14274_v15 }
 0x2be   :  { %10073 = vmatpush1.bf16.msra.mxu0 %v13448_v16  ;;  %10606 = vmatpush1.bf16.msra.mxu1 %v13450_v1  ;;  %v13488_v16 = vcombine.low %v1387_v62, %v1391_v8  ;;  %v13490_v1 = vcombine.low %v1388_v3, %v1392_v4  ;;  %v1427_v62 = vld [vmem:[#allocation2 + $0x2ac0] sm:$0xff]  ;;  %v1428_v3 = vld [vmem:[#allocation2 + $0x2ac8] sm:$0xff] }
 0x2bf   :  { %10074 = vmatprep.subr.bf16.mxu0 %v13457_v21  ;;  %10607 = vmatprep.subr.bf16.mxu1 %v13459_v22  ;;  %v13497_v21 = vcombine.high %v1395_v13, %v1399_v14  ;;  %v13499_v22 = vcombine.high %v1396_v17, %v1400_v18  ;;  %v1431_v8 = vld [vmem:[#allocation2 + $0x2ae0] sm:$0xff]  ;;  %v1432_v4 = vld [vmem:[#allocation2 + $0x2ae8] sm:$0xff] }
 0x2c2   :  { %10075 = vmatpush1.bf16.msra.mxu0 %v13456_v31  ;;  %10608 = vmatpush1.bf16.msra.mxu1 %v13458_v63  ;;  %v13496_v31 = vcombine.low %v1395_v13, %v1399_v14  ;;  %v13498_v63 = vcombine.low %v1396_v17, %v1400_v18  ;;  %v1435_v13 = vld [vmem:[#allocation2 + $0x2b00] sm:$0xff]  ;;  %v1436_v17 = vld [vmem:[#allocation2 + $0x2b08] sm:$0xff] }
 0x2c3   :  { %10076 = vmatprep.subr.bf16.mxu0 %v13465_v59  ;;  %10609 = vmatprep.subr.bf16.mxu1 %v13467_v33  ;;  %v13505_v59 = vcombine.high %v1403_v24, %v1407_v25  ;;  %v13507_v33 = vcombine.high %v1404_v26, %v1408_v28  ;;  %v1439_v14 = vld [vmem:[#allocation2 + $0x2b20] sm:$0xff]  ;;  %v1440_v18 = vld [vmem:[#allocation2 + $0x2b28] sm:$0xff] }
 0x2c6   :  { %10077 = vmatpush1.bf16.msra.mxu0 %v13464_v41  ;;  %10610 = vmatpush1.bf16.msra.mxu1 %v13466_v42  ;;  %v13504_v41 = vcombine.low %v1403_v24, %v1407_v25  ;;  %v13506_v42 = vcombine.low %v1404_v26, %v1408_v28  ;;  %v1443_v24 = vld [vmem:[#allocation2 + $0x2b40] sm:$0xff]  ;;  %v1444_v26 = vld [vmem:[#allocation2 + $0x2b48] sm:$0xff] }
 0x2c7   :  { %10078 = vmatprep.subr.bf16.mxu0 %v13473_v45  ;;  %10611 = vmatprep.subr.bf16.mxu1 %v13475_v46  ;;  %v13513_v45 = vcombine.high %v1411_v35, %v1415_v36  ;;  %v13515_v46 = vcombine.high %v1412_v39, %v1416_v40  ;;  %v1447_v25 = vld [vmem:[#allocation2 + $0x2b60] sm:$0xff]  ;;  %v1448_v28 = vld [vmem:[#allocation2 + $0x2b68] sm:$0xff] }
 0x2ca   :  { %10079 = vmatpush1.bf16.msra.mxu0 %v13472_v34  ;;  %10612 = vmatpush1.bf16.msra.mxu1 %v13474_v55  ;;  %v13512_v34 = vcombine.low %v1411_v35, %v1415_v36  ;;  %v13514_v55 = vcombine.low %v1412_v39, %v1416_v40  ;;  %v1451_v35 = vld [vmem:[#allocation2 + $0x2b80] sm:$0xff]  ;;  %v1452_v39 = vld [vmem:[#allocation2 + $0x2b88] sm:$0xff] }
 0x2cb   :  { %10080 = vmatprep.subr.bf16.mxu0 %v13481_v60  ;;  %10613 = vmatprep.subr.bf16.mxu1 %v13483_v61  ;;  %v13521_v60 = vcombine.high %v1419_v47, %v1423_v50  ;;  %v13523_v61 = vcombine.high %v1420_v52, %v1424_v54  ;;  %v1455_v36 = vld [vmem:[#allocation2 + $0x2ba0] sm:$0xff]  ;;  %v1456_v40 = vld [vmem:[#allocation2 + $0x2ba8] sm:$0xff] }
 0x2ce   :  { %10081 = vmatpush1.bf16.msra.mxu0 %v13480_v29  ;;  %10614 = vmatpush1.bf16.msra.mxu1 %v13482_v43  ;;  %v13520_v29 = vcombine.low %v1419_v47, %v1423_v50  ;;  %v13522_v43 = vcombine.low %v1420_v52, %v1424_v54  ;;  %v1459_v47 = vld [vmem:[#allocation2 + $0x2bc0] sm:$0xff]  ;;  %v1460_v52 = vld [vmem:[#allocation2 + $0x2bc8] sm:$0xff] }
 0x2cf   :  { %10082 = vmatprep.subr.bf16.mxu0 %v13489_v11  ;;  %10615 = vmatprep.subr.bf16.mxu1 %v13491_v12  ;;  %v13529_v11 = vcombine.high %v1427_v62, %v1431_v8  ;;  %v13531_v12 = vcombine.high %v1428_v3, %v1432_v4  ;;  %v1463_v50 = vld [vmem:[#allocation2 + $0x2be0] sm:$0xff]  ;;  %v1464_v54 = vld [vmem:[#allocation2 + $0x2be8] sm:$0xff] }
 0x2d2   :  { %10083 = vmatpush1.bf16.msra.mxu0 %v13488_v16  ;;  %10616 = vmatpush1.bf16.msra.mxu1 %v13490_v1  ;;  %v13528_v16 = vcombine.low %v1427_v62, %v1431_v8  ;;  %v13530_v1 = vcombine.low %v1428_v3, %v1432_v4  ;;  %v1467_v62 = vld [vmem:[#allocation2 + $0x2c00] sm:$0xff]  ;;  %v1468_v3 = vld [vmem:[#allocation2 + $0x2c08] sm:$0xff] }
 0x2d3   :  { %10084 = vmatprep.subr.bf16.mxu0 %v13497_v21  ;;  %10617 = vmatprep.subr.bf16.mxu1 %v13499_v22  ;;  %v13537_v21 = vcombine.high %v1435_v13, %v1439_v14  ;;  %v13539_v22 = vcombine.high %v1436_v17, %v1440_v18  ;;  %v1471_v8 = vld [vmem:[#allocation2 + $0x2c20] sm:$0xff]  ;;  %v1472_v4 = vld [vmem:[#allocation2 + $0x2c28] sm:$0xff] }
 0x2d6   :  { %10085 = vmatpush1.bf16.msra.mxu0 %v13496_v31  ;;  %10618 = vmatpush1.bf16.msra.mxu1 %v13498_v63  ;;  %v13536_v31 = vcombine.low %v1435_v13, %v1439_v14  ;;  %v13538_v63 = vcombine.low %v1436_v17, %v1440_v18  ;;  %v1475_v13 = vld [vmem:[#allocation2 + $0x2c40] sm:$0xff]  ;;  %v14282_v17 = vrot.slane %v14265_v49, %v14104_v53  ;;  %v1476_v18 = vld [vmem:[#allocation2 + $0x2c48] sm:$0xff] }
 0x2d7   :  { %10086 = vmatprep.subr.bf16.mxu0 %v13505_v59  ;;  %10619 = vmatprep.subr.bf16.mxu1 %v13507_v33  ;;  %v13545_v59 = vcombine.high %v1443_v24, %v1447_v25  ;;  %v13547_v33 = vcombine.high %v1444_v26, %v1448_v28  ;;  %v1479_v14 = vld [vmem:[#allocation2 + $0x2c60] sm:$0xff]  ;;  %v1484_v49 = vld [vmem:[#allocation2 + $0x2c88] sm:$0xff] }
 0x2da   :  { %10087 = vmatpush1.bf16.msra.mxu0 %v13504_v41  ;;  %10620 = vmatpush1.bf16.msra.mxu1 %v13506_v42  ;;  %v13544_v41 = vcombine.low %v1443_v24, %v1447_v25  ;;  %v13546_v42 = vcombine.low %v1444_v26, %v1448_v28  ;;  %v1483_v25 = vld [vmem:[#allocation2 + $0x2c80] sm:$0xff]  ;;  %v14286_v28 = vcombine.high %v14274_v15, %v14274_v15 }
 0x2db   :  { %10088 = vmatprep.subr.bf16.mxu0 %v13513_v45  ;;  %10621 = vmatprep.subr.bf16.mxu1 %v13515_v46  ;;  %v13553_v45 = vcombine.high %v1451_v35, %v1455_v36  ;;  %v13555_v46 = vcombine.high %v1452_v39, %v1456_v40  ;;  %v1487_v26 = vld [vmem:[#allocation2 + $0x2ca0] sm:$0xff] }
 0x2de   :  { %10089 = vmatpush1.bf16.msra.mxu0 %v13512_v34  ;;  %10622 = vmatpush1.bf16.msra.mxu1 %v13514_v55  ;;  %v13552_v34 = vcombine.low %v1451_v35, %v1455_v36  ;;  %v13554_v55 = vcombine.low %v1452_v39, %v1456_v40  ;;  %v1491_v36 = vld [vmem:[#allocation2 + $0x2cc0] sm:$0xff]  ;;  %v1492_v40 = vld [vmem:[#allocation2 + $0x2cc8] sm:$0xff] }
 0x2df   :  { %10090 = vmatprep.subr.bf16.mxu0 %v13521_v60  ;;  %10623 = vmatprep.subr.bf16.mxu1 %v13523_v61  ;;  %v13561_v60 = vcombine.high %v1459_v47, %v1463_v50  ;;  %v13563_v61 = vcombine.high %v1460_v52, %v1464_v54  ;;  %v1495_v39 = vld [vmem:[#allocation2 + $0x2ce0] sm:$0xff] }
 0x2e2   :  { %10091 = vmatpush1.bf16.msra.mxu0 %v13520_v29  ;;  %10624 = vmatpush1.bf16.msra.mxu1 %v13522_v43  ;;  %v13560_v29 = vcombine.low %v1459_v47, %v1463_v50  ;;  %v13562_v43 = vcombine.low %v1460_v52, %v1464_v54  ;;  %v1499_v50 = vld [vmem:[#allocation2 + $0x2d00] sm:$0xff]  ;;  %v1500_v54 = vld [vmem:[#allocation2 + $0x2d08] sm:$0xff] }
 0x2e3   :  { %10092 = vmatprep.subr.bf16.mxu0 %v13529_v11  ;;  %10625 = vmatprep.subr.bf16.mxu1 %v13531_v12  ;;  %v13569_v11 = vcombine.high %v1467_v62, %v1471_v8  ;;  %v13571_v12 = vcombine.high %v1468_v3, %v1472_v4  ;;  %v1503_v52 = vld [vmem:[#allocation2 + $0x2d20] sm:$0xff] }
 0x2e6   :  { %10093 = vmatpush1.bf16.msra.mxu0 %v13528_v16  ;;  %10626 = vmatpush1.bf16.msra.mxu1 %v13530_v1  ;;  %v1480_v16 = vld [vmem:[#allocation2 + $0x2c68] sm:$0xff]  ;;  %v13568_v1 = vcombine.low %v1467_v62, %v1471_v8  ;;  %v1507_v8 = vld [vmem:[#allocation2 + $0x2d40] sm:$0xff] }
 0x2e7   :  { %10094 = vmatprep.subr.bf16.mxu0 %v13537_v21  ;;  %10627 = vmatprep.subr.bf16.mxu1 %v13539_v22  ;;  %v13570_v21 = vcombine.low %v1468_v3, %v1472_v4  ;;  %v13577_v22 = vcombine.high %v1475_v13, %v1479_v14  ;;  %v13579_v24 = vcombine.high %v1476_v18, %v1480_v16  ;;  %v1511_v3 = vld [vmem:[#allocation2 + $0x2d60] sm:$0xff]  ;;  %v1508_v4 = vld [vmem:[#allocation2 + $0x2d48] sm:$0xff] }
 0x2ea   :  { %10095 = vmatpush1.bf16.msra.mxu0 %v13536_v31  ;;  %10628 = vmatpush1.bf16.msra.mxu1 %v13538_v63  ;;  %v1488_v31 = vld [vmem:[#allocation2 + $0x2ca8] sm:$0xff]  ;;  %v13576_v63 = vcombine.low %v1475_v13, %v1479_v14  ;;  %v1515_v14 = vld [vmem:[#allocation2 + $0x2d80] sm:$0xff] }
 0x2eb   :  { %10096 = vmatprep.subr.bf16.mxu0 %v13545_v59  ;;  %10629 = vmatprep.subr.bf16.mxu1 %v13547_v33  ;;  %v13578_v59 = vcombine.low %v1476_v18, %v1480_v16  ;;  %v13585_v33 = vcombine.high %v1483_v25, %v1487_v26  ;;  %v13587_v35 = vcombine.high %v1484_v49, %v1488_v31  ;;  %v1519_v18 = vld [vmem:[#allocation2 + $0x2da0] sm:$0xff]  ;;  %v1516_v16 = vld [vmem:[#allocation2 + $0x2d88] sm:$0xff] }
 0x2ee   :  { %10097 = vmatpush1.bf16.msra.mxu0 %v13544_v41  ;;  %10630 = vmatpush1.bf16.msra.mxu1 %v13546_v42  ;;  %v1496_v41 = vld [vmem:[#allocation2 + $0x2ce8] sm:$0xff]  ;;  %v13584_v42 = vcombine.low %v1483_v25, %v1487_v26  ;;  %v1523_v26 = vld [vmem:[#allocation2 + $0x2dc0] sm:$0xff] }
 0x2ef   :  { %10098 = vmatprep.subr.bf16.mxu0 %v13553_v45  ;;  %10631 = vmatprep.subr.bf16.mxu1 %v13555_v46  ;;  %v13586_v45 = vcombine.low %v1484_v49, %v1488_v31  ;;  %v13593_v46 = vcombine.high %v1491_v36, %v1495_v39  ;;  %v13595_v47 = vcombine.high %v1492_v40, %v1496_v41  ;;  %v1527_v49 = vld [vmem:[#allocation2 + $0x2de0] sm:$0xff]  ;;  %v1524_v31 = vld [vmem:[#allocation2 + $0x2dc8] sm:$0xff] }
 0x2f2   :  { %10099 = vmatpush1.bf16.msra.mxu0 %v13552_v34  ;;  %10632 = vmatpush1.bf16.msra.mxu1 %v13554_v55  ;;  %v1504_v34 = vld [vmem:[#allocation2 + $0x2d28] sm:$0xff]  ;;  %v13592_v55 = vcombine.low %v1491_v36, %v1495_v39  ;;  %v1531_v39 = vld [vmem:[#allocation2 + $0x2e00] sm:$0xff] }
 0x2f3   :  { %10100 = vmatprep.subr.bf16.mxu0 %v13561_v60  ;;  %10633 = vmatprep.subr.bf16.mxu1 %v13563_v61  ;;  %v13594_v60 = vcombine.low %v1492_v40, %v1496_v41  ;;  %v13601_v61 = vcombine.high %v1499_v50, %v1503_v52  ;;  %v13603_v62 = vcombine.high %v1500_v54, %v1504_v34  ;;  %v1535_v40 = vld [vmem:[#allocation2 + $0x2e20] sm:$0xff]  ;;  %v1532_v41 = vld [vmem:[#allocation2 + $0x2e08] sm:$0xff] }
 0x2f6   :  { %10101 = vmatpush1.bf16.msra.mxu0 %v13560_v29  ;;  %10634 = vmatpush1.bf16.msra.mxu1 %v13562_v43  ;;  %v1512_v29 = vld [vmem:[#allocation2 + $0x2d68] sm:$0xff]  ;;  %v13600_v43 = vcombine.low %v1499_v50, %v1503_v52  ;;  %v1539_v52 = vld [vmem:[#allocation2 + $0x2e40] sm:$0xff] }
 0x2f7   :  { %10111 = vmatprep.subr.bf16.mxu0 %v13569_v11  ;;  %10644 = vmatprep.subr.bf16.mxu1 %v13571_v12  ;;  %v13602_v11 = vcombine.low %v1500_v54, %v1504_v34  ;;  %v13609_v12 = vcombine.high %v1507_v8, %v1511_v3  ;;  %v13611_v13 = vcombine.high %v1508_v4, %v1512_v29  ;;  %v1543_v54 = vld [vmem:[#allocation2 + $0x2e60] sm:$0xff]  ;;  %v1540_v34 = vld [vmem:[#allocation2 + $0x2e48] sm:$0xff] }
 0x2f9   :  { %10103 = vmatmul.mubr.bf16.vlgmr.msra.gmra.mrb[0].mxu0 %v14282_v17  ;;  %10636 = vmatmul.mubr.bf16.vlgmr.msra.gmra.mrb[0].mxu1 %v14282_v17 }
 0x2fa   :  { %10112 = vmatpush1.bf16.msra.mxu0 %v13568_v1  ;;  %10645 = vmatpush1.bf16.msra.mxu1 %v13570_v21  ;;  %v1520_v1 = vld [vmem:[#allocation2 + $0x2da8] sm:$0xff]  ;;  %v13608_v21 = vcombine.low %v1507_v8, %v1511_v3  ;;  %v1547_v3 = vld [vmem:[#allocation2 + $0x2e80] sm:$0xff] }
 0x2fb   :  { %10113 = vmatprep.subr.bf16.mxu0 %v13577_v22  ;;  %10646 = vmatprep.subr.bf16.mxu1 %v13579_v24  ;;  %v13610_v22 = vcombine.low %v1508_v4, %v1512_v29  ;;  %v13617_v24 = vcombine.high %v1515_v14, %v1519_v18  ;;  %v13619_v25 = vcombine.high %v1516_v16, %v1520_v1  ;;  %v1551_v4 = vld [vmem:[#allocation2 + $0x2ea0] sm:$0xff]  ;;  %v1548_v29 = vld [vmem:[#allocation2 + $0x2e88] sm:$0xff] }
 0x2fc   :  { %10143 = vmatprep.mubr.bf16.mxu0 %v14286_v28  ;;  %10676 = vmatprep.mubr.bf16.mxu1 %v14286_v28 }
 0x2fe   :  { %10114 = vmatpush1.bf16.msra.mxu0 %v13576_v63  ;;  %10647 = vmatpush1.bf16.msra.mxu1 %v13578_v59  ;;  %v1528_v63 = vld [vmem:[#allocation2 + $0x2de8] sm:$0xff]  ;;  %v13616_v59 = vcombine.low %v1515_v14, %v1519_v18  ;;  %v1555_v18 = vld [vmem:[#allocation2 + $0x2ec0] sm:$0xff] }
 0x2ff   :  { %10115 = vmatprep.subr.bf16.mxu0 %v13585_v33  ;;  %10648 = vmatprep.subr.bf16.mxu1 %v13587_v35  ;;  %v13618_v33 = vcombine.low %v1516_v16, %v1520_v1  ;;  %v13625_v35 = vcombine.high %v1523_v26, %v1527_v49  ;;  %v13627_v36 = vcombine.high %v1524_v31, %v1528_v63  ;;  %v1559_v16 = vld [vmem:[#allocation2 + $0x2ee0] sm:$0xff]  ;;  %v1556_v1 = vld [vmem:[#allocation2 + $0x2ec8] sm:$0xff] }
 0x302   :  { %10116 = vmatpush1.bf16.msra.mxu0 %v13584_v42  ;;  %10649 = vmatpush1.bf16.msra.mxu1 %v13586_v45  ;;  %v1536_v42 = vld [vmem:[#allocation2 + $0x2e28] sm:$0xff]  ;;  %v13624_v45 = vcombine.low %v1523_v26, %v1527_v49  ;;  %v1563_v49 = vld [vmem:[#allocation2 + $0x2f00] sm:$0xff] }
 0x303   :  { %10117 = vmatprep.subr.bf16.mxu0 %v13593_v46  ;;  %10650 = vmatprep.subr.bf16.mxu1 %v13595_v47  ;;  %v13626_v46 = vcombine.low %v1524_v31, %v1528_v63  ;;  %v13633_v47 = vcombine.high %v1531_v39, %v1535_v40  ;;  %v13635_v50 = vcombine.high %v1532_v41, %v1536_v42  ;;  %v1567_v31 = vld [vmem:[#allocation2 + $0x2f20] sm:$0xff]  ;;  %v1564_v63 = vld [vmem:[#allocation2 + $0x2f08] sm:$0xff] }
 0x306   :  { %10118 = vmatpush1.bf16.msra.mxu0 %v13592_v55  ;;  %10651 = vmatpush1.bf16.msra.mxu1 %v13594_v60  ;;  %v1544_v55 = vld [vmem:[#allocation2 + $0x2e68] sm:$0xff]  ;;  %v13632_v60 = vcombine.low %v1531_v39, %v1535_v40  ;;  %v1571_v40 = vld [vmem:[#allocation2 + $0x2f40] sm:$0xff] }
 0x307   :  { %10119 = vmatprep.subr.bf16.mxu0 %v13601_v61  ;;  %10652 = vmatprep.subr.bf16.mxu1 %v13603_v62  ;;  %v13634_v61 = vcombine.low %v1532_v41, %v1536_v42  ;;  %v13641_v62 = vcombine.high %v1539_v52, %v1543_v54  ;;  %v13643_v8 = vcombine.high %v1540_v34, %v1544_v55  ;;  %v1575_v41 = vld [vmem:[#allocation2 + $0x2f60] sm:$0xff]  ;;  %v1572_v42 = vld [vmem:[#allocation2 + $0x2f48] sm:$0xff] }
 0x30a   :  { %10120 = vmatpush1.bf16.msra.mxu0 %v13600_v43  ;;  %10653 = vmatpush1.bf16.msra.mxu1 %v13602_v11  ;;  %v1552_v43 = vld [vmem:[#allocation2 + $0x2ea8] sm:$0xff]  ;;  %v13640_v11 = vcombine.low %v1539_v52, %v1543_v54  ;;  %v1579_v54 = vld [vmem:[#allocation2 + $0x2f80] sm:$0xff] }
 0x30b   :  { %10121 = vmatprep.subr.bf16.mxu0 %v13609_v12  ;;  %10654 = vmatprep.subr.bf16.mxu1 %v13611_v13  ;;  %v13642_v12 = vcombine.low %v1540_v34, %v1544_v55  ;;  %v13649_v13 = vcombine.high %v1547_v3, %v1551_v4  ;;  %v13651_v14 = vcombine.high %v1548_v29, %v1552_v43  ;;  %v1583_v34 = vld [vmem:[#allocation2 + $0x2fa0] sm:$0xff]  ;;  %v1580_v55 = vld [vmem:[#allocation2 + $0x2f88] sm:$0xff] }
 0x30e   :  { %10122 = vmatpush1.bf16.msra.mxu0 %v13608_v21  ;;  %10655 = vmatpush1.bf16.msra.mxu1 %v13610_v22  ;;  %v1560_v21 = vld [vmem:[#allocation2 + $0x2ee8] sm:$0xff]  ;;  %v13648_v22 = vcombine.low %v1547_v3, %v1551_v4  ;;  %v1587_v4 = vld [vmem:[#allocation2 + $0x2fc0] sm:$0xff] }
 0x30f   :  { %10123 = vmatprep.subr.bf16.mxu0 %v13617_v24  ;;  %10656 = vmatprep.subr.bf16.mxu1 %v13619_v25  ;;  %v13650_v24 = vcombine.low %v1548_v29, %v1552_v43  ;;  %v13657_v25 = vcombine.high %v1555_v18, %v1559_v16  ;;  %v13659_v26 = vcombine.high %v1556_v1, %v1560_v21  ;;  %v1591_v29 = vld [vmem:[#allocation2 + $0x2fe0] sm:$0xff]  ;;  %v1588_v43 = vld [vmem:[#allocation2 + $0x2fc8] sm:$0xff] }
 0x312   :  { %10124 = vmatpush1.bf16.msra.mxu0 %v13616_v59  ;;  %10657 = vmatpush1.bf16.msra.mxu1 %v13618_v33  ;;  %v1568_v59 = vld [vmem:[#allocation2 + $0x2f28] sm:$0xff]  ;;  %v13656_v33 = vcombine.low %v1555_v18, %v1559_v16  ;;  %v1595_v16 = vld [vmem:[#allocation2 + $0x3000] sm:$0xff] }
 0x313   :  { %10125 = vmatprep.subr.bf16.mxu0 %v13625_v35  ;;  %10658 = vmatprep.subr.bf16.mxu1 %v13627_v36  ;;  %v13658_v35 = vcombine.low %v1556_v1, %v1560_v21  ;;  %v13665_v36 = vcombine.high %v1563_v49, %v1567_v31  ;;  %v13667_v39 = vcombine.high %v1564_v63, %v1568_v59  ;;  %v1599_v1 = vld [vmem:[#allocation2 + $0x3020] sm:$0xff]  ;;  %v1596_v21 = vld [vmem:[#allocation2 + $0x3008] sm:$0xff] }
 0x316   :  { %10126 = vmatpush1.bf16.msra.mxu0 %v13624_v45  ;;  %10659 = vmatpush1.bf16.msra.mxu1 %v13626_v46  ;;  %v1576_v45 = vld [vmem:[#allocation2 + $0x2f68] sm:$0xff]  ;;  %v13664_v46 = vcombine.low %v1563_v49, %v1567_v31  ;;  %v1603_v31 = vld [vmem:[#allocation2 + $0x3040] sm:$0xff] }
 0x317   :  { %10127 = vmatprep.subr.bf16.mxu0 %v13633_v47  ;;  %10660 = vmatprep.subr.bf16.mxu1 %v13635_v50  ;;  %v13666_v47 = vcombine.low %v1564_v63, %v1568_v59  ;;  %v13673_v50 = vcombine.high %v1571_v40, %v1575_v41  ;;  %v13675_v52 = vcombine.high %v1572_v42, %v1576_v45  ;;  %v1607_v63 = vld [vmem:[#allocation2 + $0x3060] sm:$0xff] }
 0x318   :  { %v14294_v59 = vcombine.high %v14282_v17, %v14282_v17 }
 0x31a   :  { %10128 = vmatpush1.bf16.msra.mxu0 %v13632_v60  ;;  %10661 = vmatpush1.bf16.msra.mxu1 %v13634_v61  ;;  %v1584_v60 = vld [vmem:[#allocation2 + $0x2fa8] sm:$0xff]  ;;  %v13672_v61 = vcombine.low %v1571_v40, %v1575_v41  ;;  %v13705_v40 = vcombine.high %v1603_v31, %v1607_v63 }
 0x31b   :  { %10129 = vmatprep.subr.bf16.mxu0 %v13641_v62  ;;  %10662 = vmatprep.subr.bf16.mxu1 %v13643_v8  ;;  %v13674_v62 = vcombine.low %v1572_v42, %v1576_v45  ;;  %v13681_v8 = vcombine.high %v1579_v54, %v1583_v34  ;;  %v13683_v3 = vcombine.high %v1580_v55, %v1584_v60  ;;  %v1611_v42 = vld [vmem:[#allocation2 + $0x3080] sm:$0xff] }
 0x31c   :  { %v1615_v45 = vld [vmem:[#allocation2 + $0x30a0] sm:$0xff] }
 0x31e   :  { %10130 = vmatpush1.bf16.msra.mxu0 %v13640_v11  ;;  %10663 = vmatpush1.bf16.msra.mxu1 %v13642_v12  ;;  %v1592_v11 = vld [vmem:[#allocation2 + $0x2fe8] sm:$0xff]  ;;  %v13680_v12 = vcombine.low %v1579_v54, %v1583_v34  ;;  %v13713_v54 = vcombine.high %v1611_v42, %v1615_v45 }
 0x31f   :  { %10131 = vmatprep.subr.bf16.mxu0 %v13649_v13  ;;  %10664 = vmatprep.subr.bf16.mxu1 %v13651_v14  ;;  %v13682_v13 = vcombine.low %v1580_v55, %v1584_v60  ;;  %v13689_v14 = vcombine.high %v1587_v4, %v1591_v29  ;;  %v13691_v18 = vcombine.high %v1588_v43, %v1592_v11  ;;  %v1619_v55 = vld [vmem:[#allocation2 + $0x30c0] sm:$0xff] }
 0x320   :  { %v1623_v60 = vld [vmem:[#allocation2 + $0x30e0] sm:$0xff] }
 0x322   :  { %10132 = vmatpush1.bf16.msra.mxu0 %v13648_v22  ;;  %10665 = vmatpush1.bf16.msra.mxu1 %v13650_v24  ;;  %v1600_v22 = vld [vmem:[#allocation2 + $0x3028] sm:$0xff]  ;;  %v13688_v24 = vcombine.low %v1587_v4, %v1591_v29  ;;  %v13721_v29 = vcombine.high %v1619_v55, %v1623_v60 }
 0x323   :  { %10133 = vmatprep.subr.bf16.mxu0 %v13657_v25  ;;  %10666 = vmatprep.subr.bf16.mxu1 %v13659_v26  ;;  %v13690_v25 = vcombine.low %v1588_v43, %v1592_v11  ;;  %v13697_v26 = vcombine.high %v1595_v16, %v1599_v1  ;;  %v13699_v49 = vcombine.high %v1596_v21, %v1600_v22  ;;  %v61_v11 = vld [vmem:[#allocation2 + $0x10] sm:$0xff] }
 0x326   :  { %10134 = vmatpush1.bf16.msra.mxu0 %v13656_v33  ;;  %10667 = vmatpush1.bf16.msra.mxu1 %v13658_v35  ;;  %v1604_v33 = vld [vmem:[#allocation2 + $0x3048] sm:$0xff] }
 0x327   :  { %10135 = vmatprep.subr.bf16.mxu0 %v13665_v36  ;;  %10668 = vmatprep.subr.bf16.mxu1 %v13667_v39  ;;  %v1608_v35 = vld [vmem:[#allocation2 + $0x3068] sm:$0xff]  ;;  %v13696_v36 = vcombine.low %v1595_v16, %v1599_v1  ;;  %v13698_v39 = vcombine.low %v1596_v21, %v1600_v22  ;;  %v12159_v16 = vld.sshfl [vmem:[%s14452_s0 + $0x18] sm:$0x1 pattern:$0x75316420] }
 0x328   :  { %v13707_v41 = vcombine.high %v1604_v33, %v1608_v35 }
 0x32a   :  { %10136 = vmatpush1.bf16.msra.mxu0 %v13664_v46  ;;  %10669 = vmatpush1.bf16.msra.mxu1 %v13666_v47  ;;  %v1612_v46 = vld [vmem:[#allocation2 + $0x3088] sm:$0xff] }
 0x32b   :  { %10137 = vmatprep.subr.bf16.mxu0 %v13673_v50  ;;  %10670 = vmatprep.subr.bf16.mxu1 %v13675_v52  ;;  %v1616_v47 = vld [vmem:[#allocation2 + $0x30a8] sm:$0xff]  ;;  %v13704_v50 = vcombine.low %v1603_v31, %v1607_v63  ;;  %v13706_v52 = vcombine.low %v1604_v33, %v1608_v35  ;;  %v74_v31 = vld [vmem:[#allocation2 + $0x78] sm:$0xff] }
 0x32c   :  { %v13715_v34 = vcombine.high %v1612_v46, %v1616_v47  ;;  %v13714_v4 = vcombine.low %v1612_v46, %v1616_v47 }
 0x32e   :  { %10138 = vmatpush1.bf16.msra.mxu0 %v13672_v61  ;;  %10671 = vmatpush1.bf16.msra.mxu1 %v13674_v62  ;;  %v14032_v61 = vmov 0   ;;  %v1620_v62 = vld [vmem:[#allocation2 + $0x30c8] sm:$0xff] }
 0x32f   :  { %10139 = vmatprep.subr.bf16.mxu0 %v13681_v8  ;;  %10672 = vmatprep.subr.bf16.mxu1 %v13683_v3  ;;  %v1624_v8 = vld [vmem:[#allocation2 + $0x30e8] sm:$0xff]  ;;  %v13712_v3 = vcombine.low %v1611_v42, %v1615_v45  ;;  %v82_v42 = vld [vmem:[#allocation2 + $0xb8] sm:$0xff] }
 0x330   :  { %v13723_v43 = vcombine.high %v1620_v62, %v1624_v8  ;;  %v13722_v1 = vcombine.low %v1620_v62, %v1624_v8 }
 0x332   :  { %10140 = vmatpush1.bf16.msra.mxu0 %v13680_v12  ;;  %10673 = vmatpush1.bf16.msra.mxu1 %v13682_v13  ;;  %v65_v12 = vld [vmem:[#allocation2 + $0x30] sm:$0xff]  ;;  %v62_v13 = vld [vmem:[#allocation2 + $0x18] sm:$0xff] }
 0x333   :  { %10141 = vmatprep.subr.bf16.mxu0 %v13689_v14  ;;  %10674 = vmatprep.subr.bf16.mxu1 %v13691_v18  ;;  %v66_v14 = vld [vmem:[#allocation2 + $0x38] sm:$0xff]  ;;  %v13720_v18 = vcombine.low %v1619_v55, %v1623_v60  ;;  %v12165_v21 = vcombine.high %v61_v11, %v65_v12  ;;  %v12164_v63 = vcombine.low %v61_v11, %v65_v12 }
 0x334   :  { %v12167_v22 = vcombine.high %v62_v13, %v66_v14  ;;  %v12166_v33 = vcombine.low %v62_v13, %v66_v14  ;;  %v90_v55 = vld [vmem:[#allocation2 + $0xf8] sm:$0xff] }
 0x335   :  { %v98_v11 = vld [vmem:[#allocation2 + $0x138] sm:$0xff] }
 0x336   :  { %10142 = vmatpush1.bf16.msra.mxu0 %v13688_v24  ;;  %10675 = vmatpush1.bf16.msra.mxu1 %v13690_v25  ;;  %v69_v24 = vld [vmem:[#allocation2 + $0x50] sm:$0xff] }
 0x337   :  { %10152 = vmatprep.subr.bf16.mxu0 %v13697_v26  ;;  %10685 = vmatprep.subr.bf16.mxu1 %v13699_v49  ;;  %v73_v25 = vld [vmem:[#allocation2 + $0x70] sm:$0xff]  ;;  %v14304_v26 = vrot.slane %v12159_v16, %v14104_v53  ;;  %v70_v49 = vld [vmem:[#allocation2 + $0x58] sm:$0xff] }
 0x338   :  { %v12173_v35 = vcombine.high %v69_v24, %v73_v25  ;;  %v12172_v45 = vcombine.low %v69_v24, %v73_v25  ;;  %v12174_v46 = vcombine.low %v70_v49, %v74_v31  ;;  %v105_v16 = vld [vmem:[#allocation2 + $0x170] sm:$0xff] }
 0x339   :  { %10144 = vmatmul.mubr.bf16.vlgmr.msra.gmra.mrb[0].mxu0 %v14294_v59  ;;  %10677 = vmatmul.mubr.bf16.vlgmr.msra.gmra.mrb[0].mxu1 %v14294_v59 }
 0x33a   :  { %10153 = vmatpush1.bf16.msra.mxu0 %v13696_v36  ;;  %10686 = vmatpush1.bf16.msra.mxu1 %v13698_v39  ;;  %v12175_v36 = vcombine.high %v70_v49, %v74_v31  ;;  %v77_v39 = vld [vmem:[#allocation2 + $0x90] sm:$0xff] }
 0x33b   :  { %10154 = vmatprep.subr.bf16.mxu0 %v13705_v40  ;;  %10687 = vmatprep.subr.bf16.mxu1 %v13707_v41  ;;  %v81_v40 = vld [vmem:[#allocation2 + $0xb0] sm:$0xff]  ;;  %v78_v41 = vld [vmem:[#allocation2 + $0x98] sm:$0xff] }
 0x33c   :  { %10184 = vmatprep.mubr.bf16.mxu0 %v14032_v61  ;;  %10717 = vmatprep.mubr.bf16.mxu1 %v14032_v61  ;;  %v12181_v47 = vcombine.high %v77_v39, %v81_v40  ;;  %v12180_v60 = vcombine.low %v77_v39, %v81_v40  ;;  %v12182_v62 = vcombine.low %v78_v41, %v82_v42  ;;  %v109_v31 = vld [vmem:[#allocation2 + $0x190] sm:$0xff] }
 0x33e   :  { %10155 = vmatpush1.bf16.msra.mxu0 %v13704_v50  ;;  %10688 = vmatpush1.bf16.msra.mxu1 %v13706_v52  ;;  %v12183_v50 = vcombine.high %v78_v41, %v82_v42  ;;  %v85_v52 = vld [vmem:[#allocation2 + $0xd0] sm:$0xff] }
 0x33f   :  { %10156 = vmatprep.subr.bf16.mxu0 %v13713_v54  ;;  %10689 = vmatprep.subr.bf16.mxu1 %v13715_v34  ;;  %v89_v54 = vld [vmem:[#allocation2 + $0xf0] sm:$0xff]  ;;  %v86_v34 = vld [vmem:[#allocation2 + $0xd8] sm:$0xff] }
 0x340   :  { %v12189_v8 = vcombine.high %v85_v52, %v89_v54  ;;  %v12188_v12 = vcombine.low %v85_v52, %v89_v54  ;;  %v12190_v13 = vcombine.low %v86_v34, %v90_v55  ;;  %v117_v42 = vld [vmem:[#allocation2 + $0x1d0] sm:$0xff] }
 0x342   :  { %10157 = vmatpush1.bf16.msra.mxu0 %v13712_v3  ;;  %10690 = vmatpush1.bf16.msra.mxu1 %v13714_v4  ;;  %v12191_v3 = vcombine.high %v86_v34, %v90_v55  ;;  %v93_v4 = vld [vmem:[#allocation2 + $0x110] sm:$0xff] }
 0x343   :  { %10158 = vmatprep.subr.bf16.mxu0 %v13721_v29  ;;  %10691 = vmatprep.subr.bf16.mxu1 %v13723_v43  ;;  %v97_v29 = vld [vmem:[#allocation2 + $0x130] sm:$0xff]  ;;  %v94_v43 = vld [vmem:[#allocation2 + $0x118] sm:$0xff] }
 0x344   :  { %v12197_v14 = vcombine.high %v93_v4, %v97_v29  ;;  %v12198_v24 = vcombine.low %v94_v43, %v98_v11  ;;  %v125_v55 = vld [vmem:[#allocation2 + $0x210] sm:$0xff] }
 0x346   :  { %10159 = vmatpush1.bf16.msra.mxu0 %v13720_v18  ;;  %10692 = vmatpush1.bf16.msra.mxu1 %v13722_v1  ;;  %v101_v18 = vld [vmem:[#allocation2 + $0x150] sm:$0xff]  ;;  %v102_v1 = vld [vmem:[#allocation2 + $0x158] sm:$0xff] }
 0x347   :  { %10726 = vmatprep.subr.bf16.mxu0 %v12165_v21  ;;  %11259 = vmatprep.subr.bf16.mxu1 %v12167_v22  ;;  %v106_v21 = vld [vmem:[#allocation2 + $0x178] sm:$0xff]  ;;  %v12196_v22 = vcombine.low %v93_v4, %v97_v29  ;;  %v12205_v25 = vcombine.high %v101_v18, %v105_v16 }
 0x348   :  { %v12207_v49 = vcombine.high %v102_v1, %v106_v21  ;;  %v12206_v39 = vcombine.low %v102_v1, %v106_v21  ;;  %v141_v21 = vld [vmem:[#allocation2 + $0x290] sm:$0xff] }
 0x349   :  { %13728 = vmatmul.mubr.msk.bf16.vlgmr.msra.gmra.mrb[0].mxu0 %vm9656_vm0, %v14304_v26  ;;  %13729 = vmatmul.mubr.msk.bf16.vlgmr.msra.gmra.mrb[0].mxu1 %vm9656_vm0, %v14304_v26 }
 0x34a   :  { %10727 = vmatpush1.bf16.msra.mxu0 %v12164_v63  ;;  %11260 = vmatpush1.bf16.msra.mxu1 %v12166_v33  ;;  %v113_v63 = vld [vmem:[#allocation2 + $0x1b0] sm:$0xff]  ;;  %v110_v33 = vld [vmem:[#allocation2 + $0x198] sm:$0xff] }
 0x34b   :  { %10728 = vmatprep.subr.bf16.mxu0 %v12173_v35  ;;  %11261 = vmatprep.subr.bf16.mxu1 %v12175_v36  ;;  %v114_v35 = vld [vmem:[#allocation2 + $0x1b8] sm:$0xff]  ;;  %v12204_v36 = vcombine.low %v101_v18, %v105_v16  ;;  %v12213_v40 = vcombine.high %v109_v31, %v113_v63 }
 0x34c   :  { %10758 = vmatprep.mubr.bf16.mxu0 %v14118_v9  ;;  %11291 = vmatprep.mubr.bf16.mxu1 %v14118_v9  ;;  %v12199_v9 = vcombine.high %v94_v43, %v98_v11  ;;  %v12215_v41 = vcombine.high %v110_v33, %v114_v35  ;;  %v12214_v52 = vcombine.low %v110_v33, %v114_v35  ;;  %v133_v11 = vld [vmem:[#allocation2 + $0x250] sm:$0xff] }
 0x34d   :  { %v149_v35 = vld [vmem:[#allocation2 + $0x2d0] sm:$0xff] }
 0x34e   :  { %10729 = vmatpush1.bf16.msra.mxu0 %v12172_v45  ;;  %11262 = vmatpush1.bf16.msra.mxu1 %v12174_v46  ;;  %v121_v45 = vld [vmem:[#allocation2 + $0x1f0] sm:$0xff]  ;;  %v118_v46 = vld [vmem:[#allocation2 + $0x1d8] sm:$0xff] }
 0x34f   :  { %10730 = vmatprep.subr.bf16.mxu0 %v12181_v47  ;;  %11263 = vmatprep.subr.bf16.mxu1 %v12183_v50  ;;  %v122_v47 = vld [vmem:[#allocation2 + $0x1f8] sm:$0xff]  ;;  %v12212_v50 = vcombine.low %v109_v31, %v113_v63  ;;  %v12221_v54 = vcombine.high %v117_v42, %v121_v45 }
 0x350   :  { %v12223_v34 = vcombine.high %v118_v46, %v122_v47  ;;  %v12222_v4 = vcombine.low %v118_v46, %v122_v47  ;;  %v157_v47 = vld [vmem:[#allocation2 + $0x310] sm:$0xff] }
 0x352   :  { %10731 = vmatpush1.bf16.msra.mxu0 %v12180_v60  ;;  %11264 = vmatpush1.bf16.msra.mxu1 %v12182_v62  ;;  %v129_v60 = vld [vmem:[#allocation2 + $0x230] sm:$0xff]  ;;  %v126_v62 = vld [vmem:[#allocation2 + $0x218] sm:$0xff] }
 0x353   :  { %10732 = vmatprep.subr.bf16.mxu0 %v12189_v8  ;;  %11265 = vmatprep.subr.bf16.mxu1 %v12191_v3  ;;  %v130_v8 = vld [vmem:[#allocation2 + $0x238] sm:$0xff]  ;;  %v12220_v3 = vcombine.low %v117_v42, %v121_v45  ;;  %v12229_v29 = vcombine.high %v125_v55, %v129_v60 }
 0x354   :  { %v12231_v43 = vcombine.high %v126_v62, %v130_v8  ;;  %v12230_v18 = vcombine.low %v126_v62, %v130_v8  ;;  %v165_v8 = vld [vmem:[#allocation2 + $0x350] sm:$0xff] }
 0x356   :  { %10733 = vmatpush1.bf16.msra.mxu0 %v12188_v12  ;;  %11266 = vmatpush1.bf16.msra.mxu1 %v12190_v13  ;;  %v137_v12 = vld [vmem:[#allocation2 + $0x270] sm:$0xff]  ;;  %v134_v13 = vld [vmem:[#allocation2 + $0x258] sm:$0xff] }
 0x357   :  { %10734 = vmatprep.subr.bf16.mxu0 %v12197_v14  ;;  %11267 = vmatprep.subr.bf16.mxu1 %v12199_v9  ;;  %v138_v14 = vld [vmem:[#allocation2 + $0x278] sm:$0xff]  ;;  %v12228_v9 = vcombine.low %v125_v55, %v129_v60  ;;  %v12237_v16 = vcombine.high %v133_v11, %v137_v12 }
 0x358   :  { %v12239_v1 = vcombine.high %v134_v13, %v138_v14  ;;  %v12238_v31 = vcombine.low %v134_v13, %v138_v14  ;;  %v173_v14 = vld [vmem:[#allocation2 + $0x390] sm:$0xff] }
 0x35a   :  { %10735 = vmatpush1.bf16.msra.mxu0 %v12196_v22  ;;  %11268 = vmatpush1.bf16.msra.mxu1 %v12198_v24  ;;  %v145_v22 = vld [vmem:[#allocation2 + $0x2b0] sm:$0xff]  ;;  %v142_v24 = vld [vmem:[#allocation2 + $0x298] sm:$0xff] }
 0x35b   :  { %10736 = vmatprep.subr.bf16.mxu0 %v12205_v25  ;;  %11269 = vmatprep.subr.bf16.mxu1 %v12207_v49  ;;  %v146_v25 = vld [vmem:[#allocation2 + $0x2b8] sm:$0xff]  ;;  %v12236_v49 = vcombine.low %v133_v11, %v137_v12  ;;  %v12245_v63 = vcombine.high %v141_v21, %v145_v22 }
 0x35c   :  { %v12247_v33 = vcombine.high %v142_v24, %v146_v25  ;;  %v12246_v42 = vcombine.low %v142_v24, %v146_v25  ;;  %v181_v25 = vld [vmem:[#allocation2 + $0x3d0] sm:$0xff] }
 0x35e   :  { %10737 = vmatpush1.bf16.msra.mxu0 %v12204_v36  ;;  %11270 = vmatpush1.bf16.msra.mxu1 %v12206_v39  ;;  %v153_v36 = vld [vmem:[#allocation2 + $0x2f0] sm:$0xff]  ;;  %v150_v39 = vld [vmem:[#allocation2 + $0x2d8] sm:$0xff] }
 0x35f   :  { %10738 = vmatprep.subr.bf16.mxu0 %v12213_v40  ;;  %11271 = vmatprep.subr.bf16.mxu1 %v12215_v41  ;;  %v154_v40 = vld [vmem:[#allocation2 + $0x2f8] sm:$0xff]  ;;  %v12244_v41 = vcombine.low %v141_v21, %v145_v22  ;;  %v12253_v45 = vcombine.high %v149_v35, %v153_v36 }
 0x360   :  { %v12255_v46 = vcombine.high %v150_v39, %v154_v40  ;;  %v12254_v55 = vcombine.low %v150_v39, %v154_v40  ;;  %v189_v40 = vld [vmem:[#allocation2 + $0x410] sm:$0xff] }
 0x362   :  { %10739 = vmatpush1.bf16.msra.mxu0 %v12212_v50  ;;  %11272 = vmatpush1.bf16.msra.mxu1 %v12214_v52  ;;  %v161_v50 = vld [vmem:[#allocation2 + $0x330] sm:$0xff]  ;;  %v158_v52 = vld [vmem:[#allocation2 + $0x318] sm:$0xff] }
 0x363   :  { %10740 = vmatprep.subr.bf16.mxu0 %v12221_v54  ;;  %11273 = vmatprep.subr.bf16.mxu1 %v12223_v34  ;;  %v162_v54 = vld [vmem:[#allocation2 + $0x338] sm:$0xff]  ;;  %v12252_v34 = vcombine.low %v149_v35, %v153_v36  ;;  %v12261_v60 = vcombine.high %v157_v47, %v161_v50 }
 0x364   :  { %v12263_v62 = vcombine.high %v158_v52, %v162_v54  ;;  %v12262_v11 = vcombine.low %v158_v52, %v162_v54  ;;  %v197_v54 = vld [vmem:[#allocation2 + $0x450] sm:$0xff] }
 0x366   :  { %10741 = vmatpush1.bf16.msra.mxu0 %v12220_v3  ;;  %11274 = vmatpush1.bf16.msra.mxu1 %v12222_v4  ;;  %v169_v3 = vld [vmem:[#allocation2 + $0x370] sm:$0xff]  ;;  %v166_v4 = vld [vmem:[#allocation2 + $0x358] sm:$0xff] }
 0x367   :  { %10742 = vmatprep.subr.bf16.mxu0 %v12229_v29  ;;  %11275 = vmatprep.subr.bf16.mxu1 %v12231_v43  ;;  %v170_v29 = vld [vmem:[#allocation2 + $0x378] sm:$0xff]  ;;  %v12260_v43 = vcombine.low %v157_v47, %v161_v50  ;;  %v12269_v12 = vcombine.high %v165_v8, %v169_v3 }
 0x368   :  { %v12271_v13 = vcombine.high %v166_v4, %v170_v29  ;;  %v12270_v21 = vcombine.low %v166_v4, %v170_v29  ;;  %v205_v29 = vld [vmem:[#allocation2 + $0x490] sm:$0xff] }
 0x36a   :  { %10743 = vmatpush1.bf16.msra.mxu0 %v12228_v9  ;;  %11276 = vmatpush1.bf16.msra.mxu1 %v12230_v18  ;;  %v177_v9 = vld [vmem:[#allocation2 + $0x3b0] sm:$0xff]  ;;  %v174_v18 = vld [vmem:[#allocation2 + $0x398] sm:$0xff] }
 0x36b   :  { %10744 = vmatprep.subr.bf16.mxu0 %v12237_v16  ;;  %11277 = vmatprep.subr.bf16.mxu1 %v12239_v1  ;;  %v178_v16 = vld [vmem:[#allocation2 + $0x3b8] sm:$0xff]  ;;  %v12268_v1 = vcombine.low %v165_v8, %v169_v3  ;;  %v12277_v22 = vcombine.high %v173_v14, %v177_v9 }
 0x36c   :  { %v12279_v24 = vcombine.high %v174_v18, %v178_v16  ;;  %v12278_v35 = vcombine.low %v174_v18, %v178_v16  ;;  %v213_v16 = vld [vmem:[#allocation2 + $0x4d0] sm:$0xff] }
 0x36e   :  { %10745 = vmatpush1.bf16.msra.mxu0 %v12236_v49  ;;  %11278 = vmatpush1.bf16.msra.mxu1 %v12238_v31  ;;  %v185_v49 = vld [vmem:[#allocation2 + $0x3f0] sm:$0xff]  ;;  %v182_v31 = vld [vmem:[#allocation2 + $0x3d8] sm:$0xff] }
 0x36f   :  { %10746 = vmatprep.subr.bf16.mxu0 %v12245_v63  ;;  %11279 = vmatprep.subr.bf16.mxu1 %v12247_v33  ;;  %v186_v63 = vld [vmem:[#allocation2 + $0x3f8] sm:$0xff]  ;;  %v12276_v33 = vcombine.low %v173_v14, %v177_v9  ;;  %v12285_v36 = vcombine.high %v181_v25, %v185_v49 }
 0x370   :  { %v12287_v39 = vcombine.high %v182_v31, %v186_v63  ;;  %v12286_v47 = vcombine.low %v182_v31, %v186_v63  ;;  %v221_v31 = vld [vmem:[#allocation2 + $0x510] sm:$0xff] }
 0x371   :  { %v225_v63 = vld [vmem:[#allocation2 + $0x530] sm:$0xff] }
 0x372   :  { %10747 = vmatpush1.bf16.msra.mxu0 %v12244_v41  ;;  %11280 = vmatpush1.bf16.msra.mxu1 %v12246_v42  ;;  %v193_v41 = vld [vmem:[#allocation2 + $0x430] sm:$0xff]  ;;  %v190_v42 = vld [vmem:[#allocation2 + $0x418] sm:$0xff] }
 0x373   :  { %10748 = vmatprep.subr.bf16.mxu0 %v12253_v45  ;;  %11281 = vmatprep.subr.bf16.mxu1 %v12255_v46  ;;  %v194_v45 = vld [vmem:[#allocation2 + $0x438] sm:$0xff]  ;;  %v12284_v46 = vcombine.low %v181_v25, %v185_v49  ;;  %v12293_v50 = vcombine.high %v189_v40, %v193_v41 }
 0x374   :  { %v12295_v52 = vcombine.high %v190_v42, %v194_v45  ;;  %v12294_v8 = vcombine.low %v190_v42, %v194_v45  ;;  %v233_v42 = vld [vmem:[#allocation2 + $0x570] sm:$0xff]  ;;  %v230_v45 = vld [vmem:[#allocation2 + $0x558] sm:$0xff] }
 0x376   :  { %10749 = vmatpush1.bf16.msra.mxu0 %v12252_v34  ;;  %11282 = vmatpush1.bf16.msra.mxu1 %v12254_v55  ;;  %v201_v34 = vld [vmem:[#allocation2 + $0x470] sm:$0xff]  ;;  %v198_v55 = vld [vmem:[#allocation2 + $0x458] sm:$0xff] }
 0x377   :  { %10750 = vmatprep.subr.bf16.mxu0 %v12261_v60  ;;  %11283 = vmatprep.subr.bf16.mxu1 %v12263_v62  ;;  %v202_v60 = vld [vmem:[#allocation2 + $0x478] sm:$0xff]  ;;  %v12292_v62 = vcombine.low %v189_v40, %v193_v41  ;;  %v12301_v3 = vcombine.high %v197_v54, %v201_v34  ;;  %v12325_v40 = vcombine.high %v221_v31, %v225_v63  ;;  %v229_v41 = vld [vmem:[#allocation2 + $0x550] sm:$0xff] }
 0x378   :  { %v12303_v4 = vcombine.high %v198_v55, %v202_v60  ;;  %v12302_v14 = vcombine.low %v198_v55, %v202_v60  ;;  %v241_v55 = vld [vmem:[#allocation2 + $0x5b0] sm:$0xff]  ;;  %v238_v60 = vld [vmem:[#allocation2 + $0x598] sm:$0xff] }
 0x37a   :  { %10751 = vmatpush1.bf16.msra.mxu0 %v12260_v43  ;;  %11284 = vmatpush1.bf16.msra.mxu1 %v12262_v11  ;;  %v209_v43 = vld [vmem:[#allocation2 + $0x4b0] sm:$0xff]  ;;  %v206_v11 = vld [vmem:[#allocation2 + $0x498] sm:$0xff] }
 0x37b   :  { %10752 = vmatprep.subr.bf16.mxu0 %v12269_v12  ;;  %11285 = vmatprep.subr.bf16.mxu1 %v12271_v13  ;;  %v210_v12 = vld [vmem:[#allocation2 + $0x4b8] sm:$0xff]  ;;  %v12300_v13 = vcombine.low %v197_v54, %v201_v34  ;;  %v12309_v9 = vcombine.high %v205_v29, %v209_v43  ;;  %v237_v34 = vld [vmem:[#allocation2 + $0x590] sm:$0xff] }
 0x37c   :  { %v12311_v18 = vcombine.high %v206_v11, %v210_v12 }
 0x37e   :  { %10753 = vmatpush1.bf16.msra.mxu0 %v12268_v1  ;;  %11286 = vmatpush1.bf16.msra.mxu1 %v12270_v21  ;;  %v217_v1 = vld [vmem:[#allocation2 + $0x4f0] sm:$0xff]  ;;  %v214_v21 = vld [vmem:[#allocation2 + $0x4d8] sm:$0xff] }
 0x37f   :  { %10754 = vmatprep.subr.bf16.mxu0 %v12277_v22  ;;  %11287 = vmatprep.subr.bf16.mxu1 %v12279_v24  ;;  %v218_v22 = vld [vmem:[#allocation2 + $0x4f8] sm:$0xff]  ;;  %v12308_v24 = vcombine.low %v205_v29, %v209_v43  ;;  %v12317_v25 = vcombine.high %v213_v16, %v217_v1  ;;  %v245_v43 = vld [vmem:[#allocation2 + $0x5d0] sm:$0xff] }
 0x380   :  { %v12319_v49 = vcombine.high %v214_v21, %v218_v22 }
 0x382   :  { %10755 = vmatpush1.bf16.msra.mxu0 %v12276_v33  ;;  %11288 = vmatpush1.bf16.msra.mxu1 %v12278_v35  ;;  %v222_v33 = vld [vmem:[#allocation2 + $0x518] sm:$0xff] }
 0x383   :  { %10756 = vmatprep.subr.bf16.mxu0 %v12285_v36  ;;  %11289 = vmatprep.subr.bf16.mxu1 %v12287_v39  ;;  %v226_v35 = vld [vmem:[#allocation2 + $0x538] sm:$0xff]  ;;  %v12316_v36 = vcombine.low %v213_v16, %v217_v1  ;;  %v12318_v39 = vcombine.low %v214_v21, %v218_v22  ;;  %v253_v1 = vld [vmem:[#allocation2 + $0x610] sm:$0xff] }
 0x384   :  { %v257_v21 = vld [vmem:[#allocation2 + $0x630] sm:$0xff]  ;;  %v254_v22 = vld [vmem:[#allocation2 + $0x618] sm:$0xff] }
 0x386   :  { %10757 = vmatpush1.bf16.msra.mxu0 %v12284_v46  ;;  %11290 = vmatpush1.bf16.msra.mxu1 %v12286_v47  ;;  %v234_v46 = vld [vmem:[#allocation2 + $0x578] sm:$0xff]  ;;  %v12324_v47 = vcombine.low %v221_v31, %v225_v63  ;;  %v261_v63 = vld [vmem:[#allocation2 + $0x650] sm:$0xff] }
 0x387   :  { %10767 = vmatprep.subr.bf16.mxu0 %v12293_v50  ;;  %11300 = vmatprep.subr.bf16.mxu1 %v12295_v52  ;;  %v12326_v50 = vcombine.low %v222_v33, %v226_v35  ;;  %v12333_v52 = vcombine.high %v229_v41, %v233_v42  ;;  %v12335_v54 = vcombine.high %v230_v45, %v234_v46 }
 0x389   :  { %10759 = vmatmul.mubr.bf16.vlgmr.msra.gmra.mrb[4].mxu0 %v14124_v23  ;;  %11292 = vmatmul.mubr.bf16.vlgmr.msra.gmra.mrb[4].mxu1 %v14124_v23  ;;  %v12310_v23 = vcombine.low %v206_v11, %v210_v12  ;;  %v249_v11 = vld [vmem:[#allocation2 + $0x5f0] sm:$0xff]  ;;  %v246_v12 = vld [vmem:[#allocation2 + $0x5d8] sm:$0xff] }
 0x38a   :  { %10768 = vmatpush1.bf16.msra.mxu0 %v12292_v62  ;;  %11301 = vmatpush1.bf16.msra.mxu1 %v12294_v8  ;;  %v242_v62 = vld [vmem:[#allocation2 + $0x5b8] sm:$0xff]  ;;  %v12332_v8 = vcombine.low %v229_v41, %v233_v42  ;;  %v269_v42 = vld [vmem:[#allocation2 + $0x690] sm:$0xff] }
 0x38b   :  { %10769 = vmatprep.subr.bf16.mxu0 %v12301_v3  ;;  %11302 = vmatprep.subr.bf16.mxu1 %v12303_v4  ;;  %v12334_v3 = vcombine.low %v230_v45, %v234_v46  ;;  %v12341_v4 = vcombine.high %v237_v34, %v241_v55  ;;  %v12343_v29 = vcombine.high %v238_v60, %v242_v62  ;;  %v273_v45 = vld [vmem:[#allocation2 + $0x6b0] sm:$0xff]  ;;  %v270_v46 = vld [vmem:[#allocation2 + $0x698] sm:$0xff] }
 0x38c   :  { %10799 = vmatprep.mubr.bf16.mxu0 %v14128_v32  ;;  %11332 = vmatprep.mubr.bf16.mxu1 %v14128_v32  ;;  %v12327_v32 = vcombine.high %v222_v33, %v226_v35  ;;  %v265_v33 = vld [vmem:[#allocation2 + $0x670] sm:$0xff]  ;;  %v262_v35 = vld [vmem:[#allocation2 + $0x658] sm:$0xff] }
 0x38e   :  { %10770 = vmatpush1.bf16.msra.mxu0 %v12300_v13  ;;  %11303 = vmatpush1.bf16.msra.mxu1 %v12302_v14  ;;  %v250_v13 = vld [vmem:[#allocation2 + $0x5f8] sm:$0xff]  ;;  %v12340_v14 = vcombine.low %v237_v34, %v241_v55  ;;  %v277_v55 = vld [vmem:[#allocation2 + $0x6d0] sm:$0xff] }
 0x38f   :  { %10771 = vmatprep.subr.bf16.mxu0 %v12309_v9  ;;  %11304 = vmatprep.subr.bf16.mxu1 %v12311_v18  ;;  %v12342_v9 = vcombine.low %v238_v60, %v242_v62  ;;  %v12349_v18 = vcombine.high %v245_v43, %v249_v11  ;;  %v12351_v16 = vcombine.high %v246_v12, %v250_v13  ;;  %v281_v60 = vld [vmem:[#allocation2 + $0x6f0] sm:$0xff]  ;;  %v278_v62 = vld [vmem:[#allocation2 + $0x6d8] sm:$0xff] }
 0x392   :  { %10772 = vmatpush1.bf16.msra.mxu0 %v12308_v24  ;;  %11305 = vmatpush1.bf16.msra.mxu1 %v12310_v23  ;;  %v258_v24 = vld [vmem:[#allocation2 + $0x638] sm:$0xff]  ;;  %v12348_v23 = vcombine.low %v245_v43, %v249_v11  ;;  %v285_v11 = vld [vmem:[#allocation2 + $0x710] sm:$0xff] }
 0x393   :  { %10773 = vmatprep.subr.bf16.mxu0 %v12317_v25  ;;  %11306 = vmatprep.subr.bf16.mxu1 %v12319_v49  ;;  %v12350_v25 = vcombine.low %v246_v12, %v250_v13  ;;  %v12357_v49 = vcombine.high %v253_v1, %v257_v21  ;;  %v12359_v31 = vcombine.high %v254_v22, %v258_v24  ;;  %v289_v12 = vld [vmem:[#allocation2 + $0x730] sm:$0xff]  ;;  %v286_v13 = vld [vmem:[#allocation2 + $0x718] sm:$0xff] }
 0x396   :  { %10774 = vmatpush1.bf16.msra.mxu0 %v12316_v36  ;;  %11307 = vmatpush1.bf16.msra.mxu1 %v12318_v39  ;;  %v266_v36 = vld [vmem:[#allocation2 + $0x678] sm:$0xff]  ;;  %v12356_v39 = vcombine.low %v253_v1, %v257_v21  ;;  %v293_v21 = vld [vmem:[#allocation2 + $0x750] sm:$0xff] }
 0x397   :  { %10775 = vmatprep.subr.bf16.mxu0 %v12325_v40  ;;  %11308 = vmatprep.subr.bf16.mxu1 %v12327_v32  ;;  %v12358_v40 = vcombine.low %v254_v22, %v258_v24  ;;  %v12365_v32 = vcombine.high %v261_v63, %v265_v33  ;;  %v12367_v41 = vcombine.high %v262_v35, %v266_v36  ;;  %v297_v22 = vld [vmem:[#allocation2 + $0x770] sm:$0xff]  ;;  %v294_v24 = vld [vmem:[#allocation2 + $0x758] sm:$0xff] }
 0x39a   :  { %10776 = vmatpush1.bf16.msra.mxu0 %v12324_v47  ;;  %11309 = vmatpush1.bf16.msra.mxu1 %v12326_v50  ;;  %v274_v47 = vld [vmem:[#allocation2 + $0x6b8] sm:$0xff]  ;;  %v12364_v50 = vcombine.low %v261_v63, %v265_v33  ;;  %v301_v33 = vld [vmem:[#allocation2 + $0x790] sm:$0xff] }
 0x39b   :  { %10777 = vmatprep.subr.bf16.mxu0 %v12333_v52  ;;  %11310 = vmatprep.subr.bf16.mxu1 %v12335_v54  ;;  %v12366_v52 = vcombine.low %v262_v35, %v266_v36  ;;  %v12373_v54 = vcombine.high %v269_v42, %v273_v45  ;;  %v12375_v34 = vcombine.high %v270_v46, %v274_v47  ;;  %v305_v35 = vld [vmem:[#allocation2 + $0x7b0] sm:$0xff]  ;;  %v302_v36 = vld [vmem:[#allocation2 + $0x798] sm:$0xff] }
 0x39e   :  { %10778 = vmatpush1.bf16.msra.mxu0 %v12332_v8  ;;  %11311 = vmatpush1.bf16.msra.mxu1 %v12334_v3  ;;  %v282_v8 = vld [vmem:[#allocation2 + $0x6f8] sm:$0xff]  ;;  %v12372_v3 = vcombine.low %v269_v42, %v273_v45  ;;  %v309_v45 = vld [vmem:[#allocation2 + $0x7d0] sm:$0xff] }
 0x39f   :  { %10779 = vmatprep.subr.bf16.mxu0 %v12341_v4  ;;  %11312 = vmatprep.subr.bf16.mxu1 %v12343_v29  ;;  %v12374_v4 = vcombine.low %v270_v46, %v274_v47  ;;  %v12381_v29 = vcombine.high %v277_v55, %v281_v60  ;;  %v12383_v43 = vcombine.high %v278_v62, %v282_v8  ;;  %v313_v46 = vld [vmem:[#allocation2 + $0x7f0] sm:$0xff]  ;;  %v310_v47 = vld [vmem:[#allocation2 + $0x7d8] sm:$0xff] }
 0x3a2   :  { %10780 = vmatpush1.bf16.msra.mxu0 %v12340_v14  ;;  %11313 = vmatpush1.bf16.msra.mxu1 %v12342_v9  ;;  %v290_v14 = vld [vmem:[#allocation2 + $0x738] sm:$0xff]  ;;  %v12380_v9 = vcombine.low %v277_v55, %v281_v60  ;;  %v317_v60 = vld [vmem:[#allocation2 + $0x810] sm:$0xff] }
 0x3a3   :  { %10781 = vmatprep.subr.bf16.mxu0 %v12349_v18  ;;  %11314 = vmatprep.subr.bf16.mxu1 %v12351_v16  ;;  %v12382_v18 = vcombine.low %v278_v62, %v282_v8  ;;  %v12389_v16 = vcombine.high %v285_v11, %v289_v12  ;;  %v12391_v1 = vcombine.high %v286_v13, %v290_v14  ;;  %v321_v62 = vld [vmem:[#allocation2 + $0x830] sm:$0xff]  ;;  %v318_v8 = vld [vmem:[#allocation2 + $0x818] sm:$0xff] }
 0x3a6   :  { %10782 = vmatpush1.bf16.msra.mxu0 %v12348_v23  ;;  %11315 = vmatpush1.bf16.msra.mxu1 %v12350_v25  ;;  %v298_v23 = vld [vmem:[#allocation2 + $0x778] sm:$0xff]  ;;  %v12388_v25 = vcombine.low %v285_v11, %v289_v12  ;;  %v325_v12 = vld [vmem:[#allocation2 + $0x850] sm:$0xff] }
 0x3a7   :  { %10783 = vmatprep.subr.bf16.mxu0 %v12357_v49  ;;  %11316 = vmatprep.subr.bf16.mxu1 %v12359_v31  ;;  %v12390_v49 = vcombine.low %v286_v13, %v290_v14  ;;  %v12397_v31 = vcombine.high %v293_v21, %v297_v22  ;;  %v12399_v63 = vcombine.high %v294_v24, %v298_v23  ;;  %v329_v13 = vld [vmem:[#allocation2 + $0x870] sm:$0xff]  ;;  %v326_v14 = vld [vmem:[#allocation2 + $0x858] sm:$0xff] }
 0x3aa   :  { %10784 = vmatpush1.bf16.msra.mxu0 %v12356_v39  ;;  %11317 = vmatpush1.bf16.msra.mxu1 %v12358_v40  ;;  %v306_v39 = vld [vmem:[#allocation2 + $0x7b8] sm:$0xff]  ;;  %v12396_v40 = vcombine.low %v293_v21, %v297_v22  ;;  %v333_v22 = vld [vmem:[#allocation2 + $0x890] sm:$0xff] }
 0x3ab   :  { %10785 = vmatprep.subr.bf16.mxu0 %v12365_v32  ;;  %11318 = vmatprep.subr.bf16.mxu1 %v12367_v41  ;;  %v12398_v32 = vcombine.low %v294_v24, %v298_v23  ;;  %v12405_v41 = vcombine.high %v301_v33, %v305_v35  ;;  %v12407_v42 = vcombine.high %v302_v36, %v306_v39  ;;  %v337_v24 = vld [vmem:[#allocation2 + $0x8b0] sm:$0xff]  ;;  %v334_v23 = vld [vmem:[#allocation2 + $0x898] sm:$0xff] }
 0x3ae   :  { %10786 = vmatpush1.bf16.msra.mxu0 %v12364_v50  ;;  %11319 = vmatpush1.bf16.msra.mxu1 %v12366_v52  ;;  %v314_v50 = vld [vmem:[#allocation2 + $0x7f8] sm:$0xff]  ;;  %v12404_v52 = vcombine.low %v301_v33, %v305_v35  ;;  %v341_v35 = vld [vmem:[#allocation2 + $0x8d0] sm:$0xff] }
 0x3af   :  { %10787 = vmatprep.subr.bf16.mxu0 %v12373_v54  ;;  %11320 = vmatprep.subr.bf16.mxu1 %v12375_v34  ;;  %v12406_v54 = vcombine.low %v302_v36, %v306_v39  ;;  %v12413_v34 = vcombine.high %v309_v45, %v313_v46  ;;  %v12415_v55 = vcombine.high %v310_v47, %v314_v50  ;;  %v345_v36 = vld [vmem:[#allocation2 + $0x8f0] sm:$0xff]  ;;  %v342_v39 = vld [vmem:[#allocation2 + $0x8d8] sm:$0xff] }
 0x3b2   :  { %10788 = vmatpush1.bf16.msra.mxu0 %v12372_v3  ;;  %11321 = vmatpush1.bf16.msra.mxu1 %v12374_v4  ;;  %v322_v3 = vld [vmem:[#allocation2 + $0x838] sm:$0xff]  ;;  %v12412_v4 = vcombine.low %v309_v45, %v313_v46  ;;  %v349_v45 = vld [vmem:[#allocation2 + $0x910] sm:$0xff] }
 0x3b3   :  { %10789 = vmatprep.subr.bf16.mxu0 %v12381_v29  ;;  %11322 = vmatprep.subr.bf16.mxu1 %v12383_v43  ;;  %v12414_v29 = vcombine.low %v310_v47, %v314_v50  ;;  %v12421_v43 = vcombine.high %v317_v60, %v321_v62  ;;  %v12423_v11 = vcombine.high %v318_v8, %v322_v3  ;;  %v353_v46 = vld [vmem:[#allocation2 + $0x930] sm:$0xff]  ;;  %v350_v47 = vld [vmem:[#allocation2 + $0x918] sm:$0xff] }
 0x3b4   :  { %v354_v50 = vld [vmem:[#allocation2 + $0x938] sm:$0xff] }
 0x3b6   :  { %10790 = vmatpush1.bf16.msra.mxu0 %v12380_v9  ;;  %11323 = vmatpush1.bf16.msra.mxu1 %v12382_v18  ;;  %v330_v9 = vld [vmem:[#allocation2 + $0x878] sm:$0xff]  ;;  %v12420_v18 = vcombine.low %v317_v60, %v321_v62  ;;  %v361_v60 = vld [vmem:[#allocation2 + $0x970] sm:$0xff] }
 0x3b7   :  { %10791 = vmatprep.subr.bf16.mxu0 %v12389_v16  ;;  %11324 = vmatprep.subr.bf16.mxu1 %v12391_v1  ;;  %v12422_v16 = vcombine.low %v318_v8, %v322_v3  ;;  %v12429_v1 = vcombine.high %v325_v12, %v329_v13  ;;  %v12431_v21 = vcombine.high %v326_v14, %v330_v9  ;;  %v358_v62 = vld [vmem:[#allocation2 + $0x958] sm:$0xff] }
 0x3b8   :  { %v362_v8 = vld [vmem:[#allocation2 + $0x978] sm:$0xff]  ;;  %v12452_v3 = vcombine.low %v349_v45, %v353_v46 }
 0x3ba   :  { %10792 = vmatpush1.bf16.msra.mxu0 %v12388_v25  ;;  %11325 = vmatpush1.bf16.msra.mxu1 %v12390_v49  ;;  %v338_v25 = vld [vmem:[#allocation2 + $0x8b8] sm:$0xff]  ;;  %v12428_v49 = vcombine.low %v325_v12, %v329_v13  ;;  %v369_v12 = vld [vmem:[#allocation2 + $0x9b0] sm:$0xff] }
 0x3bb   :  { %10793 = vmatprep.subr.bf16.mxu0 %v12397_v31  ;;  %11326 = vmatprep.subr.bf16.mxu1 %v12399_v63  ;;  %v12430_v31 = vcombine.low %v326_v14, %v330_v9  ;;  %v12437_v63 = vcombine.high %v333_v22, %v337_v24  ;;  %v12439_v33 = vcombine.high %v334_v23, %v338_v25  ;;  %v366_v13 = vld [vmem:[#allocation2 + $0x998] sm:$0xff] }
 0x3bc   :  { %v370_v14 = vld [vmem:[#allocation2 + $0x9b8] sm:$0xff] }
 0x3be   :  { %10794 = vmatpush1.bf16.msra.mxu0 %v12396_v40  ;;  %11327 = vmatpush1.bf16.msra.mxu1 %v12398_v32  ;;  %v346_v40 = vld [vmem:[#allocation2 + $0x8f8] sm:$0xff]  ;;  %v12436_v32 = vcombine.low %v333_v22, %v337_v24  ;;  %v377_v22 = vld [vmem:[#allocation2 + $0x9f0] sm:$0xff] }
 0x3bf   :  { %10795 = vmatprep.subr.bf16.mxu0 %v12405_v41  ;;  %11328 = vmatprep.subr.bf16.mxu1 %v12407_v42  ;;  %v12445_v41 = vcombine.high %v341_v35, %v345_v36  ;;  %v12447_v42 = vcombine.high %v342_v39, %v346_v40  ;;  %v374_v24 = vld [vmem:[#allocation2 + $0x9d8] sm:$0xff] }
 0x3c2   :  { %10796 = vmatpush1.bf16.msra.mxu0 %v12404_v52  ;;  %11329 = vmatpush1.bf16.msra.mxu1 %v12406_v54  ;;  %v12444_v52 = vcombine.low %v341_v35, %v345_v36  ;;  %v12446_v54 = vcombine.low %v342_v39, %v346_v40  ;;  %v385_v35 = vld [vmem:[#allocation2 + $0xa30] sm:$0xff]  ;;  %v382_v36 = vld [vmem:[#allocation2 + $0xa18] sm:$0xff] }
 0x3c3   :  { %10797 = vmatprep.subr.bf16.mxu0 %v12413_v34  ;;  %11330 = vmatprep.subr.bf16.mxu1 %v12415_v55  ;;  %v12453_v34 = vcombine.high %v349_v45, %v353_v46  ;;  %v357_v55 = vld [vmem:[#allocation2 + $0x950] sm:$0xff]  ;;  %v386_v39 = vld [vmem:[#allocation2 + $0xa38] sm:$0xff] }
 0x3c4   :  { %v12460_v9 = vcombine.low %v357_v55, %v361_v60  ;;  %v393_v45 = vld [vmem:[#allocation2 + $0xa70] sm:$0xff]  ;;  %v390_v46 = vld [vmem:[#allocation2 + $0xa58] sm:$0xff] }
 0x3c6   :  { %10798 = vmatpush1.bf16.msra.mxu0 %v12412_v4  ;;  %11331 = vmatpush1.bf16.msra.mxu1 %v12414_v29  ;;  %v12454_v4 = vcombine.low %v350_v47, %v354_v50  ;;  %v12461_v29 = vcombine.high %v357_v55, %v361_v60  ;;  %v401_v55 = vld [vmem:[#allocation2 + $0xab0] sm:$0xff]  ;;  %v398_v60 = vld [vmem:[#allocation2 + $0xa98] sm:$0xff] }
 0x3c7   :  { %10808 = vmatprep.subr.bf16.mxu0 %v12421_v43  ;;  %11341 = vmatprep.subr.bf16.mxu1 %v12423_v11  ;;  %v12463_v43 = vcombine.high %v358_v62, %v362_v8  ;;  %v365_v11 = vld [vmem:[#allocation2 + $0x990] sm:$0xff] }
 0x3c9   :  { %10800 = vmatmul.mubr.bf16.vlgmr.msra.gmra.mrb[4].mxu0 %v14143_v38  ;;  %11333 = vmatmul.mubr.bf16.vlgmr.msra.gmra.mrb[4].mxu1 %v14143_v38  ;;  %v12438_v38 = vcombine.low %v334_v23, %v338_v25  ;;  %v378_v23 = vld [vmem:[#allocation2 + $0x9f8] sm:$0xff]  ;;  %v12468_v25 = vcombine.low %v365_v11, %v369_v12 }
 0x3ca   :  { %10809 = vmatpush1.bf16.msra.mxu0 %v12420_v18  ;;  %11342 = vmatpush1.bf16.msra.mxu1 %v12422_v16  ;;  %v12462_v18 = vcombine.low %v358_v62, %v362_v8  ;;  %v12469_v16 = vcombine.high %v365_v11, %v369_v12  ;;  %v402_v62 = vld [vmem:[#allocation2 + $0xab8] sm:$0xff]  ;;  %v409_v11 = vld [vmem:[#allocation2 + $0xaf0] sm:$0xff] }
 0x3cb   :  { %10810 = vmatprep.subr.bf16.mxu0 %v12429_v1  ;;  %11343 = vmatprep.subr.bf16.mxu1 %v12431_v21  ;;  %v12471_v1 = vcombine.high %v366_v13, %v370_v14  ;;  %v373_v21 = vld [vmem:[#allocation2 + $0x9d0] sm:$0xff]  ;;  %v406_v12 = vld [vmem:[#allocation2 + $0xad8] sm:$0xff] }
 0x3cc   :  { %10840 = vmatprep.mubr.bf16.mxu0 %v14146_v48  ;;  %11373 = vmatprep.mubr.bf16.mxu1 %v14146_v48  ;;  %v12455_v48 = vcombine.high %v350_v47, %v354_v50  ;;  %v12476_v40 = vcombine.low %v373_v21, %v377_v22  ;;  %v394_v47 = vld [vmem:[#allocation2 + $0xa78] sm:$0xff] }
 0x3ce   :  { %10811 = vmatpush1.bf16.msra.mxu0 %v12428_v49  ;;  %11344 = vmatpush1.bf16.msra.mxu1 %v12430_v31  ;;  %v12470_v49 = vcombine.low %v366_v13, %v370_v14  ;;  %v12477_v31 = vcombine.high %v373_v21, %v377_v22  ;;  %v410_v13 = vld [vmem:[#allocation2 + $0xaf8] sm:$0xff]  ;;  %v417_v21 = vld [vmem:[#allocation2 + $0xb30] sm:$0xff] }
 0x3cf   :  { %10812 = vmatprep.subr.bf16.mxu0 %v12437_v63  ;;  %11345 = vmatprep.subr.bf16.mxu1 %v12439_v33  ;;  %v12479_v63 = vcombine.high %v374_v24, %v378_v23  ;;  %v381_v33 = vld [vmem:[#allocation2 + $0xa10] sm:$0xff]  ;;  %v414_v22 = vld [vmem:[#allocation2 + $0xb18] sm:$0xff] }
 0x3d0   :  { %v12484_v50 = vcombine.low %v381_v33, %v385_v35 }
 0x3d2   :  { %10813 = vmatpush1.bf16.msra.mxu0 %v12436_v32  ;;  %11346 = vmatpush1.bf16.msra.mxu1 %v12438_v38  ;;  %v12478_v32 = vcombine.low %v374_v24, %v378_v23  ;;  %v12485_v38 = vcombine.high %v381_v33, %v385_v35  ;;  %v418_v24 = vld [vmem:[#allocation2 + $0xb38] sm:$0xff]  ;;  %v425_v33 = vld [vmem:[#allocation2 + $0xb70] sm:$0xff] }
 0x3d3   :  { %10814 = vmatprep.subr.bf16.mxu0 %v12445_v41  ;;  %11347 = vmatprep.subr.bf16.mxu1 %v12447_v42  ;;  %v12487_v41 = vcombine.high %v382_v36, %v386_v39  ;;  %v389_v42 = vld [vmem:[#allocation2 + $0xa50] sm:$0xff]  ;;  %v422_v35 = vld [vmem:[#allocation2 + $0xb58] sm:$0xff] }
 0x3d4   :  { %v12492_v8 = vcombine.low %v389_v42, %v393_v45 }
 0x3d6   :  { %10815 = vmatpush1.bf16.msra.mxu0 %v12444_v52  ;;  %11348 = vmatpush1.bf16.msra.mxu1 %v12446_v54  ;;  %v12486_v52 = vcombine.low %v382_v36, %v386_v39  ;;  %v12493_v54 = vcombine.high %v389_v42, %v393_v45  ;;  %v426_v36 = vld [vmem:[#allocation2 + $0xb78] sm:$0xff]  ;;  %v433_v42 = vld [vmem:[#allocation2 + $0xbb0] sm:$0xff] }
 0x3d7   :  { %10816 = vmatprep.subr.bf16.mxu0 %v12453_v34  ;;  %11349 = vmatprep.subr.bf16.mxu1 %v12455_v48  ;;  %v12495_v34 = vcombine.high %v390_v46, %v394_v47  ;;  %v397_v48 = vld [vmem:[#allocation2 + $0xa90] sm:$0xff]  ;;  %v430_v45 = vld [vmem:[#allocation2 + $0xb98] sm:$0xff] }
 0x3d8   :  { %v12500_v14 = vcombine.low %v397_v48, %v401_v55 }
 0x3da   :  { %10817 = vmatpush1.bf16.msra.mxu0 %v12452_v3  ;;  %11350 = vmatpush1.bf16.msra.mxu1 %v12454_v4  ;;  %v12494_v3 = vcombine.low %v390_v46, %v394_v47  ;;  %v12501_v4 = vcombine.high %v397_v48, %v401_v55  ;;  %v434_v46 = vld [vmem:[#allocation2 + $0xbb8] sm:$0xff]  ;;  %v441_v48 = vld [vmem:[#allocation2 + $0xbf0] sm:$0xff] }
 0x3db   :  { %10818 = vmatprep.subr.bf16.mxu0 %v12461_v29  ;;  %11351 = vmatprep.subr.bf16.mxu1 %v12463_v43  ;;  %v12503_v29 = vcombine.high %v398_v60, %v402_v62  ;;  %v405_v43 = vld [vmem:[#allocation2 + $0xad0] sm:$0xff]  ;;  %v438_v55 = vld [vmem:[#allocation2 + $0xbd8] sm:$0xff] }
 0x3dc   :  { %v12508_v23 = vcombine.low %v405_v43, %v409_v11 }
 0x3de   :  { %10819 = vmatpush1.bf16.msra.mxu0 %v12460_v9  ;;  %11352 = vmatpush1.bf16.msra.mxu1 %v12462_v18  ;;  %v12502_v9 = vcombine.low %v398_v60, %v402_v62  ;;  %v12509_v18 = vcombine.high %v405_v43, %v409_v11  ;;  %v442_v60 = vld [vmem:[#allocation2 + $0xbf8] sm:$0xff]  ;;  %v449_v43 = vld [vmem:[#allocation2 + $0xc30] sm:$0xff] }
 0x3df   :  { %10820 = vmatprep.subr.bf16.mxu0 %v12469_v16  ;;  %11353 = vmatprep.subr.bf16.mxu1 %v12471_v1  ;;  %v12511_v16 = vcombine.high %v406_v12, %v410_v13  ;;  %v413_v1 = vld [vmem:[#allocation2 + $0xb10] sm:$0xff]  ;;  %v446_v11 = vld [vmem:[#allocation2 + $0xc18] sm:$0xff] }
 0x3e0   :  { %v12516_v39 = vcombine.low %v413_v1, %v417_v21 }
 0x3e2   :  { %10821 = vmatpush1.bf16.msra.mxu0 %v12468_v25  ;;  %11354 = vmatpush1.bf16.msra.mxu1 %v12470_v49  ;;  %v12510_v25 = vcombine.low %v406_v12, %v410_v13  ;;  %v12517_v49 = vcombine.high %v413_v1, %v417_v21  ;;  %v450_v12 = vld [vmem:[#allocation2 + $0xc38] sm:$0xff]  ;;  %v457_v1 = vld [vmem:[#allocation2 + $0xc70] sm:$0xff] }
 0x3e3   :  { %10822 = vmatprep.subr.bf16.mxu0 %v12477_v31  ;;  %11355 = vmatprep.subr.bf16.mxu1 %v12479_v63  ;;  %v12519_v31 = vcombine.high %v414_v22, %v418_v24  ;;  %v421_v63 = vld [vmem:[#allocation2 + $0xb50] sm:$0xff]  ;;  %v454_v21 = vld [vmem:[#allocation2 + $0xc58] sm:$0xff] }
 0x3e4   :  { %v12524_v47 = vcombine.low %v421_v63, %v425_v33 }
 0x3e6   :  { %10823 = vmatpush1.bf16.msra.mxu0 %v12476_v40  ;;  %11356 = vmatpush1.bf16.msra.mxu1 %v12478_v32  ;;  %v12518_v40 = vcombine.low %v414_v22, %v418_v24  ;;  %v12525_v32 = vcombine.high %v421_v63, %v425_v33  ;;  %v458_v22 = vld [vmem:[#allocation2 + $0xc78] sm:$0xff]  ;;  %v465_v63 = vld [vmem:[#allocation2 + $0xcb0] sm:$0xff] }
 0x3e7   :  { %10824 = vmatprep.subr.bf16.mxu0 %v12485_v38  ;;  %11357 = vmatprep.subr.bf16.mxu1 %v12487_v41  ;;  %v12527_v38 = vcombine.high %v422_v35, %v426_v36  ;;  %v429_v41 = vld [vmem:[#allocation2 + $0xb90] sm:$0xff]  ;;  %v462_v33 = vld [vmem:[#allocation2 + $0xc98] sm:$0xff] }
 0x3e8   :  { %v12532_v62 = vcombine.low %v429_v41, %v433_v42 }
 0x3ea   :  { %10825 = vmatpush1.bf16.msra.mxu0 %v12484_v50  ;;  %11358 = vmatpush1.bf16.msra.mxu1 %v12486_v52  ;;  %v12526_v50 = vcombine.low %v422_v35, %v426_v36  ;;  %v12533_v52 = vcombine.high %v429_v41, %v433_v42  ;;  %v466_v35 = vld [vmem:[#allocation2 + $0xcb8] sm:$0xff]  ;;  %v473_v41 = vld [vmem:[#allocation2 + $0xcf0] sm:$0xff] }
 0x3eb   :  { %10826 = vmatprep.subr.bf16.mxu0 %v12493_v54  ;;  %11359 = vmatprep.subr.bf16.mxu1 %v12495_v34  ;;  %v12535_v54 = vcombine.high %v430_v45, %v434_v46  ;;  %v437_v34 = vld [vmem:[#allocation2 + $0xbd0] sm:$0xff]  ;;  %v470_v42 = vld [vmem:[#allocation2 + $0xcd8] sm:$0xff] }
 0x3ec   :  { %v12540_v13 = vcombine.low %v437_v34, %v441_v48 }
 0x3ee   :  { %10827 = vmatpush1.bf16.msra.mxu0 %v12492_v8  ;;  %11360 = vmatpush1.bf16.msra.mxu1 %v12494_v3  ;;  %v12534_v8 = vcombine.low %v430_v45, %v434_v46  ;;  %v12541_v3 = vcombine.high %v437_v34, %v441_v48  ;;  %v474_v45 = vld [vmem:[#allocation2 + $0xcf8] sm:$0xff] }
 0x3ef   :  { %10828 = vmatprep.subr.bf16.mxu0 %v12501_v4  ;;  %11361 = vmatprep.subr.bf16.mxu1 %v12503_v29  ;;  %v12543_v4 = vcombine.high %v438_v55, %v442_v60  ;;  %v445_v29 = vld [vmem:[#allocation2 + $0xc10] sm:$0xff]  ;;  %v478_v34 = vld [vmem:[#allocation2 + $0xd18] sm:$0xff] }
 0x3f0   :  { %v12548_v24 = vcombine.low %v445_v29, %v449_v43  ;;  %v482_v48 = vld [vmem:[#allocation2 + $0xd38] sm:$0xff] }
 0x3f2   :  { %10829 = vmatpush1.bf16.msra.mxu0 %v12500_v14  ;;  %11362 = vmatpush1.bf16.msra.mxu1 %v12502_v9  ;;  %v12542_v14 = vcombine.low %v438_v55, %v442_v60  ;;  %v12549_v9 = vcombine.high %v445_v29, %v449_v43  ;;  %v12574_v60 = vcombine.low %v470_v42, %v474_v45  ;;  %v490_v29 = vld [vmem:[#allocation2 + $0xd78] sm:$0xff] }
 0x3f3   :  { %10830 = vmatprep.subr.bf16.mxu0 %v12509_v18  ;;  %11363 = vmatprep.subr.bf16.mxu1 %v12511_v16  ;;  %v12551_v18 = vcombine.high %v446_v11, %v450_v12  ;;  %v453_v16 = vld [vmem:[#allocation2 + $0xc50] sm:$0xff] }
 0x3f4   :  { %v12556_v36 = vcombine.low %v453_v16, %v457_v1 }
 0x3f6   :  { %10831 = vmatpush1.bf16.msra.mxu0 %v12508_v23  ;;  %11364 = vmatpush1.bf16.msra.mxu1 %v12510_v25  ;;  %v12550_v23 = vcombine.low %v446_v11, %v450_v12  ;;  %v12557_v25 = vcombine.high %v453_v16, %v457_v1  ;;  %v12582_v11 = vcombine.low %v478_v34, %v482_v48  ;;  %v498_v16 = vld [vmem:[#allocation2 + $0xdb8] sm:$0xff] }
 0x3f7   :  { %10832 = vmatprep.subr.bf16.mxu0 %v12517_v49  ;;  %11365 = vmatprep.subr.bf16.mxu1 %v12519_v31  ;;  %v12559_v49 = vcombine.high %v454_v21, %v458_v22  ;;  %v461_v31 = vld [vmem:[#allocation2 + $0xc90] sm:$0xff] }
 0x3f8   :  { %v12564_v46 = vcombine.low %v461_v31, %v465_v63 }
 0x3fa   :  { %10833 = vmatpush1.bf16.msra.mxu0 %v12516_v39  ;;  %11366 = vmatpush1.bf16.msra.mxu1 %v12518_v40  ;;  %v12558_v39 = vcombine.low %v454_v21, %v458_v22  ;;  %v12565_v40 = vcombine.high %v461_v31, %v465_v63 }
 0x3fb   :  { %10834 = vmatprep.subr.bf16.mxu0 %v12525_v32  ;;  %11367 = vmatprep.subr.bf16.mxu1 %v12527_v38  ;;  %v12567_v32 = vcombine.high %v462_v33, %v466_v35  ;;  %v469_v38 = vld [vmem:[#allocation2 + $0xcd0] sm:$0xff] }
 0x3fc   :  { %v12572_v55 = vcombine.low %v469_v38, %v473_v41 }
 0x3fe   :  { %10835 = vmatpush1.bf16.msra.mxu0 %v12524_v47  ;;  %11368 = vmatpush1.bf16.msra.mxu1 %v12526_v50  ;;  %v12573_v47 = vcombine.high %v469_v38, %v473_v41  ;;  %v12575_v50 = vcombine.high %v470_v42, %v474_v45 }
 0x3ff   :  { %10836 = vmatprep.subr.bf16.mxu0 %v12533_v52  ;;  %11369 = vmatprep.subr.bf16.mxu1 %v12535_v54  ;;  %v477_v52 = vld [vmem:[#allocation2 + $0xd10] sm:$0xff] }
 0x400   :  { %v481_v54 = vld [vmem:[#allocation2 + $0xd30] sm:$0xff] }
 0x401   :  { %v12580_v43 = vcombine.low %v477_v52, %v481_v54 }
 0x402   :  { %10837 = vmatpush1.bf16.msra.mxu0 %v12532_v62  ;;  %11370 = vmatpush1.bf16.msra.mxu1 %v12534_v8  ;;  %v12581_v62 = vcombine.high %v477_v52, %v481_v54  ;;  %v485_v8 = vld [vmem:[#allocation2 + $0xd50] sm:$0xff] }
 0x403   :  { %10838 = vmatprep.subr.bf16.mxu0 %v12541_v3  ;;  %11371 = vmatprep.subr.bf16.mxu1 %v12543_v4  ;;  %v489_v3 = vld [vmem:[#allocation2 + $0xd70] sm:$0xff]  ;;  %v486_v4 = vld [vmem:[#allocation2 + $0xd58] sm:$0xff] }
 0x404   :  { %v12589_v12 = vcombine.high %v485_v8, %v489_v3  ;;  %v12588_v1 = vcombine.low %v485_v8, %v489_v3  ;;  %v12590_v21 = vcombine.low %v486_v4, %v490_v29 }
 0x406   :  { %10839 = vmatpush1.bf16.msra.mxu0 %v12540_v13  ;;  %11372 = vmatpush1.bf16.msra.mxu1 %v12542_v14  ;;  %v12591_v13 = vcombine.high %v486_v4, %v490_v29  ;;  %v493_v14 = vld [vmem:[#allocation2 + $0xd90] sm:$0xff]  ;;  %v510_v4 = vld [vmem:[#allocation2 + $0xe18] sm:$0xff] }
 0x407   :  { %10849 = vmatprep.subr.bf16.mxu0 %v12549_v9  ;;  %11382 = vmatprep.subr.bf16.mxu1 %v12551_v18  ;;  %v497_v9 = vld [vmem:[#allocation2 + $0xdb0] sm:$0xff]  ;;  %v494_v18 = vld [vmem:[#allocation2 + $0xd98] sm:$0xff] }
 0x408   :  { %v12597_v22 = vcombine.high %v493_v14, %v497_v9  ;;  %v12598_v45 = vcombine.low %v494_v18, %v498_v16  ;;  %v514_v29 = vld [vmem:[#allocation2 + $0xe38] sm:$0xff] }
 0x409   :  { %10841 = vmatmul.mubr.bf16.vlgmr.msra.gmra.mrb[4].mxu0 %v14154_v58  ;;  %11374 = vmatmul.mubr.bf16.vlgmr.msra.gmra.mrb[4].mxu1 %v14154_v58  ;;  %v12566_v58 = vcombine.low %v462_v33, %v466_v35  ;;  %v12596_v35 = vcombine.low %v493_v14, %v497_v9 }
 0x40a   :  { %10850 = vmatpush1.bf16.msra.mxu0 %v12548_v24  ;;  %11383 = vmatpush1.bf16.msra.mxu1 %v12550_v23  ;;  %v12599_v23 = vcombine.high %v494_v18, %v498_v16 }
 0x40b   :  { %10851 = vmatprep.subr.bf16.mxu0 %v12557_v25  ;;  %11384 = vmatprep.subr.bf16.mxu1 %v12559_v49  ;;  %v501_v25 = vld [vmem:[#allocation2 + $0xdd0] sm:$0xff] }
 0x40c   :  { %10881 = vmatprep.mubr.bf16.mxu0 %v14158_v5  ;;  %11414 = vmatprep.mubr.bf16.mxu1 %v14158_v5  ;;  %v12583_v5 = vcombine.high %v478_v34, %v482_v48  ;;  %v505_v49 = vld [vmem:[#allocation2 + $0xdf0] sm:$0xff] }
 0x40d   :  { %v12605_v54 = vcombine.high %v501_v25, %v505_v49 }
 0x40e   :  { %10852 = vmatpush1.bf16.msra.mxu0 %v12556_v36  ;;  %11385 = vmatpush1.bf16.msra.mxu1 %v12558_v39  ;;  %v502_v36 = vld [vmem:[#allocation2 + $0xdd8] sm:$0xff] }
 0x40f   :  { %10853 = vmatprep.subr.bf16.mxu0 %v12565_v40  ;;  %11386 = vmatprep.subr.bf16.mxu1 %v12567_v32  ;;  %v506_v39 = vld [vmem:[#allocation2 + $0xdf8] sm:$0xff] }
 0x410   :  { %v12606_v9 = vcombine.low %v502_v36, %v506_v39 }
 0x412   :  { %10854 = vmatpush1.bf16.msra.mxu0 %v12564_v46  ;;  %11387 = vmatpush1.bf16.msra.mxu1 %v12566_v58 }
 0x413   :  { %10855 = vmatprep.subr.bf16.mxu0 %v12573_v47  ;;  %11388 = vmatprep.subr.bf16.mxu1 %v12575_v50 }
 0x416   :  { %10856 = vmatpush1.bf16.msra.mxu0 %v12572_v55  ;;  %11389 = vmatpush1.bf16.msra.mxu1 %v12574_v60  ;;  %v12607_v60 = vcombine.high %v502_v36, %v506_v39  ;;  %v12614_v36 = vcombine.low %v510_v4, %v514_v29 }
 0x417   :  { %10857 = vmatprep.subr.bf16.mxu0 %v12581_v62  ;;  %11390 = vmatprep.subr.bf16.mxu1 %v12583_v5  ;;  %v509_v62 = vld [vmem:[#allocation2 + $0xe10] sm:$0xff] }
 0x418   :  { %v513_v5 = vld [vmem:[#allocation2 + $0xe30] sm:$0xff] }
 0x419   :  { %v12613_v18 = vcombine.high %v509_v62, %v513_v5 }
 0x41a   :  { %10858 = vmatpush1.bf16.msra.mxu0 %v12580_v43  ;;  %11391 = vmatpush1.bf16.msra.mxu1 %v12582_v11 }
 0x41b   :  { %10859 = vmatprep.subr.bf16.mxu0 %v12589_v12  ;;  %11392 = vmatprep.subr.bf16.mxu1 %v12591_v13  ;;  %v12604_v12 = vcombine.low %v501_v25, %v505_v49  ;;  %v12612_v25 = vcombine.low %v509_v62, %v513_v5 }
 0x41c   :  { %v14324_v24 = vpop.f32.mrb[0].mxu0  ;;  %v14328_v63 = vpop.f32.mrb[0].mxu1 }
 0x41d   :  { %v11793_v31 = vsel %vm11792_vm1, %v14324_v24, 0.0  ;;  %v14330_v33 = vpop.f32.mrb[1].mxu0  ;;  %v11807_v32 = vsel %vm11792_vm1, %v14328_v63, 0.0  ;;  %v14336_v41 = vpop.f32.mrb[1].mxu1 }
 0x41e   :  { %v11794_v40 = vrot.slane %v11793_v31, 4  ;;  %v11800_v38 = vsel %vm11792_vm1, %v14330_v33, 0.0  ;;  %v10190_v42 = vpop.f32.mrb[2].mxu0  ;;  %10860 = vmatpush1.bf16.msra.mxu0 %v12588_v1  ;;  %v11808_v46 = vrot.slane %v11807_v32, 4  ;;  %v11814_v47 = vsel %vm11792_vm1, %v14336_v41, 0.0  ;;  %v10723_v50 = vpop.f32.mrb[2].mxu1  ;;  %11393 = vmatpush1.bf16.msra.mxu1 %v12590_v21 }
 0x41f   :  { %v11801_v58 = vrot.slane %v11800_v38, 4  ;;  %v10191_v52 = vpop.f32.mrb[3].mxu0  ;;  %10861 = vmatprep.subr.bf16.mxu0 %v12597_v22  ;;  %v11815_v48 = vrot.slane %v11814_v47, 4  ;;  %v10724_v55 = vpop.f32.mrb[3].mxu1  ;;  %11394 = vmatprep.subr.bf16.mxu1 %v12599_v23  ;;  %v12615_v21 = vcombine.high %v510_v4, %v514_v29  ;;  %v517_v22 = vld [vmem:[#allocation2 + $0xe50] sm:$0xff] }
 0x420   :  { %v11795_v34 = vadd.f32 %v11794_v40, %v11793_v31  ;;  %v11809_v8 = vadd.f32 %v11808_v46, %v11807_v32  ;;  %v521_v23 = vld [vmem:[#allocation2 + $0xe70] sm:$0xff]  ;;  %v518_v32 = vld [vmem:[#allocation2 + $0xe58] sm:$0xff] }
 0x421   :  { %v11802_v3 = vadd.f32 %v11801_v58, %v11800_v38  ;;  %v11816_v11 = vadd.f32 %v11815_v48, %v11814_v47  ;;  %v522_v38 = vld [vmem:[#allocation2 + $0xe78] sm:$0xff]  ;;  %v12621_v39 = vcombine.high %v517_v22, %v521_v23  ;;  %v525_v50 = vld [vmem:[#allocation2 + $0xe90] sm:$0xff]  ;;  %v12620_v62 = vcombine.low %v517_v22, %v521_v23 }
 0x422   :  { %v11796_v43 = vrot.slane %v11795_v34, 2  ;;  %10862 = vmatpush1.bf16.msra.mxu0 %v12596_v35  ;;  %v11810_v13 = vrot.slane %v11809_v8, 2  ;;  %11395 = vmatpush1.bf16.msra.mxu1 %v12598_v45  ;;  %v12623_v47 = vcombine.high %v518_v32, %v522_v38  ;;  %v529_v52 = vld [vmem:[#allocation2 + $0xeb0] sm:$0xff]  ;;  %v526_v48 = vld [vmem:[#allocation2 + $0xe98] sm:$0xff]  ;;  %v12622_v4 = vcombine.low %v518_v32, %v522_v38 }
 0x423   :  { %v11803_v14 = vrot.slane %v11802_v3, 2  ;;  %10863 = vmatprep.subr.bf16.mxu0 %v12605_v54  ;;  %v11817_v1 = vrot.slane %v11816_v11, 2  ;;  %11396 = vmatprep.subr.bf16.mxu1 %v12607_v60  ;;  %v530_v55 = vld [vmem:[#allocation2 + $0xeb8] sm:$0xff]  ;;  %v12629_v29 = vcombine.high %v525_v50, %v529_v52  ;;  %v541_v38 = vld [vmem:[#allocation2 + $0xf10] sm:$0xff] }
 0x424   :  { %v11797_v16 = vadd.f32 %v11796_v43, %v11795_v34  ;;  %v11811_v31 = vadd.f32 %v11810_v13, %v11809_v8  ;;  %v533_v13 = vld [vmem:[#allocation2 + $0xed0] sm:$0xff]  ;;  %v12630_v23 = vcombine.low %v526_v48, %v530_v55 }
 0x425   :  { %v11804_v40 = vadd.f32 %v11803_v14, %v11802_v3  ;;  %v11818_v46 = vadd.f32 %v11817_v1, %v11816_v11  ;;  %v537_v14 = vld [vmem:[#allocation2 + $0xef0] sm:$0xff]  ;;  %v538_v1 = vld [vmem:[#allocation2 + $0xef8] sm:$0xff] }
 0x426   :  { %v11798_v42 = vrot.slane %v11797_v16, 1  ;;  %10864 = vmatpush1.bf16.msra.mxu0 %v12604_v12  ;;  %v11812_v49 = vrot.slane %v11811_v31, 1  ;;  %11397 = vmatpush1.bf16.msra.mxu1 %v12606_v9  ;;  %v12631_v12 = vcombine.high %v526_v48, %v530_v55 }
 0x427   :  { %v11805_v35 = vrot.slane %v11804_v40, 1  ;;  %10865 = vmatprep.subr.bf16.mxu0 %v12613_v18  ;;  %v11819_v58 = vrot.slane %v11818_v46, 1  ;;  %11398 = vmatprep.subr.bf16.mxu1 %v12615_v21 }
 0x428   :  { %v11799_v45 = vadd.f32 %v11798_v42, %v11797_v16  ;;  %v11813_v54 = vadd.f32 %v11812_v49, %v11811_v31  ;;  %v534_v16 = vld [vmem:[#allocation2 + $0xed8] sm:$0xff]  ;;  %v545_v42 = vld [vmem:[#allocation2 + $0xf30] sm:$0xff] }
 0x429   :  { %v11806_v34 = vadd.f32 %v11805_v35, %v11804_v40  ;;  %v11820_v8 = vadd.f32 %v11819_v58, %v11818_v46  ;;  %v542_v35 = vld [vmem:[#allocation2 + $0xf18] sm:$0xff] }
 0x42a   :  { %v11850_v60 = vmul.f32 0.5, %v11799_v45  ;;  %10866 = vmatpush1.bf16.msra.mxu0 %v12612_v25  ;;  %v11852_v5 = vmul.f32 0.5, %v11813_v54  ;;  %11399 = vmatpush1.bf16.msra.mxu1 %v12614_v36  ;;  %v546_v36 = vld [vmem:[#allocation2 + $0xf38] sm:$0xff]  ;;  %v12638_v54 = vcombine.low %v534_v16, %v538_v1 }
 0x42b   :  { %v11851_v3 = vmul.f32 0.5, %v11806_v34  ;;  %10867 = vmatprep.subr.bf16.mxu0 %v12621_v39  ;;  %v11853_v11 = vmul.f32 0.5, %v11820_v8  ;;  %11400 = vmatprep.subr.bf16.mxu1 %v12623_v47  ;;  %v12636_v47 = vcombine.low %v533_v13, %v537_v14  ;;  %v12645_v34 = vcombine.high %v541_v38, %v545_v42  ;;  %v549_v8 = vld [vmem:[#allocation2 + $0xf50] sm:$0xff] }
 0x42c   :  { %v14341_v43 = vsub.f32 %v14324_v24, %v11850_v60  ;;  %v14344_v9 = vsub.f32 %v14328_v63, %v11852_v5  ;;  %v12628_v24 = vcombine.low %v525_v50, %v529_v52  ;;  %v12647_v60 = vcombine.high %v542_v35, %v546_v36 }
 0x42d   :  { %v14347_v18 = vsub.f32 %v14330_v33, %v11851_v3  ;;  %v14352_v22 = vsub.f32 %v14336_v41, %v11853_v11  ;;  %v12637_v33 = vcombine.high %v533_v13, %v537_v14  ;;  %v12639_v41 = vcombine.high %v534_v16, %v538_v1 }
 0x42e   :  { %v11866_v21 = vmul.f32 %v14341_v43, %v14341_v43  ;;  %10868 = vmatpush1.bf16.msra.mxu0 %v12620_v62  ;;  %v11868_v31 = vmul.f32 %v14344_v9, %v14344_v9  ;;  %11401 = vmatpush1.bf16.msra.mxu1 %v12622_v4  ;;  %v553_v62 = vld [vmem:[#allocation2 + $0xf70] sm:$0xff]  ;;  %v550_v4 = vld [vmem:[#allocation2 + $0xf58] sm:$0xff]  ;;  %v12644_v13 = vcombine.low %v541_v38, %v545_v42 }
 0x42f   :  { %v11867_v63 = vmul.f32 %v14347_v18, %v14347_v18  ;;  %10869 = vmatprep.subr.bf16.mxu0 %v12629_v29  ;;  %v11869_v32 = vmul.f32 %v14352_v22, %v14352_v22  ;;  %11402 = vmatprep.subr.bf16.mxu1 %v12631_v12  ;;  %v554_v29 = vld [vmem:[#allocation2 + $0xf78] sm:$0xff]  ;;  %v12646_v16 = vcombine.low %v542_v35, %v546_v36 }
 0x430   :  { %v11874_v40 = vsel %vm11792_vm1, %v11866_v21, 0.0  ;;  %v11888_v25 = vsel %vm11792_vm1, %v11868_v31, 0.0  ;;  %v12653_v1 = vcombine.high %v549_v8, %v553_v62  ;;  %v12655_v31 = vcombine.high %v550_v4, %v554_v29 }
 0x431   :  { %v11875_v46 = vrot.slane %v11874_v40, 4  ;;  %v11881_v49 = vsel %vm11792_vm1, %v11867_v63, 0.0  ;;  %v11889_v39 = vrot.slane %v11888_v25, 4  ;;  %v11895_v58 = vsel %vm11792_vm1, %v11869_v32, 0.0  ;;  %v557_v63 = vld [vmem:[#allocation2 + $0xf90] sm:$0xff] }
 0x432   :  { %v11882_v45 = vrot.slane %v11881_v49, 4  ;;  %10870 = vmatpush1.bf16.msra.mxu0 %v12628_v24  ;;  %v11896_v52 = vrot.slane %v11895_v58, 4  ;;  %11403 = vmatpush1.bf16.msra.mxu1 %v12630_v23  ;;  %v12652_v38 = vcombine.low %v549_v8, %v553_v62  ;;  %v12654_v35 = vcombine.low %v550_v4, %v554_v29 }
 0x433   :  { %v11876_v50 = vadd.f32 %v11875_v46, %v11874_v40  ;;  %10871 = vmatprep.subr.bf16.mxu0 %v12637_v33  ;;  %v11890_v48 = vadd.f32 %v11889_v39, %v11888_v25  ;;  %11404 = vmatprep.subr.bf16.mxu1 %v12639_v41  ;;  %v561_v33 = vld [vmem:[#allocation2 + $0xfb0] sm:$0xff]  ;;  %v558_v41 = vld [vmem:[#allocation2 + $0xf98] sm:$0xff] }
 0x434   :  { %v11883_v55 = vadd.f32 %v11882_v45, %v11881_v49  ;;  %v11897_v3 = vadd.f32 %v11896_v52, %v11895_v58  ;;  %v562_v46 = vld [vmem:[#allocation2 + $0xfb8] sm:$0xff]  ;;  %v12661_v36 = vcombine.high %v557_v63, %v561_v33  ;;  %v569_v52 = vld [vmem:[#allocation2 + $0xff0] sm:$0xff]  ;;  %v12660_v8 = vcombine.low %v557_v63, %v561_v33 }
 0x435   :  { %v11877_v5 = vrot.slane %v11876_v50, 2  ;;  %v11891_v11 = vrot.slane %v11890_v48, 2  ;;  %v12662_v4 = vcombine.low %v558_v41, %v562_v46 }
 0x436   :  { %v11884_v12 = vrot.slane %v11883_v55, 2  ;;  %10872 = vmatpush1.bf16.msra.mxu0 %v12636_v47  ;;  %v11898_v21 = vrot.slane %v11897_v3, 2  ;;  %11405 = vmatpush1.bf16.msra.mxu1 %v12638_v54  ;;  %v12663_v47 = vcombine.high %v558_v41, %v562_v46  ;;  %v11966_v41 = vsub.s32 0, %v14101_v44  ;;  %v582_v46 = vld [vmem:[#allocation2 + $0x1058] sm:$0xff] }
 0x437   :  { %v11878_v14 = vadd.f32 %v11877_v5, %v11876_v50  ;;  %10873 = vmatprep.subr.bf16.mxu0 %v12645_v34  ;;  %v11892_v24 = vadd.f32 %v11891_v11, %v11890_v48  ;;  %11406 = vmatprep.subr.bf16.mxu1 %v12647_v60  ;;  %v565_v50 = vld [vmem:[#allocation2 + $0xfd0] sm:$0xff]  ;;  %v566_v48 = vld [vmem:[#allocation2 + $0xfd8] sm:$0xff] }
 0x438   :  { %v11885_v23 = vadd.f32 %v11884_v12, %v11883_v55  ;;  %v11899_v32 = vadd.f32 %v11898_v21, %v11897_v3  ;;  %v570_v55 = vld [vmem:[#allocation2 + $0xff8] sm:$0xff]  ;;  %v12669_v29 = vcombine.high %v565_v50, %v569_v52  ;;  %v577_v21 = vld [vmem:[#allocation2 + $0x1030] sm:$0xff] }
 0x439   :  { %v11879_v40 = vrot.slane %v11878_v14, 1  ;;  %v11893_v25 = vrot.slane %v11892_v24, 1 }
 0x43a   :  { %v11886_v49 = vrot.slane %v11885_v23, 1  ;;  %10874 = vmatpush1.bf16.msra.mxu0 %v12644_v13  ;;  %v11900_v39 = vrot.slane %v11899_v32, 1  ;;  %11407 = vmatpush1.bf16.msra.mxu1 %v12646_v16  ;;  %v12671_v13 = vcombine.high %v566_v48, %v570_v55 }
 0x43b   :  { %v11880_v42 = vadd.f32 %v11879_v40, %v11878_v14  ;;  %10875 = vmatprep.subr.bf16.mxu0 %v12653_v1  ;;  %v11894_v45 = vadd.f32 %v11893_v25, %v11892_v24  ;;  %11408 = vmatprep.subr.bf16.mxu1 %v12655_v31  ;;  %v573_v14 = vld [vmem:[#allocation2 + $0x1010] sm:$0xff]  ;;  %v574_v1 = vld [vmem:[#allocation2 + $0x1018] sm:$0xff]  ;;  %v12670_v31 = vcombine.low %v566_v48, %v570_v55 }
 0x43c   :  { %v11887_v58 = vadd.f32 %v11886_v49, %v11885_v23  ;;  %v11901_v34 = vadd.f32 %v11900_v39, %v11899_v32  ;;  %v578_v24 = vld [vmem:[#allocation2 + $0x1038] sm:$0xff]  ;;  %v12668_v23 = vcombine.low %v565_v50, %v569_v52  ;;  %v12677_v63 = vcombine.high %v573_v14, %v577_v21  ;;  %v581_v40 = vld [vmem:[#allocation2 + $0x1050] sm:$0xff]  ;;  %v11962_v49 = vld [vmem:[#allocation4] sm:$0xff] }
 0x43d   :  { %v11930_v54 = vmul.f32 0.5, %v11880_v42  ;;  %v11932_v60 = vmul.f32 0.5, %v11894_v45  ;;  %v12679_v33 = vcombine.high %v574_v1, %v578_v24  ;;  %v585_v32 = vld [vmem:[#allocation2 + $0x1070] sm:$0xff]  ;;  %v586_v25 = vld [vmem:[#allocation2 + $0x1078] sm:$0xff]  ;;  %v11970_v42 = vsub.s32 1, %v14101_v44  ;;  %v12012_v45 = vld [vmem:[#allocation6] sm:$0xff] }
 0x43e   :  { %v11931_v5 = vmul.f32 0.5, %v11887_v58  ;;  %10876 = vmatpush1.bf16.msra.mxu0 %v12652_v38  ;;  %v11933_v3 = vmul.f32 0.5, %v11901_v34  ;;  %11409 = vmatpush1.bf16.msra.mxu1 %v12654_v35  ;;  %v11974_v38 = vsub.s32 2, %v14101_v44  ;;  %v12676_v39 = vcombine.low %v573_v14, %v577_v21  ;;  %v593_v50 = vld [vmem:[#allocation2 + $0x10b0] sm:$0xff]  ;;  %v590_v34 = vld [vmem:[#allocation2 + $0x1098] sm:$0xff] }
 0x43f   :  { %v11938_v62 = vadd.f32 1e-05, %v11930_v54  ;;  %10877 = vmatprep.subr.bf16.mxu0 %v12661_v36  ;;  %v11940_v11 = vadd.f32 1e-05, %v11932_v60  ;;  %11410 = vmatprep.subr.bf16.mxu1 %v12663_v47  ;;  %v12678_v35 = vcombine.low %v574_v1, %v578_v24  ;;  %v12685_v36 = vcombine.high %v581_v40, %v585_v32  ;;  %v589_v47 = vld [vmem:[#allocation2 + $0x1090] sm:$0xff]  ;;  %v594_v48 = vld [vmem:[#allocation2 + $0x10b8] sm:$0xff] }
 0x440   :  { %v11939_v12 = vadd.f32 1e-05, %v11931_v5  ;;  %v11941_v16 = vadd.f32 1e-05, %v11933_v3  ;;  %v12687_v58 = vcombine.high %v582_v46, %v586_v25  ;;  %v11967_v52 = vrot.slane %v11962_v49, %v11966_v41  ;;  %v597_v14 = vld [vmem:[#allocation2 + $0x10d0] sm:$0xff] }
 0x441   :  { %13938 = vrsqrt.f32 %v11938_v62  ;;  %v11978_v54 = vsub.s32 3, %v14101_v44  ;;  %v11975_v55 = vrot.slane %v11962_v49, %v11974_v38  ;;  %v11971_v60 = vrot.slane %v11962_v49, %v11970_v42  ;;  %v601_v21 = vld [vmem:[#allocation2 + $0x10f0] sm:$0xff] }
 0x442   :  { %13940 = vrsqrt.f32 %v11940_v11  ;;  %10878 = vmatpush1.bf16.msra.mxu0 %v12660_v8  ;;  %11411 = vmatpush1.bf16.msra.mxu1 %v12662_v4  ;;  %v12684_v5 = vcombine.low %v581_v40, %v585_v32  ;;  %v12017_v62 = vrot.slane %v12012_v45, %v11966_v41  ;;  %v12686_v3 = vcombine.low %v582_v46, %v586_v25 }
 0x443   :  { %13942 = vrsqrt.f32 %v11939_v12  ;;  %10879 = vmatprep.subr.bf16.mxu0 %v12669_v29  ;;  %11412 = vmatprep.subr.bf16.mxu1 %v12671_v13  ;;  %v12693_v4 = vcombine.high %v589_v47, %v593_v50  ;;  %v12025_v12 = vrot.slane %v12012_v45, %v11974_v38  ;;  %v12695_v13 = vcombine.high %v590_v34, %v594_v48 }
 0x444   :  { %13944 = vrsqrt.f32 %v11941_v16  ;;  %v12021_v1 = vrot.slane %v12012_v45, %v11970_v42  ;;  %v11979_v24 = vrot.slane %v11962_v49, %v11978_v54  ;;  %v12692_v32 = vcombine.low %v589_v47, %v593_v50 }
 0x445   :  { %v12694_v41 = vcombine.low %v590_v34, %v594_v48 }
 0x446   :  { %10880 = vmatpush1.bf16.msra.mxu0 %v12668_v23  ;;  %11413 = vmatpush1.bf16.msra.mxu1 %v12670_v31  ;;  %v12029_v23 = vrot.slane %v12012_v45, %v11978_v54  ;;  %v598_v31 = vld [vmem:[#allocation2 + $0x10d8] sm:$0xff]  ;;  %v12700_v45 = vcombine.low %v597_v14, %v601_v21 }
 0x447   :  { %10890 = vmatprep.subr.bf16.mxu0 %v12677_v63  ;;  %11423 = vmatprep.subr.bf16.mxu1 %v12679_v33  ;;  %v602_v63 = vld [vmem:[#allocation2 + $0x10f8] sm:$0xff] }
 0x448   :  { %v12703_v42 = vcombine.high %v598_v31, %v602_v63 }
 0x449   :  { %10882 = vmatmul.mubr.bf16.vlgmr.msra.gmra.mrb[4].mxu0 %v14177_v19  ;;  %11415 = vmatmul.mubr.bf16.vlgmr.msra.gmra.mrb[4].mxu1 %v14177_v19 }
 0x44a   :  { %10891 = vmatpush1.bf16.msra.mxu0 %v12676_v39  ;;  %11424 = vmatpush1.bf16.msra.mxu1 %v12678_v35  ;;  %v605_v39 = vld [vmem:[#allocation2 + $0x1110] sm:$0xff] }
 0x44b   :  { %v13939_v8 = vpop.eup %13938  ;;  %10892 = vmatprep.subr.bf16.mxu0 %v12685_v36  ;;  %11425 = vmatprep.subr.bf16.mxu1 %v12687_v58  ;;  %v609_v35 = vld [vmem:[#allocation2 + $0x1130] sm:$0xff]  ;;  %v606_v58 = vld [vmem:[#allocation2 + $0x1118] sm:$0xff] }
 0x44c   :  { %v13941_v29 = vpop.eup %13940  ;;  %v11954_v11 = vmul.f32 %v13939_v8, %v14341_v43  ;;  %10922 = vmatprep.mubr.bf16.mxu0 %v14180_v30  ;;  %11455 = vmatprep.mubr.bf16.mxu1 %v14180_v30  ;;  %v12709_v34 = vcombine.high %v605_v39, %v609_v35  ;;  %v617_v8 = vld [vmem:[#allocation2 + $0x1170] sm:$0xff] }
 0x44d   :  { %v13943_v16 = vpop.eup %13942  ;;  %v11956_v19 = vmul.f32 %v13941_v29, %v14344_v9  ;;  %v12701_v9 = vcombine.high %v597_v14, %v601_v21  ;;  %v618_v29 = vld [vmem:[#allocation2 + $0x1178] sm:$0xff] }
 0x44e   :  { %v13945_v33 = vpop.eup %13944  ;;  %v12004_v40 = vmul.f32 %v11967_v52, %v11954_v11  ;;  %v11955_v43 = vmul.f32 %v13943_v16, %v14347_v18  ;;  %10893 = vmatpush1.bf16.msra.mxu0 %v12684_v5  ;;  %11426 = vmatpush1.bf16.msra.mxu1 %v12686_v3  ;;  %v610_v18 = vld [vmem:[#allocation2 + $0x1138] sm:$0xff]  ;;  %v12702_v52 = vcombine.low %v598_v31, %v602_v63  ;;  %v613_v5 = vld [vmem:[#allocation2 + $0x1150] sm:$0xff] }
 0x44f   :  { %v12006_v46 = vmul.f32 %v11975_v55, %v11956_v19  ;;  %v11957_v25 = vmul.f32 %v13945_v33, %v14352_v22  ;;  %10894 = vmatprep.subr.bf16.mxu0 %v12693_v4  ;;  %11427 = vmatprep.subr.bf16.mxu1 %v12695_v13  ;;  %v614_v4 = vld [vmem:[#allocation2 + $0x1158] sm:$0xff]  ;;  %v12710_v13 = vcombine.low %v606_v58, %v610_v18 }
 0x450   :  { %v12054_v38 = vadd.f32 %v12017_v62, %v12004_v40  ;;  %v12005_v49 = vmul.f32 %v11971_v60, %v11955_v43  ;;  %v12711_v60 = vcombine.high %v606_v58, %v610_v18  ;;  %v12717_v16 = vcombine.high %v613_v5, %v617_v8  ;;  %v622_v63 = vld [vmem:[#allocation2 + $0x1198] sm:$0xff]  ;;  %v641_v58 = vld [vmem:[#allocation2 + $0x1230] sm:$0xff] }
 0x451   :  { %v12056_v30 = vadd.f32 %v12025_v12, %v12006_v46  ;;  %v12007_v36 = vmul.f32 %v11979_v24, %v11957_v25  ;;  %v12708_v12 = vcombine.low %v605_v39, %v609_v35  ;;  %v621_v24 = vld [vmem:[#allocation2 + $0x1190] sm:$0xff]  ;;  %v626_v33 = vld [vmem:[#allocation2 + $0x11b8] sm:$0xff]  ;;  %v12716_v43 = vcombine.low %v613_v5, %v617_v8 }
 0x452   :  { %vm12062_vm2 = vcmp.gt.f32.partialorder %v12054_v38, 0.0  ;;  %v12070_v47 = vmul.f32 0.2, %v12054_v38  ;;  %v12055_v50 = vadd.f32 %v12021_v1, %v12005_v49  ;;  %10895 = vmatpush1.bf16.msra.mxu0 %v12692_v32  ;;  %11428 = vmatpush1.bf16.msra.mxu1 %v12694_v41  ;;  %v12719_v1 = vcombine.high %v614_v4, %v618_v29  ;;  %v630_v49 = vld [vmem:[#allocation2 + $0x11d8] sm:$0xff] }
 0x453   :  { %vm12064_vm3 = vcmp.gt.f32.partialorder %v12056_v30, 0.0  ;;  %v12072_v22 = vmul.f32 0.2, %v12056_v30  ;;  %v12057_v54 = vadd.f32 %v12029_v23, %v12007_v36  ;;  %10896 = vmatprep.subr.bf16.mxu0 %v12701_v9  ;;  %11429 = vmatprep.subr.bf16.mxu1 %v12703_v42  ;;  %v625_v23 = vld [vmem:[#allocation2 + $0x11b0] sm:$0xff]  ;;  %v12718_v32 = vcombine.low %v614_v4, %v618_v29  ;;  %v634_v42 = vld [vmem:[#allocation2 + $0x11f8] sm:$0xff] }
 0x454   :  { %v12078_v48 = vsel %vm12062_vm2, %v12054_v38, %v12070_v47  ;;  %vm12063_vm4 = vcmp.gt.f32.partialorder %v12055_v50, 0.0  ;;  %v12071_v55 = vmul.f32 0.2, %v12055_v50  ;;  %v12725_v41 = vcombine.high %v621_v24, %v625_v23  ;;  %v629_v9 = vld [vmem:[#allocation2 + $0x11d0] sm:$0xff]  ;;  %v638_v18 = vld [vmem:[#allocation2 + $0x1218] sm:$0xff] }
 0x455   :  { %v12080_v62 = vsel %vm12064_vm3, %v12056_v30, %v12072_v22  ;;  %vm12065_vm5 = vcmp.gt.f32.partialorder %v12057_v54, 0.0  ;;  %v12073_v3 = vmul.f32 0.2, %v12057_v54  ;;  %v12727_v25 = vcombine.high %v622_v63, %v626_v33  ;;  %v633_v38 = vld [vmem:[#allocation2 + $0x11f0] sm:$0xff]  ;;  %v642_v47 = vld [vmem:[#allocation2 + $0x1238] sm:$0xff] }
 0x456   :  { %v12079_v11 = vsel %vm12063_vm4, %v12055_v50, %v12071_v55  ;;  %10897 = vmatpush1.bf16.msra.mxu0 %v12700_v45  ;;  %11430 = vmatpush1.bf16.msra.mxu1 %v12702_v52  ;;  %v12724_v39 = vcombine.low %v621_v24, %v625_v23  ;;  %v12726_v35 = vcombine.low %v622_v63, %v626_v33  ;;  %v637_v45 = vld [vmem:[#allocation2 + $0x1210] sm:$0xff]  ;;  %v646_v55 = vld [vmem:[#allocation2 + $0x1258] sm:$0xff] }
 0x457   :  { %v13732_v14 = vpack.c.bf16 %v12079_v11, %v12078_v48  ;;  %v12081_v21 = vsel %vm12065_vm5, %v12057_v54, %v12073_v3  ;;  %10898 = vmatprep.subr.bf16.mxu0 %v12709_v34  ;;  %11431 = vmatprep.subr.bf16.mxu1 %v12711_v60  ;;  %v12733_v30 = vcombine.high %v629_v9, %v633_v38  ;;  %v645_v34 = vld [vmem:[#allocation2 + $0x1250] sm:$0xff]  ;;  %v650_v60 = vld [vmem:[#allocation2 + $0x1278] sm:$0xff] }
 0x458   :  { %v13733_v19 = vpack.c.bf16 %v12081_v21, %v12080_v62  ;;  %v12735_v36 = vcombine.high %v630_v49, %v634_v42  ;;  %v12732_v50 = vcombine.low %v629_v9, %v633_v38  ;;  %v12734_v52 = vcombine.low %v630_v49, %v634_v42  ;;  %v649_v48 = vld [vmem:[#allocation2 + $0x1270] sm:$0xff]  ;;  %v654_v11 = vld [vmem:[#allocation2 + $0x1298] sm:$0xff] }
 0x459   :  { %v14377_v31 = vrot.slane %v13732_v14, %v14104_v53  ;;  %v12741_v22 = vcombine.high %v637_v45, %v641_v58  ;;  %v12743_v54 = vcombine.high %v638_v18, %v642_v47  ;;  %v12740_v5 = vcombine.low %v637_v45, %v641_v58  ;;  %v653_v4 = vld [vmem:[#allocation2 + $0x1290] sm:$0xff]  ;;  %v662_v24 = vld [vmem:[#allocation2 + $0x12d8] sm:$0xff] }
 0x45a   :  { %v14380_v40 = vrot.slane %v13733_v19, %v14104_v53  ;;  %10899 = vmatpush1.bf16.msra.mxu0 %v12708_v12  ;;  %11432 = vmatpush1.bf16.msra.mxu1 %v12710_v13  ;;  %v12742_v8 = vcombine.low %v638_v18, %v642_v47  ;;  %v12749_v62 = vcombine.high %v645_v34, %v649_v48  ;;  %v657_v29 = vld [vmem:[#allocation2 + $0x12b0] sm:$0xff]  ;;  %v658_v12 = vld [vmem:[#allocation2 + $0x12b8] sm:$0xff] }
 0x45b   :  { %10900 = vmatprep.subr.bf16.mxu0 %v12717_v16  ;;  %11433 = vmatprep.subr.bf16.mxu1 %v12719_v1  ;;  %v12751_v3 = vcombine.high %v646_v55, %v650_v60  ;;  %v12748_v13 = vcombine.low %v645_v34, %v649_v48  ;;  %v12750_v14 = vcombine.low %v646_v55, %v650_v60  ;;  %v661_v19 = vld [vmem:[#allocation2 + $0x12d0] sm:$0xff]  ;;  %v666_v23 = vld [vmem:[#allocation2 + $0x12f8] sm:$0xff] }
 0x45c   :  { %v12134_v46 = vcombine.low %v14377_v31, %v14380_v40  ;;  %v12757_v21 = vcombine.high %v653_v4, %v657_v29  ;;  %v12759_v16 = vcombine.high %v654_v11, %v658_v12  ;;  %v665_v1 = vld [vmem:[#allocation2 + $0x12f0] sm:$0xff]  ;;  %v12756_v63 = vcombine.low %v653_v4, %v657_v29  ;;  %v670_v9 = vld [vmem:[#allocation2 + $0x1318] sm:$0xff] }
 0x45d   :  { %v12758_v33 = vcombine.low %v654_v11, %v658_v12  ;;  %v674_v38 = vld [vmem:[#allocation2 + $0x1338] sm:$0xff]  ;;  %v12764_v49 = vcombine.low %v661_v19, %v665_v1  ;;  %v12766_v42 = vcombine.low %v662_v24, %v666_v23 }
 0x45e   :  { %10901 = vmatpush1.bf16.msra.mxu0 %v12716_v43  ;;  %11434 = vmatpush1.bf16.msra.mxu1 %v12718_v32  ;;  %v12765_v43 = vcombine.high %v661_v19, %v665_v1  ;;  %v12767_v32 = vcombine.high %v662_v24, %v666_v23  ;;  %v678_v45 = vld [vmem:[#allocation2 + $0x1358] sm:$0xff]  ;;  %v12774_v47 = vcombine.low %v670_v9, %v674_v38 }
 0x45f   :  { %10902 = vmatprep.subr.bf16.mxu0 %v12725_v41  ;;  %11435 = vmatprep.subr.bf16.mxu1 %v12727_v25  ;;  %v669_v41 = vld [vmem:[#allocation2 + $0x1310] sm:$0xff]  ;;  %v682_v58 = vld [vmem:[#allocation2 + $0x1378] sm:$0xff] }
 0x460   :  { %v673_v25 = vld [vmem:[#allocation2 + $0x1330] sm:$0xff]  ;;  %v686_v34 = vld [vmem:[#allocation2 + $0x1398] sm:$0xff]  ;;  %v12782_v60 = vcombine.low %v678_v45, %v682_v58 }
 0x461   :  { %v12772_v18 = vcombine.low %v669_v41, %v673_v25  ;;  %v690_v48 = vld [vmem:[#allocation2 + $0x13b8] sm:$0xff] }
 0x462   :  { %10903 = vmatpush1.bf16.msra.mxu0 %v12724_v39  ;;  %11436 = vmatpush1.bf16.msra.mxu1 %v12726_v35  ;;  %v12773_v39 = vcombine.high %v669_v41, %v673_v25  ;;  %v12775_v35 = vcombine.high %v670_v9, %v674_v38  ;;  %v694_v4 = vld [vmem:[#allocation2 + $0x13d8] sm:$0xff]  ;;  %v12790_v12 = vcombine.low %v686_v34, %v690_v48 }
 0x463   :  { %10904 = vmatprep.subr.bf16.mxu0 %v12733_v30  ;;  %11437 = vmatprep.subr.bf16.mxu1 %v12735_v36  ;;  %v677_v30 = vld [vmem:[#allocation2 + $0x1350] sm:$0xff]  ;;  %v698_v29 = vld [vmem:[#allocation2 + $0x13f8] sm:$0xff] }
 0x464   :  { %v681_v36 = vld [vmem:[#allocation2 + $0x1370] sm:$0xff]  ;;  %v702_v19 = vld [vmem:[#allocation2 + $0x1418] sm:$0xff]  ;;  %v12798_v23 = vcombine.low %v694_v4, %v698_v29 }
 0x465   :  { %v12780_v55 = vcombine.low %v677_v30, %v681_v36  ;;  %v706_v1 = vld [vmem:[#allocation2 + $0x1438] sm:$0xff] }
 0x466   :  { %10905 = vmatpush1.bf16.msra.mxu0 %v12732_v50  ;;  %11438 = vmatpush1.bf16.msra.mxu1 %v12734_v52  ;;  %v12781_v50 = vcombine.high %v677_v30, %v681_v36  ;;  %v12783_v52 = vcombine.high %v678_v45, %v682_v58  ;;  %v710_v41 = vld [vmem:[#allocation2 + $0x1458] sm:$0xff]  ;;  %v12806_v38 = vcombine.low %v702_v19, %v706_v1 }
 0x467   :  { %10906 = vmatprep.subr.bf16.mxu0 %v12741_v22  ;;  %11439 = vmatprep.subr.bf16.mxu1 %v12743_v54  ;;  %v685_v22 = vld [vmem:[#allocation2 + $0x1390] sm:$0xff]  ;;  %v714_v25 = vld [vmem:[#allocation2 + $0x1478] sm:$0xff] }
 0x468   :  { %v689_v54 = vld [vmem:[#allocation2 + $0x13b0] sm:$0xff]  ;;  %v718_v30 = vld [vmem:[#allocation2 + $0x1498] sm:$0xff]  ;;  %v12814_v58 = vcombine.low %v710_v41, %v714_v25 }
 0x469   :  { %v12788_v11 = vcombine.low %v685_v22, %v689_v54  ;;  %v722_v36 = vld [vmem:[#allocation2 + $0x14b8] sm:$0xff] }
 0x46a   :  { %10907 = vmatpush1.bf16.msra.mxu0 %v12740_v5  ;;  %11440 = vmatpush1.bf16.msra.mxu1 %v12742_v8  ;;  %v12789_v5 = vcombine.high %v685_v22, %v689_v54  ;;  %v12791_v8 = vcombine.high %v686_v34, %v690_v48  ;;  %v726_v22 = vld [vmem:[#allocation2 + $0x14d8] sm:$0xff] }
 0x46b   :  { %10908 = vmatprep.subr.bf16.mxu0 %v12749_v62  ;;  %11441 = vmatprep.subr.bf16.mxu1 %v12751_v3  ;;  %v693_v62 = vld [vmem:[#allocation2 + $0x13d0] sm:$0xff]  ;;  %v730_v54 = vld [vmem:[#allocation2 + $0x14f8] sm:$0xff] }
 0x46c   :  { %v697_v3 = vld [vmem:[#allocation2 + $0x13f0] sm:$0xff] }
 0x46d   :  { %v12796_v24 = vcombine.low %v693_v62, %v697_v3 }
 0x46e   :  { %10909 = vmatpush1.bf16.msra.mxu0 %v12748_v13  ;;  %11442 = vmatpush1.bf16.msra.mxu1 %v12750_v14  ;;  %v12797_v13 = vcombine.high %v693_v62, %v697_v3  ;;  %v12799_v14 = vcombine.high %v694_v4, %v698_v29  ;;  %v738_v62 = vld [vmem:[#allocation2 + $0x1538] sm:$0xff]  ;;  %v12830_v4 = vcombine.low %v726_v22, %v730_v54 }
 0x46f   :  { %10910 = vmatprep.subr.bf16.mxu0 %v12757_v21  ;;  %11443 = vmatprep.subr.bf16.mxu1 %v12759_v16  ;;  %v701_v21 = vld [vmem:[#allocation2 + $0x1410] sm:$0xff] }
 0x470   :  { %v705_v16 = vld [vmem:[#allocation2 + $0x1430] sm:$0xff] }
 0x471   :  { %v12804_v9 = vcombine.low %v701_v21, %v705_v16 }
 0x472   :  { %10911 = vmatpush1.bf16.msra.mxu0 %v12756_v63  ;;  %11444 = vmatpush1.bf16.msra.mxu1 %v12758_v33  ;;  %v12805_v63 = vcombine.high %v701_v21, %v705_v16  ;;  %v12807_v33 = vcombine.high %v702_v19, %v706_v1 }
 0x473   :  { %10912 = vmatprep.subr.bf16.mxu0 %v12765_v43  ;;  %11445 = vmatprep.subr.bf16.mxu1 %v12767_v32  ;;  %v709_v43 = vld [vmem:[#allocation2 + $0x1450] sm:$0xff] }
 0x474   :  { %v713_v32 = vld [vmem:[#allocation2 + $0x1470] sm:$0xff] }
 0x475   :  { %v12812_v45 = vcombine.low %v709_v43, %v713_v32 }
 0x476   :  { %10913 = vmatpush1.bf16.msra.mxu0 %v12764_v49  ;;  %11446 = vmatpush1.bf16.msra.mxu1 %v12766_v42  ;;  %v12813_v49 = vcombine.high %v709_v43, %v713_v32  ;;  %v12815_v42 = vcombine.high %v710_v41, %v714_v25 }
 0x477   :  { %10914 = vmatprep.subr.bf16.mxu0 %v12773_v39  ;;  %11447 = vmatprep.subr.bf16.mxu1 %v12775_v35  ;;  %v717_v39 = vld [vmem:[#allocation2 + $0x1490] sm:$0xff] }
 0x478   :  { %v721_v35 = vld [vmem:[#allocation2 + $0x14b0] sm:$0xff] }
 0x479   :  { %v12820_v34 = vcombine.low %v717_v39, %v721_v35 }
 0x47a   :  { %10915 = vmatpush1.bf16.msra.mxu0 %v12772_v18  ;;  %11448 = vmatpush1.bf16.msra.mxu1 %v12774_v47  ;;  %v12821_v18 = vcombine.high %v717_v39, %v721_v35  ;;  %v12823_v47 = vcombine.high %v718_v30, %v722_v36 }
 0x47b   :  { %10916 = vmatprep.subr.bf16.mxu0 %v12781_v50  ;;  %11449 = vmatprep.subr.bf16.mxu1 %v12783_v52  ;;  %v725_v50 = vld [vmem:[#allocation2 + $0x14d0] sm:$0xff] }
 0x47c   :  { %v729_v52 = vld [vmem:[#allocation2 + $0x14f0] sm:$0xff] }
 0x47d   :  { %v12829_v48 = vcombine.high %v725_v50, %v729_v52  ;;  %v12828_v3 = vcombine.low %v725_v50, %v729_v52 }
 0x47e   :  { %10917 = vmatpush1.bf16.msra.mxu0 %v12780_v55  ;;  %11450 = vmatpush1.bf16.msra.mxu1 %v12782_v60  ;;  %v12831_v55 = vcombine.high %v726_v22, %v730_v54  ;;  %v733_v60 = vld [vmem:[#allocation2 + $0x1510] sm:$0xff] }
 0x47f   :  { %10918 = vmatprep.subr.bf16.mxu0 %v12789_v5  ;;  %11451 = vmatprep.subr.bf16.mxu1 %v12791_v8  ;;  %v737_v5 = vld [vmem:[#allocation2 + $0x1530] sm:$0xff]  ;;  %v734_v8 = vld [vmem:[#allocation2 + $0x1518] sm:$0xff] }
 0x480   :  { %v12837_v29 = vcombine.high %v733_v60, %v737_v5  ;;  %v12836_v21 = vcombine.low %v733_v60, %v737_v5  ;;  %v12838_v16 = vcombine.low %v734_v8, %v738_v62 }
 0x482   :  { %10919 = vmatpush1.bf16.msra.mxu0 %v12788_v11  ;;  %11452 = vmatpush1.bf16.msra.mxu1 %v12790_v12  ;;  %v741_v11 = vld [vmem:[#allocation2 + $0x1550] sm:$0xff] }
 0x483   :  { %10920 = vmatprep.subr.bf16.mxu0 %v12797_v13  ;;  %11453 = vmatprep.subr.bf16.mxu1 %v12799_v14  ;;  %v745_v12 = vld [vmem:[#allocation2 + $0x1570] sm:$0xff]  ;;  %v742_v13 = vld [vmem:[#allocation2 + $0x1558] sm:$0xff] }
 0x484   :  { %v746_v14 = vld [vmem:[#allocation2 + $0x1578] sm:$0xff]  ;;  %v12845_v19 = vcombine.high %v741_v11, %v745_v12  ;;  %v12844_v43 = vcombine.low %v741_v11, %v745_v12 }
 0x485   :  { %v12847_v1 = vcombine.high %v742_v13, %v746_v14  ;;  %v12846_v32 = vcombine.low %v742_v13, %v746_v14 }
 0x486   :  { %10921 = vmatpush1.bf16.msra.mxu0 %v12796_v24  ;;  %11454 = vmatpush1.bf16.msra.mxu1 %v12798_v23  ;;  %v749_v24 = vld [vmem:[#allocation2 + $0x1590] sm:$0xff] }
 0x487   :  { %10931 = vmatprep.subr.bf16.mxu0 %v12805_v63  ;;  %11464 = vmatprep.subr.bf16.mxu1 %v12807_v33  ;;  %v753_v23 = vld [vmem:[#allocation2 + $0x15b0] sm:$0xff]  ;;  %v750_v63 = vld [vmem:[#allocation2 + $0x1598] sm:$0xff] }
 0x488   :  { %v754_v33 = vld [vmem:[#allocation2 + $0x15b8] sm:$0xff]  ;;  %v12853_v41 = vcombine.high %v749_v24, %v753_v23  ;;  %v12852_v39 = vcombine.low %v749_v24, %v753_v23 }
 0x489   :  { %10923 = vmatmul.mubr.bf16.vlgmr.msra.gmra.mrb[4].mxu0 %v14188_v51  ;;  %11456 = vmatmul.mubr.bf16.vlgmr.msra.gmra.mrb[4].mxu1 %v14188_v51  ;;  %v12822_v51 = vcombine.low %v718_v30, %v722_v36  ;;  %v12855_v25 = vcombine.high %v750_v63, %v754_v33  ;;  %v12854_v35 = vcombine.low %v750_v63, %v754_v33 }
 0x48a   :  { %10932 = vmatpush1.bf16.msra.mxu0 %v12804_v9  ;;  %11465 = vmatpush1.bf16.msra.mxu1 %v12806_v38  ;;  %v757_v9 = vld [vmem:[#allocation2 + $0x15d0] sm:$0xff] }
 0x48b   :  { %10933 = vmatprep.subr.bf16.mxu0 %v12813_v49  ;;  %11466 = vmatprep.subr.bf16.mxu1 %v12815_v42  ;;  %v761_v38 = vld [vmem:[#allocation2 + $0x15f0] sm:$0xff]  ;;  %v758_v49 = vld [vmem:[#allocation2 + $0x15d8] sm:$0xff] }
 0x48c   :  { %10963 = vmatprep.mubr.bf16.mxu0 %v14192_v0  ;;  %11496 = vmatprep.mubr.bf16.mxu1 %v14192_v0  ;;  %v12839_v0 = vcombine.high %v734_v8, %v738_v62  ;;  %v762_v42 = vld [vmem:[#allocation2 + $0x15f8] sm:$0xff]  ;;  %v12861_v30 = vcombine.high %v757_v9, %v761_v38  ;;  %v12860_v50 = vcombine.low %v757_v9, %v761_v38 }
 0x48d   :  { %v12863_v36 = vcombine.high %v758_v49, %v762_v42  ;;  %v12862_v52 = vcombine.low %v758_v49, %v762_v42 }
 0x48e   :  { %10934 = vmatpush1.bf16.msra.mxu0 %v12812_v45  ;;  %11467 = vmatpush1.bf16.msra.mxu1 %v12814_v58  ;;  %v765_v45 = vld [vmem:[#allocation2 + $0x1610] sm:$0xff] }
 0x48f   :  { %10935 = vmatprep.subr.bf16.mxu0 %v12821_v18  ;;  %11468 = vmatprep.subr.bf16.mxu1 %v12823_v47  ;;  %v769_v58 = vld [vmem:[#allocation2 + $0x1630] sm:$0xff]  ;;  %v766_v18 = vld [vmem:[#allocation2 + $0x1618] sm:$0xff] }
 0x490   :  { %v770_v47 = vld [vmem:[#allocation2 + $0x1638] sm:$0xff]  ;;  %v12869_v22 = vcombine.high %v765_v45, %v769_v58  ;;  %v12868_v60 = vcombine.low %v765_v45, %v769_v58 }
 0x491   :  { %v12871_v54 = vcombine.high %v766_v18, %v770_v47  ;;  %v12870_v5 = vcombine.low %v766_v18, %v770_v47 }
 0x492   :  { %10936 = vmatpush1.bf16.msra.mxu0 %v12820_v34  ;;  %11469 = vmatpush1.bf16.msra.mxu1 %v12822_v51  ;;  %v773_v34 = vld [vmem:[#allocation2 + $0x1650] sm:$0xff] }
 0x493   :  { %10937 = vmatprep.subr.bf16.mxu0 %v12829_v48  ;;  %11470 = vmatprep.subr.bf16.mxu1 %v12831_v55  ;;  %v777_v51 = vld [vmem:[#allocation2 + $0x1670] sm:$0xff]  ;;  %v774_v48 = vld [vmem:[#allocation2 + $0x1658] sm:$0xff] }
 0x494   :  { %v778_v55 = vld [vmem:[#allocation2 + $0x1678] sm:$0xff]  ;;  %v12877_v8 = vcombine.high %v773_v34, %v777_v51  ;;  %v12876_v11 = vcombine.low %v773_v34, %v777_v51 }
 0x495   :  { %v12879_v62 = vcombine.high %v774_v48, %v778_v55  ;;  %v12878_v12 = vcombine.low %v774_v48, %v778_v55 }
 0x496   :  { %10938 = vmatpush1.bf16.msra.mxu0 %v12828_v3  ;;  %11471 = vmatpush1.bf16.msra.mxu1 %v12830_v4  ;;  %v781_v3 = vld [vmem:[#allocation2 + $0x1690] sm:$0xff] }
 0x497   :  { %10939 = vmatprep.subr.bf16.mxu0 %v12837_v29  ;;  %11472 = vmatprep.subr.bf16.mxu1 %v12839_v0  ;;  %v785_v4 = vld [vmem:[#allocation2 + $0x16b0] sm:$0xff]  ;;  %v782_v29 = vld [vmem:[#allocation2 + $0x1698] sm:$0xff] }
 0x498   :  { %v786_v0 = vld [vmem:[#allocation2 + $0x16b8] sm:$0xff]  ;;  %v12885_v13 = vcombine.high %v781_v3, %v785_v4  ;;  %v12884_v24 = vcombine.low %v781_v3, %v785_v4 }
 0x499   :  { %v12887_v14 = vcombine.high %v782_v29, %v786_v0  ;;  %v12886_v23 = vcombine.low %v782_v29, %v786_v0 }
 0x49a   :  { %10940 = vmatpush1.bf16.msra.mxu0 %v12836_v21  ;;  %11473 = vmatpush1.bf16.msra.mxu1 %v12838_v16  ;;  %v789_v21 = vld [vmem:[#allocation2 + $0x16d0] sm:$0xff] }
 0x49b   :  { %10941 = vmatprep.subr.bf16.mxu0 %v12845_v19  ;;  %11474 = vmatprep.subr.bf16.mxu1 %v12847_v1  ;;  %v793_v16 = vld [vmem:[#allocation2 + $0x16f0] sm:$0xff]  ;;  %v790_v19 = vld [vmem:[#allocation2 + $0x16d8] sm:$0xff] }
 0x49c   :  { %v794_v1 = vld [vmem:[#allocation2 + $0x16f8] sm:$0xff]  ;;  %v12893_v63 = vcombine.high %v789_v21, %v793_v16  ;;  %v12892_v9 = vcombine.low %v789_v21, %v793_v16 }
 0x49d   :  { %v12895_v33 = vcombine.high %v790_v19, %v794_v1  ;;  %v12894_v38 = vcombine.low %v790_v19, %v794_v1 }
 0x49e   :  { %10942 = vmatpush1.bf16.msra.mxu0 %v12844_v43  ;;  %11475 = vmatpush1.bf16.msra.mxu1 %v12846_v32  ;;  %v797_v43 = vld [vmem:[#allocation2 + $0x1710] sm:$0xff] }
 0x49f   :  { %10943 = vmatprep.subr.bf16.mxu0 %v12853_v41  ;;  %11476 = vmatprep.subr.bf16.mxu1 %v12855_v25  ;;  %v801_v32 = vld [vmem:[#allocation2 + $0x1730] sm:$0xff]  ;;  %v798_v41 = vld [vmem:[#allocation2 + $0x1718] sm:$0xff] }
 0x4a0   :  { %v802_v25 = vld [vmem:[#allocation2 + $0x1738] sm:$0xff]  ;;  %v12901_v49 = vcombine.high %v797_v43, %v801_v32  ;;  %v12900_v45 = vcombine.low %v797_v43, %v801_v32 }
 0x4a1   :  { %v12903_v42 = vcombine.high %v798_v41, %v802_v25  ;;  %v12902_v58 = vcombine.low %v798_v41, %v802_v25 }
 0x4a2   :  { %10944 = vmatpush1.bf16.msra.mxu0 %v12852_v39  ;;  %11477 = vmatpush1.bf16.msra.mxu1 %v12854_v35  ;;  %v805_v39 = vld [vmem:[#allocation2 + $0x1750] sm:$0xff] }
 0x4a3   :  { %10945 = vmatprep.subr.bf16.mxu0 %v12861_v30  ;;  %11478 = vmatprep.subr.bf16.mxu1 %v12863_v36  ;;  %v809_v35 = vld [vmem:[#allocation2 + $0x1770] sm:$0xff]  ;;  %v806_v30 = vld [vmem:[#allocation2 + $0x1758] sm:$0xff] }
 0x4a4   :  { %v810_v36 = vld [vmem:[#allocation2 + $0x1778] sm:$0xff]  ;;  %v12909_v18 = vcombine.high %v805_v39, %v809_v35  ;;  %v12908_v34 = vcombine.low %v805_v39, %v809_v35 }
 0x4a5   :  { %v12911_v47 = vcombine.high %v806_v30, %v810_v36  ;;  %v12910_v51 = vcombine.low %v806_v30, %v810_v36 }
 0x4a6   :  { %10946 = vmatpush1.bf16.msra.mxu0 %v12860_v50  ;;  %11479 = vmatpush1.bf16.msra.mxu1 %v12862_v52  ;;  %v813_v50 = vld [vmem:[#allocation2 + $0x1790] sm:$0xff] }
 0x4a7   :  { %10947 = vmatprep.subr.bf16.mxu0 %v12869_v22  ;;  %11480 = vmatprep.subr.bf16.mxu1 %v12871_v54  ;;  %v817_v52 = vld [vmem:[#allocation2 + $0x17b0] sm:$0xff]  ;;  %v814_v22 = vld [vmem:[#allocation2 + $0x1798] sm:$0xff] }
 0x4a8   :  { %v818_v54 = vld [vmem:[#allocation2 + $0x17b8] sm:$0xff]  ;;  %v12917_v48 = vcombine.high %v813_v50, %v817_v52  ;;  %v12916_v3 = vcombine.low %v813_v50, %v817_v52 }
 0x4a9   :  { %v12919_v55 = vcombine.high %v814_v22, %v818_v54  ;;  %v12918_v4 = vcombine.low %v814_v22, %v818_v54  ;;  %v861_v54 = vld [vmem:[#allocation2 + $0x1910] sm:$0xff] }
 0x4aa   :  { %10948 = vmatpush1.bf16.msra.mxu0 %v12868_v60  ;;  %11481 = vmatpush1.bf16.msra.mxu1 %v12870_v5  ;;  %v821_v60 = vld [vmem:[#allocation2 + $0x17d0] sm:$0xff] }
 0x4ab   :  { %10949 = vmatprep.subr.bf16.mxu0 %v12877_v8  ;;  %11482 = vmatprep.subr.bf16.mxu1 %v12879_v62  ;;  %v825_v5 = vld [vmem:[#allocation2 + $0x17f0] sm:$0xff]  ;;  %v822_v8 = vld [vmem:[#allocation2 + $0x17d8] sm:$0xff] }
 0x4ac   :  { %v826_v62 = vld [vmem:[#allocation2 + $0x17f8] sm:$0xff]  ;;  %v12925_v29 = vcombine.high %v821_v60, %v825_v5  ;;  %v12924_v21 = vcombine.low %v821_v60, %v825_v5 }
 0x4ad   :  { %v12927_v0 = vcombine.high %v822_v8, %v826_v62  ;;  %v12926_v16 = vcombine.low %v822_v8, %v826_v62  ;;  %v869_v8 = vld [vmem:[#allocation2 + $0x1950] sm:$0xff] }
 0x4ae   :  { %10950 = vmatpush1.bf16.msra.mxu0 %v12876_v11  ;;  %11483 = vmatpush1.bf16.msra.mxu1 %v12878_v12  ;;  %v829_v11 = vld [vmem:[#allocation2 + $0x1810] sm:$0xff] }
 0x4af   :  { %10951 = vmatprep.subr.bf16.mxu0 %v12885_v13  ;;  %11484 = vmatprep.subr.bf16.mxu1 %v12887_v14  ;;  %v833_v12 = vld [vmem:[#allocation2 + $0x1830] sm:$0xff]  ;;  %v830_v13 = vld [vmem:[#allocation2 + $0x1818] sm:$0xff] }
 0x4b0   :  { %v834_v14 = vld [vmem:[#allocation2 + $0x1838] sm:$0xff]  ;;  %v12933_v19 = vcombine.high %v829_v11, %v833_v12  ;;  %v12932_v43 = vcombine.low %v829_v11, %v833_v12  ;;  %v873_v62 = vld [vmem:[#allocation2 + $0x1970] sm:$0xff] }
 0x4b1   :  { %v12935_v1 = vcombine.high %v830_v13, %v834_v14  ;;  %v12934_v32 = vcombine.low %v830_v13, %v834_v14  ;;  %v12973_v11 = vcombine.high %v869_v8, %v873_v62  ;;  %v877_v13 = vld [vmem:[#allocation2 + $0x1990] sm:$0xff] }
 0x4b2   :  { %10952 = vmatpush1.bf16.msra.mxu0 %v12884_v24  ;;  %11485 = vmatpush1.bf16.msra.mxu1 %v12886_v23  ;;  %v837_v24 = vld [vmem:[#allocation2 + $0x1850] sm:$0xff] }
 0x4b3   :  { %10953 = vmatprep.subr.bf16.mxu0 %v12893_v63  ;;  %11486 = vmatprep.subr.bf16.mxu1 %v12895_v33  ;;  %v841_v23 = vld [vmem:[#allocation2 + $0x1870] sm:$0xff]  ;;  %v838_v63 = vld [vmem:[#allocation2 + $0x1858] sm:$0xff] }
 0x4b4   :  { %v842_v33 = vld [vmem:[#allocation2 + $0x1878] sm:$0xff]  ;;  %v12941_v41 = vcombine.high %v837_v24, %v841_v23  ;;  %v12940_v39 = vcombine.low %v837_v24, %v841_v23  ;;  %v881_v14 = vld [vmem:[#allocation2 + $0x19b0] sm:$0xff] }
 0x4b5   :  { %v12943_v25 = vcombine.high %v838_v63, %v842_v33  ;;  %v12942_v35 = vcombine.low %v838_v63, %v842_v33  ;;  %v12981_v24 = vcombine.high %v877_v13, %v881_v14  ;;  %v885_v63 = vld [vmem:[#allocation2 + $0x19d0] sm:$0xff] }
 0x4b6   :  { %10954 = vmatpush1.bf16.msra.mxu0 %v12892_v9  ;;  %11487 = vmatpush1.bf16.msra.mxu1 %v12894_v38  ;;  %v845_v9 = vld [vmem:[#allocation2 + $0x1890] sm:$0xff] }
 0x4b7   :  { %10955 = vmatprep.subr.bf16.mxu0 %v12901_v49  ;;  %11488 = vmatprep.subr.bf16.mxu1 %v12903_v42  ;;  %v849_v38 = vld [vmem:[#allocation2 + $0x18b0] sm:$0xff]  ;;  %v846_v49 = vld [vmem:[#allocation2 + $0x1898] sm:$0xff] }
 0x4b8   :  { %v850_v42 = vld [vmem:[#allocation2 + $0x18b8] sm:$0xff]  ;;  %v12949_v30 = vcombine.high %v845_v9, %v849_v38  ;;  %v12948_v50 = vcombine.low %v845_v9, %v849_v38  ;;  %v889_v33 = vld [vmem:[#allocation2 + $0x19f0] sm:$0xff] }
 0x4b9   :  { %v12951_v36 = vcombine.high %v846_v49, %v850_v42  ;;  %v12989_v9 = vcombine.high %v885_v63, %v889_v33 }
 0x4ba   :  { %10956 = vmatpush1.bf16.msra.mxu0 %v12900_v45  ;;  %11489 = vmatpush1.bf16.msra.mxu1 %v12902_v58  ;;  %v853_v45 = vld [vmem:[#allocation2 + $0x18d0] sm:$0xff] }
 0x4bb   :  { %10957 = vmatprep.subr.bf16.mxu0 %v12909_v18  ;;  %11490 = vmatprep.subr.bf16.mxu1 %v12911_v47  ;;  %v857_v58 = vld [vmem:[#allocation2 + $0x18f0] sm:$0xff]  ;;  %v854_v18 = vld [vmem:[#allocation2 + $0x18d8] sm:$0xff] }
 0x4bc   :  { %v858_v47 = vld [vmem:[#allocation2 + $0x18f8] sm:$0xff]  ;;  %v12957_v52 = vcombine.high %v853_v45, %v857_v58 }
 0x4bd   :  { %v12959_v22 = vcombine.high %v854_v18, %v858_v47  ;;  %v12958_v60 = vcombine.low %v854_v18, %v858_v47  ;;  %v901_v18 = vld [vmem:[#allocation2 + $0x1a50] sm:$0xff] }
 0x4be   :  { %10958 = vmatpush1.bf16.msra.mxu0 %v12908_v34  ;;  %11491 = vmatpush1.bf16.msra.mxu1 %v12910_v51  ;;  %v865_v34 = vld [vmem:[#allocation2 + $0x1930] sm:$0xff]  ;;  %v862_v51 = vld [vmem:[#allocation2 + $0x1918] sm:$0xff] }
 0x4bf   :  { %10959 = vmatprep.subr.bf16.mxu0 %v12917_v48  ;;  %11492 = vmatprep.subr.bf16.mxu1 %v12919_v55  ;;  %v866_v48 = vld [vmem:[#allocation2 + $0x1938] sm:$0xff]  ;;  %v12956_v55 = vcombine.low %v853_v45, %v857_v58  ;;  %v12965_v5 = vcombine.high %v861_v54, %v865_v34  ;;  %v905_v47 = vld [vmem:[#allocation2 + $0x1a70] sm:$0xff] }
 0x4c2   :  { %10960 = vmatpush1.bf16.msra.mxu0 %v12916_v3  ;;  %11493 = vmatpush1.bf16.msra.mxu1 %v12918_v4  ;;  %v870_v3 = vld [vmem:[#allocation2 + $0x1958] sm:$0xff] }
 0x4c3   :  { %10961 = vmatprep.subr.bf16.mxu0 %v12925_v29  ;;  %11494 = vmatprep.subr.bf16.mxu1 %v12927_v0  ;;  %v874_v4 = vld [vmem:[#allocation2 + $0x1978] sm:$0xff]  ;;  %v12964_v29 = vcombine.low %v861_v54, %v865_v34  ;;  %v12966_v0 = vcombine.low %v862_v51, %v866_v48  ;;  %v13005_v54 = vcombine.high %v901_v18, %v905_v47 }
 0x4c4   :  { %v12975_v12 = vcombine.high %v870_v3, %v874_v4 }
 0x4c6   :  { %10962 = vmatpush1.bf16.msra.mxu0 %v12924_v21  ;;  %11495 = vmatpush1.bf16.msra.mxu1 %v12926_v16  ;;  %v878_v21 = vld [vmem:[#allocation2 + $0x1998] sm:$0xff] }
 0x4c7   :  { %10972 = vmatprep.subr.bf16.mxu0 %v12933_v19  ;;  %11505 = vmatprep.subr.bf16.mxu1 %v12935_v1  ;;  %v882_v16 = vld [vmem:[#allocation2 + $0x19b8] sm:$0xff]  ;;  %v12972_v19 = vcombine.low %v869_v8, %v873_v62  ;;  %v12974_v1 = vcombine.low %v870_v3, %v874_v4  ;;  %v917_v3 = vld [vmem:[#allocation2 + $0x1ad0] sm:$0xff] }
 0x4c8   :  { %v12983_v23 = vcombine.high %v878_v21, %v882_v16  ;;  %v921_v4 = vld [vmem:[#allocation2 + $0x1af0] sm:$0xff] }
 0x4c9   :  { %10964 = vmatmul.mubr.bf16.vlgmr.msra.gmra.mrb[4].mxu0 %v14207_v27  ;;  %11497 = vmatmul.mubr.bf16.vlgmr.msra.gmra.mrb[4].mxu1 %v14207_v27  ;;  %v12950_v27 = vcombine.low %v846_v49, %v850_v42  ;;  %v893_v49 = vld [vmem:[#allocation2 + $0x1a10] sm:$0xff] }
 0x4ca   :  { %10973 = vmatpush1.bf16.msra.mxu0 %v12932_v43  ;;  %11506 = vmatpush1.bf16.msra.mxu1 %v12934_v32  ;;  %v886_v43 = vld [vmem:[#allocation2 + $0x19d8] sm:$0xff]  ;;  %v897_v42 = vld [vmem:[#allocation2 + $0x1a30] sm:$0xff] }
 0x4cb   :  { %10974 = vmatprep.subr.bf16.mxu0 %v12941_v41  ;;  %11507 = vmatprep.subr.bf16.mxu1 %v12943_v25  ;;  %v890_v32 = vld [vmem:[#allocation2 + $0x19f8] sm:$0xff]  ;;  %v12980_v41 = vcombine.low %v877_v13, %v881_v14  ;;  %v12982_v25 = vcombine.low %v878_v21, %v882_v16  ;;  %v12997_v45 = vcombine.high %v893_v49, %v897_v42  ;;  %v925_v21 = vld [vmem:[#allocation2 + $0x1b10] sm:$0xff] }
 0x4cc   :  { %11004 = vmatprep.mubr.bf16.mxu0 %v14210_v37  ;;  %11537 = vmatprep.mubr.bf16.mxu1 %v14210_v37  ;;  %v12967_v37 = vcombine.high %v862_v51, %v866_v48  ;;  %v12991_v38 = vcombine.high %v886_v43, %v890_v32  ;;  %v909_v51 = vld [vmem:[#allocation2 + $0x1a90] sm:$0xff]  ;;  %v13021_v13 = vcombine.high %v917_v3, %v921_v4 }
 0x4cd   :  { %v913_v48 = vld [vmem:[#allocation2 + $0x1ab0] sm:$0xff] }
 0x4ce   :  { %10975 = vmatpush1.bf16.msra.mxu0 %v12940_v39  ;;  %11508 = vmatpush1.bf16.msra.mxu1 %v12942_v35  ;;  %v894_v39 = vld [vmem:[#allocation2 + $0x1a18] sm:$0xff]  ;;  %v13013_v8 = vcombine.high %v909_v51, %v913_v48  ;;  %v929_v16 = vld [vmem:[#allocation2 + $0x1b30] sm:$0xff] }
 0x4cf   :  { %10976 = vmatprep.subr.bf16.mxu0 %v12949_v30  ;;  %11509 = vmatprep.subr.bf16.mxu1 %v12951_v36  ;;  %v898_v35 = vld [vmem:[#allocation2 + $0x1a38] sm:$0xff]  ;;  %v12988_v30 = vcombine.low %v885_v63, %v889_v33  ;;  %v12990_v36 = vcombine.low %v886_v43, %v890_v32  ;;  %v13029_v63 = vcombine.high %v925_v21, %v929_v16  ;;  %v933_v43 = vld [vmem:[#allocation2 + $0x1b50] sm:$0xff] }
 0x4d0   :  { %v12999_v58 = vcombine.high %v894_v39, %v898_v35  ;;  %v937_v32 = vld [vmem:[#allocation2 + $0x1b70] sm:$0xff] }
 0x4d2   :  { %10977 = vmatpush1.bf16.msra.mxu0 %v12948_v50  ;;  %11510 = vmatpush1.bf16.msra.mxu1 %v12950_v27  ;;  %v902_v50 = vld [vmem:[#allocation2 + $0x1a58] sm:$0xff] }
 0x4d3   :  { %10978 = vmatprep.subr.bf16.mxu0 %v12957_v52  ;;  %11511 = vmatprep.subr.bf16.mxu1 %v12959_v22  ;;  %v906_v27 = vld [vmem:[#allocation2 + $0x1a78] sm:$0xff]  ;;  %v12996_v52 = vcombine.low %v893_v49, %v897_v42  ;;  %v12998_v22 = vcombine.low %v894_v39, %v898_v35  ;;  %v13037_v49 = vcombine.high %v933_v43, %v937_v32  ;;  %v941_v39 = vld [vmem:[#allocation2 + $0x1b90] sm:$0xff] }
 0x4d4   :  { %v13007_v34 = vcombine.high %v902_v50, %v906_v27  ;;  %v945_v35 = vld [vmem:[#allocation2 + $0x1bb0] sm:$0xff] }
 0x4d6   :  { %10979 = vmatpush1.bf16.msra.mxu0 %v12956_v55  ;;  %11512 = vmatpush1.bf16.msra.mxu1 %v12958_v60  ;;  %v910_v55 = vld [vmem:[#allocation2 + $0x1a98] sm:$0xff] }
 0x4d7   :  { %10980 = vmatprep.subr.bf16.mxu0 %v12965_v5  ;;  %11513 = vmatprep.subr.bf16.mxu1 %v12967_v37  ;;  %v914_v60 = vld [vmem:[#allocation2 + $0x1ab8] sm:$0xff]  ;;  %v13004_v5 = vcombine.low %v901_v18, %v905_v47  ;;  %v13006_v37 = vcombine.low %v902_v50, %v906_v27  ;;  %v13045_v18 = vcombine.high %v941_v39, %v945_v35  ;;  %v949_v50 = vld [vmem:[#allocation2 + $0x1bd0] sm:$0xff] }
 0x4d8   :  { %v13015_v62 = vcombine.high %v910_v55, %v914_v60  ;;  %v953_v27 = vld [vmem:[#allocation2 + $0x1bf0] sm:$0xff] }
 0x4da   :  { %10981 = vmatpush1.bf16.msra.mxu0 %v12964_v29  ;;  %11514 = vmatpush1.bf16.msra.mxu1 %v12966_v0  ;;  %v918_v29 = vld [vmem:[#allocation2 + $0x1ad8] sm:$0xff] }
 0x4db   :  { %10982 = vmatprep.subr.bf16.mxu0 %v12973_v11  ;;  %11515 = vmatprep.subr.bf16.mxu1 %v12975_v12  ;;  %v922_v0 = vld [vmem:[#allocation2 + $0x1af8] sm:$0xff]  ;;  %v13012_v11 = vcombine.low %v909_v51, %v913_v48  ;;  %v13014_v12 = vcombine.low %v910_v55, %v914_v60  ;;  %v13053_v51 = vcombine.high %v949_v50, %v953_v27  ;;  %v957_v55 = vld [vmem:[#allocation2 + $0x1c10] sm:$0xff] }
 0x4dc   :  { %v13023_v14 = vcombine.high %v918_v29, %v922_v0  ;;  %v961_v60 = vld [vmem:[#allocation2 + $0x1c30] sm:$0xff] }
 0x4de   :  { %10983 = vmatpush1.bf16.msra.mxu0 %v12972_v19  ;;  %11516 = vmatpush1.bf16.msra.mxu1 %v12974_v1  ;;  %v926_v19 = vld [vmem:[#allocation2 + $0x1b18] sm:$0xff] }
 0x4df   :  { %10984 = vmatprep.subr.bf16.mxu0 %v12981_v24  ;;  %11517 = vmatprep.subr.bf16.mxu1 %v12983_v23  ;;  %v930_v1 = vld [vmem:[#allocation2 + $0x1b38] sm:$0xff]  ;;  %v13020_v24 = vcombine.low %v917_v3, %v921_v4  ;;  %v13022_v23 = vcombine.low %v918_v29, %v922_v0  ;;  %v13061_v3 = vcombine.high %v957_v55, %v961_v60  ;;  %v965_v29 = vld [vmem:[#allocation2 + $0x1c50] sm:$0xff] }
 0x4e0   :  { %v13031_v33 = vcombine.high %v926_v19, %v930_v1  ;;  %v969_v0 = vld [vmem:[#allocation2 + $0x1c70] sm:$0xff] }
 0x4e2   :  { %10985 = vmatpush1.bf16.msra.mxu0 %v12980_v41  ;;  %11518 = vmatpush1.bf16.msra.mxu1 %v12982_v25  ;;  %v934_v41 = vld [vmem:[#allocation2 + $0x1b58] sm:$0xff] }
 0x4e3   :  { %10986 = vmatprep.subr.bf16.mxu0 %v12989_v9  ;;  %11519 = vmatprep.subr.bf16.mxu1 %v12991_v38  ;;  %v938_v25 = vld [vmem:[#allocation2 + $0x1b78] sm:$0xff]  ;;  %v13028_v9 = vcombine.low %v925_v21, %v929_v16  ;;  %v13030_v38 = vcombine.low %v926_v19, %v930_v1  ;;  %v13069_v21 = vcombine.high %v965_v29, %v969_v0  ;;  %v973_v19 = vld [vmem:[#allocation2 + $0x1c90] sm:$0xff] }
 0x4e4   :  { %v13039_v42 = vcombine.high %v934_v41, %v938_v25  ;;  %v977_v1 = vld [vmem:[#allocation2 + $0x1cb0] sm:$0xff] }
 0x4e6   :  { %10987 = vmatpush1.bf16.msra.mxu0 %v12988_v30  ;;  %11520 = vmatpush1.bf16.msra.mxu1 %v12990_v36  ;;  %v942_v30 = vld [vmem:[#allocation2 + $0x1b98] sm:$0xff] }
 0x4e7   :  { %10988 = vmatprep.subr.bf16.mxu0 %v12997_v45  ;;  %11521 = vmatprep.subr.bf16.mxu1 %v12999_v58  ;;  %v946_v36 = vld [vmem:[#allocation2 + $0x1bb8] sm:$0xff]  ;;  %v13036_v45 = vcombine.low %v933_v43, %v937_v32  ;;  %v13038_v58 = vcombine.low %v934_v41, %v938_v25  ;;  %v13077_v43 = vcombine.high %v973_v19, %v977_v1  ;;  %v981_v41 = vld [vmem:[#allocation2 + $0x1cd0] sm:$0xff] }
 0x4e8   :  { %v13047_v47 = vcombine.high %v942_v30, %v946_v36  ;;  %v985_v25 = vld [vmem:[#allocation2 + $0x1cf0] sm:$0xff] }
 0x4ea   :  { %10989 = vmatpush1.bf16.msra.mxu0 %v12996_v52  ;;  %11522 = vmatpush1.bf16.msra.mxu1 %v12998_v22  ;;  %v950_v52 = vld [vmem:[#allocation2 + $0x1bd8] sm:$0xff] }
 0x4eb   :  { %10990 = vmatprep.subr.bf16.mxu0 %v13005_v54  ;;  %11523 = vmatprep.subr.bf16.mxu1 %v13007_v34  ;;  %v954_v22 = vld [vmem:[#allocation2 + $0x1bf8] sm:$0xff]  ;;  %v13044_v54 = vcombine.low %v941_v39, %v945_v35  ;;  %v13046_v34 = vcombine.low %v942_v30, %v946_v36  ;;  %v989_v35 = vld [vmem:[#allocation2 + $0x1d10] sm:$0xff] }
 0x4ec   :  { %v13055_v48 = vcombine.high %v950_v52, %v954_v22  ;;  %v993_v30 = vld [vmem:[#allocation2 + $0x1d30] sm:$0xff]  ;;  %v990_v36 = vld [vmem:[#allocation2 + $0x1d18] sm:$0xff] }
 0x4ee   :  { %10991 = vmatpush1.bf16.msra.mxu0 %v13004_v5  ;;  %11524 = vmatpush1.bf16.msra.mxu1 %v13006_v37  ;;  %v958_v5 = vld [vmem:[#allocation2 + $0x1c18] sm:$0xff] }
 0x4ef   :  { %10992 = vmatprep.subr.bf16.mxu0 %v13013_v8  ;;  %11525 = vmatprep.subr.bf16.mxu1 %v13015_v62  ;;  %v962_v37 = vld [vmem:[#allocation2 + $0x1c38] sm:$0xff]  ;;  %v13052_v8 = vcombine.low %v949_v50, %v953_v27  ;;  %v13054_v62 = vcombine.low %v950_v52, %v954_v22  ;;  %v997_v50 = vld [vmem:[#allocation2 + $0x1d50] sm:$0xff] }
 0x4f0   :  { %v13063_v4 = vcombine.high %v958_v5, %v962_v37  ;;  %v1001_v27 = vld [vmem:[#allocation2 + $0x1d70] sm:$0xff]  ;;  %v998_v52 = vld [vmem:[#allocation2 + $0x1d58] sm:$0xff] }
 0x4f1   :  { %v1002_v22 = vld [vmem:[#allocation2 + $0x1d78] sm:$0xff] }
 0x4f2   :  { %10993 = vmatpush1.bf16.msra.mxu0 %v13012_v11  ;;  %11526 = vmatpush1.bf16.msra.mxu1 %v13014_v12  ;;  %v966_v11 = vld [vmem:[#allocation2 + $0x1c58] sm:$0xff] }
 0x4f3   :  { %10994 = vmatprep.subr.bf16.mxu0 %v13021_v13  ;;  %11527 = vmatprep.subr.bf16.mxu1 %v13023_v14  ;;  %v970_v12 = vld [vmem:[#allocation2 + $0x1c78] sm:$0xff]  ;;  %v13060_v13 = vcombine.low %v957_v55, %v961_v60  ;;  %v13062_v14 = vcombine.low %v958_v5, %v962_v37  ;;  %v1005_v55 = vld [vmem:[#allocation2 + $0x1d90] sm:$0xff] }
 0x4f4   :  { %v13071_v16 = vcombine.high %v966_v11, %v970_v12  ;;  %v1009_v60 = vld [vmem:[#allocation2 + $0x1db0] sm:$0xff]  ;;  %v1006_v5 = vld [vmem:[#allocation2 + $0x1d98] sm:$0xff] }
 0x4f5   :  { %v1010_v37 = vld [vmem:[#allocation2 + $0x1db8] sm:$0xff] }
 0x4f6   :  { %10995 = vmatpush1.bf16.msra.mxu0 %v13020_v24  ;;  %11528 = vmatpush1.bf16.msra.mxu1 %v13022_v23  ;;  %v974_v24 = vld [vmem:[#allocation2 + $0x1c98] sm:$0xff] }
 0x4f7   :  { %10996 = vmatprep.subr.bf16.mxu0 %v13029_v63  ;;  %11529 = vmatprep.subr.bf16.mxu1 %v13031_v33  ;;  %v978_v23 = vld [vmem:[#allocation2 + $0x1cb8] sm:$0xff]  ;;  %v13068_v63 = vcombine.low %v965_v29, %v969_v0  ;;  %v13070_v33 = vcombine.low %v966_v11, %v970_v12  ;;  %v1013_v29 = vld [vmem:[#allocation2 + $0x1dd0] sm:$0xff] }
 0x4f8   :  { %v13079_v32 = vcombine.high %v974_v24, %v978_v23  ;;  %v1017_v0 = vld [vmem:[#allocation2 + $0x1df0] sm:$0xff]  ;;  %v1014_v11 = vld [vmem:[#allocation2 + $0x1dd8] sm:$0xff] }
 0x4f9   :  { %v1018_v12 = vld [vmem:[#allocation2 + $0x1df8] sm:$0xff] }
 0x4fa   :  { %10997 = vmatpush1.bf16.msra.mxu0 %v13028_v9  ;;  %11530 = vmatpush1.bf16.msra.mxu1 %v13030_v38  ;;  %v982_v9 = vld [vmem:[#allocation2 + $0x1cd8] sm:$0xff] }
 0x4fb   :  { %10998 = vmatprep.subr.bf16.mxu0 %v13037_v49  ;;  %11531 = vmatprep.subr.bf16.mxu1 %v13039_v42  ;;  %v986_v38 = vld [vmem:[#allocation2 + $0x1cf8] sm:$0xff]  ;;  %v13076_v49 = vcombine.low %v973_v19, %v977_v1  ;;  %v13085_v42 = vcombine.high %v981_v41, %v985_v25  ;;  %v1021_v19 = vld [vmem:[#allocation2 + $0x1e10] sm:$0xff] }
 0x4fc   :  { %v13087_v39 = vcombine.high %v982_v9, %v986_v38  ;;  %v1025_v1 = vld [vmem:[#allocation2 + $0x1e30] sm:$0xff] }
 0x4fe   :  { %10999 = vmatpush1.bf16.msra.mxu0 %v13036_v45  ;;  %11532 = vmatpush1.bf16.msra.mxu1 %v13038_v58  ;;  %v994_v45 = vld [vmem:[#allocation2 + $0x1d38] sm:$0xff]  ;;  %v13084_v58 = vcombine.low %v981_v41, %v985_v25  ;;  %v1029_v41 = vld [vmem:[#allocation2 + $0x1e50] sm:$0xff] }
 0x4ff   :  { %11000 = vmatprep.subr.bf16.mxu0 %v13045_v18  ;;  %11533 = vmatprep.subr.bf16.mxu1 %v13047_v47  ;;  %v13086_v18 = vcombine.low %v982_v9, %v986_v38  ;;  %v13093_v47 = vcombine.high %v989_v35, %v993_v30  ;;  %v1033_v25 = vld [vmem:[#allocation2 + $0x1e70] sm:$0xff]  ;;  %v1030_v9 = vld [vmem:[#allocation2 + $0x1e58] sm:$0xff] }
 0x500   :  { %v1034_v38 = vld [vmem:[#allocation2 + $0x1e78] sm:$0xff] }
 0x502   :  { %11001 = vmatpush1.bf16.msra.mxu0 %v13044_v54  ;;  %11534 = vmatpush1.bf16.msra.mxu1 %v13046_v34  ;;  %v13092_v54 = vcombine.low %v989_v35, %v993_v30  ;;  %v13094_v34 = vcombine.low %v990_v36, %v994_v45  ;;  %v1037_v35 = vld [vmem:[#allocation2 + $0x1e90] sm:$0xff] }
 0x503   :  { %11002 = vmatprep.subr.bf16.mxu0 %v13053_v51  ;;  %11535 = vmatprep.subr.bf16.mxu1 %v13055_v48  ;;  %v13101_v51 = vcombine.high %v997_v50, %v1001_v27  ;;  %v13103_v48 = vcombine.high %v998_v52, %v1002_v22  ;;  %v1041_v30 = vld [vmem:[#allocation2 + $0x1eb0] sm:$0xff] }
 0x506   :  { %11003 = vmatpush1.bf16.msra.mxu0 %v13052_v8  ;;  %11536 = vmatpush1.bf16.msra.mxu1 %v13054_v62  ;;  %v13100_v8 = vcombine.low %v997_v50, %v1001_v27  ;;  %v13102_v62 = vcombine.low %v998_v52, %v1002_v22  ;;  %v1045_v50 = vld [vmem:[#allocation2 + $0x1ed0] sm:$0xff]  ;;  %v1046_v52 = vld [vmem:[#allocation2 + $0x1ed8] sm:$0xff] }
 0x507   :  { %11013 = vmatprep.subr.bf16.mxu0 %v13061_v3  ;;  %11546 = vmatprep.subr.bf16.mxu1 %v13063_v4  ;;  %v13109_v3 = vcombine.high %v1005_v55, %v1009_v60  ;;  %v13111_v4 = vcombine.high %v1006_v5, %v1010_v37  ;;  %v1049_v27 = vld [vmem:[#allocation2 + $0x1ef0] sm:$0xff]  ;;  %v1050_v22 = vld [vmem:[#allocation2 + $0x1ef8] sm:$0xff] }
 0x509   :  { %11005 = vmatmul.mubr.bf16.vlgmr.msra.gmra.mrb[4].mxu0 %v14218_v7  ;;  %11538 = vmatmul.mubr.bf16.vlgmr.msra.gmra.mrb[4].mxu1 %v14218_v7  ;;  %v13078_v7 = vcombine.low %v974_v24, %v978_v23  ;;  %v1022_v24 = vld [vmem:[#allocation2 + $0x1e18] sm:$0xff] }
 0x50a   :  { %11014 = vmatpush1.bf16.msra.mxu0 %v13060_v13  ;;  %11547 = vmatpush1.bf16.msra.mxu1 %v13062_v14  ;;  %v13108_v13 = vcombine.low %v1005_v55, %v1009_v60  ;;  %v13110_v14 = vcombine.low %v1006_v5, %v1010_v37  ;;  %v1026_v23 = vld [vmem:[#allocation2 + $0x1e38] sm:$0xff]  ;;  %v1053_v55 = vld [vmem:[#allocation2 + $0x1f10] sm:$0xff] }
 0x50b   :  { %11015 = vmatprep.subr.bf16.mxu0 %v13069_v21  ;;  %11548 = vmatprep.subr.bf16.mxu1 %v13071_v16  ;;  %v13117_v21 = vcombine.high %v1013_v29, %v1017_v0  ;;  %v13119_v16 = vcombine.high %v1014_v11, %v1018_v12  ;;  %v1057_v60 = vld [vmem:[#allocation2 + $0x1f30] sm:$0xff]  ;;  %v1054_v5 = vld [vmem:[#allocation2 + $0x1f18] sm:$0xff] }
 0x50c   :  { %11045 = vmatprep.mubr.bf16.mxu0 %v14222_v20  ;;  %11578 = vmatprep.mubr.bf16.mxu1 %v14222_v20  ;;  %v13095_v20 = vcombine.high %v990_v36, %v994_v45  ;;  %v1038_v36 = vld [vmem:[#allocation2 + $0x1e98] sm:$0xff] }
 0x50d   :  { %v1042_v45 = vld [vmem:[#allocation2 + $0x1eb8] sm:$0xff] }
 0x50e   :  { %11016 = vmatpush1.bf16.msra.mxu0 %v13068_v63  ;;  %11549 = vmatpush1.bf16.msra.mxu1 %v13070_v33  ;;  %v13116_v63 = vcombine.low %v1013_v29, %v1017_v0  ;;  %v13118_v33 = vcombine.low %v1014_v11, %v1018_v12  ;;  %v1058_v37 = vld [vmem:[#allocation2 + $0x1f38] sm:$0xff]  ;;  %v1061_v29 = vld [vmem:[#allocation2 + $0x1f50] sm:$0xff] }
 0x50f   :  { %11017 = vmatprep.subr.bf16.mxu0 %v13077_v43  ;;  %11550 = vmatprep.subr.bf16.mxu1 %v13079_v32  ;;  %v13125_v43 = vcombine.high %v1021_v19, %v1025_v1  ;;  %v13127_v32 = vcombine.high %v1022_v24, %v1026_v23  ;;  %v1065_v0 = vld [vmem:[#allocation2 + $0x1f70] sm:$0xff]  ;;  %v1062_v11 = vld [vmem:[#allocation2 + $0x1f58] sm:$0xff] }
 0x510   :  { %v1066_v12 = vld [vmem:[#allocation2 + $0x1f78] sm:$0xff] }
 0x512   :  { %11018 = vmatpush1.bf16.msra.mxu0 %v13076_v49  ;;  %11551 = vmatpush1.bf16.msra.mxu1 %v13078_v7  ;;  %v13124_v49 = vcombine.low %v1021_v19, %v1025_v1  ;;  %v13126_v7 = vcombine.low %v1022_v24, %v1026_v23  ;;  %v1069_v19 = vld [vmem:[#allocation2 + $0x1f90] sm:$0xff]  ;;  %v1070_v24 = vld [vmem:[#allocation2 + $0x1f98] sm:$0xff] }
 0x513   :  { %11019 = vmatprep.subr.bf16.mxu0 %v13085_v42  ;;  %11552 = vmatprep.subr.bf16.mxu1 %v13087_v39  ;;  %v13133_v42 = vcombine.high %v1029_v41, %v1033_v25  ;;  %v13135_v39 = vcombine.high %v1030_v9, %v1034_v38  ;;  %v1073_v1 = vld [vmem:[#allocation2 + $0x1fb0] sm:$0xff]  ;;  %v1074_v23 = vld [vmem:[#allocation2 + $0x1fb8] sm:$0xff] }
 0x516   :  { %11020 = vmatpush1.bf16.msra.mxu0 %v13084_v58  ;;  %11553 = vmatpush1.bf16.msra.mxu1 %v13086_v18  ;;  %v13132_v58 = vcombine.low %v1029_v41, %v1033_v25  ;;  %v13134_v18 = vcombine.low %v1030_v9, %v1034_v38  ;;  %v1077_v41 = vld [vmem:[#allocation2 + $0x1fd0] sm:$0xff]  ;;  %v1078_v9 = vld [vmem:[#allocation2 + $0x1fd8] sm:$0xff] }
 0x517   :  { %11021 = vmatprep.subr.bf16.mxu0 %v13093_v47  ;;  %11554 = vmatprep.subr.bf16.mxu1 %v13095_v20  ;;  %v13141_v47 = vcombine.high %v1037_v35, %v1041_v30  ;;  %v13143_v20 = vcombine.high %v1038_v36, %v1042_v45  ;;  %v1081_v25 = vld [vmem:[#allocation2 + $0x1ff0] sm:$0xff]  ;;  %v1082_v38 = vld [vmem:[#allocation2 + $0x1ff8] sm:$0xff] }
 0x51a   :  { %11022 = vmatpush1.bf16.msra.mxu0 %v13092_v54  ;;  %11555 = vmatpush1.bf16.msra.mxu1 %v13094_v34  ;;  %v13140_v54 = vcombine.low %v1037_v35, %v1041_v30  ;;  %v13142_v34 = vcombine.low %v1038_v36, %v1042_v45  ;;  %v1085_v35 = vld [vmem:[#allocation2 + $0x2010] sm:$0xff]  ;;  %v1086_v36 = vld [vmem:[#allocation2 + $0x2018] sm:$0xff] }
 0x51b   :  { %11023 = vmatprep.subr.bf16.mxu0 %v13101_v51  ;;  %11556 = vmatprep.subr.bf16.mxu1 %v13103_v48  ;;  %v13149_v51 = vcombine.high %v1045_v50, %v1049_v27  ;;  %v13151_v48 = vcombine.high %v1046_v52, %v1050_v22  ;;  %v1089_v30 = vld [vmem:[#allocation2 + $0x2030] sm:$0xff]  ;;  %v1090_v45 = vld [vmem:[#allocation2 + $0x2038] sm:$0xff] }
 0x51e   :  { %11024 = vmatpush1.bf16.msra.mxu0 %v13100_v8  ;;  %11557 = vmatpush1.bf16.msra.mxu1 %v13102_v62  ;;  %v13148_v8 = vcombine.low %v1045_v50, %v1049_v27  ;;  %v13150_v62 = vcombine.low %v1046_v52, %v1050_v22  ;;  %v1093_v50 = vld [vmem:[#allocation2 + $0x2050] sm:$0xff]  ;;  %v1094_v52 = vld [vmem:[#allocation2 + $0x2058] sm:$0xff] }
 0x51f   :  { %11025 = vmatprep.subr.bf16.mxu0 %v13109_v3  ;;  %11558 = vmatprep.subr.bf16.mxu1 %v13111_v4  ;;  %v13157_v3 = vcombine.high %v1053_v55, %v1057_v60  ;;  %v13159_v4 = vcombine.high %v1054_v5, %v1058_v37  ;;  %v1097_v27 = vld [vmem:[#allocation2 + $0x2070] sm:$0xff]  ;;  %v1098_v22 = vld [vmem:[#allocation2 + $0x2078] sm:$0xff] }
 0x522   :  { %11026 = vmatpush1.bf16.msra.mxu0 %v13108_v13  ;;  %11559 = vmatpush1.bf16.msra.mxu1 %v13110_v14  ;;  %v13156_v13 = vcombine.low %v1053_v55, %v1057_v60  ;;  %v13158_v14 = vcombine.low %v1054_v5, %v1058_v37  ;;  %v1101_v55 = vld [vmem:[#allocation2 + $0x2090] sm:$0xff]  ;;  %v1102_v5 = vld [vmem:[#allocation2 + $0x2098] sm:$0xff] }
 0x523   :  { %11027 = vmatprep.subr.bf16.mxu0 %v13117_v21  ;;  %11560 = vmatprep.subr.bf16.mxu1 %v13119_v16  ;;  %v13165_v21 = vcombine.high %v1061_v29, %v1065_v0  ;;  %v13167_v16 = vcombine.high %v1062_v11, %v1066_v12  ;;  %v1105_v60 = vld [vmem:[#allocation2 + $0x20b0] sm:$0xff]  ;;  %v1106_v37 = vld [vmem:[#allocation2 + $0x20b8] sm:$0xff] }
 0x526   :  { %11028 = vmatpush1.bf16.msra.mxu0 %v13116_v63  ;;  %11561 = vmatpush1.bf16.msra.mxu1 %v13118_v33  ;;  %v13164_v63 = vcombine.low %v1061_v29, %v1065_v0  ;;  %v13166_v33 = vcombine.low %v1062_v11, %v1066_v12  ;;  %v1109_v29 = vld [vmem:[#allocation2 + $0x20d0] sm:$0xff]  ;;  %v1110_v11 = vld [vmem:[#allocation2 + $0x20d8] sm:$0xff] }
 0x527   :  { %11029 = vmatprep.subr.bf16.mxu0 %v13125_v43  ;;  %11562 = vmatprep.subr.bf16.mxu1 %v13127_v32  ;;  %v13173_v43 = vcombine.high %v1069_v19, %v1073_v1  ;;  %v13175_v32 = vcombine.high %v1070_v24, %v1074_v23  ;;  %v1113_v0 = vld [vmem:[#allocation2 + $0x20f0] sm:$0xff]  ;;  %v1114_v12 = vld [vmem:[#allocation2 + $0x20f8] sm:$0xff] }
 0x52a   :  { %11030 = vmatpush1.bf16.msra.mxu0 %v13124_v49  ;;  %11563 = vmatpush1.bf16.msra.mxu1 %v13126_v7  ;;  %v13172_v49 = vcombine.low %v1069_v19, %v1073_v1  ;;  %v13174_v7 = vcombine.low %v1070_v24, %v1074_v23  ;;  %v1121_v19 = vld [vmem:[#allocation2 + $0x2130] sm:$0xff]  ;;  %v1118_v1 = vld [vmem:[#allocation2 + $0x2118] sm:$0xff]  ;;  %v13212_v23 = vcombine.low %v1109_v29, %v1113_v0 }
 0x52b   :  { %11031 = vmatprep.subr.bf16.mxu0 %v13133_v42  ;;  %11564 = vmatprep.subr.bf16.mxu1 %v13135_v39  ;;  %v13181_v42 = vcombine.high %v1077_v41, %v1081_v25  ;;  %v13183_v39 = vcombine.high %v1078_v9, %v1082_v38  ;;  %v1122_v24 = vld [vmem:[#allocation2 + $0x2138] sm:$0xff] }
 0x52e   :  { %11032 = vmatpush1.bf16.msra.mxu0 %v13132_v58  ;;  %11565 = vmatpush1.bf16.msra.mxu1 %v13134_v18  ;;  %v13180_v58 = vcombine.low %v1077_v41, %v1081_v25  ;;  %v13182_v18 = vcombine.low %v1078_v9, %v1082_v38  ;;  %v1126_v41 = vld [vmem:[#allocation2 + $0x2158] sm:$0xff]  ;;  %v13222_v38 = vcombine.low %v1118_v1, %v1122_v24 }
 0x52f   :  { %11033 = vmatprep.subr.bf16.mxu0 %v13141_v47  ;;  %11566 = vmatprep.subr.bf16.mxu1 %v13143_v20  ;;  %v13189_v47 = vcombine.high %v1085_v35, %v1089_v30  ;;  %v13191_v20 = vcombine.high %v1086_v36, %v1090_v45  ;;  %v1130_v25 = vld [vmem:[#allocation2 + $0x2178] sm:$0xff] }
 0x532   :  { %11034 = vmatpush1.bf16.msra.mxu0 %v13140_v54  ;;  %11567 = vmatpush1.bf16.msra.mxu1 %v13142_v34  ;;  %v13188_v54 = vcombine.low %v1085_v35, %v1089_v30  ;;  %v13190_v34 = vcombine.low %v1086_v36, %v1090_v45  ;;  %v1134_v35 = vld [vmem:[#allocation2 + $0x2198] sm:$0xff]  ;;  %v13230_v45 = vcombine.low %v1126_v41, %v1130_v25 }
 0x533   :  { %11035 = vmatprep.subr.bf16.mxu0 %v13149_v51  ;;  %11568 = vmatprep.subr.bf16.mxu1 %v13151_v48  ;;  %v13197_v51 = vcombine.high %v1093_v50, %v1097_v27  ;;  %v13199_v48 = vcombine.high %v1094_v52, %v1098_v22  ;;  %v1138_v30 = vld [vmem:[#allocation2 + $0x21b8] sm:$0xff] }
 0x536   :  { %11036 = vmatpush1.bf16.msra.mxu0 %v13148_v8  ;;  %11569 = vmatpush1.bf16.msra.mxu1 %v13150_v62  ;;  %v13196_v8 = vcombine.low %v1093_v50, %v1097_v27  ;;  %v13198_v62 = vcombine.low %v1094_v52, %v1098_v22  ;;  %v1142_v50 = vld [vmem:[#allocation2 + $0x21d8] sm:$0xff]  ;;  %v13238_v22 = vcombine.low %v1134_v35, %v1138_v30 }
 0x537   :  { %11037 = vmatprep.subr.bf16.mxu0 %v13157_v3  ;;  %11570 = vmatprep.subr.bf16.mxu1 %v13159_v4  ;;  %v13205_v3 = vcombine.high %v1101_v55, %v1105_v60  ;;  %v13207_v4 = vcombine.high %v1102_v5, %v1106_v37  ;;  %v1146_v27 = vld [vmem:[#allocation2 + $0x21f8] sm:$0xff] }
 0x53a   :  { %11038 = vmatpush1.bf16.msra.mxu0 %v13156_v13  ;;  %11571 = vmatpush1.bf16.msra.mxu1 %v13158_v14  ;;  %v13204_v13 = vcombine.low %v1101_v55, %v1105_v60  ;;  %v13213_v14 = vcombine.high %v1109_v29, %v1113_v0  ;;  %v1150_v55 = vld [vmem:[#allocation2 + $0x2218] sm:$0xff] }
 0x53b   :  { %11039 = vmatprep.subr.bf16.mxu0 %v13165_v21  ;;  %11572 = vmatprep.subr.bf16.mxu1 %v13167_v16  ;;  %v13215_v21 = vcombine.high %v1110_v11, %v1114_v12  ;;  %v1117_v16 = vld [vmem:[#allocation2 + $0x2110] sm:$0xff]  ;;  %v1154_v60 = vld [vmem:[#allocation2 + $0x2238] sm:$0xff] }
 0x53c   :  { %v13220_v9 = vcombine.low %v1117_v16, %v1121_v19  ;;  %v1158_v29 = vld [vmem:[#allocation2 + $0x2258] sm:$0xff] }
 0x53d   :  { %v1162_v0 = vld [vmem:[#allocation2 + $0x2278] sm:$0xff] }
 0x53e   :  { %11040 = vmatpush1.bf16.msra.mxu0 %v13164_v63  ;;  %11573 = vmatpush1.bf16.msra.mxu1 %v13166_v33  ;;  %v13214_v63 = vcombine.low %v1110_v11, %v1114_v12  ;;  %v13221_v33 = vcombine.high %v1117_v16, %v1121_v19  ;;  %v13254_v12 = vcombine.low %v1150_v55, %v1154_v60  ;;  %v1166_v16 = vld [vmem:[#allocation2 + $0x2298] sm:$0xff] }
 0x53f   :  { %11041 = vmatprep.subr.bf16.mxu0 %v13173_v43  ;;  %11574 = vmatprep.subr.bf16.mxu1 %v13175_v32  ;;  %v1125_v43 = vld [vmem:[#allocation2 + $0x2150] sm:$0xff]  ;;  %v1170_v19 = vld [vmem:[#allocation2 + $0x22b8] sm:$0xff] }
 0x540   :  { %v1129_v32 = vld [vmem:[#allocation2 + $0x2170] sm:$0xff] }
 0x541   :  { %v13228_v36 = vcombine.low %v1125_v43, %v1129_v32 }
 0x542   :  { %11042 = vmatpush1.bf16.msra.mxu0 %v13172_v49  ;;  %11575 = vmatpush1.bf16.msra.mxu1 %v13174_v7  ;;  %v13229_v49 = vcombine.high %v1125_v43, %v1129_v32  ;;  %v13231_v7 = vcombine.high %v1126_v41, %v1130_v25  ;;  %v1174_v43 = vld [vmem:[#allocation2 + $0x22d8] sm:$0xff]  ;;  %v13270_v25 = vcombine.low %v1166_v16, %v1170_v19 }
 0x543   :  { %11043 = vmatprep.subr.bf16.mxu0 %v13181_v42  ;;  %11576 = vmatprep.subr.bf16.mxu1 %v13183_v39  ;;  %v1133_v42 = vld [vmem:[#allocation2 + $0x2190] sm:$0xff]  ;;  %v1178_v32 = vld [vmem:[#allocation2 + $0x22f8] sm:$0xff] }
 0x544   :  { %v1137_v39 = vld [vmem:[#allocation2 + $0x21b0] sm:$0xff] }
 0x545   :  { %v13236_v52 = vcombine.low %v1133_v42, %v1137_v39 }
 0x546   :  { %11044 = vmatpush1.bf16.msra.mxu0 %v13180_v58  ;;  %11577 = vmatpush1.bf16.msra.mxu1 %v13182_v18  ;;  %v13237_v58 = vcombine.high %v1133_v42, %v1137_v39  ;;  %v13239_v18 = vcombine.high %v1134_v35, %v1138_v30  ;;  %v1182_v42 = vld [vmem:[#allocation2 + $0x2318] sm:$0xff]  ;;  %v13278_v30 = vcombine.low %v1174_v43, %v1178_v32 }
 0x547   :  { %11054 = vmatprep.subr.bf16.mxu0 %v13189_v47  ;;  %11587 = vmatprep.subr.bf16.mxu1 %v13191_v20  ;;  %v1141_v47 = vld [vmem:[#allocation2 + $0x21d0] sm:$0xff]  ;;  %v1186_v39 = vld [vmem:[#allocation2 + $0x2338] sm:$0xff] }
 0x548   :  { %v1145_v20 = vld [vmem:[#allocation2 + $0x21f0] sm:$0xff] }
 0x549   :  { %11046 = vmatmul.mubr.bf16.vlgmr.msra.gmra.mrb[4].mxu0 %v14241_v57  ;;  %11579 = vmatmul.mubr.bf16.vlgmr.msra.gmra.mrb[4].mxu1 %v14241_v57  ;;  %v13206_v57 = vcombine.low %v1102_v5, %v1106_v37  ;;  %v13244_v5 = vcombine.low %v1141_v47, %v1145_v20  ;;  %v13246_v37 = vcombine.low %v1142_v50, %v1146_v27 }
 0x54a   :  { %11055 = vmatpush1.bf16.msra.mxu0 %v13188_v54  ;;  %11588 = vmatpush1.bf16.msra.mxu1 %v13190_v34  ;;  %v13245_v54 = vcombine.high %v1141_v47, %v1145_v20  ;;  %v13247_v34 = vcombine.high %v1142_v50, %v1146_v27  ;;  %v1190_v47 = vld [vmem:[#allocation2 + $0x2358] sm:$0xff]  ;;  %v13286_v27 = vcombine.low %v1182_v42, %v1186_v39 }
 0x54b   :  { %11056 = vmatprep.subr.bf16.mxu0 %v13197_v51  ;;  %11589 = vmatprep.subr.bf16.mxu1 %v13199_v48  ;;  %v1149_v51 = vld [vmem:[#allocation2 + $0x2210] sm:$0xff]  ;;  %v1194_v20 = vld [vmem:[#allocation2 + $0x2378] sm:$0xff] }
 0x54c   :  { %11086 = vmatprep.mubr.bf16.mxu0 %v14244_v6  ;;  %11619 = vmatprep.mubr.bf16.mxu1 %v14244_v6  ;;  %v13223_v6 = vcombine.high %v1118_v1, %v1122_v24  ;;  %v1153_v48 = vld [vmem:[#allocation2 + $0x2230] sm:$0xff]  ;;  %v13262_v24 = vcombine.low %v1158_v29, %v1162_v0 }
 0x54d   :  { %v13252_v11 = vcombine.low %v1149_v51, %v1153_v48 }
 0x54e   :  { %11057 = vmatpush1.bf16.msra.mxu0 %v13196_v8  ;;  %11590 = vmatpush1.bf16.msra.mxu1 %v13198_v62  ;;  %v13253_v8 = vcombine.high %v1149_v51, %v1153_v48  ;;  %v13255_v62 = vcombine.high %v1150_v55, %v1154_v60  ;;  %v1198_v51 = vld [vmem:[#allocation2 + $0x2398] sm:$0xff]  ;;  %v13294_v60 = vcombine.low %v1190_v47, %v1194_v20 }
 0x54f   :  { %11058 = vmatprep.subr.bf16.mxu0 %v13205_v3  ;;  %11591 = vmatprep.subr.bf16.mxu1 %v13207_v4  ;;  %v1157_v3 = vld [vmem:[#allocation2 + $0x2250] sm:$0xff]  ;;  %v1202_v48 = vld [vmem:[#allocation2 + $0x23b8] sm:$0xff] }
 0x550   :  { %v1161_v4 = vld [vmem:[#allocation2 + $0x2270] sm:$0xff] }
 0x551   :  { %v13260_v1 = vcombine.low %v1157_v3, %v1161_v4 }
 0x552   :  { %11059 = vmatpush1.bf16.msra.mxu0 %v13204_v13  ;;  %11592 = vmatpush1.bf16.msra.mxu1 %v13206_v57  ;;  %v13261_v13 = vcombine.high %v1157_v3, %v1161_v4  ;;  %v13263_v57 = vcombine.high %v1158_v29, %v1162_v0  ;;  %v1206_v3 = vld [vmem:[#allocation2 + $0x23d8] sm:$0xff]  ;;  %v13302_v0 = vcombine.low %v1198_v51, %v1202_v48 }
 0x553   :  { %11060 = vmatprep.subr.bf16.mxu0 %v13213_v14  ;;  %11593 = vmatprep.subr.bf16.mxu1 %v13215_v21  ;;  %v1165_v14 = vld [vmem:[#allocation2 + $0x2290] sm:$0xff]  ;;  %v1210_v4 = vld [vmem:[#allocation2 + $0x23f8] sm:$0xff] }
 0x554   :  { %v1169_v21 = vld [vmem:[#allocation2 + $0x22b0] sm:$0xff] }
 0x555   :  { %v13268_v41 = vcombine.low %v1165_v14, %v1169_v21 }
 0x556   :  { %11061 = vmatpush1.bf16.msra.mxu0 %v13212_v23  ;;  %11594 = vmatpush1.bf16.msra.mxu1 %v13214_v63  ;;  %v13269_v23 = vcombine.high %v1165_v14, %v1169_v21  ;;  %v13271_v63 = vcombine.high %v1166_v16, %v1170_v19  ;;  %v1214_v14 = vld [vmem:[#allocation2 + $0x2418] sm:$0xff]  ;;  %v13310_v19 = vcombine.low %v1206_v3, %v1210_v4 }
 0x557   :  { %11062 = vmatprep.subr.bf16.mxu0 %v13221_v33  ;;  %11595 = vmatprep.subr.bf16.mxu1 %v13223_v6  ;;  %v1173_v33 = vld [vmem:[#allocation2 + $0x22d0] sm:$0xff]  ;;  %v1218_v21 = vld [vmem:[#allocation2 + $0x2438] sm:$0xff] }
 0x558   :  { %v1177_v6 = vld [vmem:[#allocation2 + $0x22f0] sm:$0xff] }
 0x559   :  { %v13276_v35 = vcombine.low %v1173_v33, %v1177_v6 }
 0x55a   :  { %11063 = vmatpush1.bf16.msra.mxu0 %v13220_v9  ;;  %11596 = vmatpush1.bf16.msra.mxu1 %v13222_v38  ;;  %v13277_v9 = vcombine.high %v1173_v33, %v1177_v6  ;;  %v13279_v38 = vcombine.high %v1174_v43, %v1178_v32  ;;  %v1222_v33 = vld [vmem:[#allocation2 + $0x2458] sm:$0xff]  ;;  %v13318_v32 = vcombine.low %v1214_v14, %v1218_v21 }
 0x55b   :  { %11064 = vmatprep.subr.bf16.mxu0 %v13229_v49  ;;  %11597 = vmatprep.subr.bf16.mxu1 %v13231_v7  ;;  %v1181_v49 = vld [vmem:[#allocation2 + $0x2310] sm:$0xff]  ;;  %v1226_v6 = vld [vmem:[#allocation2 + $0x2478] sm:$0xff] }
 0x55c   :  { %v1185_v7 = vld [vmem:[#allocation2 + $0x2330] sm:$0xff] }
 0x55d   :  { %v13284_v50 = vcombine.low %v1181_v49, %v1185_v7 }
 0x55e   :  { %11065 = vmatpush1.bf16.msra.mxu0 %v13228_v36  ;;  %11598 = vmatpush1.bf16.msra.mxu1 %v13230_v45  ;;  %v13285_v36 = vcombine.high %v1181_v49, %v1185_v7  ;;  %v13287_v45 = vcombine.high %v1182_v42, %v1186_v39  ;;  %v1230_v49 = vld [vmem:[#allocation2 + $0x2498] sm:$0xff]  ;;  %v13326_v39 = vcombine.low %v1222_v33, %v1226_v6 }
 0x55f   :  { %11066 = vmatprep.subr.bf16.mxu0 %v13237_v58  ;;  %11599 = vmatprep.subr.bf16.mxu1 %v13239_v18  ;;  %v1189_v58 = vld [vmem:[#allocation2 + $0x2350] sm:$0xff]  ;;  %v1234_v7 = vld [vmem:[#allocation2 + $0x24b8] sm:$0xff] }
 0x560   :  { %v1193_v18 = vld [vmem:[#allocation2 + $0x2370] sm:$0xff] }
 0x561   :  { %v13292_v55 = vcombine.low %v1189_v58, %v1193_v18 }
 0x562   :  { %11067 = vmatpush1.bf16.msra.mxu0 %v13236_v52  ;;  %11600 = vmatpush1.bf16.msra.mxu1 %v13238_v22  ;;  %v13293_v52 = vcombine.high %v1189_v58, %v1193_v18  ;;  %v13295_v22 = vcombine.high %v1190_v47, %v1194_v20  ;;  %v1238_v58 = vld [vmem:[#allocation2 + $0x24d8] sm:$0xff] }
 0x563   :  { %11068 = vmatprep.subr.bf16.mxu0 %v13245_v54  ;;  %11601 = vmatprep.subr.bf16.mxu1 %v13247_v34  ;;  %v1197_v54 = vld [vmem:[#allocation2 + $0x2390] sm:$0xff]  ;;  %v1242_v18 = vld [vmem:[#allocation2 + $0x24f8] sm:$0xff] }
 0x564   :  { %v1201_v34 = vld [vmem:[#allocation2 + $0x23b0] sm:$0xff] }
 0x565   :  { %v13300_v29 = vcombine.low %v1197_v54, %v1201_v34 }
 0x566   :  { %11069 = vmatpush1.bf16.msra.mxu0 %v13244_v5  ;;  %11602 = vmatpush1.bf16.msra.mxu1 %v13246_v37  ;;  %v13301_v5 = vcombine.high %v1197_v54, %v1201_v34  ;;  %v13303_v37 = vcombine.high %v1198_v51, %v1202_v48  ;;  %v1250_v54 = vld [vmem:[#allocation2 + $0x2538] sm:$0xff]  ;;  %v13342_v51 = vcombine.low %v1238_v58, %v1242_v18 }
 0x567   :  { %11070 = vmatprep.subr.bf16.mxu0 %v13253_v8  ;;  %11603 = vmatprep.subr.bf16.mxu1 %v13255_v62  ;;  %v1205_v8 = vld [vmem:[#allocation2 + $0x23d0] sm:$0xff] }
 0x568   :  { %v1209_v62 = vld [vmem:[#allocation2 + $0x23f0] sm:$0xff] }
 0x569   :  { %v13308_v16 = vcombine.low %v1205_v8, %v1209_v62 }
 0x56a   :  { %11071 = vmatpush1.bf16.msra.mxu0 %v13252_v11  ;;  %11604 = vmatpush1.bf16.msra.mxu1 %v13254_v12  ;;  %v13309_v11 = vcombine.high %v1205_v8, %v1209_v62  ;;  %v13311_v12 = vcombine.high %v1206_v3, %v1210_v4 }
 0x56b   :  { %11072 = vmatprep.subr.bf16.mxu0 %v13261_v13  ;;  %11605 = vmatprep.subr.bf16.mxu1 %v13263_v57  ;;  %v1213_v13 = vld [vmem:[#allocation2 + $0x2410] sm:$0xff] }
 0x56c   :  { %v1217_v57 = vld [vmem:[#allocation2 + $0x2430] sm:$0xff] }
 0x56d   :  { %v13316_v43 = vcombine.low %v1213_v13, %v1217_v57 }
 0x56e   :  { %11073 = vmatpush1.bf16.msra.mxu0 %v13260_v1  ;;  %11606 = vmatpush1.bf16.msra.mxu1 %v13262_v24  ;;  %v13317_v1 = vcombine.high %v1213_v13, %v1217_v57  ;;  %v13319_v24 = vcombine.high %v1214_v14, %v1218_v21 }
 0x56f   :  { %11074 = vmatprep.subr.bf16.mxu0 %v13269_v23  ;;  %11607 = vmatprep.subr.bf16.mxu1 %v13271_v63  ;;  %v1221_v23 = vld [vmem:[#allocation2 + $0x2450] sm:$0xff] }
 0x570   :  { %v1225_v63 = vld [vmem:[#allocation2 + $0x2470] sm:$0xff] }
 0x571   :  { %v13324_v42 = vcombine.low %v1221_v23, %v1225_v63 }
 0x572   :  { %11075 = vmatpush1.bf16.msra.mxu0 %v13268_v41  ;;  %11608 = vmatpush1.bf16.msra.mxu1 %v13270_v25  ;;  %v13325_v41 = vcombine.high %v1221_v23, %v1225_v63  ;;  %v13327_v25 = vcombine.high %v1222_v33, %v1226_v6 }
 0x573   :  { %11076 = vmatprep.subr.bf16.mxu0 %v13277_v9  ;;  %11609 = vmatprep.subr.bf16.mxu1 %v13279_v38  ;;  %v1229_v9 = vld [vmem:[#allocation2 + $0x2490] sm:$0xff] }
 0x574   :  { %v1233_v38 = vld [vmem:[#allocation2 + $0x24b0] sm:$0xff] }
 0x575   :  { %v13332_v47 = vcombine.low %v1229_v9, %v1233_v38 }
 0x576   :  { %11077 = vmatpush1.bf16.msra.mxu0 %v13276_v35  ;;  %11610 = vmatpush1.bf16.msra.mxu1 %v13278_v30  ;;  %v13333_v35 = vcombine.high %v1229_v9, %v1233_v38  ;;  %v13335_v30 = vcombine.high %v1230_v49, %v1234_v7 }
 0x577   :  { %11078 = vmatprep.subr.bf16.mxu0 %v13285_v36  ;;  %11611 = vmatprep.subr.bf16.mxu1 %v13287_v45  ;;  %v1237_v36 = vld [vmem:[#allocation2 + $0x24d0] sm:$0xff] }
 0x578   :  { %v1241_v45 = vld [vmem:[#allocation2 + $0x24f0] sm:$0xff] }
 0x579   :  { %v13341_v20 = vcombine.high %v1237_v36, %v1241_v45  ;;  %v13340_v34 = vcombine.low %v1237_v36, %v1241_v45 }
 0x57a   :  { %11079 = vmatpush1.bf16.msra.mxu0 %v13284_v50  ;;  %11612 = vmatpush1.bf16.msra.mxu1 %v13286_v27  ;;  %v13343_v50 = vcombine.high %v1238_v58, %v1242_v18  ;;  %v1245_v27 = vld [vmem:[#allocation2 + $0x2510] sm:$0xff] }
 0x57b   :  { %11080 = vmatprep.subr.bf16.mxu0 %v13293_v52  ;;  %11613 = vmatprep.subr.bf16.mxu1 %v13295_v22  ;;  %v1249_v52 = vld [vmem:[#allocation2 + $0x2530] sm:$0xff]  ;;  %v1246_v22 = vld [vmem:[#allocation2 + $0x2518] sm:$0xff] }
 0x57c   :  { %v13349_v48 = vcombine.high %v1245_v27, %v1249_v52  ;;  %v13348_v8 = vcombine.low %v1245_v27, %v1249_v52  ;;  %v13350_v62 = vcombine.low %v1246_v22, %v1250_v54 }
 0x57e   :  { %11081 = vmatpush1.bf16.msra.mxu0 %v13292_v55  ;;  %11614 = vmatpush1.bf16.msra.mxu1 %v13294_v60  ;;  %v1253_v55 = vld [vmem:[#allocation2 + $0x2550] sm:$0xff] }
 0x57f   :  { %11082 = vmatprep.subr.bf16.mxu0 %v13301_v5  ;;  %11615 = vmatprep.subr.bf16.mxu1 %v13303_v37  ;;  %v1257_v60 = vld [vmem:[#allocation2 + $0x2570] sm:$0xff]  ;;  %v1254_v5 = vld [vmem:[#allocation2 + $0x2558] sm:$0xff] }
 0x580   :  { %v1258_v37 = vld [vmem:[#allocation2 + $0x2578] sm:$0xff]  ;;  %v13357_v3 = vcombine.high %v1253_v55, %v1257_v60  ;;  %v13356_v13 = vcombine.low %v1253_v55, %v1257_v60 }
 0x581   :  { %v13359_v4 = vcombine.high %v1254_v5, %v1258_v37  ;;  %v13358_v57 = vcombine.low %v1254_v5, %v1258_v37 }
 0x582   :  { %11083 = vmatpush1.bf16.msra.mxu0 %v13300_v29  ;;  %11616 = vmatpush1.bf16.msra.mxu1 %v13302_v0  ;;  %v1261_v29 = vld [vmem:[#allocation2 + $0x2590] sm:$0xff] }
 0x583   :  { %11084 = vmatprep.subr.bf16.mxu0 %v13309_v11  ;;  %11617 = vmatprep.subr.bf16.mxu1 %v13311_v12  ;;  %v1265_v0 = vld [vmem:[#allocation2 + $0x25b0] sm:$0xff]  ;;  %v1262_v11 = vld [vmem:[#allocation2 + $0x2598] sm:$0xff] }
 0x584   :  { %v1266_v12 = vld [vmem:[#allocation2 + $0x25b8] sm:$0xff]  ;;  %v13365_v14 = vcombine.high %v1261_v29, %v1265_v0  ;;  %v13364_v23 = vcombine.low %v1261_v29, %v1265_v0 }
 0x585   :  { %v13367_v21 = vcombine.high %v1262_v11, %v1266_v12  ;;  %v13366_v63 = vcombine.low %v1262_v11, %v1266_v12 }
 0x586   :  { %11085 = vmatpush1.bf16.msra.mxu0 %v13308_v16  ;;  %11618 = vmatpush1.bf16.msra.mxu1 %v13310_v19  ;;  %v1269_v16 = vld [vmem:[#allocation2 + $0x25d0] sm:$0xff] }
 0x587   :  { %11095 = vmatprep.subr.bf16.mxu0 %v13317_v1  ;;  %11628 = vmatprep.subr.bf16.mxu1 %v13319_v24  ;;  %v1273_v19 = vld [vmem:[#allocation2 + $0x25f0] sm:$0xff]  ;;  %v1270_v1 = vld [vmem:[#allocation2 + $0x25d8] sm:$0xff] }
 0x588   :  { %v1274_v24 = vld [vmem:[#allocation2 + $0x25f8] sm:$0xff]  ;;  %v13373_v33 = vcombine.high %v1269_v16, %v1273_v19  ;;  %v13372_v9 = vcombine.low %v1269_v16, %v1273_v19 }
 0x589   :  { %11087 = vmatmul.mubr.bf16.vlgmr.msra.gmra.mrb[4].mxu0 %v14252_v56  ;;  %11620 = vmatmul.mubr.bf16.vlgmr.msra.gmra.mrb[4].mxu1 %v14252_v56  ;;  %v13334_v56 = vcombine.low %v1230_v49, %v1234_v7  ;;  %v13375_v6 = vcombine.high %v1270_v1, %v1274_v24  ;;  %v13374_v38 = vcombine.low %v1270_v1, %v1274_v24 }
 0x58a   :  { %11096 = vmatpush1.bf16.msra.mxu0 %v13316_v43  ;;  %11629 = vmatpush1.bf16.msra.mxu1 %v13318_v32  ;;  %v1277_v43 = vld [vmem:[#allocation2 + $0x2610] sm:$0xff] }
 0x58b   :  { %11097 = vmatprep.subr.bf16.mxu0 %v13325_v41  ;;  %11630 = vmatprep.subr.bf16.mxu1 %v13327_v25  ;;  %v1281_v32 = vld [vmem:[#allocation2 + $0x2630] sm:$0xff]  ;;  %v1278_v41 = vld [vmem:[#allocation2 + $0x2618] sm:$0xff] }
 0x58c   :  { %11127 = vmatprep.mubr.bf16.mxu0 %v14256_v10  ;;  %11660 = vmatprep.mubr.bf16.mxu1 %v14256_v10  ;;  %v13351_v10 = vcombine.high %v1246_v22, %v1250_v54  ;;  %v1282_v25 = vld [vmem:[#allocation2 + $0x2638] sm:$0xff]  ;;  %v13381_v49 = vcombine.high %v1277_v43, %v1281_v32  ;;  %v13380_v36 = vcombine.low %v1277_v43, %v1281_v32 }
 0x58d   :  { %v13383_v7 = vcombine.high %v1278_v41, %v1282_v25  ;;  %v13382_v45 = vcombine.low %v1278_v41, %v1282_v25 }
 0x58e   :  { %11098 = vmatpush1.bf16.msra.mxu0 %v13324_v42  ;;  %11631 = vmatpush1.bf16.msra.mxu1 %v13326_v39  ;;  %v1285_v42 = vld [vmem:[#allocation2 + $0x2650] sm:$0xff] }
 0x58f   :  { %11099 = vmatprep.subr.bf16.mxu0 %v13333_v35  ;;  %11632 = vmatprep.subr.bf16.mxu1 %v13335_v30  ;;  %v1289_v39 = vld [vmem:[#allocation2 + $0x2670] sm:$0xff]  ;;  %v1286_v35 = vld [vmem:[#allocation2 + $0x2658] sm:$0xff] }
 0x590   :  { %v1290_v30 = vld [vmem:[#allocation2 + $0x2678] sm:$0xff]  ;;  %v13389_v58 = vcombine.high %v1285_v42, %v1289_v39  ;;  %v13388_v27 = vcombine.low %v1285_v42, %v1289_v39 }
 0x591   :  { %v13391_v18 = vcombine.high %v1286_v35, %v1290_v30  ;;  %v13390_v52 = vcombine.low %v1286_v35, %v1290_v30 }
 0x592   :  { %11100 = vmatpush1.bf16.msra.mxu0 %v13332_v47  ;;  %11633 = vmatpush1.bf16.msra.mxu1 %v13334_v56  ;;  %v1293_v47 = vld [vmem:[#allocation2 + $0x2690] sm:$0xff] }
 0x593   :  { %11101 = vmatprep.subr.bf16.mxu0 %v13341_v20  ;;  %11634 = vmatprep.subr.bf16.mxu1 %v13343_v50  ;;  %v1297_v56 = vld [vmem:[#allocation2 + $0x26b0] sm:$0xff]  ;;  %v1294_v20 = vld [vmem:[#allocation2 + $0x2698] sm:$0xff] }
 0x594   :  { %v1298_v50 = vld [vmem:[#allocation2 + $0x26b8] sm:$0xff]  ;;  %v13397_v22 = vcombine.high %v1293_v47, %v1297_v56  ;;  %v13396_v55 = vcombine.low %v1293_v47, %v1297_v56 }
 0x595   :  { %v13399_v54 = vcombine.high %v1294_v20, %v1298_v50  ;;  %v13398_v60 = vcombine.low %v1294_v20, %v1298_v50 }
 0x596   :  { %11102 = vmatpush1.bf16.msra.mxu0 %v13340_v34  ;;  %11635 = vmatpush1.bf16.msra.mxu1 %v13342_v51  ;;  %v1301_v34 = vld [vmem:[#allocation2 + $0x26d0] sm:$0xff] }
 0x597   :  { %11103 = vmatprep.subr.bf16.mxu0 %v13349_v48  ;;  %11636 = vmatprep.subr.bf16.mxu1 %v13351_v10  ;;  %v1305_v51 = vld [vmem:[#allocation2 + $0x26f0] sm:$0xff]  ;;  %v1302_v48 = vld [vmem:[#allocation2 + $0x26d8] sm:$0xff] }
 0x598   :  { %v1306_v10 = vld [vmem:[#allocation2 + $0x26f8] sm:$0xff]  ;;  %v13405_v5 = vcombine.high %v1301_v34, %v1305_v51  ;;  %v13404_v29 = vcombine.low %v1301_v34, %v1305_v51 }
 0x599   :  { %v13407_v37 = vcombine.high %v1302_v48, %v1306_v10  ;;  %v13406_v0 = vcombine.low %v1302_v48, %v1306_v10 }
 0x59a   :  { %11104 = vmatpush1.bf16.msra.mxu0 %v13348_v8  ;;  %11637 = vmatpush1.bf16.msra.mxu1 %v13350_v62  ;;  %v1309_v8 = vld [vmem:[#allocation2 + $0x2710] sm:$0xff] }
 0x59b   :  { %11105 = vmatprep.subr.bf16.mxu0 %v13357_v3  ;;  %11638 = vmatprep.subr.bf16.mxu1 %v13359_v4  ;;  %v1313_v62 = vld [vmem:[#allocation2 + $0x2730] sm:$0xff]  ;;  %v1310_v3 = vld [vmem:[#allocation2 + $0x2718] sm:$0xff] }
 0x59c   :  { %v1314_v4 = vld [vmem:[#allocation2 + $0x2738] sm:$0xff]  ;;  %v13413_v11 = vcombine.high %v1309_v8, %v1313_v62  ;;  %v13412_v16 = vcombine.low %v1309_v8, %v1313_v62 }
 0x59d   :  { %v13415_v12 = vcombine.high %v1310_v3, %v1314_v4  ;;  %v13414_v19 = vcombine.low %v1310_v3, %v1314_v4 }
 0x59e   :  { %11106 = vmatpush1.bf16.msra.mxu0 %v13356_v13  ;;  %11639 = vmatpush1.bf16.msra.mxu1 %v13358_v57  ;;  %v1317_v13 = vld [vmem:[#allocation2 + $0x2750] sm:$0xff] }
 0x59f   :  { %11107 = vmatprep.subr.bf16.mxu0 %v13365_v14  ;;  %11640 = vmatprep.subr.bf16.mxu1 %v13367_v21  ;;  %v1321_v57 = vld [vmem:[#allocation2 + $0x2770] sm:$0xff]  ;;  %v1318_v14 = vld [vmem:[#allocation2 + $0x2758] sm:$0xff] }
 0x5a0   :  { %v1322_v21 = vld [vmem:[#allocation2 + $0x2778] sm:$0xff]  ;;  %v13421_v1 = vcombine.high %v1317_v13, %v1321_v57  ;;  %v13420_v43 = vcombine.low %v1317_v13, %v1321_v57 }
 0x5a1   :  { %v13423_v24 = vcombine.high %v1318_v14, %v1322_v21  ;;  %v13422_v32 = vcombine.low %v1318_v14, %v1322_v21  ;;  %v1373_v21 = vld [vmem:[#allocation2 + $0x2910] sm:$0xff] }
 0x5a2   :  { %11108 = vmatpush1.bf16.msra.mxu0 %v13364_v23  ;;  %11641 = vmatpush1.bf16.msra.mxu1 %v13366_v63  ;;  %v1325_v23 = vld [vmem:[#allocation2 + $0x2790] sm:$0xff] }
 0x5a3   :  { %11109 = vmatprep.subr.bf16.mxu0 %v13373_v33  ;;  %11642 = vmatprep.subr.bf16.mxu1 %v13375_v6  ;;  %v1329_v63 = vld [vmem:[#allocation2 + $0x27b0] sm:$0xff]  ;;  %v1326_v33 = vld [vmem:[#allocation2 + $0x2798] sm:$0xff] }
 0x5a4   :  { %v1330_v6 = vld [vmem:[#allocation2 + $0x27b8] sm:$0xff]  ;;  %v13429_v41 = vcombine.high %v1325_v23, %v1329_v63  ;;  %v13428_v42 = vcombine.low %v1325_v23, %v1329_v63 }
 0x5a5   :  { %v13431_v25 = vcombine.high %v1326_v33, %v1330_v6  ;;  %v13430_v39 = vcombine.low %v1326_v33, %v1330_v6  ;;  %v1381_v33 = vld [vmem:[#allocation2 + $0x2950] sm:$0xff] }
 0x5a6   :  { %11110 = vmatpush1.bf16.msra.mxu0 %v13372_v9  ;;  %11643 = vmatpush1.bf16.msra.mxu1 %v13374_v38  ;;  %v1333_v9 = vld [vmem:[#allocation2 + $0x27d0] sm:$0xff] }
 0x5a7   :  { %11111 = vmatprep.subr.bf16.mxu0 %v13381_v49  ;;  %11644 = vmatprep.subr.bf16.mxu1 %v13383_v7  ;;  %v1337_v38 = vld [vmem:[#allocation2 + $0x27f0] sm:$0xff]  ;;  %v1334_v49 = vld [vmem:[#allocation2 + $0x27d8] sm:$0xff] }
 0x5a8   :  { %v1338_v7 = vld [vmem:[#allocation2 + $0x27f8] sm:$0xff]  ;;  %v13437_v35 = vcombine.high %v1333_v9, %v1337_v38  ;;  %v13436_v47 = vcombine.low %v1333_v9, %v1337_v38  ;;  %v1385_v6 = vld [vmem:[#allocation2 + $0x2970] sm:$0xff] }
 0x5a9   :  { %v13439_v30 = vcombine.high %v1334_v49, %v1338_v7  ;;  %v13438_v56 = vcombine.low %v1334_v49, %v1338_v7  ;;  %v13485_v9 = vcombine.high %v1381_v33, %v1385_v6  ;;  %v1389_v49 = vld [vmem:[#allocation2 + $0x2990] sm:$0xff] }
 0x5aa   :  { %11112 = vmatpush1.bf16.msra.mxu0 %v13380_v36  ;;  %11645 = vmatpush1.bf16.msra.mxu1 %v13382_v45  ;;  %v1341_v36 = vld [vmem:[#allocation2 + $0x2810] sm:$0xff] }
 0x5ab   :  { %11113 = vmatprep.subr.bf16.mxu0 %v13389_v58  ;;  %11646 = vmatprep.subr.bf16.mxu1 %v13391_v18  ;;  %v1345_v45 = vld [vmem:[#allocation2 + $0x2830] sm:$0xff]  ;;  %v1342_v58 = vld [vmem:[#allocation2 + $0x2818] sm:$0xff] }
 0x5ac   :  { %v1346_v18 = vld [vmem:[#allocation2 + $0x2838] sm:$0xff]  ;;  %v13445_v20 = vcombine.high %v1341_v36, %v1345_v45  ;;  %v13444_v34 = vcombine.low %v1341_v36, %v1345_v45  ;;  %v1393_v7 = vld [vmem:[#allocation2 + $0x29b0] sm:$0xff] }
 0x5ad   :  { %v13447_v50 = vcombine.high %v1342_v58, %v1346_v18  ;;  %v13446_v51 = vcombine.low %v1342_v58, %v1346_v18  ;;  %v13493_v36 = vcombine.high %v1389_v49, %v1393_v7  ;;  %v1397_v58 = vld [vmem:[#allocation2 + $0x29d0] sm:$0xff] }
 0x5ae   :  { %11114 = vmatpush1.bf16.msra.mxu0 %v13388_v27  ;;  %11647 = vmatpush1.bf16.msra.mxu1 %v13390_v52  ;;  %v1349_v27 = vld [vmem:[#allocation2 + $0x2850] sm:$0xff] }
 0x5af   :  { %11115 = vmatprep.subr.bf16.mxu0 %v13397_v22  ;;  %11648 = vmatprep.subr.bf16.mxu1 %v13399_v54  ;;  %v1353_v52 = vld [vmem:[#allocation2 + $0x2870] sm:$0xff]  ;;  %v1350_v22 = vld [vmem:[#allocation2 + $0x2858] sm:$0xff] }
 0x5b0   :  { %v1354_v54 = vld [vmem:[#allocation2 + $0x2878] sm:$0xff]  ;;  %v13453_v48 = vcombine.high %v1349_v27, %v1353_v52  ;;  %v13452_v8 = vcombine.low %v1349_v27, %v1353_v52  ;;  %v1401_v18 = vld [vmem:[#allocation2 + $0x29f0] sm:$0xff] }
 0x5b1   :  { %v13455_v10 = vcombine.high %v1350_v22, %v1354_v54  ;;  %v13454_v62 = vcombine.low %v1350_v22, %v1354_v54  ;;  %v13501_v27 = vcombine.high %v1397_v58, %v1401_v18  ;;  %v1405_v22 = vld [vmem:[#allocation2 + $0x2a10] sm:$0xff] }
 0x5b2   :  { %11116 = vmatpush1.bf16.msra.mxu0 %v13396_v55  ;;  %11649 = vmatpush1.bf16.msra.mxu1 %v13398_v60  ;;  %v1357_v55 = vld [vmem:[#allocation2 + $0x2890] sm:$0xff] }
 0x5b3   :  { %11117 = vmatprep.subr.bf16.mxu0 %v13405_v5  ;;  %11650 = vmatprep.subr.bf16.mxu1 %v13407_v37  ;;  %v1361_v60 = vld [vmem:[#allocation2 + $0x28b0] sm:$0xff]  ;;  %v1358_v5 = vld [vmem:[#allocation2 + $0x2898] sm:$0xff] }
 0x5b4   :  { %v1362_v37 = vld [vmem:[#allocation2 + $0x28b8] sm:$0xff]  ;;  %v13461_v3 = vcombine.high %v1357_v55, %v1361_v60  ;;  %v13460_v13 = vcombine.low %v1357_v55, %v1361_v60  ;;  %v1409_v54 = vld [vmem:[#allocation2 + $0x2a30] sm:$0xff] }
 0x5b5   :  { %v13463_v4 = vcombine.high %v1358_v5, %v1362_v37  ;;  %v13509_v55 = vcombine.high %v1405_v22, %v1409_v54 }
 0x5b6   :  { %11118 = vmatpush1.bf16.msra.mxu0 %v13404_v29  ;;  %11651 = vmatpush1.bf16.msra.mxu1 %v13406_v0  ;;  %v1365_v29 = vld [vmem:[#allocation2 + $0x28d0] sm:$0xff] }
 0x5b7   :  { %11119 = vmatprep.subr.bf16.mxu0 %v13413_v11  ;;  %11652 = vmatprep.subr.bf16.mxu1 %v13415_v12  ;;  %v1369_v0 = vld [vmem:[#allocation2 + $0x28f0] sm:$0xff]  ;;  %v1366_v11 = vld [vmem:[#allocation2 + $0x28d8] sm:$0xff] }
 0x5b8   :  { %v1370_v12 = vld [vmem:[#allocation2 + $0x28f8] sm:$0xff]  ;;  %v13469_v57 = vcombine.high %v1365_v29, %v1369_v0 }
 0x5b9   :  { %v13471_v14 = vcombine.high %v1366_v11, %v1370_v12  ;;  %v13470_v23 = vcombine.low %v1366_v11, %v1370_v12  ;;  %v1421_v11 = vld [vmem:[#allocation2 + $0x2a90] sm:$0xff] }
 0x5ba   :  { %11120 = vmatpush1.bf16.msra.mxu0 %v13412_v16  ;;  %11653 = vmatpush1.bf16.msra.mxu1 %v13414_v19  ;;  %v1377_v16 = vld [vmem:[#allocation2 + $0x2930] sm:$0xff]  ;;  %v1374_v19 = vld [vmem:[#allocation2 + $0x2918] sm:$0xff] }
 0x5bb   :  { %11121 = vmatprep.subr.bf16.mxu0 %v13421_v1  ;;  %11654 = vmatprep.subr.bf16.mxu1 %v13423_v24  ;;  %v1378_v1 = vld [vmem:[#allocation2 + $0x2938] sm:$0xff]  ;;  %v13468_v24 = vcombine.low %v1365_v29, %v1369_v0  ;;  %v13477_v63 = vcombine.high %v1373_v21, %v1377_v16  ;;  %v1425_v12 = vld [vmem:[#allocation2 + $0x2ab0] sm:$0xff] }
 0x5be   :  { %11122 = vmatpush1.bf16.msra.mxu0 %v13420_v43  ;;  %11655 = vmatpush1.bf16.msra.mxu1 %v13422_v32  ;;  %v1382_v43 = vld [vmem:[#allocation2 + $0x2958] sm:$0xff] }
 0x5bf   :  { %11123 = vmatprep.subr.bf16.mxu0 %v13429_v41  ;;  %11656 = vmatprep.subr.bf16.mxu1 %v13431_v25  ;;  %v1386_v32 = vld [vmem:[#allocation2 + $0x2978] sm:$0xff]  ;;  %v13476_v41 = vcombine.low %v1373_v21, %v1377_v16  ;;  %v13478_v25 = vcombine.low %v1374_v19, %v1378_v1  ;;  %v13525_v21 = vcombine.high %v1421_v11, %v1425_v12 }
 0x5c0   :  { %v13487_v38 = vcombine.high %v1382_v43, %v1386_v32 }
 0x5c2   :  { %11124 = vmatpush1.bf16.msra.mxu0 %v13428_v42  ;;  %11657 = vmatpush1.bf16.msra.mxu1 %v13430_v39  ;;  %v1390_v42 = vld [vmem:[#allocation2 + $0x2998] sm:$0xff] }
 0x5c3   :  { %11125 = vmatprep.subr.bf16.mxu0 %v13437_v35  ;;  %11658 = vmatprep.subr.bf16.mxu1 %v13439_v30  ;;  %v1394_v39 = vld [vmem:[#allocation2 + $0x29b8] sm:$0xff]  ;;  %v13484_v35 = vcombine.low %v1381_v33, %v1385_v6  ;;  %v13486_v30 = vcombine.low %v1382_v43, %v1386_v32  ;;  %v1437_v43 = vld [vmem:[#allocation2 + $0x2b10] sm:$0xff] }
 0x5c4   :  { %v13495_v45 = vcombine.high %v1390_v42, %v1394_v39  ;;  %v1441_v32 = vld [vmem:[#allocation2 + $0x2b30] sm:$0xff] }
 0x5c6   :  { %11126 = vmatpush1.bf16.msra.mxu0 %v13436_v47  ;;  %11659 = vmatpush1.bf16.msra.mxu1 %v13438_v56  ;;  %v1398_v47 = vld [vmem:[#allocation2 + $0x29d8] sm:$0xff] }
 0x5c7   :  { %11136 = vmatprep.subr.bf16.mxu0 %v13445_v20  ;;  %11669 = vmatprep.subr.bf16.mxu1 %v13447_v50  ;;  %v1402_v56 = vld [vmem:[#allocation2 + $0x29f8] sm:$0xff]  ;;  %v13492_v20 = vcombine.low %v1389_v49, %v1393_v7  ;;  %v13494_v50 = vcombine.low %v1390_v42, %v1394_v39  ;;  %v13541_v49 = vcombine.high %v1437_v43, %v1441_v32  ;;  %v1445_v42 = vld [vmem:[#allocation2 + $0x2b50] sm:$0xff] }
 0x5c8   :  { %v13503_v52 = vcombine.high %v1398_v47, %v1402_v56  ;;  %v1449_v39 = vld [vmem:[#allocation2 + $0x2b70] sm:$0xff] }
 0x5c9   :  { %11128 = vmatmul.mubr.bf16.vlgmr.msra.gmra.mrb[4].mxu0 %v14271_v2  ;;  %11661 = vmatmul.mubr.bf16.vlgmr.msra.gmra.mrb[4].mxu1 %v14271_v2  ;;  %v13462_v2 = vcombine.low %v1358_v5, %v1362_v37  ;;  %v1413_v5 = vld [vmem:[#allocation2 + $0x2a50] sm:$0xff] }
 0x5ca   :  { %11137 = vmatpush1.bf16.msra.mxu0 %v13444_v34  ;;  %11670 = vmatpush1.bf16.msra.mxu1 %v13446_v51  ;;  %v1406_v34 = vld [vmem:[#allocation2 + $0x2a18] sm:$0xff]  ;;  %v1417_v37 = vld [vmem:[#allocation2 + $0x2a70] sm:$0xff] }
 0x5cb   :  { %11138 = vmatprep.subr.bf16.mxu0 %v13453_v48  ;;  %11671 = vmatprep.subr.bf16.mxu1 %v13455_v10  ;;  %v1410_v51 = vld [vmem:[#allocation2 + $0x2a38] sm:$0xff]  ;;  %v13500_v48 = vcombine.low %v1397_v58, %v1401_v18  ;;  %v13502_v10 = vcombine.low %v1398_v47, %v1402_v56  ;;  %v13517_v29 = vcombine.high %v1413_v5, %v1417_v37  ;;  %v1453_v47 = vld [vmem:[#allocation2 + $0x2b90] sm:$0xff] }
 0x5cc   :  { %11168 = vmatprep.mubr.bf16.mxu0 %v14274_v15  ;;  %11701 = vmatprep.mubr.bf16.mxu1 %v14274_v15  ;;  %v13479_v15 = vcombine.high %v1374_v19, %v1378_v1  ;;  %v13511_v60 = vcombine.high %v1406_v34, %v1410_v51  ;;  %v1429_v19 = vld [vmem:[#allocation2 + $0x2ad0] sm:$0xff]  ;;  %v13549_v58 = vcombine.high %v1445_v42, %v1449_v39 }
 0x5cd   :  { %v1433_v1 = vld [vmem:[#allocation2 + $0x2af0] sm:$0xff] }
 0x5ce   :  { %11139 = vmatpush1.bf16.msra.mxu0 %v13452_v8  ;;  %11672 = vmatpush1.bf16.msra.mxu1 %v13454_v62  ;;  %v1414_v8 = vld [vmem:[#allocation2 + $0x2a58] sm:$0xff]  ;;  %v13533_v33 = vcombine.high %v1429_v19, %v1433_v1  ;;  %v1457_v56 = vld [vmem:[#allocation2 + $0x2bb0] sm:$0xff] }
 0x5cf   :  { %11140 = vmatprep.subr.bf16.mxu0 %v13461_v3  ;;  %11673 = vmatprep.subr.bf16.mxu1 %v13463_v4  ;;  %v1418_v62 = vld [vmem:[#allocation2 + $0x2a78] sm:$0xff]  ;;  %v13508_v3 = vcombine.low %v1405_v22, %v1409_v54  ;;  %v13510_v4 = vcombine.low %v1406_v34, %v1410_v51  ;;  %v13557_v22 = vcombine.high %v1453_v47, %v1457_v56  ;;  %v1461_v34 = vld [vmem:[#allocation2 + $0x2bd0] sm:$0xff] }
 0x5d0   :  { %v13519_v0 = vcombine.high %v1414_v8, %v1418_v62  ;;  %v1465_v51 = vld [vmem:[#allocation2 + $0x2bf0] sm:$0xff] }
 0x5d2   :  { %11141 = vmatpush1.bf16.msra.mxu0 %v13460_v13  ;;  %11674 = vmatpush1.bf16.msra.mxu1 %v13462_v2  ;;  %v1422_v13 = vld [vmem:[#allocation2 + $0x2a98] sm:$0xff] }
 0x5d3   :  { %11142 = vmatprep.subr.bf16.mxu0 %v13469_v57  ;;  %11675 = vmatprep.subr.bf16.mxu1 %v13471_v14  ;;  %v1426_v2 = vld [vmem:[#allocation2 + $0x2ab8] sm:$0xff]  ;;  %v13516_v57 = vcombine.low %v1413_v5, %v1417_v37  ;;  %v13518_v14 = vcombine.low %v1414_v8, %v1418_v62  ;;  %v13565_v5 = vcombine.high %v1461_v34, %v1465_v51  ;;  %v1469_v8 = vld [vmem:[#allocation2 + $0x2c10] sm:$0xff] }
 0x5d4   :  { %v13527_v16 = vcombine.high %v1422_v13, %v1426_v2  ;;  %v1473_v62 = vld [vmem:[#allocation2 + $0x2c30] sm:$0xff] }
 0x5d6   :  { %11143 = vmatpush1.bf16.msra.mxu0 %v13468_v24  ;;  %11676 = vmatpush1.bf16.msra.mxu1 %v13470_v23  ;;  %v1430_v24 = vld [vmem:[#allocation2 + $0x2ad8] sm:$0xff] }
 0x5d7   :  { %11144 = vmatprep.subr.bf16.mxu0 %v13477_v63  ;;  %11677 = vmatprep.subr.bf16.mxu1 %v13479_v15  ;;  %v1434_v23 = vld [vmem:[#allocation2 + $0x2af8] sm:$0xff]  ;;  %v13524_v63 = vcombine.low %v1421_v11, %v1425_v12  ;;  %v13526_v15 = vcombine.low %v1422_v13, %v1426_v2  ;;  %v13573_v11 = vcombine.high %v1469_v8, %v1473_v62  ;;  %v1477_v13 = vld [vmem:[#allocation2 + $0x2c50] sm:$0xff] }
 0x5d8   :  { %v13535_v6 = vcombine.high %v1430_v24, %v1434_v23  ;;  %v1481_v2 = vld [vmem:[#allocation2 + $0x2c70] sm:$0xff] }
 0x5da   :  { %11145 = vmatpush1.bf16.msra.mxu0 %v13476_v41  ;;  %11678 = vmatpush1.bf16.msra.mxu1 %v13478_v25  ;;  %v1438_v41 = vld [vmem:[#allocation2 + $0x2b18] sm:$0xff] }
 0x5db   :  { %11146 = vmatprep.subr.bf16.mxu0 %v13485_v9  ;;  %11679 = vmatprep.subr.bf16.mxu1 %v13487_v38  ;;  %v1442_v25 = vld [vmem:[#allocation2 + $0x2b38] sm:$0xff]  ;;  %v13532_v9 = vcombine.low %v1429_v19, %v1433_v1  ;;  %v13534_v38 = vcombine.low %v1430_v24, %v1434_v23  ;;  %v13581_v19 = vcombine.high %v1477_v13, %v1481_v2  ;;  %v1485_v24 = vld [vmem:[#allocation2 + $0x2c90] sm:$0xff] }
 0x5dc   :  { %v13543_v7 = vcombine.high %v1438_v41, %v1442_v25  ;;  %v1489_v23 = vld [vmem:[#allocation2 + $0x2cb0] sm:$0xff] }
 0x5de   :  { %11147 = vmatpush1.bf16.msra.mxu0 %v13484_v35  ;;  %11680 = vmatpush1.bf16.msra.mxu1 %v13486_v30  ;;  %v1446_v35 = vld [vmem:[#allocation2 + $0x2b58] sm:$0xff] }
 0x5df   :  { %11148 = vmatprep.subr.bf16.mxu0 %v13493_v36  ;;  %11681 = vmatprep.subr.bf16.mxu1 %v13495_v45  ;;  %v1450_v30 = vld [vmem:[#allocation2 + $0x2b78] sm:$0xff]  ;;  %v13540_v36 = vcombine.low %v1437_v43, %v1441_v32  ;;  %v13542_v45 = vcombine.low %v1438_v41, %v1442_v25  ;;  %v13589_v43 = vcombine.high %v1485_v24, %v1489_v23  ;;  %v1493_v41 = vld [vmem:[#allocation2 + $0x2cd0] sm:$0xff] }
 0x5e0   :  { %v13551_v18 = vcombine.high %v1446_v35, %v1450_v30  ;;  %v1497_v25 = vld [vmem:[#allocation2 + $0x2cf0] sm:$0xff] }
 0x5e2   :  { %11149 = vmatpush1.bf16.msra.mxu0 %v13492_v20  ;;  %11682 = vmatpush1.bf16.msra.mxu1 %v13494_v50  ;;  %v1454_v20 = vld [vmem:[#allocation2 + $0x2b98] sm:$0xff] }
 0x5e3   :  { %11150 = vmatprep.subr.bf16.mxu0 %v13501_v27  ;;  %11683 = vmatprep.subr.bf16.mxu1 %v13503_v52  ;;  %v1458_v50 = vld [vmem:[#allocation2 + $0x2bb8] sm:$0xff]  ;;  %v13548_v27 = vcombine.low %v1445_v42, %v1449_v39  ;;  %v13550_v52 = vcombine.low %v1446_v35, %v1450_v30  ;;  %v1501_v39 = vld [vmem:[#allocation2 + $0x2d10] sm:$0xff] }
 0x5e4   :  { %v13559_v54 = vcombine.high %v1454_v20, %v1458_v50  ;;  %v1505_v35 = vld [vmem:[#allocation2 + $0x2d30] sm:$0xff]  ;;  %v1502_v30 = vld [vmem:[#allocation2 + $0x2d18] sm:$0xff] }
 0x5e6   :  { %11151 = vmatpush1.bf16.msra.mxu0 %v13500_v48  ;;  %11684 = vmatpush1.bf16.msra.mxu1 %v13502_v10  ;;  %v1462_v48 = vld [vmem:[#allocation2 + $0x2bd8] sm:$0xff] }
 0x5e7   :  { %11152 = vmatprep.subr.bf16.mxu0 %v13509_v55  ;;  %11685 = vmatprep.subr.bf16.mxu1 %v13511_v60  ;;  %v1466_v10 = vld [vmem:[#allocation2 + $0x2bf8] sm:$0xff]  ;;  %v13556_v55 = vcombine.low %v1453_v47, %v1457_v56  ;;  %v13558_v60 = vcombine.low %v1454_v20, %v1458_v50  ;;  %v1509_v47 = vld [vmem:[#allocation2 + $0x2d50] sm:$0xff] }
 0x5e8   :  { %v13567_v37 = vcombine.high %v1462_v48, %v1466_v10  ;;  %v1513_v56 = vld [vmem:[#allocation2 + $0x2d70] sm:$0xff]  ;;  %v1510_v20 = vld [vmem:[#allocation2 + $0x2d58] sm:$0xff] }
 0x5e9   :  { %v1514_v50 = vld [vmem:[#allocation2 + $0x2d78] sm:$0xff] }
 0x5ea   :  { %11153 = vmatpush1.bf16.msra.mxu0 %v13508_v3  ;;  %11686 = vmatpush1.bf16.msra.mxu1 %v13510_v4  ;;  %v1470_v3 = vld [vmem:[#allocation2 + $0x2c18] sm:$0xff] }
 0x5eb   :  { %11154 = vmatprep.subr.bf16.mxu0 %v13517_v29  ;;  %11687 = vmatprep.subr.bf16.mxu1 %v13519_v0  ;;  %v1474_v4 = vld [vmem:[#allocation2 + $0x2c38] sm:$0xff]  ;;  %v13564_v29 = vcombine.low %v1461_v34, %v1465_v51  ;;  %v13566_v0 = vcombine.low %v1462_v48, %v1466_v10  ;;  %v1517_v34 = vld [vmem:[#allocation2 + $0x2d90] sm:$0xff] }
 0x5ec   :  { %v13575_v12 = vcombine.high %v1470_v3, %v1474_v4  ;;  %v1521_v51 = vld [vmem:[#allocation2 + $0x2db0] sm:$0xff]  ;;  %v1518_v48 = vld [vmem:[#allocation2 + $0x2d98] sm:$0xff] }
 0x5ed   :  { %v1522_v10 = vld [vmem:[#allocation2 + $0x2db8] sm:$0xff] }
 0x5ee   :  { %11155 = vmatpush1.bf16.msra.mxu0 %v13516_v57  ;;  %11688 = vmatpush1.bf16.msra.mxu1 %v13518_v14  ;;  %v1478_v57 = vld [vmem:[#allocation2 + $0x2c58] sm:$0xff] }
 0x5ef   :  { %11156 = vmatprep.subr.bf16.mxu0 %v13525_v21  ;;  %11689 = vmatprep.subr.bf16.mxu1 %v13527_v16  ;;  %v1482_v14 = vld [vmem:[#allocation2 + $0x2c78] sm:$0xff]  ;;  %v13572_v21 = vcombine.low %v1469_v8, %v1473_v62  ;;  %v13574_v16 = vcombine.low %v1470_v3, %v1474_v4  ;;  %v1525_v8 = vld [vmem:[#allocation2 + $0x2dd0] sm:$0xff] }
 0x5f0   :  { %v13583_v1 = vcombine.high %v1478_v57, %v1482_v14  ;;  %v1529_v62 = vld [vmem:[#allocation2 + $0x2df0] sm:$0xff]  ;;  %v1526_v3 = vld [vmem:[#allocation2 + $0x2dd8] sm:$0xff] }
 0x5f1   :  { %v1530_v4 = vld [vmem:[#allocation2 + $0x2df8] sm:$0xff] }
 0x5f2   :  { %11157 = vmatpush1.bf16.msra.mxu0 %v13524_v63  ;;  %11690 = vmatpush1.bf16.msra.mxu1 %v13526_v15  ;;  %v1486_v63 = vld [vmem:[#allocation2 + $0x2c98] sm:$0xff] }
 0x5f3   :  { %11158 = vmatprep.subr.bf16.mxu0 %v13533_v33  ;;  %11691 = vmatprep.subr.bf16.mxu1 %v13535_v6  ;;  %v1490_v15 = vld [vmem:[#allocation2 + $0x2cb8] sm:$0xff]  ;;  %v13580_v33 = vcombine.low %v1477_v13, %v1481_v2  ;;  %v13582_v6 = vcombine.low %v1478_v57, %v1482_v14  ;;  %v1533_v13 = vld [vmem:[#allocation2 + $0x2e10] sm:$0xff] }
 0x5f4   :  { %v13591_v32 = vcombine.high %v1486_v63, %v1490_v15  ;;  %v1537_v2 = vld [vmem:[#allocation2 + $0x2e30] sm:$0xff]  ;;  %v1534_v57 = vld [vmem:[#allocation2 + $0x2e18] sm:$0xff] }
 0x5f5   :  { %v1538_v14 = vld [vmem:[#allocation2 + $0x2e38] sm:$0xff] }
 0x5f6   :  { %11159 = vmatpush1.bf16.msra.mxu0 %v13532_v9  ;;  %11692 = vmatpush1.bf16.msra.mxu1 %v13534_v38  ;;  %v1494_v9 = vld [vmem:[#allocation2 + $0x2cd8] sm:$0xff] }
 0x5f7   :  { %11160 = vmatprep.subr.bf16.mxu0 %v13541_v49  ;;  %11693 = vmatprep.subr.bf16.mxu1 %v13543_v7  ;;  %v1498_v38 = vld [vmem:[#allocation2 + $0x2cf8] sm:$0xff]  ;;  %v13588_v49 = vcombine.low %v1485_v24, %v1489_v23  ;;  %v13597_v7 = vcombine.high %v1493_v41, %v1497_v25  ;;  %v1541_v24 = vld [vmem:[#allocation2 + $0x2e50] sm:$0xff] }
 0x5f8   :  { %v13599_v42 = vcombine.high %v1494_v9, %v1498_v38  ;;  %v1545_v23 = vld [vmem:[#allocation2 + $0x2e70] sm:$0xff] }
 0x5fa   :  { %11161 = vmatpush1.bf16.msra.mxu0 %v13540_v36  ;;  %11694 = vmatpush1.bf16.msra.mxu1 %v13542_v45  ;;  %v1506_v36 = vld [vmem:[#allocation2 + $0x2d38] sm:$0xff]  ;;  %v13596_v45 = vcombine.low %v1493_v41, %v1497_v25  ;;  %v1549_v41 = vld [vmem:[#allocation2 + $0x2e90] sm:$0xff] }
 0x5fb   :  { %11162 = vmatprep.subr.bf16.mxu0 %v13549_v58  ;;  %11695 = vmatprep.subr.bf16.mxu1 %v13551_v18  ;;  %v13598_v58 = vcombine.low %v1494_v9, %v1498_v38  ;;  %v13605_v18 = vcombine.high %v1501_v39, %v1505_v35  ;;  %v1553_v25 = vld [vmem:[#allocation2 + $0x2eb0] sm:$0xff]  ;;  %v1550_v9 = vld [vmem:[#allocation2 + $0x2e98] sm:$0xff] }
 0x5fc   :  { %v1554_v38 = vld [vmem:[#allocation2 + $0x2eb8] sm:$0xff] }
 0x5fe   :  { %11163 = vmatpush1.bf16.msra.mxu0 %v13548_v27  ;;  %11696 = vmatpush1.bf16.msra.mxu1 %v13550_v52  ;;  %v13604_v27 = vcombine.low %v1501_v39, %v1505_v35  ;;  %v13606_v52 = vcombine.low %v1502_v30, %v1506_v36  ;;  %v1557_v39 = vld [vmem:[#allocation2 + $0x2ed0] sm:$0xff] }
 0x5ff   :  { %11164 = vmatprep.subr.bf16.mxu0 %v13557_v22  ;;  %11697 = vmatprep.subr.bf16.mxu1 %v13559_v54  ;;  %v13613_v22 = vcombine.high %v1509_v47, %v1513_v56  ;;  %v13615_v54 = vcombine.high %v1510_v20, %v1514_v50  ;;  %v1561_v35 = vld [vmem:[#allocation2 + $0x2ef0] sm:$0xff] }
 0x602   :  { %11165 = vmatpush1.bf16.msra.mxu0 %v13556_v55  ;;  %11698 = vmatpush1.bf16.msra.mxu1 %v13558_v60  ;;  %v13612_v55 = vcombine.low %v1509_v47, %v1513_v56  ;;  %v13614_v60 = vcombine.low %v1510_v20, %v1514_v50  ;;  %v1565_v47 = vld [vmem:[#allocation2 + $0x2f10] sm:$0xff]  ;;  %v1566_v20 = vld [vmem:[#allocation2 + $0x2f18] sm:$0xff] }
 0x603   :  { %11166 = vmatprep.subr.bf16.mxu0 %v13565_v5  ;;  %11699 = vmatprep.subr.bf16.mxu1 %v13567_v37  ;;  %v13621_v5 = vcombine.high %v1517_v34, %v1521_v51  ;;  %v13623_v37 = vcombine.high %v1518_v48, %v1522_v10  ;;  %v1569_v56 = vld [vmem:[#allocation2 + $0x2f30] sm:$0xff]  ;;  %v1570_v50 = vld [vmem:[#allocation2 + $0x2f38] sm:$0xff] }
 0x606   :  { %11167 = vmatpush1.bf16.msra.mxu0 %v13564_v29  ;;  %11700 = vmatpush1.bf16.msra.mxu1 %v13566_v0  ;;  %v13620_v29 = vcombine.low %v1517_v34, %v1521_v51  ;;  %v13622_v0 = vcombine.low %v1518_v48, %v1522_v10  ;;  %v1573_v34 = vld [vmem:[#allocation2 + $0x2f50] sm:$0xff]  ;;  %v1574_v48 = vld [vmem:[#allocation2 + $0x2f58] sm:$0xff] }
 0x607   :  { %11177 = vmatprep.subr.bf16.mxu0 %v13573_v11  ;;  %11710 = vmatprep.subr.bf16.mxu1 %v13575_v12  ;;  %v13629_v11 = vcombine.high %v1525_v8, %v1529_v62  ;;  %v13631_v12 = vcombine.high %v1526_v3, %v1530_v4  ;;  %v1577_v51 = vld [vmem:[#allocation2 + $0x2f70] sm:$0xff]  ;;  %v1578_v10 = vld [vmem:[#allocation2 + $0x2f78] sm:$0xff] }
 0x609   :  { %11169 = vmatmul.mubr.bf16.vlgmr.msra.gmra.mrb[4].mxu0 %v14282_v17  ;;  %11702 = vmatmul.mubr.bf16.vlgmr.msra.gmra.mrb[4].mxu1 %v14282_v17  ;;  %v13590_v17 = vcombine.low %v1486_v63, %v1490_v15  ;;  %v1542_v63 = vld [vmem:[#allocation2 + $0x2e58] sm:$0xff] }
 0x60a   :  { %11178 = vmatpush1.bf16.msra.mxu0 %v13572_v21  ;;  %11711 = vmatpush1.bf16.msra.mxu1 %v13574_v16  ;;  %v13628_v21 = vcombine.low %v1525_v8, %v1529_v62  ;;  %v13630_v16 = vcombine.low %v1526_v3, %v1530_v4  ;;  %v1546_v15 = vld [vmem:[#allocation2 + $0x2e78] sm:$0xff]  ;;  %v1581_v8 = vld [vmem:[#allocation2 + $0x2f90] sm:$0xff] }
 0x60b   :  { %11179 = vmatprep.subr.bf16.mxu0 %v13581_v19  ;;  %11712 = vmatprep.subr.bf16.mxu1 %v13583_v1  ;;  %v13637_v19 = vcombine.high %v1533_v13, %v1537_v2  ;;  %v13639_v1 = vcombine.high %v1534_v57, %v1538_v14  ;;  %v1585_v62 = vld [vmem:[#allocation2 + $0x2fb0] sm:$0xff]  ;;  %v1582_v3 = vld [vmem:[#allocation2 + $0x2f98] sm:$0xff] }
 0x60c   :  { %11209 = vmatprep.mubr.bf16.mxu0 %v14286_v28  ;;  %11742 = vmatprep.mubr.bf16.mxu1 %v14286_v28  ;;  %v13607_v28 = vcombine.high %v1502_v30, %v1506_v36  ;;  %v1558_v30 = vld [vmem:[#allocation2 + $0x2ed8] sm:$0xff] }
 0x60d   :  { %v1562_v36 = vld [vmem:[#allocation2 + $0x2ef8] sm:$0xff] }
 0x60e   :  { %11180 = vmatpush1.bf16.msra.mxu0 %v13580_v33  ;;  %11713 = vmatpush1.bf16.msra.mxu1 %v13582_v6  ;;  %v13636_v33 = vcombine.low %v1533_v13, %v1537_v2  ;;  %v13638_v6 = vcombine.low %v1534_v57, %v1538_v14  ;;  %v1586_v4 = vld [vmem:[#allocation2 + $0x2fb8] sm:$0xff]  ;;  %v1589_v13 = vld [vmem:[#allocation2 + $0x2fd0] sm:$0xff] }
 0x60f   :  { %11181 = vmatprep.subr.bf16.mxu0 %v13589_v43  ;;  %11714 = vmatprep.subr.bf16.mxu1 %v13591_v32  ;;  %v13645_v43 = vcombine.high %v1541_v24, %v1545_v23  ;;  %v13647_v32 = vcombine.high %v1542_v63, %v1546_v15  ;;  %v1593_v2 = vld [vmem:[#allocation2 + $0x2ff0] sm:$0xff]  ;;  %v1590_v57 = vld [vmem:[#allocation2 + $0x2fd8] sm:$0xff] }
 0x610   :  { %v1594_v14 = vld [vmem:[#allocation2 + $0x2ff8] sm:$0xff] }
 0x612   :  { %11182 = vmatpush1.bf16.msra.mxu0 %v13588_v49  ;;  %11715 = vmatpush1.bf16.msra.mxu1 %v13590_v17  ;;  %v13644_v49 = vcombine.low %v1541_v24, %v1545_v23  ;;  %v13646_v17 = vcombine.low %v1542_v63, %v1546_v15  ;;  %v1597_v24 = vld [vmem:[#allocation2 + $0x3010] sm:$0xff]  ;;  %v1598_v63 = vld [vmem:[#allocation2 + $0x3018] sm:$0xff] }
 0x613   :  { %11183 = vmatprep.subr.bf16.mxu0 %v13597_v7  ;;  %11716 = vmatprep.subr.bf16.mxu1 %v13599_v42  ;;  %v13653_v7 = vcombine.high %v1549_v41, %v1553_v25  ;;  %v13655_v42 = vcombine.high %v1550_v9, %v1554_v38  ;;  %v1601_v23 = vld [vmem:[#allocation2 + $0x3030] sm:$0xff]  ;;  %v1602_v15 = vld [vmem:[#allocation2 + $0x3038] sm:$0xff] }
 0x616   :  { %11184 = vmatpush1.bf16.msra.mxu0 %v13596_v45  ;;  %11717 = vmatpush1.bf16.msra.mxu1 %v13598_v58  ;;  %v13652_v45 = vcombine.low %v1549_v41, %v1553_v25  ;;  %v13654_v58 = vcombine.low %v1550_v9, %v1554_v38  ;;  %v1605_v41 = vld [vmem:[#allocation2 + $0x3050] sm:$0xff]  ;;  %v1606_v9 = vld [vmem:[#allocation2 + $0x3058] sm:$0xff] }
 0x617   :  { %11185 = vmatprep.subr.bf16.mxu0 %v13605_v18  ;;  %11718 = vmatprep.subr.bf16.mxu1 %v13607_v28  ;;  %v13661_v18 = vcombine.high %v1557_v39, %v1561_v35  ;;  %v13663_v28 = vcombine.high %v1558_v30, %v1562_v36  ;;  %v1609_v25 = vld [vmem:[#allocation2 + $0x3070] sm:$0xff]  ;;  %v1610_v38 = vld [vmem:[#allocation2 + $0x3078] sm:$0xff] }
 0x61a   :  { %11186 = vmatpush1.bf16.msra.mxu0 %v13604_v27  ;;  %11719 = vmatpush1.bf16.msra.mxu1 %v13606_v52  ;;  %v13660_v27 = vcombine.low %v1557_v39, %v1561_v35  ;;  %v13662_v52 = vcombine.low %v1558_v30, %v1562_v36  ;;  %v1613_v39 = vld [vmem:[#allocation2 + $0x3090] sm:$0xff]  ;;  %v1614_v30 = vld [vmem:[#allocation2 + $0x3098] sm:$0xff] }
 0x61b   :  { %11187 = vmatprep.subr.bf16.mxu0 %v13613_v22  ;;  %11720 = vmatprep.subr.bf16.mxu1 %v13615_v54  ;;  %v13669_v22 = vcombine.high %v1565_v47, %v1569_v56  ;;  %v13671_v54 = vcombine.high %v1566_v20, %v1570_v50  ;;  %v1617_v35 = vld [vmem:[#allocation2 + $0x30b0] sm:$0xff]  ;;  %v1618_v36 = vld [vmem:[#allocation2 + $0x30b8] sm:$0xff] }
 0x61e   :  { %11188 = vmatpush1.bf16.msra.mxu0 %v13612_v55  ;;  %11721 = vmatpush1.bf16.msra.mxu1 %v13614_v60  ;;  %v13668_v55 = vcombine.low %v1565_v47, %v1569_v56  ;;  %v13670_v60 = vcombine.low %v1566_v20, %v1570_v50  ;;  %v1621_v47 = vld [vmem:[#allocation2 + $0x30d0] sm:$0xff]  ;;  %v1622_v20 = vld [vmem:[#allocation2 + $0x30d8] sm:$0xff] }
 0x61f   :  { %11189 = vmatprep.subr.bf16.mxu0 %v13621_v5  ;;  %11722 = vmatprep.subr.bf16.mxu1 %v13623_v37  ;;  %v13677_v5 = vcombine.high %v1573_v34, %v1577_v51  ;;  %v13679_v37 = vcombine.high %v1574_v48, %v1578_v10  ;;  %v1625_v56 = vld [vmem:[#allocation2 + $0x30f0] sm:$0xff]  ;;  %v1626_v50 = vld [vmem:[#allocation2 + $0x30f8] sm:$0xff] }
 0x622   :  { %11190 = vmatpush1.bf16.msra.mxu0 %v13620_v29  ;;  %11723 = vmatpush1.bf16.msra.mxu1 %v13622_v0  ;;  %v13676_v29 = vcombine.low %v1573_v34, %v1577_v51  ;;  %v13678_v0 = vcombine.low %v1574_v48, %v1578_v10  ;;  %v13726_v34 = vcombine.low %v1622_v20, %v1626_v50 }
 0x623   :  { %11191 = vmatprep.subr.bf16.mxu0 %v13629_v11  ;;  %11724 = vmatprep.subr.bf16.mxu1 %v13631_v12  ;;  %v13685_v11 = vcombine.high %v1581_v8, %v1585_v62  ;;  %v13687_v12 = vcombine.high %v1582_v3, %v1586_v4 }
 0x626   :  { %11192 = vmatpush1.bf16.msra.mxu0 %v13628_v21  ;;  %11725 = vmatpush1.bf16.msra.mxu1 %v13630_v16  ;;  %v13684_v21 = vcombine.low %v1581_v8, %v1585_v62  ;;  %v13686_v16 = vcombine.low %v1582_v3, %v1586_v4 }
 0x627   :  { %11193 = vmatprep.subr.bf16.mxu0 %v13637_v19  ;;  %11726 = vmatprep.subr.bf16.mxu1 %v13639_v1  ;;  %v13693_v19 = vcombine.high %v1589_v13, %v1593_v2  ;;  %v13695_v1 = vcombine.high %v1590_v57, %v1594_v14 }
 0x62a   :  { %11194 = vmatpush1.bf16.msra.mxu0 %v13636_v33  ;;  %11727 = vmatpush1.bf16.msra.mxu1 %v13638_v6  ;;  %v13692_v33 = vcombine.low %v1589_v13, %v1593_v2  ;;  %v13694_v6 = vcombine.low %v1590_v57, %v1594_v14 }
 0x62b   :  { %11195 = vmatprep.subr.bf16.mxu0 %v13645_v43  ;;  %11728 = vmatprep.subr.bf16.mxu1 %v13647_v32  ;;  %v13701_v43 = vcombine.high %v1597_v24, %v1601_v23  ;;  %v13703_v32 = vcombine.high %v1598_v63, %v1602_v15 }
 0x62e   :  { %11196 = vmatpush1.bf16.msra.mxu0 %v13644_v49  ;;  %11729 = vmatpush1.bf16.msra.mxu1 %v13646_v17  ;;  %v13700_v49 = vcombine.low %v1597_v24, %v1601_v23  ;;  %v13702_v17 = vcombine.low %v1598_v63, %v1602_v15 }
 0x62f   :  { %11197 = vmatprep.subr.bf16.mxu0 %v13653_v7  ;;  %11730 = vmatprep.subr.bf16.mxu1 %v13655_v42  ;;  %v13709_v7 = vcombine.high %v1605_v41, %v1609_v25  ;;  %v13711_v42 = vcombine.high %v1606_v9, %v1610_v38 }
 0x632   :  { %11198 = vmatpush1.bf16.msra.mxu0 %v13652_v45  ;;  %11731 = vmatpush1.bf16.msra.mxu1 %v13654_v58  ;;  %v13708_v45 = vcombine.low %v1605_v41, %v1609_v25  ;;  %v13710_v58 = vcombine.low %v1606_v9, %v1610_v38 }
 0x633   :  { %11199 = vmatprep.subr.bf16.mxu0 %v13661_v18  ;;  %11732 = vmatprep.subr.bf16.mxu1 %v13663_v28  ;;  %v13717_v18 = vcombine.high %v1613_v39, %v1617_v35  ;;  %v13719_v28 = vcombine.high %v1614_v30, %v1618_v36 }
 0x636   :  { %11200 = vmatpush1.bf16.msra.mxu0 %v13660_v27  ;;  %11733 = vmatpush1.bf16.msra.mxu1 %v13662_v52  ;;  %v13716_v27 = vcombine.low %v1613_v39, %v1617_v35  ;;  %v13725_v52 = vcombine.high %v1621_v47, %v1625_v56 }
 0x637   :  { %11201 = vmatprep.subr.bf16.mxu0 %v13669_v22  ;;  %11734 = vmatprep.subr.bf16.mxu1 %v13671_v54  ;;  %v13727_v22 = vcombine.high %v1622_v20, %v1626_v50  ;;  %v13724_v54 = vcombine.low %v1621_v47, %v1625_v56 }
 0x63a   :  { %11202 = vmatpush1.bf16.msra.mxu0 %v13668_v55  ;;  %11735 = vmatpush1.bf16.msra.mxu1 %v13670_v60 }
 0x63b   :  { %11203 = vmatprep.subr.bf16.mxu0 %v13677_v5  ;;  %11736 = vmatprep.subr.bf16.mxu1 %v13679_v37 }
 0x63e   :  { %11204 = vmatpush1.bf16.msra.mxu0 %v13676_v29  ;;  %11737 = vmatpush1.bf16.msra.mxu1 %v13678_v0 }
 0x63f   :  { %11205 = vmatprep.subr.bf16.mxu0 %v13685_v11  ;;  %11738 = vmatprep.subr.bf16.mxu1 %v13687_v12 }
 0x642   :  { %11206 = vmatpush1.bf16.msra.mxu0 %v13684_v21  ;;  %11739 = vmatpush1.bf16.msra.mxu1 %v13686_v16 }
 0x643   :  { %11207 = vmatprep.subr.bf16.mxu0 %v13693_v19  ;;  %11740 = vmatprep.subr.bf16.mxu1 %v13695_v1 }
 0x646   :  { %11208 = vmatpush1.bf16.msra.mxu0 %v13692_v33  ;;  %11741 = vmatpush1.bf16.msra.mxu1 %v13694_v6 }
 0x647   :  { %11218 = vmatprep.subr.bf16.mxu0 %v13701_v43  ;;  %11751 = vmatprep.subr.bf16.mxu1 %v13703_v32 }
 0x649   :  { %11210 = vmatmul.mubr.bf16.vlgmr.msra.gmra.mrb[4].mxu0 %v14294_v59  ;;  %11743 = vmatmul.mubr.bf16.vlgmr.msra.gmra.mrb[4].mxu1 %v14294_v59  ;;  %v13718_v59 = vcombine.low %v1614_v30, %v1618_v36 }
 0x64a   :  { %11219 = vmatpush1.bf16.msra.mxu0 %v13700_v49  ;;  %11752 = vmatpush1.bf16.msra.mxu1 %v13702_v17 }
 0x64b   :  { %11220 = vmatprep.subr.bf16.mxu0 %v13709_v7  ;;  %11753 = vmatprep.subr.bf16.mxu1 %v13711_v42 }
 0x64c   :  { %11250 = vmatprep.mubr.bf16.mxu0 %v14032_v61  ;;  %11783 = vmatprep.mubr.bf16.mxu1 %v14032_v61 }
 0x64e   :  { %11221 = vmatpush1.bf16.msra.mxu0 %v13708_v45  ;;  %11754 = vmatpush1.bf16.msra.mxu1 %v13710_v58 }
 0x64f   :  { %11222 = vmatprep.subr.bf16.mxu0 %v13717_v18  ;;  %11755 = vmatprep.subr.bf16.mxu1 %v13719_v28 }
 0x652   :  { %11223 = vmatpush1.bf16.msra.mxu0 %v13716_v27  ;;  %11756 = vmatpush1.bf16.msra.mxu1 %v13718_v59 }
 0x653   :  { %11224 = vmatprep.subr.bf16.mxu0 %v13725_v52  ;;  %11757 = vmatprep.subr.bf16.mxu1 %v13727_v22 }
 0x656   :  { %11225 = vmatpush1.bf16.msra.mxu0 %v13724_v54  ;;  %11758 = vmatpush1.bf16.msra.mxu1 %v13726_v34 }
 0x659   :  { %13730 = vmatmul.mubr.msk.bf16.vlgmr.msra.gmra.mrb[4].mxu0 %vm9656_vm0, %v14304_v26  ;;  %13731 = vmatmul.mubr.msk.bf16.vlgmr.msra.gmra.mrb[4].mxu1 %vm9656_vm0, %v14304_v26 }
 0x72c   :  { %v11252_v61 = vpop.f32.mrb[4].mxu0  ;;  %v11785_v48 = vpop.f32.mrb[4].mxu1 }
 0x72d   :  { %v11821_v51 = vsel %vm11792_vm1, %v11252_v61, 0.0  ;;  %v11254_v10 = vpop.f32.mrb[5].mxu0  ;;  %v11835_v60 = vsel %vm11792_vm1, %v11785_v48, 0.0  ;;  %v11787_v37 = vpop.f32.mrb[5].mxu1 }
 0x72e   :  { %v11822_v55 = vrot.slane %v11821_v51, 4  ;;  %v11828_v5 = vsel %vm11792_vm1, %v11254_v10, 0.0  ;;  %v11256_v8 = vpop.f32.mrb[6].mxu0  ;;  %v11836_v62 = vrot.slane %v11835_v60, 4  ;;  %v11842_v4 = vsel %vm11792_vm1, %v11787_v37, 0.0  ;;  %v11789_v29 = vpop.f32.mrb[6].mxu1 }
 0x72f   :  { %v11829_v3 = vrot.slane %v11828_v5, 4  ;;  %v11257_v0 = vpop.f32.mrb[7].mxu0  ;;  %v11843_v26 = vrot.slane %v11842_v4, 4  ;;  %v11790_v12 = vpop.f32.mrb[7].mxu1 }
 0x730   :  { %v11823_v11 = vadd.f32 %v11822_v55, %v11821_v51  ;;  %v11837_v13 = vadd.f32 %v11836_v62, %v11835_v60 }
 0x731   :  { %v11830_v2 = vadd.f32 %v11829_v3, %v11828_v5  ;;  %v11844_v14 = vadd.f32 %v11843_v26, %v11842_v4 }
 0x732   :  { %v11824_v57 = vrot.slane %v11823_v11, 2  ;;  %v11838_v21 = vrot.slane %v11837_v13, 2 }
 0x733   :  { %v11831_v16 = vrot.slane %v11830_v2, 2  ;;  %v11845_v1 = vrot.slane %v11844_v14, 2 }
 0x734   :  { %v11825_v19 = vadd.f32 %v11824_v57, %v11823_v11  ;;  %v11839_v24 = vadd.f32 %v11838_v21, %v11837_v13 }
 0x735   :  { %v11832_v23 = vadd.f32 %v11831_v16, %v11830_v2  ;;  %v11846_v15 = vadd.f32 %v11845_v1, %v11844_v14 }
 0x736   :  { %v11826_v63 = vrot.slane %v11825_v19, 1  ;;  %v11840_v33 = vrot.slane %v11839_v24, 1 }
 0x737   :  { %v11833_v6 = vrot.slane %v11832_v23, 1  ;;  %v11847_v32 = vrot.slane %v11846_v15, 1 }
 0x738   :  { %v11827_v43 = vadd.f32 %v11826_v63, %v11825_v19  ;;  %v11841_v41 = vadd.f32 %v11840_v33, %v11839_v24  ;;  %v11982_v24 = vsub.s32 4, %v14101_v44  ;;  %v11986_v63 = vsub.s32 5, %v14101_v44  ;;  %v13954_v33 = vld [vmem:[#allocation4] sm:$0xff] }
 0x739   :  { %v11834_v25 = vadd.f32 %v11833_v6, %v11832_v23  ;;  %v11848_v38 = vadd.f32 %v11847_v32, %v11846_v15  ;;  %v11990_v23 = vsub.s32 6, %v14101_v44  ;;  %v11994_v15 = vsub.s32 7, %v14101_v44 }
 0x73a   :  { %v11854_v9 = vmul.f32 0.5, %v11827_v43  ;;  %v11856_v49 = vmul.f32 0.5, %v11841_v41  ;;  %v11983_v6 = vrot.slane %v13954_v33, %v11982_v24 }
 0x73b   :  { %v11855_v17 = vmul.f32 0.5, %v11834_v25  ;;  %v11857_v42 = vmul.f32 0.5, %v11848_v38  ;;  %v11991_v32 = vrot.slane %v13954_v33, %v11990_v23 }
 0x73c   :  { %v11862_v7 = vsub.f32 %v11252_v61, %v11854_v9  ;;  %v11864_v39 = vsub.f32 %v11785_v48, %v11856_v49  ;;  %v13955_v9 = vld [vmem:[#allocation6] sm:$0xff]  ;;  %v11987_v49 = vrot.slane %v13954_v33, %v11986_v63 }
 0x73d   :  { %v14424_v35 = vsub.f32 %v11254_v10, %v11855_v17  ;;  %v14426_v36 = vsub.f32 %v11787_v37, %v11857_v42  ;;  %v12033_v38 = vrot.slane %v13955_v9, %v11982_v24 }
 0x73e   :  { %v11870_v30 = vmul.f32 %v11862_v7, %v11862_v7  ;;  %v11872_v45 = vmul.f32 %v11864_v39, %v11864_v39 }
 0x73f   :  { %v11871_v58 = vmul.f32 %v14424_v35, %v14424_v35  ;;  %v11873_v28 = vmul.f32 %v14426_v36, %v14426_v36 }
 0x740   :  { %v11902_v18 = vsel %vm11792_vm1, %v11870_v30, 0.0  ;;  %v11916_v56 = vsel %vm11792_vm1, %v11872_v45, 0.0  ;;  %v12041_v30 = vrot.slane %v13955_v9, %v11990_v23  ;;  %v11995_v45 = vrot.slane %v13954_v33, %v11994_v15 }
 0x741   :  { %v11903_v47 = vrot.slane %v11902_v18, 4  ;;  %v11909_v20 = vsel %vm11792_vm1, %v11871_v58, 0.0  ;;  %v11917_v50 = vrot.slane %v11916_v56, 4  ;;  %v11923_v59 = vsel %vm11792_vm1, %v11873_v28, 0.0 }
 0x742   :  { %v11910_v27 = vrot.slane %v11909_v20, 4  ;;  %v11924_v22 = vrot.slane %v11923_v59, 4 }
 0x743   :  { %v11904_v52 = vadd.f32 %v11903_v47, %v11902_v18  ;;  %v11918_v54 = vadd.f32 %v11917_v50, %v11916_v56  ;;  %v12037_v47 = vrot.slane %v13955_v9, %v11986_v63 }
 0x744   :  { %v11911_v34 = vadd.f32 %v11910_v27, %v11909_v20  ;;  %v11925_v51 = vadd.f32 %v11924_v22, %v11923_v59  ;;  %v12045_v20 = vrot.slane %v13955_v9, %v11994_v15 }
 0x745   :  { %v11905_v61 = vrot.slane %v11904_v52, 2  ;;  %v11919_v48 = vrot.slane %v11918_v54, 2 }
 0x746   :  { %v11912_v10 = vrot.slane %v11911_v34, 2  ;;  %v11926_v60 = vrot.slane %v11925_v51, 2 }
 0x747   :  { %v11906_v55 = vadd.f32 %v11905_v61, %v11904_v52  ;;  %v11920_v5 = vadd.f32 %v11919_v48, %v11918_v54 }
 0x748   :  { %v11913_v37 = vadd.f32 %v11912_v10, %v11911_v34  ;;  %v11927_v62 = vadd.f32 %v11926_v60, %v11925_v51 }
 0x749   :  { %v11907_v8 = vrot.slane %v11906_v55, 1  ;;  %v11921_v3 = vrot.slane %v11920_v5, 1 }
 0x74a   :  { %v11914_v4 = vrot.slane %v11913_v37, 1  ;;  %v11928_v0 = vrot.slane %v11927_v62, 1 }
 0x74b   :  { %v11908_v29 = vadd.f32 %v11907_v8, %v11906_v55  ;;  %v11922_v11 = vadd.f32 %v11921_v3, %v11920_v5  ;;  %v12142_v8 = vrot.slane %v12134_v46, %v14104_v53 }
 0x74c   :  { %v11915_v26 = vadd.f32 %v11914_v4, %v11913_v37  ;;  %v11929_v13 = vadd.f32 %v11928_v0, %v11927_v62 }
 0x74d   :  { %v11934_v12 = vmul.f32 0.5, %v11908_v29  ;;  %v11936_v2 = vmul.f32 0.5, %v11922_v11 }
 0x74e   :  { %v11935_v57 = vmul.f32 0.5, %v11915_v26  ;;  %v11937_v21 = vmul.f32 0.5, %v11929_v13 }
 0x74f   :  { %v11942_v14 = vadd.f32 1e-05, %v11934_v12  ;;  %v11944_v16 = vadd.f32 1e-05, %v11936_v2 }
 0x750   :  { %v11943_v19 = vadd.f32 1e-05, %v11935_v57  ;;  %v11945_v1 = vadd.f32 1e-05, %v11937_v21 }
 0x751   :  { %13946 = vrsqrt.f32 %v11942_v14 }
 0x752   :  { %13948 = vrsqrt.f32 %v11944_v16 }
 0x753   :  { %13950 = vrsqrt.f32 %v11943_v19 }
 0x754   :  { %13952 = vrsqrt.f32 %v11945_v1 }
 0x75b   :  { %v13947_v43 = vpop.eup %13946 }
 0x75c   :  { %v13949_v41 = vpop.eup %13948  ;;  %v11958_v25 = vmul.f32 %v13947_v43, %v11862_v7 }
 0x75d   :  { %v13951_v17 = vpop.eup %13950  ;;  %v11960_v42 = vmul.f32 %v13949_v41, %v11864_v39 }
 0x75e   :  { %v13953_v58 = vpop.eup %13952  ;;  %v12008_v18 = vmul.f32 %v11983_v6, %v11958_v25  ;;  %v11959_v28 = vmul.f32 %v13951_v17, %v14424_v35 }
 0x75f   :  { %v12010_v56 = vmul.f32 %v11991_v32, %v11960_v42  ;;  %v11961_v44 = vmul.f32 %v13953_v58, %v14426_v36 }
 0x760   :  { %v12058_v50 = vadd.f32 %v12033_v38, %v12008_v18  ;;  %v12009_v27 = vmul.f32 %v11987_v49, %v11959_v28 }
 0x761   :  { %v12060_v59 = vadd.f32 %v12041_v30, %v12010_v56  ;;  %v12011_v7 = vmul.f32 %v11995_v45, %v11961_v44 }
 0x762   :  { %vm12066_vm6 = vcmp.gt.f32.partialorder %v12058_v50, 0.0  ;;  %v12074_v52 = vmul.f32 0.2, %v12058_v50  ;;  %v12059_v22 = vadd.f32 %v12037_v47, %v12009_v27 }
 0x763   :  { %vm12068_vm7 = vcmp.gt.f32.partialorder %v12060_v59, 0.0  ;;  %v12076_v39 = vmul.f32 0.2, %v12060_v59  ;;  %v12061_v54 = vadd.f32 %v12045_v20, %v12011_v7 }
 0x764   :  { %v12082_v34 = vsel %vm12066_vm6, %v12058_v50, %v12074_v52  ;;  %vm12067_vm8 = vcmp.gt.f32.partialorder %v12059_v22, 0.0  ;;  %v12075_v61 = vmul.f32 0.2, %v12059_v22 }
 0x765   :  { %v12084_v51 = vsel %vm12068_vm7, %v12060_v59, %v12076_v39  ;;  %vm12069_vm9 = vcmp.gt.f32.partialorder %v12061_v54, 0.0  ;;  %v12077_v35 = vmul.f32 0.2, %v12061_v54 }
 0x766   :  { %v12083_v48 = vsel %vm12067_vm8, %v12059_v22, %v12075_v61 }
 0x767   :  { %v13734_v10 = vpack.c.bf16 %v12083_v48, %v12082_v34  ;;  %v12085_v36 = vsel %vm12069_vm9, %v12061_v54, %v12077_v35 }
 0x768   :  { %v13735_v55 = vpack.c.bf16 %v12085_v36, %v12084_v51 }
 0x769   :  { %v12126_v60 = vrot.slane %v13734_v10, %v14104_v53 }
 0x76a   :  { %v12133_v5 = vrot.slane %v13735_v55, %v14104_v53 }
 0x76c   :  { %v12135_v37 = vcombine.low %v12126_v60, %v12133_v5 }
 0x76e   :  { %v12149_v62 = vrot.slane %v12135_v37, %v14104_v53 }
 0x770   :  { %v12150_v3 = vcombine.low %v12142_v8, %v12149_v62 }
 0x772   :  { %12152 = vst [vmem:[%s14456_s4] sm:$0xff] %v12150_v3 }
 0x773   :  { %12157 = vsyncpa [#allocation3], 1 }
 0x774   :  { %12158 = vsyncpa [#allocation5], 1 }

</bundles_post_ra>
